<compile_context>
chip_gen: v7x
topology: tpu7x:2x2x1
jax: 0.10.0
libtpu: 0.0.40
codegen_flags: <defaults>
</compile_context>

<pallas_src>
import functools

import jax
import jax.numpy as jnp
from jax.experimental import pallas as pl
from jax.experimental.pallas import tpu as pltpu

# ----------------------------- configuration ------------------------------
B = 2            # batch
H = W = 32       # full resolution (must be multiple of 32, per module assert)
HF, WF = H // 2, W // 2       # matching / feature resolution (scale 1)
HWF = HF * WF
CFEAT = 32       # matching feature channels
M_BINS = 64      # num_depth_bins (PairNet requires 64)
H1 = 64          # decoder hidden width
MIN_DEPTH = 0.5
MAX_DEPTH = 10.0
FRAMES_TO_LOAD = [0, -1]
N_LOOKUP = len(FRAMES_TO_LOAD) - 1


# ------------------------- Pallas kernel body -------------------------------
def cost_decoder_kernel(fref_ref, fwarp_ref, w1_ref, b1_ref, w2_ref, b2_ref,
                        depth_ref, disp_ref, *, min_inv, max_inv, m_sub):
    # fref:  (1, C, hw)        f32  reference matching features
    # fwarp: (1, N, C, M, hw)  bf16 warped lookup-frame features (per plane m)
    # outs:  depth/disp (1, 1, hw) f32
    _, n, c, m, hw = fwarp_ref.shape

    # matching cost = mean over (N lookup frames, C channels) of fwarp * fref.
    # Built per M-subtile so each (m_sub, hw) f32 accumulator stays in vregs
    # across the whole N*C FMA loop; the full (M, hw) cost is assembled once.
    cost_chunks = []
    for ms in range(m // m_sub):
        acc = jnp.zeros((m_sub, hw), jnp.float32)
        for ni in range(n):
            for ci in range(c):
                fr = fref_ref[0, pl.ds(ci, 1), :]                       # (1, hw) f32
                fw = fwarp_ref[0, ni, ci, ms * m_sub:(ms + 1) * m_sub, :]
                acc = acc + fw.astype(jnp.float32) * fr                 # f32 FMA
        cost_chunks.append(acc)
    cost = jnp.concatenate(cost_chunks, axis=0)                         # (M, hw)
    # NOTE: 1/(N*C) normalization is folded into w1 by the wrapper.

    # decoder: two MXU matmuls over the depth-bin axis (1x1 conv / MLP).
    h1 = jnp.dot(w1_ref[...], cost, preferred_element_type=jnp.float32)
    h1 = jnp.maximum(h1 + b1_ref[...], 0.0)                             # (H1, hw)
    logits = jnp.dot(w2_ref[...], h1, preferred_element_type=jnp.float32)
    logits = logits + b2_ref[...]                                       # (1, hw)

    sig = jax.nn.sigmoid(logits)
    inv_depth = min_inv + (max_inv - min_inv) * sig
    depth_ref[0] = pl.reciprocal(inv_depth)          # exact 1/x for parity
    # disp = 1/(depth + 1e-8) == inv_depth/(1 + 1e-8*inv_depth) ~= inv_depth
    disp_ref[0] = inv_depth


# ---------------------------- Pallas wrapper --------------------------------
def _pick_hw_block(hw, n, c, m, itemsize, budget_bytes=4 * 1024 * 1024):
    """Largest multiple-of-128 divisor of hw whose fwarp block fits the budget."""
    best = None
    for d in range(128, hw + 1, 128):
        if hw % d == 0 and n * c * m * d * itemsize <= budget_bytes:
            best = d
    if best is None:
        best = 128 if hw % 128 == 0 else hw
    return best


def cost_decoder_pallas(f_ref, f_warp, w1, b1, w2, b2, *, min_depth, max_depth):
    # f_ref: (B, C, HW) f32   f_warp: (B, N, C, M, HW) bf16 -> depth/disp (B,1,HW)
    b, c, hw = f_ref.shape
    _, n, _, m, _ = f_warp.shape
    h1 = w1.shape[0]
    itemsize = jnp.dtype(f_warp.dtype).itemsize
    hw_block = _pick_hw_block(hw, n, c, m, itemsize)
    m_sub = 8 if m % 8 == 0 else m

    # fold the 1/(N*C) matching-cost mean into the (small, constant) w1.
    w1_s = (w1 * (1.0 / float(n * c))).astype(jnp.float32)

    kern = functools.partial(cost_decoder_kernel,
                             min_inv=1.0 / max_depth, max_inv=1.0 / min_depth,
                             m_sub=m_sub)

    flops = 2 * b * n * c * m * hw + 2 * b * h1 * m * hw + 2 * b * h1 * hw
    bytes_accessed = (b * n * c * m * hw * itemsize     # fwarp (dominant)
                      + b * c * hw * 4                  # fref
                      + 2 * b * hw * 4                  # depth + disp
                      + (h1 * m + h1 + h1 + 1) * 4)     # weights
    cost_est = pl.CostEstimate(flops=flops, transcendentals=2 * b * hw,
                               bytes_accessed=bytes_accessed)

    return pl.pallas_call(
        kern,
        out_shape=(jax.ShapeDtypeStruct((b, 1, hw), jnp.float32),
                   jax.ShapeDtypeStruct((b, 1, hw), jnp.float32)),
        grid_spec=pltpu.PrefetchScalarGridSpec(
            num_scalar_prefetch=0, grid=(b, hw // hw_block),
            in_specs=[pl.BlockSpec((1, c, hw_block), lambda i, j: (i, 0, j)),
                      pl.BlockSpec((1, n, c, m, hw_block),
                                   lambda i, j: (i, 0, 0, 0, j)),
                      pl.BlockSpec((h1, m), lambda i, j: (0, 0)),
                      pl.BlockSpec((h1, 1), lambda i, j: (0, 0)),
                      pl.BlockSpec((1, h1), lambda i, j: (0, 0)),
                      pl.BlockSpec((1, 1), lambda i, j: (0, 0))],
            out_specs=[pl.BlockSpec((1, 1, hw_block), lambda i, j: (i, 0, j)),
                       pl.BlockSpec((1, 1, hw_block), lambda i, j: (i, 0, j))]),
        compiler_params=pltpu.CompilerParams(
            dimension_semantics=("parallel", "parallel"),
            vmem_limit_bytes=32 * 1024 * 1024),
        cost_estimate=cost_est,
    )(f_ref, f_warp, w1_s, b1, w2, b2)


# ------------------------------ JAX glue ------------------------------------
def avgpool2(x):
    # x: (..., C, H, W) -> (..., C, H/2, W/2)
    shp = x.shape
    x = x.reshape(shp[:-2] + (shp[-2] // 2, 2, shp[-1] // 2, 2))
    return x.mean(axis=(-3, -1))


def extract_features(ref_nchw, look_nchw, w_feat, b_feat):
    # Tiny placeholder 1x1-conv encoder kept in XLA (a pallas_call here is pure
    # overhead at (32x3)@(3xP); revisit when the real MnasNet encoder lands).
    ref_ds = avgpool2(ref_nchw)                                   # (B,3,HF,WF)
    look_ds = avgpool2(look_nchw)                                 # (B,N,3,HF,WF)

    def conv1x1(x):
        y = jnp.einsum("oc,...chw->...ohw", w_feat, x)
        y = y + b_feat.reshape((1,) * (y.ndim - 3) + (-1, 1, 1))
        return jax.nn.relu(y)

    f_ref = conv1x1(ref_ds).reshape(B, CFEAT, HWF)                # (B,C,HW)
    f_look = conv1x1(look_ds).reshape(B, N_LOOKUP, CFEAT, HWF)    # (B,N,C,HW)
    return f_ref, f_look


def bilinear_sample_cf(img_flat, u, v):
    # img_flat: (C, HF*WF) channels-first; u, v: (M, HW) pixel coords; border clamp.
    # TODO(synk): F.grid_sample gather stays in plain JAX (data-dependent gather
    # not expressed with BlockSpec index maps); in-kernel VMEM gather is the
    # remaining structural optimization.
    u0f = jnp.floor(u)
    v0f = jnp.floor(v)
    du = u - u0f
    dv = v - v0f
    u0 = jnp.clip(u0f.astype(jnp.int32), 0, WF - 1)
    u1 = jnp.clip(u0f.astype(jnp.int32) + 1, 0, WF - 1)
    v0 = jnp.clip(v0f.astype(jnp.int32), 0, HF - 1)
    v1 = jnp.clip(v0f.astype(jnp.int32) + 1, 0, HF - 1)

    def gather(vi, ui):
        return jnp.take(img_flat, vi * WF + ui, axis=1)   # (C, M, HW)

    w00 = ((1 - du) * (1 - dv))[None]
    w01 = (du * (1 - dv))[None]
    w10 = ((1 - du) * dv)[None]
    w11 = (du * dv)[None]
    return (gather(v0, u0) * w00 + gather(v0, u1) * w01 +
            gather(v1, u0) * w10 + gather(v1, u1) * w11)  # (C, M, HW)


def make_depth_bins():
    inv = jnp.linspace(1.0 / MAX_DEPTH, 1.0 / MIN_DEPTH, M_BINS)
    return 1.0 / inv            # inverse-depth binning ("inverse", M=64)


def pairnet_eval_forward(data, params):
    """Mirrors baseline_pairnet_eval.forward(data, frames_to_load, is_verbose=False)."""
    input_color = data[("color", 0, 0)]                              # (B,3,H,W)
    lookup_frames = jnp.stack(
        [data[("color", i, 0)] for i in FRAMES_TO_LOAD[1:]], axis=1)  # (B,N,3,H,W)

    # --- cal_poses: relative_pose[fi] = pose[fi] @ pose_inv[0] (tiny: plain XLA) ---
    poses = jnp.stack([data[("pose", i)] for i in FRAMES_TO_LOAD[1:]], axis=1)
    relative_poses = jnp.einsum("bnij,bjk->bnik", poses, data[("pose_inv", 0)])

    invK_ref = data[("inv_K", 1)]                                      # (B,4,4)
    Ks_src = jnp.stack([data[("K", 1)] for _ in FRAMES_TO_LOAD[1:]], 1)  # (B,N,4,4)

    # --- encoder: feature extraction (XLA einsum; tiny placeholder conv) ---
    f_ref, f_look = extract_features(input_color, lookup_frames,
                                     params["w_feat"], params["b_feat"])

    # --- encoder: plane-sweep warp coordinates (glue) ---
    depth_bins = make_depth_bins()
    ys, xs = jnp.meshgrid(jnp.arange(HF, dtype=jnp.float32),
                          jnp.arange(WF, dtype=jnp.float32), indexing="ij")
    pix = jnp.stack([xs.reshape(-1), ys.reshape(-1),
                     jnp.ones(HWF, jnp.float32)], axis=0)              # (3,HW)
    cam_dirs = jnp.einsum("bij,jp->bip", invK_ref[:, :3, :3], pix)     # (B,3,HW)
    cam_pts = cam_dirs[:, None] * depth_bins[None, :, None, None]      # (B,M,3,HW)
    cam_h = jnp.concatenate(
        [cam_pts, jnp.ones((B, M_BINS, 1, HWF), jnp.float32)], axis=2)
    x_src = jnp.einsum("bnij,bmjp->bnmip", relative_poses, cam_h)      # (B,N,M,4,HW)
    proj = jnp.einsum("bnij,bnmjp->bnmip",
                      Ks_src[:, :, :3, :3], x_src[:, :, :, :3, :])     # (B,N,M,3,HW)
    z = jnp.clip(proj[:, :, :, 2], 1e-6, None)
    u = proj[:, :, :, 0] / z
    v = proj[:, :, :, 1] / z

    # warped lookup features, channels-first (B, N, C, M, HW), cast to bf16 so
    # the dominant HBM stream into the fused kernel is halved; the mean over N
    # and C happens inside the kernel in f32.
    warped = jax.vmap(jax.vmap(bilinear_sample_cf))(f_look, u, v)
    warped = warped.astype(jnp.bfloat16)

    # --- fused matching cost volume + depth decoder (one Pallas call) ---
    depth_f, disp_f = cost_decoder_pallas(
        f_ref, warped, params["w1"], params["b1"], params["w2"], params["b2"],
        min_depth=MIN_DEPTH, max_depth=MAX_DEPTH)                      # (B,1,HW)

    depth_feat = depth_f.reshape(B, 1, HF, WF)
    disp_feat = disp_f.reshape(B, 1, HF, WF)
    # TODO(synk): full-res U-Net decoder upsampling path simplified to nearest resize.
    depth_full = jnp.repeat(jnp.repeat(depth_feat, 2, axis=2), 2, axis=3)
    disp_full = jnp.repeat(jnp.repeat(disp_feat, 2, axis=2), 2, axis=3)

    return {"disp": disp_full, "depth": depth_full}


# ------------------------------- main --------------------------------------
if __name__ == "__main__":
    key = jax.random.PRNGKey(0)
    ks = jax.random.split(key, 10)

    # deterministic parameters (placeholder encoder/decoder weights)
    params = {
        "w_feat": 0.1 * jax.random.normal(ks[0], (CFEAT, 3), jnp.float32),
        "b_feat": 0.01 * jax.random.normal(ks[1], (CFEAT,), jnp.float32),
        "w1": 0.1 * jax.random.normal(ks[2], (H1, M_BINS), jnp.float32),
        "b1": 0.01 * jax.random.normal(ks[3], (H1, 1), jnp.float32),
        "w2": 0.1 * jax.random.normal(ks[4], (1, H1), jnp.float32),
        "b2": 0.01 * jax.random.normal(ks[5], (1, 1), jnp.float32),
    }

    # deterministic inputs (PyTorch NCHW convention for colors)
    color0 = jax.random.uniform(ks[6], (B, 3, H, W), jnp.float32)
    color1 = jax.random.uniform(ks[7], (B, 3, H, W), jnp.float32)

    eye = jnp.eye(4, dtype=jnp.float32)
    pose0 = jnp.tile(eye[None], (B, 1, 1))
    pose_m1 = pose0.at[:, 0, 3].set(0.1).at[:, 1, 3].set(-0.05)
    pose_inv0 = jnp.tile(eye[None], (B, 1, 1))

    K = jnp.array([[float(WF), 0.0, WF / 2.0, 0.0],
                   [0.0, float(HF), HF / 2.0, 0.0],
                   [0.0, 0.0, 1.0, 0.0],
                   [0.0, 0.0, 0.0, 1.0]], jnp.float32)
    invK = jnp.linalg.inv(K)
    K_b = jnp.tile(K[None], (B, 1, 1))
    invK_b = jnp.tile(invK[None], (B, 1, 1))

    data = {
        ("color", 0, 0): color0,
        ("color", -1, 0): color1,
        ("pose", -1): pose_m1,
        ("pose_inv", 0): pose_inv0,
        ("K", 1): K_b,
        ("inv_K", 1): invK_b,
        "depth_min": jnp.float32(MIN_DEPTH),
        "depth_max": jnp.float32(MAX_DEPTH),
    }

    out = pairnet_eval_forward(data, params)
    jax.block_until_ready(out["depth"])
    jax.block_until_ready(out["disp"])

    assert out["depth"].shape == (B, 1, H, W)
    assert out["disp"].shape == (B, 1, H, W)
    assert bool(jnp.all(jnp.isfinite(out["depth"])))
    assert bool(jnp.all(jnp.isfinite(out["disp"])))
    print("KERNEL_OK")
</pallas_src>

<mosaic_0001>
module attributes {stable_mosaic.version = 11 : i64} {
  func.func @cost_decoder_kernel(%arg0: i32, %arg1: i32, %arg2: memref<1x32x256xf32, #tpu.memory_space<vmem>>, %arg3: memref<1x1x32x64x256xbf16, #tpu.memory_space<vmem>>, %arg4: memref<64x64xf32, #tpu.memory_space<vmem>>, %arg5: memref<64x1xf32, #tpu.memory_space<vmem>>, %arg6: memref<1x64xf32, #tpu.memory_space<vmem>>, %arg7: memref<1x1xf32, #tpu.memory_space<vmem>>, %arg8: memref<1x1x256xf32, #tpu.memory_space<vmem>>, %arg9: memref<1x1x256xf32, #tpu.memory_space<vmem>>) attributes {dimension_semantics = [#tpu.dimension_semantics<parallel>, #tpu.dimension_semantics<parallel>], iteration_bounds = array<i64: 2, 1>, scalar_prefetch = 0 : i64, scratch_operands = 0 : i64, tpu.core_type = #tpu.core_type<tc>, window_params = [{transform_indices = @transform_0, window_bounds = array<i64: 1, 32, 256>}, {transform_indices = @transform_1, window_bounds = array<i64: 1, 1, 32, 64, 256>}, {pipeline_mode = #tpu.pipeline_mode<synchronous>, transform_indices = @transform_2, window_bounds = array<i64: 64, 64>}, {pipeline_mode = #tpu.pipeline_mode<synchronous>, transform_indices = @transform_3, window_bounds = array<i64: 64, 1>}, {pipeline_mode = #tpu.pipeline_mode<synchronous>, transform_indices = @transform_4, window_bounds = array<i64: 1, 64>}, {pipeline_mode = #tpu.pipeline_mode<synchronous>, transform_indices = @transform_5, window_bounds = array<i64: 1, 1>}, {transform_indices = @transform_6, window_bounds = array<i64: 1, 1, 256>}, {transform_indices = @transform_7, window_bounds = array<i64: 1, 1, 256>}]} {
    %cst = arith.constant 0.000000e+00 : f32
    %0 = vector.broadcast %cst : f32 to vector<8x256xf32>
    %c0 = arith.constant 0 : index
    %c0_0 = arith.constant 0 : index
    %c0_1 = arith.constant 0 : index
    %1 = vector.load %arg2[%c0, %c0_0, %c0_1] : memref<1x32x256xf32, #tpu.memory_space<vmem>>, vector<1x1x256xf32>
    %2 = vector.shape_cast %1 : vector<1x1x256xf32> to vector<1x256xf32>
    %c0_2 = arith.constant 0 : index
    %c0_3 = arith.constant 0 : index
    %c0_4 = arith.constant 0 : index
    %c0_5 = arith.constant 0 : index
    %c0_6 = arith.constant 0 : index
    %3 = vector.load %arg3[%c0_2, %c0_3, %c0_4, %c0_5, %c0_6] : memref<1x1x32x64x256xbf16, #tpu.memory_space<vmem>>, vector<1x1x1x8x256xbf16>
    %4 = vector.shape_cast %3 : vector<1x1x1x8x256xbf16> to vector<8x256xbf16>
    %5 = arith.extf %4 : vector<8x256xbf16> to vector<8x256xf32>
    %6 = vector.broadcast %2 : vector<1x256xf32> to vector<8x256xf32>
    %7 = arith.mulf %5, %6 : vector<8x256xf32>
    %8 = arith.addf %0, %7 : vector<8x256xf32>
    %c0_7 = arith.constant 0 : index
    %c1 = arith.constant 1 : index
    %c0_8 = arith.constant 0 : index
    %9 = vector.load %arg2[%c0_7, %c1, %c0_8] : memref<1x32x256xf32, #tpu.memory_space<vmem>>, vector<1x1x256xf32>
    %10 = vector.shape_cast %9 : vector<1x1x256xf32> to vector<1x256xf32>
    %c0_9 = arith.constant 0 : index
    %c0_10 = arith.constant 0 : index
    %c1_11 = arith.constant 1 : index
    %c0_12 = arith.constant 0 : index
    %c0_13 = arith.constant 0 : index
    %11 = vector.load %arg3[%c0_9, %c0_10, %c1_11, %c0_12, %c0_13] : memref<1x1x32x64x256xbf16, #tpu.memory_space<vmem>>, vector<1x1x1x8x256xbf16>
    %12 = vector.shape_cast %11 : vector<1x1x1x8x256xbf16> to vector<8x256xbf16>
    %13 = arith.extf %12 : vector<8x256xbf16> to vector<8x256xf32>
    %14 = vector.broadcast %10 : vector<1x256xf32> to vector<8x256xf32>
    %15 = arith.mulf %13, %14 : vector<8x256xf32>
    %16 = arith.addf %8, %15 : vector<8x256xf32>
    %c0_14 = arith.constant 0 : index
    %c2 = arith.constant 2 : index
    %c0_15 = arith.constant 0 : index
    %17 = vector.load %arg2[%c0_14, %c2, %c0_15] : memref<1x32x256xf32, #tpu.memory_space<vmem>>, vector<1x1x256xf32>
    %18 = vector.shape_cast %17 : vector<1x1x256xf32> to vector<1x256xf32>
    %c0_16 = arith.constant 0 : index
    %c0_17 = arith.constant 0 : index
    %c2_18 = arith.constant 2 : index
    %c0_19 = arith.constant 0 : index
    %c0_20 = arith.constant 0 : index
    %19 = vector.load %arg3[%c0_16, %c0_17, %c2_18, %c0_19, %c0_20] : memref<1x1x32x64x256xbf16, #tpu.memory_space<vmem>>, vector<1x1x1x8x256xbf16>
    %20 = vector.shape_cast %19 : vector<1x1x1x8x256xbf16> to vector<8x256xbf16>
    %21 = arith.extf %20 : vector<8x256xbf16> to vector<8x256xf32>
    %22 = vector.broadcast %18 : vector<1x256xf32> to vector<8x256xf32>
    %23 = arith.mulf %21, %22 : vector<8x256xf32>
    %24 = arith.addf %16, %23 : vector<8x256xf32>
    %c0_21 = arith.constant 0 : index
    %c3 = arith.constant 3 : index
    %c0_22 = arith.constant 0 : index
    %25 = vector.load %arg2[%c0_21, %c3, %c0_22] : memref<1x32x256xf32, #tpu.memory_space<vmem>>, vector<1x1x256xf32>
    %26 = vector.shape_cast %25 : vector<1x1x256xf32> to vector<1x256xf32>
    %c0_23 = arith.constant 0 : index
    %c0_24 = arith.constant 0 : index
    %c3_25 = arith.constant 3 : index
    %c0_26 = arith.constant 0 : index
    %c0_27 = arith.constant 0 : index
    %27 = vector.load %arg3[%c0_23, %c0_24, %c3_25, %c0_26, %c0_27] : memref<1x1x32x64x256xbf16, #tpu.memory_space<vmem>>, vector<1x1x1x8x256xbf16>
    %28 = vector.shape_cast %27 : vector<1x1x1x8x256xbf16> to vector<8x256xbf16>
    %29 = arith.extf %28 : vector<8x256xbf16> to vector<8x256xf32>
    %30 = vector.broadcast %26 : vector<1x256xf32> to vector<8x256xf32>
    %31 = arith.mulf %29, %30 : vector<8x256xf32>
    %32 = arith.addf %24, %31 : vector<8x256xf32>
    %c0_28 = arith.constant 0 : index
    %c4 = arith.constant 4 : index
    %c0_29 = arith.constant 0 : index
    %33 = vector.load %arg2[%c0_28, %c4, %c0_29] : memref<1x32x256xf32, #tpu.memory_space<vmem>>, vector<1x1x256xf32>
    %34 = vector.shape_cast %33 : vector<1x1x256xf32> to vector<1x256xf32>
    %c0_30 = arith.constant 0 : index
    %c0_31 = arith.constant 0 : index
    %c4_32 = arith.constant 4 : index
    %c0_33 = arith.constant 0 : index
    %c0_34 = arith.constant 0 : index
    %35 = vector.load %arg3[%c0_30, %c0_31, %c4_32, %c0_33, %c0_34] : memref<1x1x32x64x256xbf16, #tpu.memory_space<vmem>>, vector<1x1x1x8x256xbf16>
    %36 = vector.shape_cast %35 : vector<1x1x1x8x256xbf16> to vector<8x256xbf16>
    %37 = arith.extf %36 : vector<8x256xbf16> to vector<8x256xf32>
    %38 = vector.broadcast %34 : vector<1x256xf32> to vector<8x256xf32>
    %39 = arith.mulf %37, %38 : vector<8x256xf32>
    %40 = arith.addf %32, %39 : vector<8x256xf32>
    %c0_35 = arith.constant 0 : index
    %c5 = arith.constant 5 : index
    %c0_36 = arith.constant 0 : index
    %41 = vector.load %arg2[%c0_35, %c5, %c0_36] : memref<1x32x256xf32, #tpu.memory_space<vmem>>, vector<1x1x256xf32>
    %42 = vector.shape_cast %41 : vector<1x1x256xf32> to vector<1x256xf32>
    %c0_37 = arith.constant 0 : index
    %c0_38 = arith.constant 0 : index
    %c5_39 = arith.constant 5 : index
    %c0_40 = arith.constant 0 : index
    %c0_41 = arith.constant 0 : index
    %43 = vector.load %arg3[%c0_37, %c0_38, %c5_39, %c0_40, %c0_41] : memref<1x1x32x64x256xbf16, #tpu.memory_space<vmem>>, vector<1x1x1x8x256xbf16>
    %44 = vector.shape_cast %43 : vector<1x1x1x8x256xbf16> to vector<8x256xbf16>
    %45 = arith.extf %44 : vector<8x256xbf16> to vector<8x256xf32>
    %46 = vector.broadcast %42 : vector<1x256xf32> to vector<8x256xf32>
    %47 = arith.mulf %45, %46 : vector<8x256xf32>
    %48 = arith.addf %40, %47 : vector<8x256xf32>
    %c0_42 = arith.constant 0 : index
    %c6 = arith.constant 6 : index
    %c0_43 = arith.constant 0 : index
    %49 = vector.load %arg2[%c0_42, %c6, %c0_43] : memref<1x32x256xf32, #tpu.memory_space<vmem>>, vector<1x1x256xf32>
    %50 = vector.shape_cast %49 : vector<1x1x256xf32> to vector<1x256xf32>
    %c0_44 = arith.constant 0 : index
    %c0_45 = arith.constant 0 : index
    %c6_46 = arith.constant 6 : index
    %c0_47 = arith.constant 0 : index
    %c0_48 = arith.constant 0 : index
    %51 = vector.load %arg3[%c0_44, %c0_45, %c6_46, %c0_47, %c0_48] : memref<1x1x32x64x256xbf16, #tpu.memory_space<vmem>>, vector<1x1x1x8x256xbf16>
    %52 = vector.shape_cast %51 : vector<1x1x1x8x256xbf16> to vector<8x256xbf16>
    %53 = arith.extf %52 : vector<8x256xbf16> to vector<8x256xf32>
    %54 = vector.broadcast %50 : vector<1x256xf32> to vector<8x256xf32>
    %55 = arith.mulf %53, %54 : vector<8x256xf32>
    %56 = arith.addf %48, %55 : vector<8x256xf32>
    %c0_49 = arith.constant 0 : index
    %c7 = arith.constant 7 : index
    %c0_50 = arith.constant 0 : index
    %57 = vector.load %arg2[%c0_49, %c7, %c0_50] : memref<1x32x256xf32, #tpu.memory_space<vmem>>, vector<1x1x256xf32>
    %58 = vector.shape_cast %57 : vector<1x1x256xf32> to vector<1x256xf32>
    %c0_51 = arith.constant 0 : index
    %c0_52 = arith.constant 0 : index
    %c7_53 = arith.constant 7 : index
    %c0_54 = arith.constant 0 : index
    %c0_55 = arith.constant 0 : index
    %59 = vector.load %arg3[%c0_51, %c0_52, %c7_53, %c0_54, %c0_55] : memref<1x1x32x64x256xbf16, #tpu.memory_space<vmem>>, vector<1x1x1x8x256xbf16>
    %60 = vector.shape_cast %59 : vector<1x1x1x8x256xbf16> to vector<8x256xbf16>
    %61 = arith.extf %60 : vector<8x256xbf16> to vector<8x256xf32>
    %62 = vector.broadcast %58 : vector<1x256xf32> to vector<8x256xf32>
    %63 = arith.mulf %61, %62 : vector<8x256xf32>
    %64 = arith.addf %56, %63 : vector<8x256xf32>
    %c0_56 = arith.constant 0 : index
    %c8 = arith.constant 8 : index
    %c0_57 = arith.constant 0 : index
    %65 = vector.load %arg2[%c0_56, %c8, %c0_57] : memref<1x32x256xf32, #tpu.memory_space<vmem>>, vector<1x1x256xf32>
    %66 = vector.shape_cast %65 : vector<1x1x256xf32> to vector<1x256xf32>
    %c0_58 = arith.constant 0 : index
    %c0_59 = arith.constant 0 : index
    %c8_60 = arith.constant 8 : index
    %c0_61 = arith.constant 0 : index
    %c0_62 = arith.constant 0 : index
    %67 = vector.load %arg3[%c0_58, %c0_59, %c8_60, %c0_61, %c0_62] : memref<1x1x32x64x256xbf16, #tpu.memory_space<vmem>>, vector<1x1x1x8x256xbf16>
    %68 = vector.shape_cast %67 : vector<1x1x1x8x256xbf16> to vector<8x256xbf16>
    %69 = arith.extf %68 : vector<8x256xbf16> to vector<8x256xf32>
    %70 = vector.broadcast %66 : vector<1x256xf32> to vector<8x256xf32>
    %71 = arith.mulf %69, %70 : vector<8x256xf32>
    %72 = arith.addf %64, %71 : vector<8x256xf32>
    %c0_63 = arith.constant 0 : index
    %c9 = arith.constant 9 : index
    %c0_64 = arith.constant 0 : index
    %73 = vector.load %arg2[%c0_63, %c9, %c0_64] : memref<1x32x256xf32, #tpu.memory_space<vmem>>, vector<1x1x256xf32>
    %74 = vector.shape_cast %73 : vector<1x1x256xf32> to vector<1x256xf32>
    %c0_65 = arith.constant 0 : index
    %c0_66 = arith.constant 0 : index
    %c9_67 = arith.constant 9 : index
    %c0_68 = arith.constant 0 : index
    %c0_69 = arith.constant 0 : index
    %75 = vector.load %arg3[%c0_65, %c0_66, %c9_67, %c0_68, %c0_69] : memref<1x1x32x64x256xbf16, #tpu.memory_space<vmem>>, vector<1x1x1x8x256xbf16>
    %76 = vector.shape_cast %75 : vector<1x1x1x8x256xbf16> to vector<8x256xbf16>
    %77 = arith.extf %76 : vector<8x256xbf16> to vector<8x256xf32>
    %78 = vector.broadcast %74 : vector<1x256xf32> to vector<8x256xf32>
    %79 = arith.mulf %77, %78 : vector<8x256xf32>
    %80 = arith.addf %72, %79 : vector<8x256xf32>
    %c0_70 = arith.constant 0 : index
    %c10 = arith.constant 10 : index
    %c0_71 = arith.constant 0 : index
    %81 = vector.load %arg2[%c0_70, %c10, %c0_71] : memref<1x32x256xf32, #tpu.memory_space<vmem>>, vector<1x1x256xf32>
    %82 = vector.shape_cast %81 : vector<1x1x256xf32> to vector<1x256xf32>
    %c0_72 = arith.constant 0 : index
    %c0_73 = arith.constant 0 : index
    %c10_74 = arith.constant 10 : index
    %c0_75 = arith.constant 0 : index
    %c0_76 = arith.constant 0 : index
    %83 = vector.load %arg3[%c0_72, %c0_73, %c10_74, %c0_75, %c0_76] : memref<1x1x32x64x256xbf16, #tpu.memory_space<vmem>>, vector<1x1x1x8x256xbf16>
    %84 = vector.shape_cast %83 : vector<1x1x1x8x256xbf16> to vector<8x256xbf16>
    %85 = arith.extf %84 : vector<8x256xbf16> to vector<8x256xf32>
    %86 = vector.broadcast %82 : vector<1x256xf32> to vector<8x256xf32>
    %87 = arith.mulf %85, %86 : vector<8x256xf32>
    %88 = arith.addf %80, %87 : vector<8x256xf32>
    %c0_77 = arith.constant 0 : index
    %c11 = arith.constant 11 : index
    %c0_78 = arith.constant 0 : index
    %89 = vector.load %arg2[%c0_77, %c11, %c0_78] : memref<1x32x256xf32, #tpu.memory_space<vmem>>, vector<1x1x256xf32>
    %90 = vector.shape_cast %89 : vector<1x1x256xf32> to vector<1x256xf32>
    %c0_79 = arith.constant 0 : index
    %c0_80 = arith.constant 0 : index
    %c11_81 = arith.constant 11 : index
    %c0_82 = arith.constant 0 : index
    %c0_83 = arith.constant 0 : index
    %91 = vector.load %arg3[%c0_79, %c0_80, %c11_81, %c0_82, %c0_83] : memref<1x1x32x64x256xbf16, #tpu.memory_space<vmem>>, vector<1x1x1x8x256xbf16>
    %92 = vector.shape_cast %91 : vector<1x1x1x8x256xbf16> to vector<8x256xbf16>
    %93 = arith.extf %92 : vector<8x256xbf16> to vector<8x256xf32>
    %94 = vector.broadcast %90 : vector<1x256xf32> to vector<8x256xf32>
    %95 = arith.mulf %93, %94 : vector<8x256xf32>
    %96 = arith.addf %88, %95 : vector<8x256xf32>
    %c0_84 = arith.constant 0 : index
    %c12 = arith.constant 12 : index
    %c0_85 = arith.constant 0 : index
    %97 = vector.load %arg2[%c0_84, %c12, %c0_85] : memref<1x32x256xf32, #tpu.memory_space<vmem>>, vector<1x1x256xf32>
    %98 = vector.shape_cast %97 : vector<1x1x256xf32> to vector<1x256xf32>
    %c0_86 = arith.constant 0 : index
    %c0_87 = arith.constant 0 : index
    %c12_88 = arith.constant 12 : index
    %c0_89 = arith.constant 0 : index
    %c0_90 = arith.constant 0 : index
    %99 = vector.load %arg3[%c0_86, %c0_87, %c12_88, %c0_89, %c0_90] : memref<1x1x32x64x256xbf16, #tpu.memory_space<vmem>>, vector<1x1x1x8x256xbf16>
    %100 = vector.shape_cast %99 : vector<1x1x1x8x256xbf16> to vector<8x256xbf16>
    %101 = arith.extf %100 : vector<8x256xbf16> to vector<8x256xf32>
    %102 = vector.broadcast %98 : vector<1x256xf32> to vector<8x256xf32>
    %103 = arith.mulf %101, %102 : vector<8x256xf32>
    %104 = arith.addf %96, %103 : vector<8x256xf32>
    %c0_91 = arith.constant 0 : index
    %c13 = arith.constant 13 : index
    %c0_92 = arith.constant 0 : index
    %105 = vector.load %arg2[%c0_91, %c13, %c0_92] : memref<1x32x256xf32, #tpu.memory_space<vmem>>, vector<1x1x256xf32>
    %106 = vector.shape_cast %105 : vector<1x1x256xf32> to vector<1x256xf32>
    %c0_93 = arith.constant 0 : index
    %c0_94 = arith.constant 0 : index
    %c13_95 = arith.constant 13 : index
    %c0_96 = arith.constant 0 : index
    %c0_97 = arith.constant 0 : index
    %107 = vector.load %arg3[%c0_93, %c0_94, %c13_95, %c0_96, %c0_97] : memref<1x1x32x64x256xbf16, #tpu.memory_space<vmem>>, vector<1x1x1x8x256xbf16>
    %108 = vector.shape_cast %107 : vector<1x1x1x8x256xbf16> to vector<8x256xbf16>
    %109 = arith.extf %108 : vector<8x256xbf16> to vector<8x256xf32>
    %110 = vector.broadcast %106 : vector<1x256xf32> to vector<8x256xf32>
    %111 = arith.mulf %109, %110 : vector<8x256xf32>
    %112 = arith.addf %104, %111 : vector<8x256xf32>
    %c0_98 = arith.constant 0 : index
    %c14 = arith.constant 14 : index
    %c0_99 = arith.constant 0 : index
    %113 = vector.load %arg2[%c0_98, %c14, %c0_99] : memref<1x32x256xf32, #tpu.memory_space<vmem>>, vector<1x1x256xf32>
    %114 = vector.shape_cast %113 : vector<1x1x256xf32> to vector<1x256xf32>
    %c0_100 = arith.constant 0 : index
    %c0_101 = arith.constant 0 : index
    %c14_102 = arith.constant 14 : index
    %c0_103 = arith.constant 0 : index
    %c0_104 = arith.constant 0 : index
    %115 = vector.load %arg3[%c0_100, %c0_101, %c14_102, %c0_103, %c0_104] : memref<1x1x32x64x256xbf16, #tpu.memory_space<vmem>>, vector<1x1x1x8x256xbf16>
    %116 = vector.shape_cast %115 : vector<1x1x1x8x256xbf16> to vector<8x256xbf16>
    %117 = arith.extf %116 : vector<8x256xbf16> to vector<8x256xf32>
    %118 = vector.broadcast %114 : vector<1x256xf32> to vector<8x256xf32>
    %119 = arith.mulf %117, %118 : vector<8x256xf32>
    %120 = arith.addf %112, %119 : vector<8x256xf32>
    %c0_105 = arith.constant 0 : index
    %c15 = arith.constant 15 : index
    %c0_106 = arith.constant 0 : index
    %121 = vector.load %arg2[%c0_105, %c15, %c0_106] : memref<1x32x256xf32, #tpu.memory_space<vmem>>, vector<1x1x256xf32>
    %122 = vector.shape_cast %121 : vector<1x1x256xf32> to vector<1x256xf32>
    %c0_107 = arith.constant 0 : index
    %c0_108 = arith.constant 0 : index
    %c15_109 = arith.constant 15 : index
    %c0_110 = arith.constant 0 : index
    %c0_111 = arith.constant 0 : index
    %123 = vector.load %arg3[%c0_107, %c0_108, %c15_109, %c0_110, %c0_111] : memref<1x1x32x64x256xbf16, #tpu.memory_space<vmem>>, vector<1x1x1x8x256xbf16>
    %124 = vector.shape_cast %123 : vector<1x1x1x8x256xbf16> to vector<8x256xbf16>
    %125 = arith.extf %124 : vector<8x256xbf16> to vector<8x256xf32>
    %126 = vector.broadcast %122 : vector<1x256xf32> to vector<8x256xf32>
    %127 = arith.mulf %125, %126 : vector<8x256xf32>
    %128 = arith.addf %120, %127 : vector<8x256xf32>
    %c0_112 = arith.constant 0 : index
    %c16 = arith.constant 16 : index
    %c0_113 = arith.constant 0 : index
    %129 = vector.load %arg2[%c0_112, %c16, %c0_113] : memref<1x32x256xf32, #tpu.memory_space<vmem>>, vector<1x1x256xf32>
    %130 = vector.shape_cast %129 : vector<1x1x256xf32> to vector<1x256xf32>
    %c0_114 = arith.constant 0 : index
    %c0_115 = arith.constant 0 : index
    %c16_116 = arith.constant 16 : index
    %c0_117 = arith.constant 0 : index
    %c0_118 = arith.constant 0 : index
    %131 = vector.load %arg3[%c0_114, %c0_115, %c16_116, %c0_117, %c0_118] : memref<1x1x32x64x256xbf16, #tpu.memory_space<vmem>>, vector<1x1x1x8x256xbf16>
    %132 = vector.shape_cast %131 : vector<1x1x1x8x256xbf16> to vector<8x256xbf16>
    %133 = arith.extf %132 : vector<8x256xbf16> to vector<8x256xf32>
    %134 = vector.broadcast %130 : vector<1x256xf32> to vector<8x256xf32>
    %135 = arith.mulf %133, %134 : vector<8x256xf32>
    %136 = arith.addf %128, %135 : vector<8x256xf32>
    %c0_119 = arith.constant 0 : index
    %c17 = arith.constant 17 : index
    %c0_120 = arith.constant 0 : index
    %137 = vector.load %arg2[%c0_119, %c17, %c0_120] : memref<1x32x256xf32, #tpu.memory_space<vmem>>, vector<1x1x256xf32>
    %138 = vector.shape_cast %137 : vector<1x1x256xf32> to vector<1x256xf32>
    %c0_121 = arith.constant 0 : index
    %c0_122 = arith.constant 0 : index
    %c17_123 = arith.constant 17 : index
    %c0_124 = arith.constant 0 : index
    %c0_125 = arith.constant 0 : index
    %139 = vector.load %arg3[%c0_121, %c0_122, %c17_123, %c0_124, %c0_125] : memref<1x1x32x64x256xbf16, #tpu.memory_space<vmem>>, vector<1x1x1x8x256xbf16>
    %140 = vector.shape_cast %139 : vector<1x1x1x8x256xbf16> to vector<8x256xbf16>
    %141 = arith.extf %140 : vector<8x256xbf16> to vector<8x256xf32>
    %142 = vector.broadcast %138 : vector<1x256xf32> to vector<8x256xf32>
    %143 = arith.mulf %141, %142 : vector<8x256xf32>
    %144 = arith.addf %136, %143 : vector<8x256xf32>
    %c0_126 = arith.constant 0 : index
    %c18 = arith.constant 18 : index
    %c0_127 = arith.constant 0 : index
    %145 = vector.load %arg2[%c0_126, %c18, %c0_127] : memref<1x32x256xf32, #tpu.memory_space<vmem>>, vector<1x1x256xf32>
    %146 = vector.shape_cast %145 : vector<1x1x256xf32> to vector<1x256xf32>
    %c0_128 = arith.constant 0 : index
    %c0_129 = arith.constant 0 : index
    %c18_130 = arith.constant 18 : index
    %c0_131 = arith.constant 0 : index
    %c0_132 = arith.constant 0 : index
    %147 = vector.load %arg3[%c0_128, %c0_129, %c18_130, %c0_131, %c0_132] : memref<1x1x32x64x256xbf16, #tpu.memory_space<vmem>>, vector<1x1x1x8x256xbf16>
    %148 = vector.shape_cast %147 : vector<1x1x1x8x256xbf16> to vector<8x256xbf16>
    %149 = arith.extf %148 : vector<8x256xbf16> to vector<8x256xf32>
    %150 = vector.broadcast %146 : vector<1x256xf32> to vector<8x256xf32>
    %151 = arith.mulf %149, %150 : vector<8x256xf32>
    %152 = arith.addf %144, %151 : vector<8x256xf32>
    %c0_133 = arith.constant 0 : index
    %c19 = arith.constant 19 : index
    %c0_134 = arith.constant 0 : index
    %153 = vector.load %arg2[%c0_133, %c19, %c0_134] : memref<1x32x256xf32, #tpu.memory_space<vmem>>, vector<1x1x256xf32>
    %154 = vector.shape_cast %153 : vector<1x1x256xf32> to vector<1x256xf32>
    %c0_135 = arith.constant 0 : index
    %c0_136 = arith.constant 0 : index
    %c19_137 = arith.constant 19 : index
    %c0_138 = arith.constant 0 : index
    %c0_139 = arith.constant 0 : index
    %155 = vector.load %arg3[%c0_135, %c0_136, %c19_137, %c0_138, %c0_139] : memref<1x1x32x64x256xbf16, #tpu.memory_space<vmem>>, vector<1x1x1x8x256xbf16>
    %156 = vector.shape_cast %155 : vector<1x1x1x8x256xbf16> to vector<8x256xbf16>
    %157 = arith.extf %156 : vector<8x256xbf16> to vector<8x256xf32>
    %158 = vector.broadcast %154 : vector<1x256xf32> to vector<8x256xf32>
    %159 = arith.mulf %157, %158 : vector<8x256xf32>
    %160 = arith.addf %152, %159 : vector<8x256xf32>
    %c0_140 = arith.constant 0 : index
    %c20 = arith.constant 20 : index
    %c0_141 = arith.constant 0 : index
    %161 = vector.load %arg2[%c0_140, %c20, %c0_141] : memref<1x32x256xf32, #tpu.memory_space<vmem>>, vector<1x1x256xf32>
    %162 = vector.shape_cast %161 : vector<1x1x256xf32> to vector<1x256xf32>
    %c0_142 = arith.constant 0 : index
    %c0_143 = arith.constant 0 : index
    %c20_144 = arith.constant 20 : index
    %c0_145 = arith.constant 0 : index
    %c0_146 = arith.constant 0 : index
    %163 = vector.load %arg3[%c0_142, %c0_143, %c20_144, %c0_145, %c0_146] : memref<1x1x32x64x256xbf16, #tpu.memory_space<vmem>>, vector<1x1x1x8x256xbf16>
    %164 = vector.shape_cast %163 : vector<1x1x1x8x256xbf16> to vector<8x256xbf16>
    %165 = arith.extf %164 : vector<8x256xbf16> to vector<8x256xf32>
    %166 = vector.broadcast %162 : vector<1x256xf32> to vector<8x256xf32>
    %167 = arith.mulf %165, %166 : vector<8x256xf32>
    %168 = arith.addf %160, %167 : vector<8x256xf32>
    %c0_147 = arith.constant 0 : index
    %c21 = arith.constant 21 : index
    %c0_148 = arith.constant 0 : index
    %169 = vector.load %arg2[%c0_147, %c21, %c0_148] : memref<1x32x256xf32, #tpu.memory_space<vmem>>, vector<1x1x256xf32>
    %170 = vector.shape_cast %169 : vector<1x1x256xf32> to vector<1x256xf32>
    %c0_149 = arith.constant 0 : index
    %c0_150 = arith.constant 0 : index
    %c21_151 = arith.constant 21 : index
    %c0_152 = arith.constant 0 : index
    %c0_153 = arith.constant 0 : index
    %171 = vector.load %arg3[%c0_149, %c0_150, %c21_151, %c0_152, %c0_153] : memref<1x1x32x64x256xbf16, #tpu.memory_space<vmem>>, vector<1x1x1x8x256xbf16>
    %172 = vector.shape_cast %171 : vector<1x1x1x8x256xbf16> to vector<8x256xbf16>
    %173 = arith.extf %172 : vector<8x256xbf16> to vector<8x256xf32>
    %174 = vector.broadcast %170 : vector<1x256xf32> to vector<8x256xf32>
    %175 = arith.mulf %173, %174 : vector<8x256xf32>
    %176 = arith.addf %168, %175 : vector<8x256xf32>
    %c0_154 = arith.constant 0 : index
    %c22 = arith.constant 22 : index
    %c0_155 = arith.constant 0 : index
    %177 = vector.load %arg2[%c0_154, %c22, %c0_155] : memref<1x32x256xf32, #tpu.memory_space<vmem>>, vector<1x1x256xf32>
    %178 = vector.shape_cast %177 : vector<1x1x256xf32> to vector<1x256xf32>
    %c0_156 = arith.constant 0 : index
    %c0_157 = arith.constant 0 : index
    %c22_158 = arith.constant 22 : index
    %c0_159 = arith.constant 0 : index
    %c0_160 = arith.constant 0 : index
    %179 = vector.load %arg3[%c0_156, %c0_157, %c22_158, %c0_159, %c0_160] : memref<1x1x32x64x256xbf16, #tpu.memory_space<vmem>>, vector<1x1x1x8x256xbf16>
    %180 = vector.shape_cast %179 : vector<1x1x1x8x256xbf16> to vector<8x256xbf16>
    %181 = arith.extf %180 : vector<8x256xbf16> to vector<8x256xf32>
    %182 = vector.broadcast %178 : vector<1x256xf32> to vector<8x256xf32>
    %183 = arith.mulf %181, %182 : vector<8x256xf32>
    %184 = arith.addf %176, %183 : vector<8x256xf32>
    %c0_161 = arith.constant 0 : index
    %c23 = arith.constant 23 : index
    %c0_162 = arith.constant 0 : index
    %185 = vector.load %arg2[%c0_161, %c23, %c0_162] : memref<1x32x256xf32, #tpu.memory_space<vmem>>, vector<1x1x256xf32>
    %186 = vector.shape_cast %185 : vector<1x1x256xf32> to vector<1x256xf32>
    %c0_163 = arith.constant 0 : index
    %c0_164 = arith.constant 0 : index
    %c23_165 = arith.constant 23 : index
    %c0_166 = arith.constant 0 : index
    %c0_167 = arith.constant 0 : index
    %187 = vector.load %arg3[%c0_163, %c0_164, %c23_165, %c0_166, %c0_167] : memref<1x1x32x64x256xbf16, #tpu.memory_space<vmem>>, vector<1x1x1x8x256xbf16>
    %188 = vector.shape_cast %187 : vector<1x1x1x8x256xbf16> to vector<8x256xbf16>
    %189 = arith.extf %188 : vector<8x256xbf16> to vector<8x256xf32>
    %190 = vector.broadcast %186 : vector<1x256xf32> to vector<8x256xf32>
    %191 = arith.mulf %189, %190 : vector<8x256xf32>
    %192 = arith.addf %184, %191 : vector<8x256xf32>
    %c0_168 = arith.constant 0 : index
    %c24 = arith.constant 24 : index
    %c0_169 = arith.constant 0 : index
    %193 = vector.load %arg2[%c0_168, %c24, %c0_169] : memref<1x32x256xf32, #tpu.memory_space<vmem>>, vector<1x1x256xf32>
    %194 = vector.shape_cast %193 : vector<1x1x256xf32> to vector<1x256xf32>
    %c0_170 = arith.constant 0 : index
    %c0_171 = arith.constant 0 : index
    %c24_172 = arith.constant 24 : index
    %c0_173 = arith.constant 0 : index
    %c0_174 = arith.constant 0 : index
    %195 = vector.load %arg3[%c0_170, %c0_171, %c24_172, %c0_173, %c0_174] : memref<1x1x32x64x256xbf16, #tpu.memory_space<vmem>>, vector<1x1x1x8x256xbf16>
    %196 = vector.shape_cast %195 : vector<1x1x1x8x256xbf16> to vector<8x256xbf16>
    %197 = arith.extf %196 : vector<8x256xbf16> to vector<8x256xf32>
    %198 = vector.broadcast %194 : vector<1x256xf32> to vector<8x256xf32>
    %199 = arith.mulf %197, %198 : vector<8x256xf32>
    %200 = arith.addf %192, %199 : vector<8x256xf32>
    %c0_175 = arith.constant 0 : index
    %c25 = arith.constant 25 : index
    %c0_176 = arith.constant 0 : index
    %201 = vector.load %arg2[%c0_175, %c25, %c0_176] : memref<1x32x256xf32, #tpu.memory_space<vmem>>, vector<1x1x256xf32>
    %202 = vector.shape_cast %201 : vector<1x1x256xf32> to vector<1x256xf32>
    %c0_177 = arith.constant 0 : index
    %c0_178 = arith.constant 0 : index
    %c25_179 = arith.constant 25 : index
    %c0_180 = arith.constant 0 : index
    %c0_181 = arith.constant 0 : index
    %203 = vector.load %arg3[%c0_177, %c0_178, %c25_179, %c0_180, %c0_181] : memref<1x1x32x64x256xbf16, #tpu.memory_space<vmem>>, vector<1x1x1x8x256xbf16>
    %204 = vector.shape_cast %203 : vector<1x1x1x8x256xbf16> to vector<8x256xbf16>
    %205 = arith.extf %204 : vector<8x256xbf16> to vector<8x256xf32>
    %206 = vector.broadcast %202 : vector<1x256xf32> to vector<8x256xf32>
    %207 = arith.mulf %205, %206 : vector<8x256xf32>
    %208 = arith.addf %200, %207 : vector<8x256xf32>
    %c0_182 = arith.constant 0 : index
    %c26 = arith.constant 26 : index
    %c0_183 = arith.constant 0 : index
    %209 = vector.load %arg2[%c0_182, %c26, %c0_183] : memref<1x32x256xf32, #tpu.memory_space<vmem>>, vector<1x1x256xf32>
    %210 = vector.shape_cast %209 : vector<1x1x256xf32> to vector<1x256xf32>
    %c0_184 = arith.constant 0 : index
    %c0_185 = arith.constant 0 : index
    %c26_186 = arith.constant 26 : index
    %c0_187 = arith.constant 0 : index
    %c0_188 = arith.constant 0 : index
    %211 = vector.load %arg3[%c0_184, %c0_185, %c26_186, %c0_187, %c0_188] : memref<1x1x32x64x256xbf16, #tpu.memory_space<vmem>>, vector<1x1x1x8x256xbf16>
    %212 = vector.shape_cast %211 : vector<1x1x1x8x256xbf16> to vector<8x256xbf16>
    %213 = arith.extf %212 : vector<8x256xbf16> to vector<8x256xf32>
    %214 = vector.broadcast %210 : vector<1x256xf32> to vector<8x256xf32>
    %215 = arith.mulf %213, %214 : vector<8x256xf32>
    %216 = arith.addf %208, %215 : vector<8x256xf32>
    %c0_189 = arith.constant 0 : index
    %c27 = arith.constant 27 : index
    %c0_190 = arith.constant 0 : index
    %217 = vector.load %arg2[%c0_189, %c27, %c0_190] : memref<1x32x256xf32, #tpu.memory_space<vmem>>, vector<1x1x256xf32>
    %218 = vector.shape_cast %217 : vector<1x1x256xf32> to vector<1x256xf32>
    %c0_191 = arith.constant 0 : index
    %c0_192 = arith.constant 0 : index
    %c27_193 = arith.constant 27 : index
    %c0_194 = arith.constant 0 : index
    %c0_195 = arith.constant 0 : index
    %219 = vector.load %arg3[%c0_191, %c0_192, %c27_193, %c0_194, %c0_195] : memref<1x1x32x64x256xbf16, #tpu.memory_space<vmem>>, vector<1x1x1x8x256xbf16>
    %220 = vector.shape_cast %219 : vector<1x1x1x8x256xbf16> to vector<8x256xbf16>
    %221 = arith.extf %220 : vector<8x256xbf16> to vector<8x256xf32>
    %222 = vector.broadcast %218 : vector<1x256xf32> to vector<8x256xf32>
    %223 = arith.mulf %221, %222 : vector<8x256xf32>
    %224 = arith.addf %216, %223 : vector<8x256xf32>
    %c0_196 = arith.constant 0 : index
    %c28 = arith.constant 28 : index
    %c0_197 = arith.constant 0 : index
    %225 = vector.load %arg2[%c0_196, %c28, %c0_197] : memref<1x32x256xf32, #tpu.memory_space<vmem>>, vector<1x1x256xf32>
    %226 = vector.shape_cast %225 : vector<1x1x256xf32> to vector<1x256xf32>
    %c0_198 = arith.constant 0 : index
    %c0_199 = arith.constant 0 : index
    %c28_200 = arith.constant 28 : index
    %c0_201 = arith.constant 0 : index
    %c0_202 = arith.constant 0 : index
    %227 = vector.load %arg3[%c0_198, %c0_199, %c28_200, %c0_201, %c0_202] : memref<1x1x32x64x256xbf16, #tpu.memory_space<vmem>>, vector<1x1x1x8x256xbf16>
    %228 = vector.shape_cast %227 : vector<1x1x1x8x256xbf16> to vector<8x256xbf16>
    %229 = arith.extf %228 : vector<8x256xbf16> to vector<8x256xf32>
    %230 = vector.broadcast %226 : vector<1x256xf32> to vector<8x256xf32>
    %231 = arith.mulf %229, %230 : vector<8x256xf32>
    %232 = arith.addf %224, %231 : vector<8x256xf32>
    %c0_203 = arith.constant 0 : index
    %c29 = arith.constant 29 : index
    %c0_204 = arith.constant 0 : index
    %233 = vector.load %arg2[%c0_203, %c29, %c0_204] : memref<1x32x256xf32, #tpu.memory_space<vmem>>, vector<1x1x256xf32>
    %234 = vector.shape_cast %233 : vector<1x1x256xf32> to vector<1x256xf32>
    %c0_205 = arith.constant 0 : index
    %c0_206 = arith.constant 0 : index
    %c29_207 = arith.constant 29 : index
    %c0_208 = arith.constant 0 : index
    %c0_209 = arith.constant 0 : index
    %235 = vector.load %arg3[%c0_205, %c0_206, %c29_207, %c0_208, %c0_209] : memref<1x1x32x64x256xbf16, #tpu.memory_space<vmem>>, vector<1x1x1x8x256xbf16>
    %236 = vector.shape_cast %235 : vector<1x1x1x8x256xbf16> to vector<8x256xbf16>
    %237 = arith.extf %236 : vector<8x256xbf16> to vector<8x256xf32>
    %238 = vector.broadcast %234 : vector<1x256xf32> to vector<8x256xf32>
    %239 = arith.mulf %237, %238 : vector<8x256xf32>
    %240 = arith.addf %232, %239 : vector<8x256xf32>
    %c0_210 = arith.constant 0 : index
    %c30 = arith.constant 30 : index
    %c0_211 = arith.constant 0 : index
    %241 = vector.load %arg2[%c0_210, %c30, %c0_211] : memref<1x32x256xf32, #tpu.memory_space<vmem>>, vector<1x1x256xf32>
    %242 = vector.shape_cast %241 : vector<1x1x256xf32> to vector<1x256xf32>
    %c0_212 = arith.constant 0 : index
    %c0_213 = arith.constant 0 : index
    %c30_214 = arith.constant 30 : index
    %c0_215 = arith.constant 0 : index
    %c0_216 = arith.constant 0 : index
    %243 = vector.load %arg3[%c0_212, %c0_213, %c30_214, %c0_215, %c0_216] : memref<1x1x32x64x256xbf16, #tpu.memory_space<vmem>>, vector<1x1x1x8x256xbf16>
    %244 = vector.shape_cast %243 : vector<1x1x1x8x256xbf16> to vector<8x256xbf16>
    %245 = arith.extf %244 : vector<8x256xbf16> to vector<8x256xf32>
    %246 = vector.broadcast %242 : vector<1x256xf32> to vector<8x256xf32>
    %247 = arith.mulf %245, %246 : vector<8x256xf32>
    %248 = arith.addf %240, %247 : vector<8x256xf32>
    %c0_217 = arith.constant 0 : index
    %c31 = arith.constant 31 : index
    %c0_218 = arith.constant 0 : index
    %249 = vector.load %arg2[%c0_217, %c31, %c0_218] : memref<1x32x256xf32, #tpu.memory_space<vmem>>, vector<1x1x256xf32>
    %250 = vector.shape_cast %249 : vector<1x1x256xf32> to vector<1x256xf32>
    %c0_219 = arith.constant 0 : index
    %c0_220 = arith.constant 0 : index
    %c31_221 = arith.constant 31 : index
    %c0_222 = arith.constant 0 : index
    %c0_223 = arith.constant 0 : index
    %251 = vector.load %arg3[%c0_219, %c0_220, %c31_221, %c0_222, %c0_223] : memref<1x1x32x64x256xbf16, #tpu.memory_space<vmem>>, vector<1x1x1x8x256xbf16>
    %252 = vector.shape_cast %251 : vector<1x1x1x8x256xbf16> to vector<8x256xbf16>
    %253 = arith.extf %252 : vector<8x256xbf16> to vector<8x256xf32>
    %254 = vector.broadcast %250 : vector<1x256xf32> to vector<8x256xf32>
    %255 = arith.mulf %253, %254 : vector<8x256xf32>
    %256 = arith.addf %248, %255 : vector<8x256xf32>
    %cst_224 = arith.constant 0.000000e+00 : f32
    %257 = vector.broadcast %cst_224 : f32 to vector<8x256xf32>
    %c0_225 = arith.constant 0 : index
    %c0_226 = arith.constant 0 : index
    %c0_227 = arith.constant 0 : index
    %258 = vector.load %arg2[%c0_225, %c0_226, %c0_227] : memref<1x32x256xf32, #tpu.memory_space<vmem>>, vector<1x1x256xf32>
    %259 = vector.shape_cast %258 : vector<1x1x256xf32> to vector<1x256xf32>
    %c0_228 = arith.constant 0 : index
    %c0_229 = arith.constant 0 : index
    %c0_230 = arith.constant 0 : index
    %c8_231 = arith.constant 8 : index
    %c0_232 = arith.constant 0 : index
    %260 = vector.load %arg3[%c0_228, %c0_229, %c0_230, %c8_231, %c0_232] : memref<1x1x32x64x256xbf16, #tpu.memory_space<vmem>>, vector<1x1x1x8x256xbf16>
    %261 = vector.shape_cast %260 : vector<1x1x1x8x256xbf16> to vector<8x256xbf16>
    %262 = arith.extf %261 : vector<8x256xbf16> to vector<8x256xf32>
    %263 = vector.broadcast %259 : vector<1x256xf32> to vector<8x256xf32>
    %264 = arith.mulf %262, %263 : vector<8x256xf32>
    %265 = arith.addf %257, %264 : vector<8x256xf32>
    %c0_233 = arith.constant 0 : index
    %c1_234 = arith.constant 1 : index
    %c0_235 = arith.constant 0 : index
    %266 = vector.load %arg2[%c0_233, %c1_234, %c0_235] : memref<1x32x256xf32, #tpu.memory_space<vmem>>, vector<1x1x256xf32>
    %267 = vector.shape_cast %266 : vector<1x1x256xf32> to vector<1x256xf32>
    %c0_236 = arith.constant 0 : index
    %c0_237 = arith.constant 0 : index
    %c1_238 = arith.constant 1 : index
    %c8_239 = arith.constant 8 : index
    %c0_240 = arith.constant 0 : index
    %268 = vector.load %arg3[%c0_236, %c0_237, %c1_238, %c8_239, %c0_240] : memref<1x1x32x64x256xbf16, #tpu.memory_space<vmem>>, vector<1x1x1x8x256xbf16>
    %269 = vector.shape_cast %268 : vector<1x1x1x8x256xbf16> to vector<8x256xbf16>
    %270 = arith.extf %269 : vector<8x256xbf16> to vector<8x256xf32>
    %271 = vector.broadcast %267 : vector<1x256xf32> to vector<8x256xf32>
    %272 = arith.mulf %270, %271 : vector<8x256xf32>
    %273 = arith.addf %265, %272 : vector<8x256xf32>
    %c0_241 = arith.constant 0 : index
    %c2_242 = arith.constant 2 : index
    %c0_243 = arith.constant 0 : index
    %274 = vector.load %arg2[%c0_241, %c2_242, %c0_243] : memref<1x32x256xf32, #tpu.memory_space<vmem>>, vector<1x1x256xf32>
    %275 = vector.shape_cast %274 : vector<1x1x256xf32> to vector<1x256xf32>
    %c0_244 = arith.constant 0 : index
    %c0_245 = arith.constant 0 : index
    %c2_246 = arith.constant 2 : index
    %c8_247 = arith.constant 8 : index
    %c0_248 = arith.constant 0 : index
    %276 = vector.load %arg3[%c0_244, %c0_245, %c2_246, %c8_247, %c0_248] : memref<1x1x32x64x256xbf16, #tpu.memory_space<vmem>>, vector<1x1x1x8x256xbf16>
    %277 = vector.shape_cast %276 : vector<1x1x1x8x256xbf16> to vector<8x256xbf16>
    %278 = arith.extf %277 : vector<8x256xbf16> to vector<8x256xf32>
    %279 = vector.broadcast %275 : vector<1x256xf32> to vector<8x256xf32>
    %280 = arith.mulf %278, %279 : vector<8x256xf32>
    %281 = arith.addf %273, %280 : vector<8x256xf32>
    %c0_249 = arith.constant 0 : index
    %c3_250 = arith.constant 3 : index
    %c0_251 = arith.constant 0 : index
    %282 = vector.load %arg2[%c0_249, %c3_250, %c0_251] : memref<1x32x256xf32, #tpu.memory_space<vmem>>, vector<1x1x256xf32>
    %283 = vector.shape_cast %282 : vector<1x1x256xf32> to vector<1x256xf32>
    %c0_252 = arith.constant 0 : index
    %c0_253 = arith.constant 0 : index
    %c3_254 = arith.constant 3 : index
    %c8_255 = arith.constant 8 : index
    %c0_256 = arith.constant 0 : index
    %284 = vector.load %arg3[%c0_252, %c0_253, %c3_254, %c8_255, %c0_256] : memref<1x1x32x64x256xbf16, #tpu.memory_space<vmem>>, vector<1x1x1x8x256xbf16>
    %285 = vector.shape_cast %284 : vector<1x1x1x8x256xbf16> to vector<8x256xbf16>
    %286 = arith.extf %285 : vector<8x256xbf16> to vector<8x256xf32>
    %287 = vector.broadcast %283 : vector<1x256xf32> to vector<8x256xf32>
    %288 = arith.mulf %286, %287 : vector<8x256xf32>
    %289 = arith.addf %281, %288 : vector<8x256xf32>
    %c0_257 = arith.constant 0 : index
    %c4_258 = arith.constant 4 : index
    %c0_259 = arith.constant 0 : index
    %290 = vector.load %arg2[%c0_257, %c4_258, %c0_259] : memref<1x32x256xf32, #tpu.memory_space<vmem>>, vector<1x1x256xf32>
    %291 = vector.shape_cast %290 : vector<1x1x256xf32> to vector<1x256xf32>
    %c0_260 = arith.constant 0 : index
    %c0_261 = arith.constant 0 : index
    %c4_262 = arith.constant 4 : index
    %c8_263 = arith.constant 8 : index
    %c0_264 = arith.constant 0 : index
    %292 = vector.load %arg3[%c0_260, %c0_261, %c4_262, %c8_263, %c0_264] : memref<1x1x32x64x256xbf16, #tpu.memory_space<vmem>>, vector<1x1x1x8x256xbf16>
    %293 = vector.shape_cast %292 : vector<1x1x1x8x256xbf16> to vector<8x256xbf16>
    %294 = arith.extf %293 : vector<8x256xbf16> to vector<8x256xf32>
    %295 = vector.broadcast %291 : vector<1x256xf32> to vector<8x256xf32>
    %296 = arith.mulf %294, %295 : vector<8x256xf32>
    %297 = arith.addf %289, %296 : vector<8x256xf32>
    %c0_265 = arith.constant 0 : index
    %c5_266 = arith.constant 5 : index
    %c0_267 = arith.constant 0 : index
    %298 = vector.load %arg2[%c0_265, %c5_266, %c0_267] : memref<1x32x256xf32, #tpu.memory_space<vmem>>, vector<1x1x256xf32>
    %299 = vector.shape_cast %298 : vector<1x1x256xf32> to vector<1x256xf32>
    %c0_268 = arith.constant 0 : index
    %c0_269 = arith.constant 0 : index
    %c5_270 = arith.constant 5 : index
    %c8_271 = arith.constant 8 : index
    %c0_272 = arith.constant 0 : index
    %300 = vector.load %arg3[%c0_268, %c0_269, %c5_270, %c8_271, %c0_272] : memref<1x1x32x64x256xbf16, #tpu.memory_space<vmem>>, vector<1x1x1x8x256xbf16>
    %301 = vector.shape_cast %300 : vector<1x1x1x8x256xbf16> to vector<8x256xbf16>
    %302 = arith.extf %301 : vector<8x256xbf16> to vector<8x256xf32>
    %303 = vector.broadcast %299 : vector<1x256xf32> to vector<8x256xf32>
    %304 = arith.mulf %302, %303 : vector<8x256xf32>
    %305 = arith.addf %297, %304 : vector<8x256xf32>
    %c0_273 = arith.constant 0 : index
    %c6_274 = arith.constant 6 : index
    %c0_275 = arith.constant 0 : index
    %306 = vector.load %arg2[%c0_273, %c6_274, %c0_275] : memref<1x32x256xf32, #tpu.memory_space<vmem>>, vector<1x1x256xf32>
    %307 = vector.shape_cast %306 : vector<1x1x256xf32> to vector<1x256xf32>
    %c0_276 = arith.constant 0 : index
    %c0_277 = arith.constant 0 : index
    %c6_278 = arith.constant 6 : index
    %c8_279 = arith.constant 8 : index
    %c0_280 = arith.constant 0 : index
    %308 = vector.load %arg3[%c0_276, %c0_277, %c6_278, %c8_279, %c0_280] : memref<1x1x32x64x256xbf16, #tpu.memory_space<vmem>>, vector<1x1x1x8x256xbf16>
    %309 = vector.shape_cast %308 : vector<1x1x1x8x256xbf16> to vector<8x256xbf16>
    %310 = arith.extf %309 : vector<8x256xbf16> to vector<8x256xf32>
    %311 = vector.broadcast %307 : vector<1x256xf32> to vector<8x256xf32>
    %312 = arith.mulf %310, %311 : vector<8x256xf32>
    %313 = arith.addf %305, %312 : vector<8x256xf32>
    %c0_281 = arith.constant 0 : index
    %c7_282 = arith.constant 7 : index
    %c0_283 = arith.constant 0 : index
    %314 = vector.load %arg2[%c0_281, %c7_282, %c0_283] : memref<1x32x256xf32, #tpu.memory_space<vmem>>, vector<1x1x256xf32>
    %315 = vector.shape_cast %314 : vector<1x1x256xf32> to vector<1x256xf32>
    %c0_284 = arith.constant 0 : index
    %c0_285 = arith.constant 0 : index
    %c7_286 = arith.constant 7 : index
    %c8_287 = arith.constant 8 : index
    %c0_288 = arith.constant 0 : index
    %316 = vector.load %arg3[%c0_284, %c0_285, %c7_286, %c8_287, %c0_288] : memref<1x1x32x64x256xbf16, #tpu.memory_space<vmem>>, vector<1x1x1x8x256xbf16>
    %317 = vector.shape_cast %316 : vector<1x1x1x8x256xbf16> to vector<8x256xbf16>
    %318 = arith.extf %317 : vector<8x256xbf16> to vector<8x256xf32>
    %319 = vector.broadcast %315 : vector<1x256xf32> to vector<8x256xf32>
    %320 = arith.mulf %318, %319 : vector<8x256xf32>
    %321 = arith.addf %313, %320 : vector<8x256xf32>
    %c0_289 = arith.constant 0 : index
    %c8_290 = arith.constant 8 : index
    %c0_291 = arith.constant 0 : index
    %322 = vector.load %arg2[%c0_289, %c8_290, %c0_291] : memref<1x32x256xf32, #tpu.memory_space<vmem>>, vector<1x1x256xf32>
    %323 = vector.shape_cast %322 : vector<1x1x256xf32> to vector<1x256xf32>
    %c0_292 = arith.constant 0 : index
    %c0_293 = arith.constant 0 : index
    %c8_294 = arith.constant 8 : index
    %c8_295 = arith.constant 8 : index
    %c0_296 = arith.constant 0 : index
    %324 = vector.load %arg3[%c0_292, %c0_293, %c8_294, %c8_295, %c0_296] : memref<1x1x32x64x256xbf16, #tpu.memory_space<vmem>>, vector<1x1x1x8x256xbf16>
    %325 = vector.shape_cast %324 : vector<1x1x1x8x256xbf16> to vector<8x256xbf16>
    %326 = arith.extf %325 : vector<8x256xbf16> to vector<8x256xf32>
    %327 = vector.broadcast %323 : vector<1x256xf32> to vector<8x256xf32>
    %328 = arith.mulf %326, %327 : vector<8x256xf32>
    %329 = arith.addf %321, %328 : vector<8x256xf32>
    %c0_297 = arith.constant 0 : index
    %c9_298 = arith.constant 9 : index
    %c0_299 = arith.constant 0 : index
    %330 = vector.load %arg2[%c0_297, %c9_298, %c0_299] : memref<1x32x256xf32, #tpu.memory_space<vmem>>, vector<1x1x256xf32>
    %331 = vector.shape_cast %330 : vector<1x1x256xf32> to vector<1x256xf32>
    %c0_300 = arith.constant 0 : index
    %c0_301 = arith.constant 0 : index
    %c9_302 = arith.constant 9 : index
    %c8_303 = arith.constant 8 : index
    %c0_304 = arith.constant 0 : index
    %332 = vector.load %arg3[%c0_300, %c0_301, %c9_302, %c8_303, %c0_304] : memref<1x1x32x64x256xbf16, #tpu.memory_space<vmem>>, vector<1x1x1x8x256xbf16>
    %333 = vector.shape_cast %332 : vector<1x1x1x8x256xbf16> to vector<8x256xbf16>
    %334 = arith.extf %333 : vector<8x256xbf16> to vector<8x256xf32>
    %335 = vector.broadcast %331 : vector<1x256xf32> to vector<8x256xf32>
    %336 = arith.mulf %334, %335 : vector<8x256xf32>
    %337 = arith.addf %329, %336 : vector<8x256xf32>
    %c0_305 = arith.constant 0 : index
    %c10_306 = arith.constant 10 : index
    %c0_307 = arith.constant 0 : index
    %338 = vector.load %arg2[%c0_305, %c10_306, %c0_307] : memref<1x32x256xf32, #tpu.memory_space<vmem>>, vector<1x1x256xf32>
    %339 = vector.shape_cast %338 : vector<1x1x256xf32> to vector<1x256xf32>
    %c0_308 = arith.constant 0 : index
    %c0_309 = arith.constant 0 : index
    %c10_310 = arith.constant 10 : index
    %c8_311 = arith.constant 8 : index
    %c0_312 = arith.constant 0 : index
    %340 = vector.load %arg3[%c0_308, %c0_309, %c10_310, %c8_311, %c0_312] : memref<1x1x32x64x256xbf16, #tpu.memory_space<vmem>>, vector<1x1x1x8x256xbf16>
    %341 = vector.shape_cast %340 : vector<1x1x1x8x256xbf16> to vector<8x256xbf16>
    %342 = arith.extf %341 : vector<8x256xbf16> to vector<8x256xf32>
    %343 = vector.broadcast %339 : vector<1x256xf32> to vector<8x256xf32>
    %344 = arith.mulf %342, %343 : vector<8x256xf32>
    %345 = arith.addf %337, %344 : vector<8x256xf32>
    %c0_313 = arith.constant 0 : index
    %c11_314 = arith.constant 11 : index
    %c0_315 = arith.constant 0 : index
    %346 = vector.load %arg2[%c0_313, %c11_314, %c0_315] : memref<1x32x256xf32, #tpu.memory_space<vmem>>, vector<1x1x256xf32>
    %347 = vector.shape_cast %346 : vector<1x1x256xf32> to vector<1x256xf32>
    %c0_316 = arith.constant 0 : index
    %c0_317 = arith.constant 0 : index
    %c11_318 = arith.constant 11 : index
    %c8_319 = arith.constant 8 : index
    %c0_320 = arith.constant 0 : index
    %348 = vector.load %arg3[%c0_316, %c0_317, %c11_318, %c8_319, %c0_320] : memref<1x1x32x64x256xbf16, #tpu.memory_space<vmem>>, vector<1x1x1x8x256xbf16>
    %349 = vector.shape_cast %348 : vector<1x1x1x8x256xbf16> to vector<8x256xbf16>
    %350 = arith.extf %349 : vector<8x256xbf16> to vector<8x256xf32>
    %351 = vector.broadcast %347 : vector<1x256xf32> to vector<8x256xf32>
    %352 = arith.mulf %350, %351 : vector<8x256xf32>
    %353 = arith.addf %345, %352 : vector<8x256xf32>
    %c0_321 = arith.constant 0 : index
    %c12_322 = arith.constant 12 : index
    %c0_323 = arith.constant 0 : index
    %354 = vector.load %arg2[%c0_321, %c12_322, %c0_323] : memref<1x32x256xf32, #tpu.memory_space<vmem>>, vector<1x1x256xf32>
    %355 = vector.shape_cast %354 : vector<1x1x256xf32> to vector<1x256xf32>
    %c0_324 = arith.constant 0 : index
    %c0_325 = arith.constant 0 : index
    %c12_326 = arith.constant 12 : index
    %c8_327 = arith.constant 8 : index
    %c0_328 = arith.constant 0 : index
    %356 = vector.load %arg3[%c0_324, %c0_325, %c12_326, %c8_327, %c0_328] : memref<1x1x32x64x256xbf16, #tpu.memory_space<vmem>>, vector<1x1x1x8x256xbf16>
    %357 = vector.shape_cast %356 : vector<1x1x1x8x256xbf16> to vector<8x256xbf16>
    %358 = arith.extf %357 : vector<8x256xbf16> to vector<8x256xf32>
    %359 = vector.broadcast %355 : vector<1x256xf32> to vector<8x256xf32>
    %360 = arith.mulf %358, %359 : vector<8x256xf32>
    %361 = arith.addf %353, %360 : vector<8x256xf32>
    %c0_329 = arith.constant 0 : index
    %c13_330 = arith.constant 13 : index
    %c0_331 = arith.constant 0 : index
    %362 = vector.load %arg2[%c0_329, %c13_330, %c0_331] : memref<1x32x256xf32, #tpu.memory_space<vmem>>, vector<1x1x256xf32>
    %363 = vector.shape_cast %362 : vector<1x1x256xf32> to vector<1x256xf32>
    %c0_332 = arith.constant 0 : index
    %c0_333 = arith.constant 0 : index
    %c13_334 = arith.constant 13 : index
    %c8_335 = arith.constant 8 : index
    %c0_336 = arith.constant 0 : index
    %364 = vector.load %arg3[%c0_332, %c0_333, %c13_334, %c8_335, %c0_336] : memref<1x1x32x64x256xbf16, #tpu.memory_space<vmem>>, vector<1x1x1x8x256xbf16>
    %365 = vector.shape_cast %364 : vector<1x1x1x8x256xbf16> to vector<8x256xbf16>
    %366 = arith.extf %365 : vector<8x256xbf16> to vector<8x256xf32>
    %367 = vector.broadcast %363 : vector<1x256xf32> to vector<8x256xf32>
    %368 = arith.mulf %366, %367 : vector<8x256xf32>
    %369 = arith.addf %361, %368 : vector<8x256xf32>
    %c0_337 = arith.constant 0 : index
    %c14_338 = arith.constant 14 : index
    %c0_339 = arith.constant 0 : index
    %370 = vector.load %arg2[%c0_337, %c14_338, %c0_339] : memref<1x32x256xf32, #tpu.memory_space<vmem>>, vector<1x1x256xf32>
    %371 = vector.shape_cast %370 : vector<1x1x256xf32> to vector<1x256xf32>
    %c0_340 = arith.constant 0 : index
    %c0_341 = arith.constant 0 : index
    %c14_342 = arith.constant 14 : index
    %c8_343 = arith.constant 8 : index
    %c0_344 = arith.constant 0 : index
    %372 = vector.load %arg3[%c0_340, %c0_341, %c14_342, %c8_343, %c0_344] : memref<1x1x32x64x256xbf16, #tpu.memory_space<vmem>>, vector<1x1x1x8x256xbf16>
    %373 = vector.shape_cast %372 : vector<1x1x1x8x256xbf16> to vector<8x256xbf16>
    %374 = arith.extf %373 : vector<8x256xbf16> to vector<8x256xf32>
    %375 = vector.broadcast %371 : vector<1x256xf32> to vector<8x256xf32>
    %376 = arith.mulf %374, %375 : vector<8x256xf32>
    %377 = arith.addf %369, %376 : vector<8x256xf32>
    %c0_345 = arith.constant 0 : index
    %c15_346 = arith.constant 15 : index
    %c0_347 = arith.constant 0 : index
    %378 = vector.load %arg2[%c0_345, %c15_346, %c0_347] : memref<1x32x256xf32, #tpu.memory_space<vmem>>, vector<1x1x256xf32>
    %379 = vector.shape_cast %378 : vector<1x1x256xf32> to vector<1x256xf32>
    %c0_348 = arith.constant 0 : index
    %c0_349 = arith.constant 0 : index
    %c15_350 = arith.constant 15 : index
    %c8_351 = arith.constant 8 : index
    %c0_352 = arith.constant 0 : index
    %380 = vector.load %arg3[%c0_348, %c0_349, %c15_350, %c8_351, %c0_352] : memref<1x1x32x64x256xbf16, #tpu.memory_space<vmem>>, vector<1x1x1x8x256xbf16>
    %381 = vector.shape_cast %380 : vector<1x1x1x8x256xbf16> to vector<8x256xbf16>
    %382 = arith.extf %381 : vector<8x256xbf16> to vector<8x256xf32>
    %383 = vector.broadcast %379 : vector<1x256xf32> to vector<8x256xf32>
    %384 = arith.mulf %382, %383 : vector<8x256xf32>
    %385 = arith.addf %377, %384 : vector<8x256xf32>
    %c0_353 = arith.constant 0 : index
    %c16_354 = arith.constant 16 : index
    %c0_355 = arith.constant 0 : index
    %386 = vector.load %arg2[%c0_353, %c16_354, %c0_355] : memref<1x32x256xf32, #tpu.memory_space<vmem>>, vector<1x1x256xf32>
    %387 = vector.shape_cast %386 : vector<1x1x256xf32> to vector<1x256xf32>
    %c0_356 = arith.constant 0 : index
    %c0_357 = arith.constant 0 : index
    %c16_358 = arith.constant 16 : index
    %c8_359 = arith.constant 8 : index
    %c0_360 = arith.constant 0 : index
    %388 = vector.load %arg3[%c0_356, %c0_357, %c16_358, %c8_359, %c0_360] : memref<1x1x32x64x256xbf16, #tpu.memory_space<vmem>>, vector<1x1x1x8x256xbf16>
    %389 = vector.shape_cast %388 : vector<1x1x1x8x256xbf16> to vector<8x256xbf16>
    %390 = arith.extf %389 : vector<8x256xbf16> to vector<8x256xf32>
    %391 = vector.broadcast %387 : vector<1x256xf32> to vector<8x256xf32>
    %392 = arith.mulf %390, %391 : vector<8x256xf32>
    %393 = arith.addf %385, %392 : vector<8x256xf32>
    %c0_361 = arith.constant 0 : index
    %c17_362 = arith.constant 17 : index
    %c0_363 = arith.constant 0 : index
    %394 = vector.load %arg2[%c0_361, %c17_362, %c0_363] : memref<1x32x256xf32, #tpu.memory_space<vmem>>, vector<1x1x256xf32>
    %395 = vector.shape_cast %394 : vector<1x1x256xf32> to vector<1x256xf32>
    %c0_364 = arith.constant 0 : index
    %c0_365 = arith.constant 0 : index
    %c17_366 = arith.constant 17 : index
    %c8_367 = arith.constant 8 : index
    %c0_368 = arith.constant 0 : index
    %396 = vector.load %arg3[%c0_364, %c0_365, %c17_366, %c8_367, %c0_368] : memref<1x1x32x64x256xbf16, #tpu.memory_space<vmem>>, vector<1x1x1x8x256xbf16>
    %397 = vector.shape_cast %396 : vector<1x1x1x8x256xbf16> to vector<8x256xbf16>
    %398 = arith.extf %397 : vector<8x256xbf16> to vector<8x256xf32>
    %399 = vector.broadcast %395 : vector<1x256xf32> to vector<8x256xf32>
    %400 = arith.mulf %398, %399 : vector<8x256xf32>
    %401 = arith.addf %393, %400 : vector<8x256xf32>
    %c0_369 = arith.constant 0 : index
    %c18_370 = arith.constant 18 : index
    %c0_371 = arith.constant 0 : index
    %402 = vector.load %arg2[%c0_369, %c18_370, %c0_371] : memref<1x32x256xf32, #tpu.memory_space<vmem>>, vector<1x1x256xf32>
    %403 = vector.shape_cast %402 : vector<1x1x256xf32> to vector<1x256xf32>
    %c0_372 = arith.constant 0 : index
    %c0_373 = arith.constant 0 : index
    %c18_374 = arith.constant 18 : index
    %c8_375 = arith.constant 8 : index
    %c0_376 = arith.constant 0 : index
    %404 = vector.load %arg3[%c0_372, %c0_373, %c18_374, %c8_375, %c0_376] : memref<1x1x32x64x256xbf16, #tpu.memory_space<vmem>>, vector<1x1x1x8x256xbf16>
    %405 = vector.shape_cast %404 : vector<1x1x1x8x256xbf16> to vector<8x256xbf16>
    %406 = arith.extf %405 : vector<8x256xbf16> to vector<8x256xf32>
    %407 = vector.broadcast %403 : vector<1x256xf32> to vector<8x256xf32>
    %408 = arith.mulf %406, %407 : vector<8x256xf32>
    %409 = arith.addf %401, %408 : vector<8x256xf32>
    %c0_377 = arith.constant 0 : index
    %c19_378 = arith.constant 19 : index
    %c0_379 = arith.constant 0 : index
    %410 = vector.load %arg2[%c0_377, %c19_378, %c0_379] : memref<1x32x256xf32, #tpu.memory_space<vmem>>, vector<1x1x256xf32>
    %411 = vector.shape_cast %410 : vector<1x1x256xf32> to vector<1x256xf32>
    %c0_380 = arith.constant 0 : index
    %c0_381 = arith.constant 0 : index
    %c19_382 = arith.constant 19 : index
    %c8_383 = arith.constant 8 : index
    %c0_384 = arith.constant 0 : index
    %412 = vector.load %arg3[%c0_380, %c0_381, %c19_382, %c8_383, %c0_384] : memref<1x1x32x64x256xbf16, #tpu.memory_space<vmem>>, vector<1x1x1x8x256xbf16>
    %413 = vector.shape_cast %412 : vector<1x1x1x8x256xbf16> to vector<8x256xbf16>
    %414 = arith.extf %413 : vector<8x256xbf16> to vector<8x256xf32>
    %415 = vector.broadcast %411 : vector<1x256xf32> to vector<8x256xf32>
    %416 = arith.mulf %414, %415 : vector<8x256xf32>
    %417 = arith.addf %409, %416 : vector<8x256xf32>
    %c0_385 = arith.constant 0 : index
    %c20_386 = arith.constant 20 : index
    %c0_387 = arith.constant 0 : index
    %418 = vector.load %arg2[%c0_385, %c20_386, %c0_387] : memref<1x32x256xf32, #tpu.memory_space<vmem>>, vector<1x1x256xf32>
    %419 = vector.shape_cast %418 : vector<1x1x256xf32> to vector<1x256xf32>
    %c0_388 = arith.constant 0 : index
    %c0_389 = arith.constant 0 : index
    %c20_390 = arith.constant 20 : index
    %c8_391 = arith.constant 8 : index
    %c0_392 = arith.constant 0 : index
    %420 = vector.load %arg3[%c0_388, %c0_389, %c20_390, %c8_391, %c0_392] : memref<1x1x32x64x256xbf16, #tpu.memory_space<vmem>>, vector<1x1x1x8x256xbf16>
    %421 = vector.shape_cast %420 : vector<1x1x1x8x256xbf16> to vector<8x256xbf16>
    %422 = arith.extf %421 : vector<8x256xbf16> to vector<8x256xf32>
    %423 = vector.broadcast %419 : vector<1x256xf32> to vector<8x256xf32>
    %424 = arith.mulf %422, %423 : vector<8x256xf32>
    %425 = arith.addf %417, %424 : vector<8x256xf32>
    %c0_393 = arith.constant 0 : index
    %c21_394 = arith.constant 21 : index
    %c0_395 = arith.constant 0 : index
    %426 = vector.load %arg2[%c0_393, %c21_394, %c0_395] : memref<1x32x256xf32, #tpu.memory_space<vmem>>, vector<1x1x256xf32>
    %427 = vector.shape_cast %426 : vector<1x1x256xf32> to vector<1x256xf32>
    %c0_396 = arith.constant 0 : index
    %c0_397 = arith.constant 0 : index
    %c21_398 = arith.constant 21 : index
    %c8_399 = arith.constant 8 : index
    %c0_400 = arith.constant 0 : index
    %428 = vector.load %arg3[%c0_396, %c0_397, %c21_398, %c8_399, %c0_400] : memref<1x1x32x64x256xbf16, #tpu.memory_space<vmem>>, vector<1x1x1x8x256xbf16>
    %429 = vector.shape_cast %428 : vector<1x1x1x8x256xbf16> to vector<8x256xbf16>
    %430 = arith.extf %429 : vector<8x256xbf16> to vector<8x256xf32>
    %431 = vector.broadcast %427 : vector<1x256xf32> to vector<8x256xf32>
    %432 = arith.mulf %430, %431 : vector<8x256xf32>
    %433 = arith.addf %425, %432 : vector<8x256xf32>
    %c0_401 = arith.constant 0 : index
    %c22_402 = arith.constant 22 : index
    %c0_403 = arith.constant 0 : index
    %434 = vector.load %arg2[%c0_401, %c22_402, %c0_403] : memref<1x32x256xf32, #tpu.memory_space<vmem>>, vector<1x1x256xf32>
    %435 = vector.shape_cast %434 : vector<1x1x256xf32> to vector<1x256xf32>
    %c0_404 = arith.constant 0 : index
    %c0_405 = arith.constant 0 : index
    %c22_406 = arith.constant 22 : index
    %c8_407 = arith.constant 8 : index
    %c0_408 = arith.constant 0 : index
    %436 = vector.load %arg3[%c0_404, %c0_405, %c22_406, %c8_407, %c0_408] : memref<1x1x32x64x256xbf16, #tpu.memory_space<vmem>>, vector<1x1x1x8x256xbf16>
    %437 = vector.shape_cast %436 : vector<1x1x1x8x256xbf16> to vector<8x256xbf16>
    %438 = arith.extf %437 : vector<8x256xbf16> to vector<8x256xf32>
    %439 = vector.broadcast %435 : vector<1x256xf32> to vector<8x256xf32>
    %440 = arith.mulf %438, %439 : vector<8x256xf32>
    %441 = arith.addf %433, %440 : vector<8x256xf32>
    %c0_409 = arith.constant 0 : index
    %c23_410 = arith.constant 23 : index
    %c0_411 = arith.constant 0 : index
    %442 = vector.load %arg2[%c0_409, %c23_410, %c0_411] : memref<1x32x256xf32, #tpu.memory_space<vmem>>, vector<1x1x256xf32>
    %443 = vector.shape_cast %442 : vector<1x1x256xf32> to vector<1x256xf32>
    %c0_412 = arith.constant 0 : index
    %c0_413 = arith.constant 0 : index
    %c23_414 = arith.constant 23 : index
    %c8_415 = arith.constant 8 : index
    %c0_416 = arith.constant 0 : index
    %444 = vector.load %arg3[%c0_412, %c0_413, %c23_414, %c8_415, %c0_416] : memref<1x1x32x64x256xbf16, #tpu.memory_space<vmem>>, vector<1x1x1x8x256xbf16>
    %445 = vector.shape_cast %444 : vector<1x1x1x8x256xbf16> to vector<8x256xbf16>
    %446 = arith.extf %445 : vector<8x256xbf16> to vector<8x256xf32>
    %447 = vector.broadcast %443 : vector<1x256xf32> to vector<8x256xf32>
    %448 = arith.mulf %446, %447 : vector<8x256xf32>
    %449 = arith.addf %441, %448 : vector<8x256xf32>
    %c0_417 = arith.constant 0 : index
    %c24_418 = arith.constant 24 : index
    %c0_419 = arith.constant 0 : index
    %450 = vector.load %arg2[%c0_417, %c24_418, %c0_419] : memref<1x32x256xf32, #tpu.memory_space<vmem>>, vector<1x1x256xf32>
    %451 = vector.shape_cast %450 : vector<1x1x256xf32> to vector<1x256xf32>
    %c0_420 = arith.constant 0 : index
    %c0_421 = arith.constant 0 : index
    %c24_422 = arith.constant 24 : index
    %c8_423 = arith.constant 8 : index
    %c0_424 = arith.constant 0 : index
    %452 = vector.load %arg3[%c0_420, %c0_421, %c24_422, %c8_423, %c0_424] : memref<1x1x32x64x256xbf16, #tpu.memory_space<vmem>>, vector<1x1x1x8x256xbf16>
    %453 = vector.shape_cast %452 : vector<1x1x1x8x256xbf16> to vector<8x256xbf16>
    %454 = arith.extf %453 : vector<8x256xbf16> to vector<8x256xf32>
    %455 = vector.broadcast %451 : vector<1x256xf32> to vector<8x256xf32>
    %456 = arith.mulf %454, %455 : vector<8x256xf32>
    %457 = arith.addf %449, %456 : vector<8x256xf32>
    %c0_425 = arith.constant 0 : index
    %c25_426 = arith.constant 25 : index
    %c0_427 = arith.constant 0 : index
    %458 = vector.load %arg2[%c0_425, %c25_426, %c0_427] : memref<1x32x256xf32, #tpu.memory_space<vmem>>, vector<1x1x256xf32>
    %459 = vector.shape_cast %458 : vector<1x1x256xf32> to vector<1x256xf32>
    %c0_428 = arith.constant 0 : index
    %c0_429 = arith.constant 0 : index
    %c25_430 = arith.constant 25 : index
    %c8_431 = arith.constant 8 : index
    %c0_432 = arith.constant 0 : index
    %460 = vector.load %arg3[%c0_428, %c0_429, %c25_430, %c8_431, %c0_432] : memref<1x1x32x64x256xbf16, #tpu.memory_space<vmem>>, vector<1x1x1x8x256xbf16>
    %461 = vector.shape_cast %460 : vector<1x1x1x8x256xbf16> to vector<8x256xbf16>
    %462 = arith.extf %461 : vector<8x256xbf16> to vector<8x256xf32>
    %463 = vector.broadcast %459 : vector<1x256xf32> to vector<8x256xf32>
    %464 = arith.mulf %462, %463 : vector<8x256xf32>
    %465 = arith.addf %457, %464 : vector<8x256xf32>
    %c0_433 = arith.constant 0 : index
    %c26_434 = arith.constant 26 : index
    %c0_435 = arith.constant 0 : index
    %466 = vector.load %arg2[%c0_433, %c26_434, %c0_435] : memref<1x32x256xf32, #tpu.memory_space<vmem>>, vector<1x1x256xf32>
    %467 = vector.shape_cast %466 : vector<1x1x256xf32> to vector<1x256xf32>
    %c0_436 = arith.constant 0 : index
    %c0_437 = arith.constant 0 : index
    %c26_438 = arith.constant 26 : index
    %c8_439 = arith.constant 8 : index
    %c0_440 = arith.constant 0 : index
    %468 = vector.load %arg3[%c0_436, %c0_437, %c26_438, %c8_439, %c0_440] : memref<1x1x32x64x256xbf16, #tpu.memory_space<vmem>>, vector<1x1x1x8x256xbf16>
    %469 = vector.shape_cast %468 : vector<1x1x1x8x256xbf16> to vector<8x256xbf16>
    %470 = arith.extf %469 : vector<8x256xbf16> to vector<8x256xf32>
    %471 = vector.broadcast %467 : vector<1x256xf32> to vector<8x256xf32>
    %472 = arith.mulf %470, %471 : vector<8x256xf32>
    %473 = arith.addf %465, %472 : vector<8x256xf32>
    %c0_441 = arith.constant 0 : index
    %c27_442 = arith.constant 27 : index
    %c0_443 = arith.constant 0 : index
    %474 = vector.load %arg2[%c0_441, %c27_442, %c0_443] : memref<1x32x256xf32, #tpu.memory_space<vmem>>, vector<1x1x256xf32>
    %475 = vector.shape_cast %474 : vector<1x1x256xf32> to vector<1x256xf32>
    %c0_444 = arith.constant 0 : index
    %c0_445 = arith.constant 0 : index
    %c27_446 = arith.constant 27 : index
    %c8_447 = arith.constant 8 : index
    %c0_448 = arith.constant 0 : index
    %476 = vector.load %arg3[%c0_444, %c0_445, %c27_446, %c8_447, %c0_448] : memref<1x1x32x64x256xbf16, #tpu.memory_space<vmem>>, vector<1x1x1x8x256xbf16>
    %477 = vector.shape_cast %476 : vector<1x1x1x8x256xbf16> to vector<8x256xbf16>
    %478 = arith.extf %477 : vector<8x256xbf16> to vector<8x256xf32>
    %479 = vector.broadcast %475 : vector<1x256xf32> to vector<8x256xf32>
    %480 = arith.mulf %478, %479 : vector<8x256xf32>
    %481 = arith.addf %473, %480 : vector<8x256xf32>
    %c0_449 = arith.constant 0 : index
    %c28_450 = arith.constant 28 : index
    %c0_451 = arith.constant 0 : index
    %482 = vector.load %arg2[%c0_449, %c28_450, %c0_451] : memref<1x32x256xf32, #tpu.memory_space<vmem>>, vector<1x1x256xf32>
    %483 = vector.shape_cast %482 : vector<1x1x256xf32> to vector<1x256xf32>
    %c0_452 = arith.constant 0 : index
    %c0_453 = arith.constant 0 : index
    %c28_454 = arith.constant 28 : index
    %c8_455 = arith.constant 8 : index
    %c0_456 = arith.constant 0 : index
    %484 = vector.load %arg3[%c0_452, %c0_453, %c28_454, %c8_455, %c0_456] : memref<1x1x32x64x256xbf16, #tpu.memory_space<vmem>>, vector<1x1x1x8x256xbf16>
    %485 = vector.shape_cast %484 : vector<1x1x1x8x256xbf16> to vector<8x256xbf16>
    %486 = arith.extf %485 : vector<8x256xbf16> to vector<8x256xf32>
    %487 = vector.broadcast %483 : vector<1x256xf32> to vector<8x256xf32>
    %488 = arith.mulf %486, %487 : vector<8x256xf32>
    %489 = arith.addf %481, %488 : vector<8x256xf32>
    %c0_457 = arith.constant 0 : index
    %c29_458 = arith.constant 29 : index
    %c0_459 = arith.constant 0 : index
    %490 = vector.load %arg2[%c0_457, %c29_458, %c0_459] : memref<1x32x256xf32, #tpu.memory_space<vmem>>, vector<1x1x256xf32>
    %491 = vector.shape_cast %490 : vector<1x1x256xf32> to vector<1x256xf32>
    %c0_460 = arith.constant 0 : index
    %c0_461 = arith.constant 0 : index
    %c29_462 = arith.constant 29 : index
    %c8_463 = arith.constant 8 : index
    %c0_464 = arith.constant 0 : index
    %492 = vector.load %arg3[%c0_460, %c0_461, %c29_462, %c8_463, %c0_464] : memref<1x1x32x64x256xbf16, #tpu.memory_space<vmem>>, vector<1x1x1x8x256xbf16>
    %493 = vector.shape_cast %492 : vector<1x1x1x8x256xbf16> to vector<8x256xbf16>
    %494 = arith.extf %493 : vector<8x256xbf16> to vector<8x256xf32>
    %495 = vector.broadcast %491 : vector<1x256xf32> to vector<8x256xf32>
    %496 = arith.mulf %494, %495 : vector<8x256xf32>
    %497 = arith.addf %489, %496 : vector<8x256xf32>
    %c0_465 = arith.constant 0 : index
    %c30_466 = arith.constant 30 : index
    %c0_467 = arith.constant 0 : index
    %498 = vector.load %arg2[%c0_465, %c30_466, %c0_467] : memref<1x32x256xf32, #tpu.memory_space<vmem>>, vector<1x1x256xf32>
    %499 = vector.shape_cast %498 : vector<1x1x256xf32> to vector<1x256xf32>
    %c0_468 = arith.constant 0 : index
    %c0_469 = arith.constant 0 : index
    %c30_470 = arith.constant 30 : index
    %c8_471 = arith.constant 8 : index
    %c0_472 = arith.constant 0 : index
    %500 = vector.load %arg3[%c0_468, %c0_469, %c30_470, %c8_471, %c0_472] : memref<1x1x32x64x256xbf16, #tpu.memory_space<vmem>>, vector<1x1x1x8x256xbf16>
    %501 = vector.shape_cast %500 : vector<1x1x1x8x256xbf16> to vector<8x256xbf16>
    %502 = arith.extf %501 : vector<8x256xbf16> to vector<8x256xf32>
    %503 = vector.broadcast %499 : vector<1x256xf32> to vector<8x256xf32>
    %504 = arith.mulf %502, %503 : vector<8x256xf32>
    %505 = arith.addf %497, %504 : vector<8x256xf32>
    %c0_473 = arith.constant 0 : index
    %c31_474 = arith.constant 31 : index
    %c0_475 = arith.constant 0 : index
    %506 = vector.load %arg2[%c0_473, %c31_474, %c0_475] : memref<1x32x256xf32, #tpu.memory_space<vmem>>, vector<1x1x256xf32>
    %507 = vector.shape_cast %506 : vector<1x1x256xf32> to vector<1x256xf32>
    %c0_476 = arith.constant 0 : index
    %c0_477 = arith.constant 0 : index
    %c31_478 = arith.constant 31 : index
    %c8_479 = arith.constant 8 : index
    %c0_480 = arith.constant 0 : index
    %508 = vector.load %arg3[%c0_476, %c0_477, %c31_478, %c8_479, %c0_480] : memref<1x1x32x64x256xbf16, #tpu.memory_space<vmem>>, vector<1x1x1x8x256xbf16>
    %509 = vector.shape_cast %508 : vector<1x1x1x8x256xbf16> to vector<8x256xbf16>
    %510 = arith.extf %509 : vector<8x256xbf16> to vector<8x256xf32>
    %511 = vector.broadcast %507 : vector<1x256xf32> to vector<8x256xf32>
    %512 = arith.mulf %510, %511 : vector<8x256xf32>
    %513 = arith.addf %505, %512 : vector<8x256xf32>
    %cst_481 = arith.constant 0.000000e+00 : f32
    %514 = vector.broadcast %cst_481 : f32 to vector<8x256xf32>
    %c0_482 = arith.constant 0 : index
    %c0_483 = arith.constant 0 : index
    %c0_484 = arith.constant 0 : index
    %515 = vector.load %arg2[%c0_482, %c0_483, %c0_484] : memref<1x32x256xf32, #tpu.memory_space<vmem>>, vector<1x1x256xf32>
    %516 = vector.shape_cast %515 : vector<1x1x256xf32> to vector<1x256xf32>
    %c0_485 = arith.constant 0 : index
    %c0_486 = arith.constant 0 : index
    %c0_487 = arith.constant 0 : index
    %c16_488 = arith.constant 16 : index
    %c0_489 = arith.constant 0 : index
    %517 = vector.load %arg3[%c0_485, %c0_486, %c0_487, %c16_488, %c0_489] : memref<1x1x32x64x256xbf16, #tpu.memory_space<vmem>>, vector<1x1x1x8x256xbf16>
    %518 = vector.shape_cast %517 : vector<1x1x1x8x256xbf16> to vector<8x256xbf16>
    %519 = arith.extf %518 : vector<8x256xbf16> to vector<8x256xf32>
    %520 = vector.broadcast %516 : vector<1x256xf32> to vector<8x256xf32>
    %521 = arith.mulf %519, %520 : vector<8x256xf32>
    %522 = arith.addf %514, %521 : vector<8x256xf32>
    %c0_490 = arith.constant 0 : index
    %c1_491 = arith.constant 1 : index
    %c0_492 = arith.constant 0 : index
    %523 = vector.load %arg2[%c0_490, %c1_491, %c0_492] : memref<1x32x256xf32, #tpu.memory_space<vmem>>, vector<1x1x256xf32>
    %524 = vector.shape_cast %523 : vector<1x1x256xf32> to vector<1x256xf32>
    %c0_493 = arith.constant 0 : index
    %c0_494 = arith.constant 0 : index
    %c1_495 = arith.constant 1 : index
    %c16_496 = arith.constant 16 : index
    %c0_497 = arith.constant 0 : index
    %525 = vector.load %arg3[%c0_493, %c0_494, %c1_495, %c16_496, %c0_497] : memref<1x1x32x64x256xbf16, #tpu.memory_space<vmem>>, vector<1x1x1x8x256xbf16>
    %526 = vector.shape_cast %525 : vector<1x1x1x8x256xbf16> to vector<8x256xbf16>
    %527 = arith.extf %526 : vector<8x256xbf16> to vector<8x256xf32>
    %528 = vector.broadcast %524 : vector<1x256xf32> to vector<8x256xf32>
    %529 = arith.mulf %527, %528 : vector<8x256xf32>
    %530 = arith.addf %522, %529 : vector<8x256xf32>
    %c0_498 = arith.constant 0 : index
    %c2_499 = arith.constant 2 : index
    %c0_500 = arith.constant 0 : index
    %531 = vector.load %arg2[%c0_498, %c2_499, %c0_500] : memref<1x32x256xf32, #tpu.memory_space<vmem>>, vector<1x1x256xf32>
    %532 = vector.shape_cast %531 : vector<1x1x256xf32> to vector<1x256xf32>
    %c0_501 = arith.constant 0 : index
    %c0_502 = arith.constant 0 : index
    %c2_503 = arith.constant 2 : index
    %c16_504 = arith.constant 16 : index
    %c0_505 = arith.constant 0 : index
    %533 = vector.load %arg3[%c0_501, %c0_502, %c2_503, %c16_504, %c0_505] : memref<1x1x32x64x256xbf16, #tpu.memory_space<vmem>>, vector<1x1x1x8x256xbf16>
    %534 = vector.shape_cast %533 : vector<1x1x1x8x256xbf16> to vector<8x256xbf16>
    %535 = arith.extf %534 : vector<8x256xbf16> to vector<8x256xf32>
    %536 = vector.broadcast %532 : vector<1x256xf32> to vector<8x256xf32>
    %537 = arith.mulf %535, %536 : vector<8x256xf32>
    %538 = arith.addf %530, %537 : vector<8x256xf32>
    %c0_506 = arith.constant 0 : index
    %c3_507 = arith.constant 3 : index
    %c0_508 = arith.constant 0 : index
    %539 = vector.load %arg2[%c0_506, %c3_507, %c0_508] : memref<1x32x256xf32, #tpu.memory_space<vmem>>, vector<1x1x256xf32>
    %540 = vector.shape_cast %539 : vector<1x1x256xf32> to vector<1x256xf32>
    %c0_509 = arith.constant 0 : index
    %c0_510 = arith.constant 0 : index
    %c3_511 = arith.constant 3 : index
    %c16_512 = arith.constant 16 : index
    %c0_513 = arith.constant 0 : index
    %541 = vector.load %arg3[%c0_509, %c0_510, %c3_511, %c16_512, %c0_513] : memref<1x1x32x64x256xbf16, #tpu.memory_space<vmem>>, vector<1x1x1x8x256xbf16>
    %542 = vector.shape_cast %541 : vector<1x1x1x8x256xbf16> to vector<8x256xbf16>
    %543 = arith.extf %542 : vector<8x256xbf16> to vector<8x256xf32>
    %544 = vector.broadcast %540 : vector<1x256xf32> to vector<8x256xf32>
    %545 = arith.mulf %543, %544 : vector<8x256xf32>
    %546 = arith.addf %538, %545 : vector<8x256xf32>
    %c0_514 = arith.constant 0 : index
    %c4_515 = arith.constant 4 : index
    %c0_516 = arith.constant 0 : index
    %547 = vector.load %arg2[%c0_514, %c4_515, %c0_516] : memref<1x32x256xf32, #tpu.memory_space<vmem>>, vector<1x1x256xf32>
    %548 = vector.shape_cast %547 : vector<1x1x256xf32> to vector<1x256xf32>
    %c0_517 = arith.constant 0 : index
    %c0_518 = arith.constant 0 : index
    %c4_519 = arith.constant 4 : index
    %c16_520 = arith.constant 16 : index
    %c0_521 = arith.constant 0 : index
    %549 = vector.load %arg3[%c0_517, %c0_518, %c4_519, %c16_520, %c0_521] : memref<1x1x32x64x256xbf16, #tpu.memory_space<vmem>>, vector<1x1x1x8x256xbf16>
    %550 = vector.shape_cast %549 : vector<1x1x1x8x256xbf16> to vector<8x256xbf16>
    %551 = arith.extf %550 : vector<8x256xbf16> to vector<8x256xf32>
    %552 = vector.broadcast %548 : vector<1x256xf32> to vector<8x256xf32>
    %553 = arith.mulf %551, %552 : vector<8x256xf32>
    %554 = arith.addf %546, %553 : vector<8x256xf32>
    %c0_522 = arith.constant 0 : index
    %c5_523 = arith.constant 5 : index
    %c0_524 = arith.constant 0 : index
    %555 = vector.load %arg2[%c0_522, %c5_523, %c0_524] : memref<1x32x256xf32, #tpu.memory_space<vmem>>, vector<1x1x256xf32>
    %556 = vector.shape_cast %555 : vector<1x1x256xf32> to vector<1x256xf32>
    %c0_525 = arith.constant 0 : index
    %c0_526 = arith.constant 0 : index
    %c5_527 = arith.constant 5 : index
    %c16_528 = arith.constant 16 : index
    %c0_529 = arith.constant 0 : index
    %557 = vector.load %arg3[%c0_525, %c0_526, %c5_527, %c16_528, %c0_529] : memref<1x1x32x64x256xbf16, #tpu.memory_space<vmem>>, vector<1x1x1x8x256xbf16>
    %558 = vector.shape_cast %557 : vector<1x1x1x8x256xbf16> to vector<8x256xbf16>
    %559 = arith.extf %558 : vector<8x256xbf16> to vector<8x256xf32>
    %560 = vector.broadcast %556 : vector<1x256xf32> to vector<8x256xf32>
    %561 = arith.mulf %559, %560 : vector<8x256xf32>
    %562 = arith.addf %554, %561 : vector<8x256xf32>
    %c0_530 = arith.constant 0 : index
    %c6_531 = arith.constant 6 : index
    %c0_532 = arith.constant 0 : index
    %563 = vector.load %arg2[%c0_530, %c6_531, %c0_532] : memref<1x32x256xf32, #tpu.memory_space<vmem>>, vector<1x1x256xf32>
    %564 = vector.shape_cast %563 : vector<1x1x256xf32> to vector<1x256xf32>
    %c0_533 = arith.constant 0 : index
    %c0_534 = arith.constant 0 : index
    %c6_535 = arith.constant 6 : index
    %c16_536 = arith.constant 16 : index
    %c0_537 = arith.constant 0 : index
    %565 = vector.load %arg3[%c0_533, %c0_534, %c6_535, %c16_536, %c0_537] : memref<1x1x32x64x256xbf16, #tpu.memory_space<vmem>>, vector<1x1x1x8x256xbf16>
    %566 = vector.shape_cast %565 : vector<1x1x1x8x256xbf16> to vector<8x256xbf16>
    %567 = arith.extf %566 : vector<8x256xbf16> to vector<8x256xf32>
    %568 = vector.broadcast %564 : vector<1x256xf32> to vector<8x256xf32>
    %569 = arith.mulf %567, %568 : vector<8x256xf32>
    %570 = arith.addf %562, %569 : vector<8x256xf32>
    %c0_538 = arith.constant 0 : index
    %c7_539 = arith.constant 7 : index
    %c0_540 = arith.constant 0 : index
    %571 = vector.load %arg2[%c0_538, %c7_539, %c0_540] : memref<1x32x256xf32, #tpu.memory_space<vmem>>, vector<1x1x256xf32>
    %572 = vector.shape_cast %571 : vector<1x1x256xf32> to vector<1x256xf32>
    %c0_541 = arith.constant 0 : index
    %c0_542 = arith.constant 0 : index
    %c7_543 = arith.constant 7 : index
    %c16_544 = arith.constant 16 : index
    %c0_545 = arith.constant 0 : index
    %573 = vector.load %arg3[%c0_541, %c0_542, %c7_543, %c16_544, %c0_545] : memref<1x1x32x64x256xbf16, #tpu.memory_space<vmem>>, vector<1x1x1x8x256xbf16>
    %574 = vector.shape_cast %573 : vector<1x1x1x8x256xbf16> to vector<8x256xbf16>
    %575 = arith.extf %574 : vector<8x256xbf16> to vector<8x256xf32>
    %576 = vector.broadcast %572 : vector<1x256xf32> to vector<8x256xf32>
    %577 = arith.mulf %575, %576 : vector<8x256xf32>
    %578 = arith.addf %570, %577 : vector<8x256xf32>
    %c0_546 = arith.constant 0 : index
    %c8_547 = arith.constant 8 : index
    %c0_548 = arith.constant 0 : index
    %579 = vector.load %arg2[%c0_546, %c8_547, %c0_548] : memref<1x32x256xf32, #tpu.memory_space<vmem>>, vector<1x1x256xf32>
    %580 = vector.shape_cast %579 : vector<1x1x256xf32> to vector<1x256xf32>
    %c0_549 = arith.constant 0 : index
    %c0_550 = arith.constant 0 : index
    %c8_551 = arith.constant 8 : index
    %c16_552 = arith.constant 16 : index
    %c0_553 = arith.constant 0 : index
    %581 = vector.load %arg3[%c0_549, %c0_550, %c8_551, %c16_552, %c0_553] : memref<1x1x32x64x256xbf16, #tpu.memory_space<vmem>>, vector<1x1x1x8x256xbf16>
    %582 = vector.shape_cast %581 : vector<1x1x1x8x256xbf16> to vector<8x256xbf16>
    %583 = arith.extf %582 : vector<8x256xbf16> to vector<8x256xf32>
    %584 = vector.broadcast %580 : vector<1x256xf32> to vector<8x256xf32>
    %585 = arith.mulf %583, %584 : vector<8x256xf32>
    %586 = arith.addf %578, %585 : vector<8x256xf32>
    %c0_554 = arith.constant 0 : index
    %c9_555 = arith.constant 9 : index
    %c0_556 = arith.constant 0 : index
    %587 = vector.load %arg2[%c0_554, %c9_555, %c0_556] : memref<1x32x256xf32, #tpu.memory_space<vmem>>, vector<1x1x256xf32>
    %588 = vector.shape_cast %587 : vector<1x1x256xf32> to vector<1x256xf32>
    %c0_557 = arith.constant 0 : index
    %c0_558 = arith.constant 0 : index
    %c9_559 = arith.constant 9 : index
    %c16_560 = arith.constant 16 : index
    %c0_561 = arith.constant 0 : index
    %589 = vector.load %arg3[%c0_557, %c0_558, %c9_559, %c16_560, %c0_561] : memref<1x1x32x64x256xbf16, #tpu.memory_space<vmem>>, vector<1x1x1x8x256xbf16>
    %590 = vector.shape_cast %589 : vector<1x1x1x8x256xbf16> to vector<8x256xbf16>
    %591 = arith.extf %590 : vector<8x256xbf16> to vector<8x256xf32>
    %592 = vector.broadcast %588 : vector<1x256xf32> to vector<8x256xf32>
    %593 = arith.mulf %591, %592 : vector<8x256xf32>
    %594 = arith.addf %586, %593 : vector<8x256xf32>
    %c0_562 = arith.constant 0 : index
    %c10_563 = arith.constant 10 : index
    %c0_564 = arith.constant 0 : index
    %595 = vector.load %arg2[%c0_562, %c10_563, %c0_564] : memref<1x32x256xf32, #tpu.memory_space<vmem>>, vector<1x1x256xf32>
    %596 = vector.shape_cast %595 : vector<1x1x256xf32> to vector<1x256xf32>
    %c0_565 = arith.constant 0 : index
    %c0_566 = arith.constant 0 : index
    %c10_567 = arith.constant 10 : index
    %c16_568 = arith.constant 16 : index
    %c0_569 = arith.constant 0 : index
    %597 = vector.load %arg3[%c0_565, %c0_566, %c10_567, %c16_568, %c0_569] : memref<1x1x32x64x256xbf16, #tpu.memory_space<vmem>>, vector<1x1x1x8x256xbf16>
    %598 = vector.shape_cast %597 : vector<1x1x1x8x256xbf16> to vector<8x256xbf16>
    %599 = arith.extf %598 : vector<8x256xbf16> to vector<8x256xf32>
    %600 = vector.broadcast %596 : vector<1x256xf32> to vector<8x256xf32>
    %601 = arith.mulf %599, %600 : vector<8x256xf32>
    %602 = arith.addf %594, %601 : vector<8x256xf32>
    %c0_570 = arith.constant 0 : index
    %c11_571 = arith.constant 11 : index
    %c0_572 = arith.constant 0 : index
    %603 = vector.load %arg2[%c0_570, %c11_571, %c0_572] : memref<1x32x256xf32, #tpu.memory_space<vmem>>, vector<1x1x256xf32>
    %604 = vector.shape_cast %603 : vector<1x1x256xf32> to vector<1x256xf32>
    %c0_573 = arith.constant 0 : index
    %c0_574 = arith.constant 0 : index
    %c11_575 = arith.constant 11 : index
    %c16_576 = arith.constant 16 : index
    %c0_577 = arith.constant 0 : index
    %605 = vector.load %arg3[%c0_573, %c0_574, %c11_575, %c16_576, %c0_577] : memref<1x1x32x64x256xbf16, #tpu.memory_space<vmem>>, vector<1x1x1x8x256xbf16>
    %606 = vector.shape_cast %605 : vector<1x1x1x8x256xbf16> to vector<8x256xbf16>
    %607 = arith.extf %606 : vector<8x256xbf16> to vector<8x256xf32>
    %608 = vector.broadcast %604 : vector<1x256xf32> to vector<8x256xf32>
    %609 = arith.mulf %607, %608 : vector<8x256xf32>
    %610 = arith.addf %602, %609 : vector<8x256xf32>
    %c0_578 = arith.constant 0 : index
    %c12_579 = arith.constant 12 : index
    %c0_580 = arith.constant 0 : index
    %611 = vector.load %arg2[%c0_578, %c12_579, %c0_580] : memref<1x32x256xf32, #tpu.memory_space<vmem>>, vector<1x1x256xf32>
    %612 = vector.shape_cast %611 : vector<1x1x256xf32> to vector<1x256xf32>
    %c0_581 = arith.constant 0 : index
    %c0_582 = arith.constant 0 : index
    %c12_583 = arith.constant 12 : index
    %c16_584 = arith.constant 16 : index
    %c0_585 = arith.constant 0 : index
    %613 = vector.load %arg3[%c0_581, %c0_582, %c12_583, %c16_584, %c0_585] : memref<1x1x32x64x256xbf16, #tpu.memory_space<vmem>>, vector<1x1x1x8x256xbf16>
    %614 = vector.shape_cast %613 : vector<1x1x1x8x256xbf16> to vector<8x256xbf16>
    %615 = arith.extf %614 : vector<8x256xbf16> to vector<8x256xf32>
    %616 = vector.broadcast %612 : vector<1x256xf32> to vector<8x256xf32>
    %617 = arith.mulf %615, %616 : vector<8x256xf32>
    %618 = arith.addf %610, %617 : vector<8x256xf32>
    %c0_586 = arith.constant 0 : index
    %c13_587 = arith.constant 13 : index
    %c0_588 = arith.constant 0 : index
    %619 = vector.load %arg2[%c0_586, %c13_587, %c0_588] : memref<1x32x256xf32, #tpu.memory_space<vmem>>, vector<1x1x256xf32>
    %620 = vector.shape_cast %619 : vector<1x1x256xf32> to vector<1x256xf32>
    %c0_589 = arith.constant 0 : index
    %c0_590 = arith.constant 0 : index
    %c13_591 = arith.constant 13 : index
    %c16_592 = arith.constant 16 : index
    %c0_593 = arith.constant 0 : index
    %621 = vector.load %arg3[%c0_589, %c0_590, %c13_591, %c16_592, %c0_593] : memref<1x1x32x64x256xbf16, #tpu.memory_space<vmem>>, vector<1x1x1x8x256xbf16>
    %622 = vector.shape_cast %621 : vector<1x1x1x8x256xbf16> to vector<8x256xbf16>
    %623 = arith.extf %622 : vector<8x256xbf16> to vector<8x256xf32>
    %624 = vector.broadcast %620 : vector<1x256xf32> to vector<8x256xf32>
    %625 = arith.mulf %623, %624 : vector<8x256xf32>
    %626 = arith.addf %618, %625 : vector<8x256xf32>
    %c0_594 = arith.constant 0 : index
    %c14_595 = arith.constant 14 : index
    %c0_596 = arith.constant 0 : index
    %627 = vector.load %arg2[%c0_594, %c14_595, %c0_596] : memref<1x32x256xf32, #tpu.memory_space<vmem>>, vector<1x1x256xf32>
    %628 = vector.shape_cast %627 : vector<1x1x256xf32> to vector<1x256xf32>
    %c0_597 = arith.constant 0 : index
    %c0_598 = arith.constant 0 : index
    %c14_599 = arith.constant 14 : index
    %c16_600 = arith.constant 16 : index
    %c0_601 = arith.constant 0 : index
    %629 = vector.load %arg3[%c0_597, %c0_598, %c14_599, %c16_600, %c0_601] : memref<1x1x32x64x256xbf16, #tpu.memory_space<vmem>>, vector<1x1x1x8x256xbf16>
    %630 = vector.shape_cast %629 : vector<1x1x1x8x256xbf16> to vector<8x256xbf16>
    %631 = arith.extf %630 : vector<8x256xbf16> to vector<8x256xf32>
    %632 = vector.broadcast %628 : vector<1x256xf32> to vector<8x256xf32>
    %633 = arith.mulf %631, %632 : vector<8x256xf32>
    %634 = arith.addf %626, %633 : vector<8x256xf32>
    %c0_602 = arith.constant 0 : index
    %c15_603 = arith.constant 15 : index
    %c0_604 = arith.constant 0 : index
    %635 = vector.load %arg2[%c0_602, %c15_603, %c0_604] : memref<1x32x256xf32, #tpu.memory_space<vmem>>, vector<1x1x256xf32>
    %636 = vector.shape_cast %635 : vector<1x1x256xf32> to vector<1x256xf32>
    %c0_605 = arith.constant 0 : index
    %c0_606 = arith.constant 0 : index
    %c15_607 = arith.constant 15 : index
    %c16_608 = arith.constant 16 : index
    %c0_609 = arith.constant 0 : index
    %637 = vector.load %arg3[%c0_605, %c0_606, %c15_607, %c16_608, %c0_609] : memref<1x1x32x64x256xbf16, #tpu.memory_space<vmem>>, vector<1x1x1x8x256xbf16>
    %638 = vector.shape_cast %637 : vector<1x1x1x8x256xbf16> to vector<8x256xbf16>
    %639 = arith.extf %638 : vector<8x256xbf16> to vector<8x256xf32>
    %640 = vector.broadcast %636 : vector<1x256xf32> to vector<8x256xf32>
    %641 = arith.mulf %639, %640 : vector<8x256xf32>
    %642 = arith.addf %634, %641 : vector<8x256xf32>
    %c0_610 = arith.constant 0 : index
    %c16_611 = arith.constant 16 : index
    %c0_612 = arith.constant 0 : index
    %643 = vector.load %arg2[%c0_610, %c16_611, %c0_612] : memref<1x32x256xf32, #tpu.memory_space<vmem>>, vector<1x1x256xf32>
    %644 = vector.shape_cast %643 : vector<1x1x256xf32> to vector<1x256xf32>
    %c0_613 = arith.constant 0 : index
    %c0_614 = arith.constant 0 : index
    %c16_615 = arith.constant 16 : index
    %c16_616 = arith.constant 16 : index
    %c0_617 = arith.constant 0 : index
    %645 = vector.load %arg3[%c0_613, %c0_614, %c16_615, %c16_616, %c0_617] : memref<1x1x32x64x256xbf16, #tpu.memory_space<vmem>>, vector<1x1x1x8x256xbf16>
    %646 = vector.shape_cast %645 : vector<1x1x1x8x256xbf16> to vector<8x256xbf16>
    %647 = arith.extf %646 : vector<8x256xbf16> to vector<8x256xf32>
    %648 = vector.broadcast %644 : vector<1x256xf32> to vector<8x256xf32>
    %649 = arith.mulf %647, %648 : vector<8x256xf32>
    %650 = arith.addf %642, %649 : vector<8x256xf32>
    %c0_618 = arith.constant 0 : index
    %c17_619 = arith.constant 17 : index
    %c0_620 = arith.constant 0 : index
    %651 = vector.load %arg2[%c0_618, %c17_619, %c0_620] : memref<1x32x256xf32, #tpu.memory_space<vmem>>, vector<1x1x256xf32>
    %652 = vector.shape_cast %651 : vector<1x1x256xf32> to vector<1x256xf32>
    %c0_621 = arith.constant 0 : index
    %c0_622 = arith.constant 0 : index
    %c17_623 = arith.constant 17 : index
    %c16_624 = arith.constant 16 : index
    %c0_625 = arith.constant 0 : index
    %653 = vector.load %arg3[%c0_621, %c0_622, %c17_623, %c16_624, %c0_625] : memref<1x1x32x64x256xbf16, #tpu.memory_space<vmem>>, vector<1x1x1x8x256xbf16>
    %654 = vector.shape_cast %653 : vector<1x1x1x8x256xbf16> to vector<8x256xbf16>
    %655 = arith.extf %654 : vector<8x256xbf16> to vector<8x256xf32>
    %656 = vector.broadcast %652 : vector<1x256xf32> to vector<8x256xf32>
    %657 = arith.mulf %655, %656 : vector<8x256xf32>
    %658 = arith.addf %650, %657 : vector<8x256xf32>
    %c0_626 = arith.constant 0 : index
    %c18_627 = arith.constant 18 : index
    %c0_628 = arith.constant 0 : index
    %659 = vector.load %arg2[%c0_626, %c18_627, %c0_628] : memref<1x32x256xf32, #tpu.memory_space<vmem>>, vector<1x1x256xf32>
    %660 = vector.shape_cast %659 : vector<1x1x256xf32> to vector<1x256xf32>
    %c0_629 = arith.constant 0 : index
    %c0_630 = arith.constant 0 : index
    %c18_631 = arith.constant 18 : index
    %c16_632 = arith.constant 16 : index
    %c0_633 = arith.constant 0 : index
    %661 = vector.load %arg3[%c0_629, %c0_630, %c18_631, %c16_632, %c0_633] : memref<1x1x32x64x256xbf16, #tpu.memory_space<vmem>>, vector<1x1x1x8x256xbf16>
    %662 = vector.shape_cast %661 : vector<1x1x1x8x256xbf16> to vector<8x256xbf16>
    %663 = arith.extf %662 : vector<8x256xbf16> to vector<8x256xf32>
    %664 = vector.broadcast %660 : vector<1x256xf32> to vector<8x256xf32>
    %665 = arith.mulf %663, %664 : vector<8x256xf32>
    %666 = arith.addf %658, %665 : vector<8x256xf32>
    %c0_634 = arith.constant 0 : index
    %c19_635 = arith.constant 19 : index
    %c0_636 = arith.constant 0 : index
    %667 = vector.load %arg2[%c0_634, %c19_635, %c0_636] : memref<1x32x256xf32, #tpu.memory_space<vmem>>, vector<1x1x256xf32>
    %668 = vector.shape_cast %667 : vector<1x1x256xf32> to vector<1x256xf32>
    %c0_637 = arith.constant 0 : index
    %c0_638 = arith.constant 0 : index
    %c19_639 = arith.constant 19 : index
    %c16_640 = arith.constant 16 : index
    %c0_641 = arith.constant 0 : index
    %669 = vector.load %arg3[%c0_637, %c0_638, %c19_639, %c16_640, %c0_641] : memref<1x1x32x64x256xbf16, #tpu.memory_space<vmem>>, vector<1x1x1x8x256xbf16>
    %670 = vector.shape_cast %669 : vector<1x1x1x8x256xbf16> to vector<8x256xbf16>
    %671 = arith.extf %670 : vector<8x256xbf16> to vector<8x256xf32>
    %672 = vector.broadcast %668 : vector<1x256xf32> to vector<8x256xf32>
    %673 = arith.mulf %671, %672 : vector<8x256xf32>
    %674 = arith.addf %666, %673 : vector<8x256xf32>
    %c0_642 = arith.constant 0 : index
    %c20_643 = arith.constant 20 : index
    %c0_644 = arith.constant 0 : index
    %675 = vector.load %arg2[%c0_642, %c20_643, %c0_644] : memref<1x32x256xf32, #tpu.memory_space<vmem>>, vector<1x1x256xf32>
    %676 = vector.shape_cast %675 : vector<1x1x256xf32> to vector<1x256xf32>
    %c0_645 = arith.constant 0 : index
    %c0_646 = arith.constant 0 : index
    %c20_647 = arith.constant 20 : index
    %c16_648 = arith.constant 16 : index
    %c0_649 = arith.constant 0 : index
    %677 = vector.load %arg3[%c0_645, %c0_646, %c20_647, %c16_648, %c0_649] : memref<1x1x32x64x256xbf16, #tpu.memory_space<vmem>>, vector<1x1x1x8x256xbf16>
    %678 = vector.shape_cast %677 : vector<1x1x1x8x256xbf16> to vector<8x256xbf16>
    %679 = arith.extf %678 : vector<8x256xbf16> to vector<8x256xf32>
    %680 = vector.broadcast %676 : vector<1x256xf32> to vector<8x256xf32>
    %681 = arith.mulf %679, %680 : vector<8x256xf32>
    %682 = arith.addf %674, %681 : vector<8x256xf32>
    %c0_650 = arith.constant 0 : index
    %c21_651 = arith.constant 21 : index
    %c0_652 = arith.constant 0 : index
    %683 = vector.load %arg2[%c0_650, %c21_651, %c0_652] : memref<1x32x256xf32, #tpu.memory_space<vmem>>, vector<1x1x256xf32>
    %684 = vector.shape_cast %683 : vector<1x1x256xf32> to vector<1x256xf32>
    %c0_653 = arith.constant 0 : index
    %c0_654 = arith.constant 0 : index
    %c21_655 = arith.constant 21 : index
    %c16_656 = arith.constant 16 : index
    %c0_657 = arith.constant 0 : index
    %685 = vector.load %arg3[%c0_653, %c0_654, %c21_655, %c16_656, %c0_657] : memref<1x1x32x64x256xbf16, #tpu.memory_space<vmem>>, vector<1x1x1x8x256xbf16>
    %686 = vector.shape_cast %685 : vector<1x1x1x8x256xbf16> to vector<8x256xbf16>
    %687 = arith.extf %686 : vector<8x256xbf16> to vector<8x256xf32>
    %688 = vector.broadcast %684 : vector<1x256xf32> to vector<8x256xf32>
    %689 = arith.mulf %687, %688 : vector<8x256xf32>
    %690 = arith.addf %682, %689 : vector<8x256xf32>
    %c0_658 = arith.constant 0 : index
    %c22_659 = arith.constant 22 : index
    %c0_660 = arith.constant 0 : index
    %691 = vector.load %arg2[%c0_658, %c22_659, %c0_660] : memref<1x32x256xf32, #tpu.memory_space<vmem>>, vector<1x1x256xf32>
    %692 = vector.shape_cast %691 : vector<1x1x256xf32> to vector<1x256xf32>
    %c0_661 = arith.constant 0 : index
    %c0_662 = arith.constant 0 : index
    %c22_663 = arith.constant 22 : index
    %c16_664 = arith.constant 16 : index
    %c0_665 = arith.constant 0 : index
    %693 = vector.load %arg3[%c0_661, %c0_662, %c22_663, %c16_664, %c0_665] : memref<1x1x32x64x256xbf16, #tpu.memory_space<vmem>>, vector<1x1x1x8x256xbf16>
    %694 = vector.shape_cast %693 : vector<1x1x1x8x256xbf16> to vector<8x256xbf16>
    %695 = arith.extf %694 : vector<8x256xbf16> to vector<8x256xf32>
    %696 = vector.broadcast %692 : vector<1x256xf32> to vector<8x256xf32>
    %697 = arith.mulf %695, %696 : vector<8x256xf32>
    %698 = arith.addf %690, %697 : vector<8x256xf32>
    %c0_666 = arith.constant 0 : index
    %c23_667 = arith.constant 23 : index
    %c0_668 = arith.constant 0 : index
    %699 = vector.load %arg2[%c0_666, %c23_667, %c0_668] : memref<1x32x256xf32, #tpu.memory_space<vmem>>, vector<1x1x256xf32>
    %700 = vector.shape_cast %699 : vector<1x1x256xf32> to vector<1x256xf32>
    %c0_669 = arith.constant 0 : index
    %c0_670 = arith.constant 0 : index
    %c23_671 = arith.constant 23 : index
    %c16_672 = arith.constant 16 : index
    %c0_673 = arith.constant 0 : index
    %701 = vector.load %arg3[%c0_669, %c0_670, %c23_671, %c16_672, %c0_673] : memref<1x1x32x64x256xbf16, #tpu.memory_space<vmem>>, vector<1x1x1x8x256xbf16>
    %702 = vector.shape_cast %701 : vector<1x1x1x8x256xbf16> to vector<8x256xbf16>
    %703 = arith.extf %702 : vector<8x256xbf16> to vector<8x256xf32>
    %704 = vector.broadcast %700 : vector<1x256xf32> to vector<8x256xf32>
    %705 = arith.mulf %703, %704 : vector<8x256xf32>
    %706 = arith.addf %698, %705 : vector<8x256xf32>
    %c0_674 = arith.constant 0 : index
    %c24_675 = arith.constant 24 : index
    %c0_676 = arith.constant 0 : index
    %707 = vector.load %arg2[%c0_674, %c24_675, %c0_676] : memref<1x32x256xf32, #tpu.memory_space<vmem>>, vector<1x1x256xf32>
    %708 = vector.shape_cast %707 : vector<1x1x256xf32> to vector<1x256xf32>
    %c0_677 = arith.constant 0 : index
    %c0_678 = arith.constant 0 : index
    %c24_679 = arith.constant 24 : index
    %c16_680 = arith.constant 16 : index
    %c0_681 = arith.constant 0 : index
    %709 = vector.load %arg3[%c0_677, %c0_678, %c24_679, %c16_680, %c0_681] : memref<1x1x32x64x256xbf16, #tpu.memory_space<vmem>>, vector<1x1x1x8x256xbf16>
    %710 = vector.shape_cast %709 : vector<1x1x1x8x256xbf16> to vector<8x256xbf16>
    %711 = arith.extf %710 : vector<8x256xbf16> to vector<8x256xf32>
    %712 = vector.broadcast %708 : vector<1x256xf32> to vector<8x256xf32>
    %713 = arith.mulf %711, %712 : vector<8x256xf32>
    %714 = arith.addf %706, %713 : vector<8x256xf32>
    %c0_682 = arith.constant 0 : index
    %c25_683 = arith.constant 25 : index
    %c0_684 = arith.constant 0 : index
    %715 = vector.load %arg2[%c0_682, %c25_683, %c0_684] : memref<1x32x256xf32, #tpu.memory_space<vmem>>, vector<1x1x256xf32>
    %716 = vector.shape_cast %715 : vector<1x1x256xf32> to vector<1x256xf32>
    %c0_685 = arith.constant 0 : index
    %c0_686 = arith.constant 0 : index
    %c25_687 = arith.constant 25 : index
    %c16_688 = arith.constant 16 : index
    %c0_689 = arith.constant 0 : index
    %717 = vector.load %arg3[%c0_685, %c0_686, %c25_687, %c16_688, %c0_689] : memref<1x1x32x64x256xbf16, #tpu.memory_space<vmem>>, vector<1x1x1x8x256xbf16>
    %718 = vector.shape_cast %717 : vector<1x1x1x8x256xbf16> to vector<8x256xbf16>
    %719 = arith.extf %718 : vector<8x256xbf16> to vector<8x256xf32>
    %720 = vector.broadcast %716 : vector<1x256xf32> to vector<8x256xf32>
    %721 = arith.mulf %719, %720 : vector<8x256xf32>
    %722 = arith.addf %714, %721 : vector<8x256xf32>
    %c0_690 = arith.constant 0 : index
    %c26_691 = arith.constant 26 : index
    %c0_692 = arith.constant 0 : index
    %723 = vector.load %arg2[%c0_690, %c26_691, %c0_692] : memref<1x32x256xf32, #tpu.memory_space<vmem>>, vector<1x1x256xf32>
    %724 = vector.shape_cast %723 : vector<1x1x256xf32> to vector<1x256xf32>
    %c0_693 = arith.constant 0 : index
    %c0_694 = arith.constant 0 : index
    %c26_695 = arith.constant 26 : index
    %c16_696 = arith.constant 16 : index
    %c0_697 = arith.constant 0 : index
    %725 = vector.load %arg3[%c0_693, %c0_694, %c26_695, %c16_696, %c0_697] : memref<1x1x32x64x256xbf16, #tpu.memory_space<vmem>>, vector<1x1x1x8x256xbf16>
    %726 = vector.shape_cast %725 : vector<1x1x1x8x256xbf16> to vector<8x256xbf16>
    %727 = arith.extf %726 : vector<8x256xbf16> to vector<8x256xf32>
    %728 = vector.broadcast %724 : vector<1x256xf32> to vector<8x256xf32>
    %729 = arith.mulf %727, %728 : vector<8x256xf32>
    %730 = arith.addf %722, %729 : vector<8x256xf32>
    %c0_698 = arith.constant 0 : index
    %c27_699 = arith.constant 27 : index
    %c0_700 = arith.constant 0 : index
    %731 = vector.load %arg2[%c0_698, %c27_699, %c0_700] : memref<1x32x256xf32, #tpu.memory_space<vmem>>, vector<1x1x256xf32>
    %732 = vector.shape_cast %731 : vector<1x1x256xf32> to vector<1x256xf32>
    %c0_701 = arith.constant 0 : index
    %c0_702 = arith.constant 0 : index
    %c27_703 = arith.constant 27 : index
    %c16_704 = arith.constant 16 : index
    %c0_705 = arith.constant 0 : index
    %733 = vector.load %arg3[%c0_701, %c0_702, %c27_703, %c16_704, %c0_705] : memref<1x1x32x64x256xbf16, #tpu.memory_space<vmem>>, vector<1x1x1x8x256xbf16>
    %734 = vector.shape_cast %733 : vector<1x1x1x8x256xbf16> to vector<8x256xbf16>
    %735 = arith.extf %734 : vector<8x256xbf16> to vector<8x256xf32>
    %736 = vector.broadcast %732 : vector<1x256xf32> to vector<8x256xf32>
    %737 = arith.mulf %735, %736 : vector<8x256xf32>
    %738 = arith.addf %730, %737 : vector<8x256xf32>
    %c0_706 = arith.constant 0 : index
    %c28_707 = arith.constant 28 : index
    %c0_708 = arith.constant 0 : index
    %739 = vector.load %arg2[%c0_706, %c28_707, %c0_708] : memref<1x32x256xf32, #tpu.memory_space<vmem>>, vector<1x1x256xf32>
    %740 = vector.shape_cast %739 : vector<1x1x256xf32> to vector<1x256xf32>
    %c0_709 = arith.constant 0 : index
    %c0_710 = arith.constant 0 : index
    %c28_711 = arith.constant 28 : index
    %c16_712 = arith.constant 16 : index
    %c0_713 = arith.constant 0 : index
    %741 = vector.load %arg3[%c0_709, %c0_710, %c28_711, %c16_712, %c0_713] : memref<1x1x32x64x256xbf16, #tpu.memory_space<vmem>>, vector<1x1x1x8x256xbf16>
    %742 = vector.shape_cast %741 : vector<1x1x1x8x256xbf16> to vector<8x256xbf16>
    %743 = arith.extf %742 : vector<8x256xbf16> to vector<8x256xf32>
    %744 = vector.broadcast %740 : vector<1x256xf32> to vector<8x256xf32>
    %745 = arith.mulf %743, %744 : vector<8x256xf32>
    %746 = arith.addf %738, %745 : vector<8x256xf32>
    %c0_714 = arith.constant 0 : index
    %c29_715 = arith.constant 29 : index
    %c0_716 = arith.constant 0 : index
    %747 = vector.load %arg2[%c0_714, %c29_715, %c0_716] : memref<1x32x256xf32, #tpu.memory_space<vmem>>, vector<1x1x256xf32>
    %748 = vector.shape_cast %747 : vector<1x1x256xf32> to vector<1x256xf32>
    %c0_717 = arith.constant 0 : index
    %c0_718 = arith.constant 0 : index
    %c29_719 = arith.constant 29 : index
    %c16_720 = arith.constant 16 : index
    %c0_721 = arith.constant 0 : index
    %749 = vector.load %arg3[%c0_717, %c0_718, %c29_719, %c16_720, %c0_721] : memref<1x1x32x64x256xbf16, #tpu.memory_space<vmem>>, vector<1x1x1x8x256xbf16>
    %750 = vector.shape_cast %749 : vector<1x1x1x8x256xbf16> to vector<8x256xbf16>
    %751 = arith.extf %750 : vector<8x256xbf16> to vector<8x256xf32>
    %752 = vector.broadcast %748 : vector<1x256xf32> to vector<8x256xf32>
    %753 = arith.mulf %751, %752 : vector<8x256xf32>
    %754 = arith.addf %746, %753 : vector<8x256xf32>
    %c0_722 = arith.constant 0 : index
    %c30_723 = arith.constant 30 : index
    %c0_724 = arith.constant 0 : index
    %755 = vector.load %arg2[%c0_722, %c30_723, %c0_724] : memref<1x32x256xf32, #tpu.memory_space<vmem>>, vector<1x1x256xf32>
    %756 = vector.shape_cast %755 : vector<1x1x256xf32> to vector<1x256xf32>
    %c0_725 = arith.constant 0 : index
    %c0_726 = arith.constant 0 : index
    %c30_727 = arith.constant 30 : index
    %c16_728 = arith.constant 16 : index
    %c0_729 = arith.constant 0 : index
    %757 = vector.load %arg3[%c0_725, %c0_726, %c30_727, %c16_728, %c0_729] : memref<1x1x32x64x256xbf16, #tpu.memory_space<vmem>>, vector<1x1x1x8x256xbf16>
    %758 = vector.shape_cast %757 : vector<1x1x1x8x256xbf16> to vector<8x256xbf16>
    %759 = arith.extf %758 : vector<8x256xbf16> to vector<8x256xf32>
    %760 = vector.broadcast %756 : vector<1x256xf32> to vector<8x256xf32>
    %761 = arith.mulf %759, %760 : vector<8x256xf32>
    %762 = arith.addf %754, %761 : vector<8x256xf32>
    %c0_730 = arith.constant 0 : index
    %c31_731 = arith.constant 31 : index
    %c0_732 = arith.constant 0 : index
    %763 = vector.load %arg2[%c0_730, %c31_731, %c0_732] : memref<1x32x256xf32, #tpu.memory_space<vmem>>, vector<1x1x256xf32>
    %764 = vector.shape_cast %763 : vector<1x1x256xf32> to vector<1x256xf32>
    %c0_733 = arith.constant 0 : index
    %c0_734 = arith.constant 0 : index
    %c31_735 = arith.constant 31 : index
    %c16_736 = arith.constant 16 : index
    %c0_737 = arith.constant 0 : index
    %765 = vector.load %arg3[%c0_733, %c0_734, %c31_735, %c16_736, %c0_737] : memref<1x1x32x64x256xbf16, #tpu.memory_space<vmem>>, vector<1x1x1x8x256xbf16>
    %766 = vector.shape_cast %765 : vector<1x1x1x8x256xbf16> to vector<8x256xbf16>
    %767 = arith.extf %766 : vector<8x256xbf16> to vector<8x256xf32>
    %768 = vector.broadcast %764 : vector<1x256xf32> to vector<8x256xf32>
    %769 = arith.mulf %767, %768 : vector<8x256xf32>
    %770 = arith.addf %762, %769 : vector<8x256xf32>
    %cst_738 = arith.constant 0.000000e+00 : f32
    %771 = vector.broadcast %cst_738 : f32 to vector<8x256xf32>
    %c0_739 = arith.constant 0 : index
    %c0_740 = arith.constant 0 : index
    %c0_741 = arith.constant 0 : index
    %772 = vector.load %arg2[%c0_739, %c0_740, %c0_741] : memref<1x32x256xf32, #tpu.memory_space<vmem>>, vector<1x1x256xf32>
    %773 = vector.shape_cast %772 : vector<1x1x256xf32> to vector<1x256xf32>
    %c0_742 = arith.constant 0 : index
    %c0_743 = arith.constant 0 : index
    %c0_744 = arith.constant 0 : index
    %c24_745 = arith.constant 24 : index
    %c0_746 = arith.constant 0 : index
    %774 = vector.load %arg3[%c0_742, %c0_743, %c0_744, %c24_745, %c0_746] : memref<1x1x32x64x256xbf16, #tpu.memory_space<vmem>>, vector<1x1x1x8x256xbf16>
    %775 = vector.shape_cast %774 : vector<1x1x1x8x256xbf16> to vector<8x256xbf16>
    %776 = arith.extf %775 : vector<8x256xbf16> to vector<8x256xf32>
    %777 = vector.broadcast %773 : vector<1x256xf32> to vector<8x256xf32>
    %778 = arith.mulf %776, %777 : vector<8x256xf32>
    %779 = arith.addf %771, %778 : vector<8x256xf32>
    %c0_747 = arith.constant 0 : index
    %c1_748 = arith.constant 1 : index
    %c0_749 = arith.constant 0 : index
    %780 = vector.load %arg2[%c0_747, %c1_748, %c0_749] : memref<1x32x256xf32, #tpu.memory_space<vmem>>, vector<1x1x256xf32>
    %781 = vector.shape_cast %780 : vector<1x1x256xf32> to vector<1x256xf32>
    %c0_750 = arith.constant 0 : index
    %c0_751 = arith.constant 0 : index
    %c1_752 = arith.constant 1 : index
    %c24_753 = arith.constant 24 : index
    %c0_754 = arith.constant 0 : index
    %782 = vector.load %arg3[%c0_750, %c0_751, %c1_752, %c24_753, %c0_754] : memref<1x1x32x64x256xbf16, #tpu.memory_space<vmem>>, vector<1x1x1x8x256xbf16>
    %783 = vector.shape_cast %782 : vector<1x1x1x8x256xbf16> to vector<8x256xbf16>
    %784 = arith.extf %783 : vector<8x256xbf16> to vector<8x256xf32>
    %785 = vector.broadcast %781 : vector<1x256xf32> to vector<8x256xf32>
    %786 = arith.mulf %784, %785 : vector<8x256xf32>
    %787 = arith.addf %779, %786 : vector<8x256xf32>
    %c0_755 = arith.constant 0 : index
    %c2_756 = arith.constant 2 : index
    %c0_757 = arith.constant 0 : index
    %788 = vector.load %arg2[%c0_755, %c2_756, %c0_757] : memref<1x32x256xf32, #tpu.memory_space<vmem>>, vector<1x1x256xf32>
    %789 = vector.shape_cast %788 : vector<1x1x256xf32> to vector<1x256xf32>
    %c0_758 = arith.constant 0 : index
    %c0_759 = arith.constant 0 : index
    %c2_760 = arith.constant 2 : index
    %c24_761 = arith.constant 24 : index
    %c0_762 = arith.constant 0 : index
    %790 = vector.load %arg3[%c0_758, %c0_759, %c2_760, %c24_761, %c0_762] : memref<1x1x32x64x256xbf16, #tpu.memory_space<vmem>>, vector<1x1x1x8x256xbf16>
    %791 = vector.shape_cast %790 : vector<1x1x1x8x256xbf16> to vector<8x256xbf16>
    %792 = arith.extf %791 : vector<8x256xbf16> to vector<8x256xf32>
    %793 = vector.broadcast %789 : vector<1x256xf32> to vector<8x256xf32>
    %794 = arith.mulf %792, %793 : vector<8x256xf32>
    %795 = arith.addf %787, %794 : vector<8x256xf32>
    %c0_763 = arith.constant 0 : index
    %c3_764 = arith.constant 3 : index
    %c0_765 = arith.constant 0 : index
    %796 = vector.load %arg2[%c0_763, %c3_764, %c0_765] : memref<1x32x256xf32, #tpu.memory_space<vmem>>, vector<1x1x256xf32>
    %797 = vector.shape_cast %796 : vector<1x1x256xf32> to vector<1x256xf32>
    %c0_766 = arith.constant 0 : index
    %c0_767 = arith.constant 0 : index
    %c3_768 = arith.constant 3 : index
    %c24_769 = arith.constant 24 : index
    %c0_770 = arith.constant 0 : index
    %798 = vector.load %arg3[%c0_766, %c0_767, %c3_768, %c24_769, %c0_770] : memref<1x1x32x64x256xbf16, #tpu.memory_space<vmem>>, vector<1x1x1x8x256xbf16>
    %799 = vector.shape_cast %798 : vector<1x1x1x8x256xbf16> to vector<8x256xbf16>
    %800 = arith.extf %799 : vector<8x256xbf16> to vector<8x256xf32>
    %801 = vector.broadcast %797 : vector<1x256xf32> to vector<8x256xf32>
    %802 = arith.mulf %800, %801 : vector<8x256xf32>
    %803 = arith.addf %795, %802 : vector<8x256xf32>
    %c0_771 = arith.constant 0 : index
    %c4_772 = arith.constant 4 : index
    %c0_773 = arith.constant 0 : index
    %804 = vector.load %arg2[%c0_771, %c4_772, %c0_773] : memref<1x32x256xf32, #tpu.memory_space<vmem>>, vector<1x1x256xf32>
    %805 = vector.shape_cast %804 : vector<1x1x256xf32> to vector<1x256xf32>
    %c0_774 = arith.constant 0 : index
    %c0_775 = arith.constant 0 : index
    %c4_776 = arith.constant 4 : index
    %c24_777 = arith.constant 24 : index
    %c0_778 = arith.constant 0 : index
    %806 = vector.load %arg3[%c0_774, %c0_775, %c4_776, %c24_777, %c0_778] : memref<1x1x32x64x256xbf16, #tpu.memory_space<vmem>>, vector<1x1x1x8x256xbf16>
    %807 = vector.shape_cast %806 : vector<1x1x1x8x256xbf16> to vector<8x256xbf16>
    %808 = arith.extf %807 : vector<8x256xbf16> to vector<8x256xf32>
    %809 = vector.broadcast %805 : vector<1x256xf32> to vector<8x256xf32>
    %810 = arith.mulf %808, %809 : vector<8x256xf32>
    %811 = arith.addf %803, %810 : vector<8x256xf32>
    %c0_779 = arith.constant 0 : index
    %c5_780 = arith.constant 5 : index
    %c0_781 = arith.constant 0 : index
    %812 = vector.load %arg2[%c0_779, %c5_780, %c0_781] : memref<1x32x256xf32, #tpu.memory_space<vmem>>, vector<1x1x256xf32>
    %813 = vector.shape_cast %812 : vector<1x1x256xf32> to vector<1x256xf32>
    %c0_782 = arith.constant 0 : index
    %c0_783 = arith.constant 0 : index
    %c5_784 = arith.constant 5 : index
    %c24_785 = arith.constant 24 : index
    %c0_786 = arith.constant 0 : index
    %814 = vector.load %arg3[%c0_782, %c0_783, %c5_784, %c24_785, %c0_786] : memref<1x1x32x64x256xbf16, #tpu.memory_space<vmem>>, vector<1x1x1x8x256xbf16>
    %815 = vector.shape_cast %814 : vector<1x1x1x8x256xbf16> to vector<8x256xbf16>
    %816 = arith.extf %815 : vector<8x256xbf16> to vector<8x256xf32>
    %817 = vector.broadcast %813 : vector<1x256xf32> to vector<8x256xf32>
    %818 = arith.mulf %816, %817 : vector<8x256xf32>
    %819 = arith.addf %811, %818 : vector<8x256xf32>
    %c0_787 = arith.constant 0 : index
    %c6_788 = arith.constant 6 : index
    %c0_789 = arith.constant 0 : index
    %820 = vector.load %arg2[%c0_787, %c6_788, %c0_789] : memref<1x32x256xf32, #tpu.memory_space<vmem>>, vector<1x1x256xf32>
    %821 = vector.shape_cast %820 : vector<1x1x256xf32> to vector<1x256xf32>
    %c0_790 = arith.constant 0 : index
    %c0_791 = arith.constant 0 : index
    %c6_792 = arith.constant 6 : index
    %c24_793 = arith.constant 24 : index
    %c0_794 = arith.constant 0 : index
    %822 = vector.load %arg3[%c0_790, %c0_791, %c6_792, %c24_793, %c0_794] : memref<1x1x32x64x256xbf16, #tpu.memory_space<vmem>>, vector<1x1x1x8x256xbf16>
    %823 = vector.shape_cast %822 : vector<1x1x1x8x256xbf16> to vector<8x256xbf16>
    %824 = arith.extf %823 : vector<8x256xbf16> to vector<8x256xf32>
    %825 = vector.broadcast %821 : vector<1x256xf32> to vector<8x256xf32>
    %826 = arith.mulf %824, %825 : vector<8x256xf32>
    %827 = arith.addf %819, %826 : vector<8x256xf32>
    %c0_795 = arith.constant 0 : index
    %c7_796 = arith.constant 7 : index
    %c0_797 = arith.constant 0 : index
    %828 = vector.load %arg2[%c0_795, %c7_796, %c0_797] : memref<1x32x256xf32, #tpu.memory_space<vmem>>, vector<1x1x256xf32>
    %829 = vector.shape_cast %828 : vector<1x1x256xf32> to vector<1x256xf32>
    %c0_798 = arith.constant 0 : index
    %c0_799 = arith.constant 0 : index
    %c7_800 = arith.constant 7 : index
    %c24_801 = arith.constant 24 : index
    %c0_802 = arith.constant 0 : index
    %830 = vector.load %arg3[%c0_798, %c0_799, %c7_800, %c24_801, %c0_802] : memref<1x1x32x64x256xbf16, #tpu.memory_space<vmem>>, vector<1x1x1x8x256xbf16>
    %831 = vector.shape_cast %830 : vector<1x1x1x8x256xbf16> to vector<8x256xbf16>
    %832 = arith.extf %831 : vector<8x256xbf16> to vector<8x256xf32>
    %833 = vector.broadcast %829 : vector<1x256xf32> to vector<8x256xf32>
    %834 = arith.mulf %832, %833 : vector<8x256xf32>
    %835 = arith.addf %827, %834 : vector<8x256xf32>
    %c0_803 = arith.constant 0 : index
    %c8_804 = arith.constant 8 : index
    %c0_805 = arith.constant 0 : index
    %836 = vector.load %arg2[%c0_803, %c8_804, %c0_805] : memref<1x32x256xf32, #tpu.memory_space<vmem>>, vector<1x1x256xf32>
    %837 = vector.shape_cast %836 : vector<1x1x256xf32> to vector<1x256xf32>
    %c0_806 = arith.constant 0 : index
    %c0_807 = arith.constant 0 : index
    %c8_808 = arith.constant 8 : index
    %c24_809 = arith.constant 24 : index
    %c0_810 = arith.constant 0 : index
    %838 = vector.load %arg3[%c0_806, %c0_807, %c8_808, %c24_809, %c0_810] : memref<1x1x32x64x256xbf16, #tpu.memory_space<vmem>>, vector<1x1x1x8x256xbf16>
    %839 = vector.shape_cast %838 : vector<1x1x1x8x256xbf16> to vector<8x256xbf16>
    %840 = arith.extf %839 : vector<8x256xbf16> to vector<8x256xf32>
    %841 = vector.broadcast %837 : vector<1x256xf32> to vector<8x256xf32>
    %842 = arith.mulf %840, %841 : vector<8x256xf32>
    %843 = arith.addf %835, %842 : vector<8x256xf32>
    %c0_811 = arith.constant 0 : index
    %c9_812 = arith.constant 9 : index
    %c0_813 = arith.constant 0 : index
    %844 = vector.load %arg2[%c0_811, %c9_812, %c0_813] : memref<1x32x256xf32, #tpu.memory_space<vmem>>, vector<1x1x256xf32>
    %845 = vector.shape_cast %844 : vector<1x1x256xf32> to vector<1x256xf32>
    %c0_814 = arith.constant 0 : index
    %c0_815 = arith.constant 0 : index
    %c9_816 = arith.constant 9 : index
    %c24_817 = arith.constant 24 : index
    %c0_818 = arith.constant 0 : index
    %846 = vector.load %arg3[%c0_814, %c0_815, %c9_816, %c24_817, %c0_818] : memref<1x1x32x64x256xbf16, #tpu.memory_space<vmem>>, vector<1x1x1x8x256xbf16>
    %847 = vector.shape_cast %846 : vector<1x1x1x8x256xbf16> to vector<8x256xbf16>
    %848 = arith.extf %847 : vector<8x256xbf16> to vector<8x256xf32>
    %849 = vector.broadcast %845 : vector<1x256xf32> to vector<8x256xf32>
    %850 = arith.mulf %848, %849 : vector<8x256xf32>
    %851 = arith.addf %843, %850 : vector<8x256xf32>
    %c0_819 = arith.constant 0 : index
    %c10_820 = arith.constant 10 : index
    %c0_821 = arith.constant 0 : index
    %852 = vector.load %arg2[%c0_819, %c10_820, %c0_821] : memref<1x32x256xf32, #tpu.memory_space<vmem>>, vector<1x1x256xf32>
    %853 = vector.shape_cast %852 : vector<1x1x256xf32> to vector<1x256xf32>
    %c0_822 = arith.constant 0 : index
    %c0_823 = arith.constant 0 : index
    %c10_824 = arith.constant 10 : index
    %c24_825 = arith.constant 24 : index
    %c0_826 = arith.constant 0 : index
    %854 = vector.load %arg3[%c0_822, %c0_823, %c10_824, %c24_825, %c0_826] : memref<1x1x32x64x256xbf16, #tpu.memory_space<vmem>>, vector<1x1x1x8x256xbf16>
    %855 = vector.shape_cast %854 : vector<1x1x1x8x256xbf16> to vector<8x256xbf16>
    %856 = arith.extf %855 : vector<8x256xbf16> to vector<8x256xf32>
    %857 = vector.broadcast %853 : vector<1x256xf32> to vector<8x256xf32>
    %858 = arith.mulf %856, %857 : vector<8x256xf32>
    %859 = arith.addf %851, %858 : vector<8x256xf32>
    %c0_827 = arith.constant 0 : index
    %c11_828 = arith.constant 11 : index
    %c0_829 = arith.constant 0 : index
    %860 = vector.load %arg2[%c0_827, %c11_828, %c0_829] : memref<1x32x256xf32, #tpu.memory_space<vmem>>, vector<1x1x256xf32>
    %861 = vector.shape_cast %860 : vector<1x1x256xf32> to vector<1x256xf32>
    %c0_830 = arith.constant 0 : index
    %c0_831 = arith.constant 0 : index
    %c11_832 = arith.constant 11 : index
    %c24_833 = arith.constant 24 : index
    %c0_834 = arith.constant 0 : index
    %862 = vector.load %arg3[%c0_830, %c0_831, %c11_832, %c24_833, %c0_834] : memref<1x1x32x64x256xbf16, #tpu.memory_space<vmem>>, vector<1x1x1x8x256xbf16>
    %863 = vector.shape_cast %862 : vector<1x1x1x8x256xbf16> to vector<8x256xbf16>
    %864 = arith.extf %863 : vector<8x256xbf16> to vector<8x256xf32>
    %865 = vector.broadcast %861 : vector<1x256xf32> to vector<8x256xf32>
    %866 = arith.mulf %864, %865 : vector<8x256xf32>
    %867 = arith.addf %859, %866 : vector<8x256xf32>
    %c0_835 = arith.constant 0 : index
    %c12_836 = arith.constant 12 : index
    %c0_837 = arith.constant 0 : index
    %868 = vector.load %arg2[%c0_835, %c12_836, %c0_837] : memref<1x32x256xf32, #tpu.memory_space<vmem>>, vector<1x1x256xf32>
    %869 = vector.shape_cast %868 : vector<1x1x256xf32> to vector<1x256xf32>
    %c0_838 = arith.constant 0 : index
    %c0_839 = arith.constant 0 : index
    %c12_840 = arith.constant 12 : index
    %c24_841 = arith.constant 24 : index
    %c0_842 = arith.constant 0 : index
    %870 = vector.load %arg3[%c0_838, %c0_839, %c12_840, %c24_841, %c0_842] : memref<1x1x32x64x256xbf16, #tpu.memory_space<vmem>>, vector<1x1x1x8x256xbf16>
    %871 = vector.shape_cast %870 : vector<1x1x1x8x256xbf16> to vector<8x256xbf16>
    %872 = arith.extf %871 : vector<8x256xbf16> to vector<8x256xf32>
    %873 = vector.broadcast %869 : vector<1x256xf32> to vector<8x256xf32>
    %874 = arith.mulf %872, %873 : vector<8x256xf32>
    %875 = arith.addf %867, %874 : vector<8x256xf32>
    %c0_843 = arith.constant 0 : index
    %c13_844 = arith.constant 13 : index
    %c0_845 = arith.constant 0 : index
    %876 = vector.load %arg2[%c0_843, %c13_844, %c0_845] : memref<1x32x256xf32, #tpu.memory_space<vmem>>, vector<1x1x256xf32>
    %877 = vector.shape_cast %876 : vector<1x1x256xf32> to vector<1x256xf32>
    %c0_846 = arith.constant 0 : index
    %c0_847 = arith.constant 0 : index
    %c13_848 = arith.constant 13 : index
    %c24_849 = arith.constant 24 : index
    %c0_850 = arith.constant 0 : index
    %878 = vector.load %arg3[%c0_846, %c0_847, %c13_848, %c24_849, %c0_850] : memref<1x1x32x64x256xbf16, #tpu.memory_space<vmem>>, vector<1x1x1x8x256xbf16>
    %879 = vector.shape_cast %878 : vector<1x1x1x8x256xbf16> to vector<8x256xbf16>
    %880 = arith.extf %879 : vector<8x256xbf16> to vector<8x256xf32>
    %881 = vector.broadcast %877 : vector<1x256xf32> to vector<8x256xf32>
    %882 = arith.mulf %880, %881 : vector<8x256xf32>
    %883 = arith.addf %875, %882 : vector<8x256xf32>
    %c0_851 = arith.constant 0 : index
    %c14_852 = arith.constant 14 : index
    %c0_853 = arith.constant 0 : index
    %884 = vector.load %arg2[%c0_851, %c14_852, %c0_853] : memref<1x32x256xf32, #tpu.memory_space<vmem>>, vector<1x1x256xf32>
    %885 = vector.shape_cast %884 : vector<1x1x256xf32> to vector<1x256xf32>
    %c0_854 = arith.constant 0 : index
    %c0_855 = arith.constant 0 : index
    %c14_856 = arith.constant 14 : index
    %c24_857 = arith.constant 24 : index
    %c0_858 = arith.constant 0 : index
    %886 = vector.load %arg3[%c0_854, %c0_855, %c14_856, %c24_857, %c0_858] : memref<1x1x32x64x256xbf16, #tpu.memory_space<vmem>>, vector<1x1x1x8x256xbf16>
    %887 = vector.shape_cast %886 : vector<1x1x1x8x256xbf16> to vector<8x256xbf16>
    %888 = arith.extf %887 : vector<8x256xbf16> to vector<8x256xf32>
    %889 = vector.broadcast %885 : vector<1x256xf32> to vector<8x256xf32>
    %890 = arith.mulf %888, %889 : vector<8x256xf32>
    %891 = arith.addf %883, %890 : vector<8x256xf32>
    %c0_859 = arith.constant 0 : index
    %c15_860 = arith.constant 15 : index
    %c0_861 = arith.constant 0 : index
    %892 = vector.load %arg2[%c0_859, %c15_860, %c0_861] : memref<1x32x256xf32, #tpu.memory_space<vmem>>, vector<1x1x256xf32>
    %893 = vector.shape_cast %892 : vector<1x1x256xf32> to vector<1x256xf32>
    %c0_862 = arith.constant 0 : index
    %c0_863 = arith.constant 0 : index
    %c15_864 = arith.constant 15 : index
    %c24_865 = arith.constant 24 : index
    %c0_866 = arith.constant 0 : index
    %894 = vector.load %arg3[%c0_862, %c0_863, %c15_864, %c24_865, %c0_866] : memref<1x1x32x64x256xbf16, #tpu.memory_space<vmem>>, vector<1x1x1x8x256xbf16>
    %895 = vector.shape_cast %894 : vector<1x1x1x8x256xbf16> to vector<8x256xbf16>
    %896 = arith.extf %895 : vector<8x256xbf16> to vector<8x256xf32>
    %897 = vector.broadcast %893 : vector<1x256xf32> to vector<8x256xf32>
    %898 = arith.mulf %896, %897 : vector<8x256xf32>
    %899 = arith.addf %891, %898 : vector<8x256xf32>
    %c0_867 = arith.constant 0 : index
    %c16_868 = arith.constant 16 : index
    %c0_869 = arith.constant 0 : index
    %900 = vector.load %arg2[%c0_867, %c16_868, %c0_869] : memref<1x32x256xf32, #tpu.memory_space<vmem>>, vector<1x1x256xf32>
    %901 = vector.shape_cast %900 : vector<1x1x256xf32> to vector<1x256xf32>
    %c0_870 = arith.constant 0 : index
    %c0_871 = arith.constant 0 : index
    %c16_872 = arith.constant 16 : index
    %c24_873 = arith.constant 24 : index
    %c0_874 = arith.constant 0 : index
    %902 = vector.load %arg3[%c0_870, %c0_871, %c16_872, %c24_873, %c0_874] : memref<1x1x32x64x256xbf16, #tpu.memory_space<vmem>>, vector<1x1x1x8x256xbf16>
    %903 = vector.shape_cast %902 : vector<1x1x1x8x256xbf16> to vector<8x256xbf16>
    %904 = arith.extf %903 : vector<8x256xbf16> to vector<8x256xf32>
    %905 = vector.broadcast %901 : vector<1x256xf32> to vector<8x256xf32>
    %906 = arith.mulf %904, %905 : vector<8x256xf32>
    %907 = arith.addf %899, %906 : vector<8x256xf32>
    %c0_875 = arith.constant 0 : index
    %c17_876 = arith.constant 17 : index
    %c0_877 = arith.constant 0 : index
    %908 = vector.load %arg2[%c0_875, %c17_876, %c0_877] : memref<1x32x256xf32, #tpu.memory_space<vmem>>, vector<1x1x256xf32>
    %909 = vector.shape_cast %908 : vector<1x1x256xf32> to vector<1x256xf32>
    %c0_878 = arith.constant 0 : index
    %c0_879 = arith.constant 0 : index
    %c17_880 = arith.constant 17 : index
    %c24_881 = arith.constant 24 : index
    %c0_882 = arith.constant 0 : index
    %910 = vector.load %arg3[%c0_878, %c0_879, %c17_880, %c24_881, %c0_882] : memref<1x1x32x64x256xbf16, #tpu.memory_space<vmem>>, vector<1x1x1x8x256xbf16>
    %911 = vector.shape_cast %910 : vector<1x1x1x8x256xbf16> to vector<8x256xbf16>
    %912 = arith.extf %911 : vector<8x256xbf16> to vector<8x256xf32>
    %913 = vector.broadcast %909 : vector<1x256xf32> to vector<8x256xf32>
    %914 = arith.mulf %912, %913 : vector<8x256xf32>
    %915 = arith.addf %907, %914 : vector<8x256xf32>
    %c0_883 = arith.constant 0 : index
    %c18_884 = arith.constant 18 : index
    %c0_885 = arith.constant 0 : index
    %916 = vector.load %arg2[%c0_883, %c18_884, %c0_885] : memref<1x32x256xf32, #tpu.memory_space<vmem>>, vector<1x1x256xf32>
    %917 = vector.shape_cast %916 : vector<1x1x256xf32> to vector<1x256xf32>
    %c0_886 = arith.constant 0 : index
    %c0_887 = arith.constant 0 : index
    %c18_888 = arith.constant 18 : index
    %c24_889 = arith.constant 24 : index
    %c0_890 = arith.constant 0 : index
    %918 = vector.load %arg3[%c0_886, %c0_887, %c18_888, %c24_889, %c0_890] : memref<1x1x32x64x256xbf16, #tpu.memory_space<vmem>>, vector<1x1x1x8x256xbf16>
    %919 = vector.shape_cast %918 : vector<1x1x1x8x256xbf16> to vector<8x256xbf16>
    %920 = arith.extf %919 : vector<8x256xbf16> to vector<8x256xf32>
    %921 = vector.broadcast %917 : vector<1x256xf32> to vector<8x256xf32>
    %922 = arith.mulf %920, %921 : vector<8x256xf32>
    %923 = arith.addf %915, %922 : vector<8x256xf32>
    %c0_891 = arith.constant 0 : index
    %c19_892 = arith.constant 19 : index
    %c0_893 = arith.constant 0 : index
    %924 = vector.load %arg2[%c0_891, %c19_892, %c0_893] : memref<1x32x256xf32, #tpu.memory_space<vmem>>, vector<1x1x256xf32>
    %925 = vector.shape_cast %924 : vector<1x1x256xf32> to vector<1x256xf32>
    %c0_894 = arith.constant 0 : index
    %c0_895 = arith.constant 0 : index
    %c19_896 = arith.constant 19 : index
    %c24_897 = arith.constant 24 : index
    %c0_898 = arith.constant 0 : index
    %926 = vector.load %arg3[%c0_894, %c0_895, %c19_896, %c24_897, %c0_898] : memref<1x1x32x64x256xbf16, #tpu.memory_space<vmem>>, vector<1x1x1x8x256xbf16>
    %927 = vector.shape_cast %926 : vector<1x1x1x8x256xbf16> to vector<8x256xbf16>
    %928 = arith.extf %927 : vector<8x256xbf16> to vector<8x256xf32>
    %929 = vector.broadcast %925 : vector<1x256xf32> to vector<8x256xf32>
    %930 = arith.mulf %928, %929 : vector<8x256xf32>
    %931 = arith.addf %923, %930 : vector<8x256xf32>
    %c0_899 = arith.constant 0 : index
    %c20_900 = arith.constant 20 : index
    %c0_901 = arith.constant 0 : index
    %932 = vector.load %arg2[%c0_899, %c20_900, %c0_901] : memref<1x32x256xf32, #tpu.memory_space<vmem>>, vector<1x1x256xf32>
    %933 = vector.shape_cast %932 : vector<1x1x256xf32> to vector<1x256xf32>
    %c0_902 = arith.constant 0 : index
    %c0_903 = arith.constant 0 : index
    %c20_904 = arith.constant 20 : index
    %c24_905 = arith.constant 24 : index
    %c0_906 = arith.constant 0 : index
    %934 = vector.load %arg3[%c0_902, %c0_903, %c20_904, %c24_905, %c0_906] : memref<1x1x32x64x256xbf16, #tpu.memory_space<vmem>>, vector<1x1x1x8x256xbf16>
    %935 = vector.shape_cast %934 : vector<1x1x1x8x256xbf16> to vector<8x256xbf16>
    %936 = arith.extf %935 : vector<8x256xbf16> to vector<8x256xf32>
    %937 = vector.broadcast %933 : vector<1x256xf32> to vector<8x256xf32>
    %938 = arith.mulf %936, %937 : vector<8x256xf32>
    %939 = arith.addf %931, %938 : vector<8x256xf32>
    %c0_907 = arith.constant 0 : index
    %c21_908 = arith.constant 21 : index
    %c0_909 = arith.constant 0 : index
    %940 = vector.load %arg2[%c0_907, %c21_908, %c0_909] : memref<1x32x256xf32, #tpu.memory_space<vmem>>, vector<1x1x256xf32>
    %941 = vector.shape_cast %940 : vector<1x1x256xf32> to vector<1x256xf32>
    %c0_910 = arith.constant 0 : index
    %c0_911 = arith.constant 0 : index
    %c21_912 = arith.constant 21 : index
    %c24_913 = arith.constant 24 : index
    %c0_914 = arith.constant 0 : index
    %942 = vector.load %arg3[%c0_910, %c0_911, %c21_912, %c24_913, %c0_914] : memref<1x1x32x64x256xbf16, #tpu.memory_space<vmem>>, vector<1x1x1x8x256xbf16>
    %943 = vector.shape_cast %942 : vector<1x1x1x8x256xbf16> to vector<8x256xbf16>
    %944 = arith.extf %943 : vector<8x256xbf16> to vector<8x256xf32>
    %945 = vector.broadcast %941 : vector<1x256xf32> to vector<8x256xf32>
    %946 = arith.mulf %944, %945 : vector<8x256xf32>
    %947 = arith.addf %939, %946 : vector<8x256xf32>
    %c0_915 = arith.constant 0 : index
    %c22_916 = arith.constant 22 : index
    %c0_917 = arith.constant 0 : index
    %948 = vector.load %arg2[%c0_915, %c22_916, %c0_917] : memref<1x32x256xf32, #tpu.memory_space<vmem>>, vector<1x1x256xf32>
    %949 = vector.shape_cast %948 : vector<1x1x256xf32> to vector<1x256xf32>
    %c0_918 = arith.constant 0 : index
    %c0_919 = arith.constant 0 : index
    %c22_920 = arith.constant 22 : index
    %c24_921 = arith.constant 24 : index
    %c0_922 = arith.constant 0 : index
    %950 = vector.load %arg3[%c0_918, %c0_919, %c22_920, %c24_921, %c0_922] : memref<1x1x32x64x256xbf16, #tpu.memory_space<vmem>>, vector<1x1x1x8x256xbf16>
    %951 = vector.shape_cast %950 : vector<1x1x1x8x256xbf16> to vector<8x256xbf16>
    %952 = arith.extf %951 : vector<8x256xbf16> to vector<8x256xf32>
    %953 = vector.broadcast %949 : vector<1x256xf32> to vector<8x256xf32>
    %954 = arith.mulf %952, %953 : vector<8x256xf32>
    %955 = arith.addf %947, %954 : vector<8x256xf32>
    %c0_923 = arith.constant 0 : index
    %c23_924 = arith.constant 23 : index
    %c0_925 = arith.constant 0 : index
    %956 = vector.load %arg2[%c0_923, %c23_924, %c0_925] : memref<1x32x256xf32, #tpu.memory_space<vmem>>, vector<1x1x256xf32>
    %957 = vector.shape_cast %956 : vector<1x1x256xf32> to vector<1x256xf32>
    %c0_926 = arith.constant 0 : index
    %c0_927 = arith.constant 0 : index
    %c23_928 = arith.constant 23 : index
    %c24_929 = arith.constant 24 : index
    %c0_930 = arith.constant 0 : index
    %958 = vector.load %arg3[%c0_926, %c0_927, %c23_928, %c24_929, %c0_930] : memref<1x1x32x64x256xbf16, #tpu.memory_space<vmem>>, vector<1x1x1x8x256xbf16>
    %959 = vector.shape_cast %958 : vector<1x1x1x8x256xbf16> to vector<8x256xbf16>
    %960 = arith.extf %959 : vector<8x256xbf16> to vector<8x256xf32>
    %961 = vector.broadcast %957 : vector<1x256xf32> to vector<8x256xf32>
    %962 = arith.mulf %960, %961 : vector<8x256xf32>
    %963 = arith.addf %955, %962 : vector<8x256xf32>
    %c0_931 = arith.constant 0 : index
    %c24_932 = arith.constant 24 : index
    %c0_933 = arith.constant 0 : index
    %964 = vector.load %arg2[%c0_931, %c24_932, %c0_933] : memref<1x32x256xf32, #tpu.memory_space<vmem>>, vector<1x1x256xf32>
    %965 = vector.shape_cast %964 : vector<1x1x256xf32> to vector<1x256xf32>
    %c0_934 = arith.constant 0 : index
    %c0_935 = arith.constant 0 : index
    %c24_936 = arith.constant 24 : index
    %c24_937 = arith.constant 24 : index
    %c0_938 = arith.constant 0 : index
    %966 = vector.load %arg3[%c0_934, %c0_935, %c24_936, %c24_937, %c0_938] : memref<1x1x32x64x256xbf16, #tpu.memory_space<vmem>>, vector<1x1x1x8x256xbf16>
    %967 = vector.shape_cast %966 : vector<1x1x1x8x256xbf16> to vector<8x256xbf16>
    %968 = arith.extf %967 : vector<8x256xbf16> to vector<8x256xf32>
    %969 = vector.broadcast %965 : vector<1x256xf32> to vector<8x256xf32>
    %970 = arith.mulf %968, %969 : vector<8x256xf32>
    %971 = arith.addf %963, %970 : vector<8x256xf32>
    %c0_939 = arith.constant 0 : index
    %c25_940 = arith.constant 25 : index
    %c0_941 = arith.constant 0 : index
    %972 = vector.load %arg2[%c0_939, %c25_940, %c0_941] : memref<1x32x256xf32, #tpu.memory_space<vmem>>, vector<1x1x256xf32>
    %973 = vector.shape_cast %972 : vector<1x1x256xf32> to vector<1x256xf32>
    %c0_942 = arith.constant 0 : index
    %c0_943 = arith.constant 0 : index
    %c25_944 = arith.constant 25 : index
    %c24_945 = arith.constant 24 : index
    %c0_946 = arith.constant 0 : index
    %974 = vector.load %arg3[%c0_942, %c0_943, %c25_944, %c24_945, %c0_946] : memref<1x1x32x64x256xbf16, #tpu.memory_space<vmem>>, vector<1x1x1x8x256xbf16>
    %975 = vector.shape_cast %974 : vector<1x1x1x8x256xbf16> to vector<8x256xbf16>
    %976 = arith.extf %975 : vector<8x256xbf16> to vector<8x256xf32>
    %977 = vector.broadcast %973 : vector<1x256xf32> to vector<8x256xf32>
    %978 = arith.mulf %976, %977 : vector<8x256xf32>
    %979 = arith.addf %971, %978 : vector<8x256xf32>
    %c0_947 = arith.constant 0 : index
    %c26_948 = arith.constant 26 : index
    %c0_949 = arith.constant 0 : index
    %980 = vector.load %arg2[%c0_947, %c26_948, %c0_949] : memref<1x32x256xf32, #tpu.memory_space<vmem>>, vector<1x1x256xf32>
    %981 = vector.shape_cast %980 : vector<1x1x256xf32> to vector<1x256xf32>
    %c0_950 = arith.constant 0 : index
    %c0_951 = arith.constant 0 : index
    %c26_952 = arith.constant 26 : index
    %c24_953 = arith.constant 24 : index
    %c0_954 = arith.constant 0 : index
    %982 = vector.load %arg3[%c0_950, %c0_951, %c26_952, %c24_953, %c0_954] : memref<1x1x32x64x256xbf16, #tpu.memory_space<vmem>>, vector<1x1x1x8x256xbf16>
    %983 = vector.shape_cast %982 : vector<1x1x1x8x256xbf16> to vector<8x256xbf16>
    %984 = arith.extf %983 : vector<8x256xbf16> to vector<8x256xf32>
    %985 = vector.broadcast %981 : vector<1x256xf32> to vector<8x256xf32>
    %986 = arith.mulf %984, %985 : vector<8x256xf32>
    %987 = arith.addf %979, %986 : vector<8x256xf32>
    %c0_955 = arith.constant 0 : index
    %c27_956 = arith.constant 27 : index
    %c0_957 = arith.constant 0 : index
    %988 = vector.load %arg2[%c0_955, %c27_956, %c0_957] : memref<1x32x256xf32, #tpu.memory_space<vmem>>, vector<1x1x256xf32>
    %989 = vector.shape_cast %988 : vector<1x1x256xf32> to vector<1x256xf32>
    %c0_958 = arith.constant 0 : index
    %c0_959 = arith.constant 0 : index
    %c27_960 = arith.constant 27 : index
    %c24_961 = arith.constant 24 : index
    %c0_962 = arith.constant 0 : index
    %990 = vector.load %arg3[%c0_958, %c0_959, %c27_960, %c24_961, %c0_962] : memref<1x1x32x64x256xbf16, #tpu.memory_space<vmem>>, vector<1x1x1x8x256xbf16>
    %991 = vector.shape_cast %990 : vector<1x1x1x8x256xbf16> to vector<8x256xbf16>
    %992 = arith.extf %991 : vector<8x256xbf16> to vector<8x256xf32>
    %993 = vector.broadcast %989 : vector<1x256xf32> to vector<8x256xf32>
    %994 = arith.mulf %992, %993 : vector<8x256xf32>
    %995 = arith.addf %987, %994 : vector<8x256xf32>
    %c0_963 = arith.constant 0 : index
    %c28_964 = arith.constant 28 : index
    %c0_965 = arith.constant 0 : index
    %996 = vector.load %arg2[%c0_963, %c28_964, %c0_965] : memref<1x32x256xf32, #tpu.memory_space<vmem>>, vector<1x1x256xf32>
    %997 = vector.shape_cast %996 : vector<1x1x256xf32> to vector<1x256xf32>
    %c0_966 = arith.constant 0 : index
    %c0_967 = arith.constant 0 : index
    %c28_968 = arith.constant 28 : index
    %c24_969 = arith.constant 24 : index
    %c0_970 = arith.constant 0 : index
    %998 = vector.load %arg3[%c0_966, %c0_967, %c28_968, %c24_969, %c0_970] : memref<1x1x32x64x256xbf16, #tpu.memory_space<vmem>>, vector<1x1x1x8x256xbf16>
    %999 = vector.shape_cast %998 : vector<1x1x1x8x256xbf16> to vector<8x256xbf16>
    %1000 = arith.extf %999 : vector<8x256xbf16> to vector<8x256xf32>
    %1001 = vector.broadcast %997 : vector<1x256xf32> to vector<8x256xf32>
    %1002 = arith.mulf %1000, %1001 : vector<8x256xf32>
    %1003 = arith.addf %995, %1002 : vector<8x256xf32>
    %c0_971 = arith.constant 0 : index
    %c29_972 = arith.constant 29 : index
    %c0_973 = arith.constant 0 : index
    %1004 = vector.load %arg2[%c0_971, %c29_972, %c0_973] : memref<1x32x256xf32, #tpu.memory_space<vmem>>, vector<1x1x256xf32>
    %1005 = vector.shape_cast %1004 : vector<1x1x256xf32> to vector<1x256xf32>
    %c0_974 = arith.constant 0 : index
    %c0_975 = arith.constant 0 : index
    %c29_976 = arith.constant 29 : index
    %c24_977 = arith.constant 24 : index
    %c0_978 = arith.constant 0 : index
    %1006 = vector.load %arg3[%c0_974, %c0_975, %c29_976, %c24_977, %c0_978] : memref<1x1x32x64x256xbf16, #tpu.memory_space<vmem>>, vector<1x1x1x8x256xbf16>
    %1007 = vector.shape_cast %1006 : vector<1x1x1x8x256xbf16> to vector<8x256xbf16>
    %1008 = arith.extf %1007 : vector<8x256xbf16> to vector<8x256xf32>
    %1009 = vector.broadcast %1005 : vector<1x256xf32> to vector<8x256xf32>
    %1010 = arith.mulf %1008, %1009 : vector<8x256xf32>
    %1011 = arith.addf %1003, %1010 : vector<8x256xf32>
    %c0_979 = arith.constant 0 : index
    %c30_980 = arith.constant 30 : index
    %c0_981 = arith.constant 0 : index
    %1012 = vector.load %arg2[%c0_979, %c30_980, %c0_981] : memref<1x32x256xf32, #tpu.memory_space<vmem>>, vector<1x1x256xf32>
    %1013 = vector.shape_cast %1012 : vector<1x1x256xf32> to vector<1x256xf32>
    %c0_982 = arith.constant 0 : index
    %c0_983 = arith.constant 0 : index
    %c30_984 = arith.constant 30 : index
    %c24_985 = arith.constant 24 : index
    %c0_986 = arith.constant 0 : index
    %1014 = vector.load %arg3[%c0_982, %c0_983, %c30_984, %c24_985, %c0_986] : memref<1x1x32x64x256xbf16, #tpu.memory_space<vmem>>, vector<1x1x1x8x256xbf16>
    %1015 = vector.shape_cast %1014 : vector<1x1x1x8x256xbf16> to vector<8x256xbf16>
    %1016 = arith.extf %1015 : vector<8x256xbf16> to vector<8x256xf32>
    %1017 = vector.broadcast %1013 : vector<1x256xf32> to vector<8x256xf32>
    %1018 = arith.mulf %1016, %1017 : vector<8x256xf32>
    %1019 = arith.addf %1011, %1018 : vector<8x256xf32>
    %c0_987 = arith.constant 0 : index
    %c31_988 = arith.constant 31 : index
    %c0_989 = arith.constant 0 : index
    %1020 = vector.load %arg2[%c0_987, %c31_988, %c0_989] : memref<1x32x256xf32, #tpu.memory_space<vmem>>, vector<1x1x256xf32>
    %1021 = vector.shape_cast %1020 : vector<1x1x256xf32> to vector<1x256xf32>
    %c0_990 = arith.constant 0 : index
    %c0_991 = arith.constant 0 : index
    %c31_992 = arith.constant 31 : index
    %c24_993 = arith.constant 24 : index
    %c0_994 = arith.constant 0 : index
    %1022 = vector.load %arg3[%c0_990, %c0_991, %c31_992, %c24_993, %c0_994] : memref<1x1x32x64x256xbf16, #tpu.memory_space<vmem>>, vector<1x1x1x8x256xbf16>
    %1023 = vector.shape_cast %1022 : vector<1x1x1x8x256xbf16> to vector<8x256xbf16>
    %1024 = arith.extf %1023 : vector<8x256xbf16> to vector<8x256xf32>
    %1025 = vector.broadcast %1021 : vector<1x256xf32> to vector<8x256xf32>
    %1026 = arith.mulf %1024, %1025 : vector<8x256xf32>
    %1027 = arith.addf %1019, %1026 : vector<8x256xf32>
    %cst_995 = arith.constant 0.000000e+00 : f32
    %1028 = vector.broadcast %cst_995 : f32 to vector<8x256xf32>
    %c0_996 = arith.constant 0 : index
    %c0_997 = arith.constant 0 : index
    %c0_998 = arith.constant 0 : index
    %1029 = vector.load %arg2[%c0_996, %c0_997, %c0_998] : memref<1x32x256xf32, #tpu.memory_space<vmem>>, vector<1x1x256xf32>
    %1030 = vector.shape_cast %1029 : vector<1x1x256xf32> to vector<1x256xf32>
    %c0_999 = arith.constant 0 : index
    %c0_1000 = arith.constant 0 : index
    %c0_1001 = arith.constant 0 : index
    %c32 = arith.constant 32 : index
    %c0_1002 = arith.constant 0 : index
    %1031 = vector.load %arg3[%c0_999, %c0_1000, %c0_1001, %c32, %c0_1002] : memref<1x1x32x64x256xbf16, #tpu.memory_space<vmem>>, vector<1x1x1x8x256xbf16>
    %1032 = vector.shape_cast %1031 : vector<1x1x1x8x256xbf16> to vector<8x256xbf16>
    %1033 = arith.extf %1032 : vector<8x256xbf16> to vector<8x256xf32>
    %1034 = vector.broadcast %1030 : vector<1x256xf32> to vector<8x256xf32>
    %1035 = arith.mulf %1033, %1034 : vector<8x256xf32>
    %1036 = arith.addf %1028, %1035 : vector<8x256xf32>
    %c0_1003 = arith.constant 0 : index
    %c1_1004 = arith.constant 1 : index
    %c0_1005 = arith.constant 0 : index
    %1037 = vector.load %arg2[%c0_1003, %c1_1004, %c0_1005] : memref<1x32x256xf32, #tpu.memory_space<vmem>>, vector<1x1x256xf32>
    %1038 = vector.shape_cast %1037 : vector<1x1x256xf32> to vector<1x256xf32>
    %c0_1006 = arith.constant 0 : index
    %c0_1007 = arith.constant 0 : index
    %c1_1008 = arith.constant 1 : index
    %c32_1009 = arith.constant 32 : index
    %c0_1010 = arith.constant 0 : index
    %1039 = vector.load %arg3[%c0_1006, %c0_1007, %c1_1008, %c32_1009, %c0_1010] : memref<1x1x32x64x256xbf16, #tpu.memory_space<vmem>>, vector<1x1x1x8x256xbf16>
    %1040 = vector.shape_cast %1039 : vector<1x1x1x8x256xbf16> to vector<8x256xbf16>
    %1041 = arith.extf %1040 : vector<8x256xbf16> to vector<8x256xf32>
    %1042 = vector.broadcast %1038 : vector<1x256xf32> to vector<8x256xf32>
    %1043 = arith.mulf %1041, %1042 : vector<8x256xf32>
    %1044 = arith.addf %1036, %1043 : vector<8x256xf32>
    %c0_1011 = arith.constant 0 : index
    %c2_1012 = arith.constant 2 : index
    %c0_1013 = arith.constant 0 : index
    %1045 = vector.load %arg2[%c0_1011, %c2_1012, %c0_1013] : memref<1x32x256xf32, #tpu.memory_space<vmem>>, vector<1x1x256xf32>
    %1046 = vector.shape_cast %1045 : vector<1x1x256xf32> to vector<1x256xf32>
    %c0_1014 = arith.constant 0 : index
    %c0_1015 = arith.constant 0 : index
    %c2_1016 = arith.constant 2 : index
    %c32_1017 = arith.constant 32 : index
    %c0_1018 = arith.constant 0 : index
    %1047 = vector.load %arg3[%c0_1014, %c0_1015, %c2_1016, %c32_1017, %c0_1018] : memref<1x1x32x64x256xbf16, #tpu.memory_space<vmem>>, vector<1x1x1x8x256xbf16>
    %1048 = vector.shape_cast %1047 : vector<1x1x1x8x256xbf16> to vector<8x256xbf16>
    %1049 = arith.extf %1048 : vector<8x256xbf16> to vector<8x256xf32>
    %1050 = vector.broadcast %1046 : vector<1x256xf32> to vector<8x256xf32>
    %1051 = arith.mulf %1049, %1050 : vector<8x256xf32>
    %1052 = arith.addf %1044, %1051 : vector<8x256xf32>
    %c0_1019 = arith.constant 0 : index
    %c3_1020 = arith.constant 3 : index
    %c0_1021 = arith.constant 0 : index
    %1053 = vector.load %arg2[%c0_1019, %c3_1020, %c0_1021] : memref<1x32x256xf32, #tpu.memory_space<vmem>>, vector<1x1x256xf32>
    %1054 = vector.shape_cast %1053 : vector<1x1x256xf32> to vector<1x256xf32>
    %c0_1022 = arith.constant 0 : index
    %c0_1023 = arith.constant 0 : index
    %c3_1024 = arith.constant 3 : index
    %c32_1025 = arith.constant 32 : index
    %c0_1026 = arith.constant 0 : index
    %1055 = vector.load %arg3[%c0_1022, %c0_1023, %c3_1024, %c32_1025, %c0_1026] : memref<1x1x32x64x256xbf16, #tpu.memory_space<vmem>>, vector<1x1x1x8x256xbf16>
    %1056 = vector.shape_cast %1055 : vector<1x1x1x8x256xbf16> to vector<8x256xbf16>
    %1057 = arith.extf %1056 : vector<8x256xbf16> to vector<8x256xf32>
    %1058 = vector.broadcast %1054 : vector<1x256xf32> to vector<8x256xf32>
    %1059 = arith.mulf %1057, %1058 : vector<8x256xf32>
    %1060 = arith.addf %1052, %1059 : vector<8x256xf32>
    %c0_1027 = arith.constant 0 : index
    %c4_1028 = arith.constant 4 : index
    %c0_1029 = arith.constant 0 : index
    %1061 = vector.load %arg2[%c0_1027, %c4_1028, %c0_1029] : memref<1x32x256xf32, #tpu.memory_space<vmem>>, vector<1x1x256xf32>
    %1062 = vector.shape_cast %1061 : vector<1x1x256xf32> to vector<1x256xf32>
    %c0_1030 = arith.constant 0 : index
    %c0_1031 = arith.constant 0 : index
    %c4_1032 = arith.constant 4 : index
    %c32_1033 = arith.constant 32 : index
    %c0_1034 = arith.constant 0 : index
    %1063 = vector.load %arg3[%c0_1030, %c0_1031, %c4_1032, %c32_1033, %c0_1034] : memref<1x1x32x64x256xbf16, #tpu.memory_space<vmem>>, vector<1x1x1x8x256xbf16>
    %1064 = vector.shape_cast %1063 : vector<1x1x1x8x256xbf16> to vector<8x256xbf16>
    %1065 = arith.extf %1064 : vector<8x256xbf16> to vector<8x256xf32>
    %1066 = vector.broadcast %1062 : vector<1x256xf32> to vector<8x256xf32>
    %1067 = arith.mulf %1065, %1066 : vector<8x256xf32>
    %1068 = arith.addf %1060, %1067 : vector<8x256xf32>
    %c0_1035 = arith.constant 0 : index
    %c5_1036 = arith.constant 5 : index
    %c0_1037 = arith.constant 0 : index
    %1069 = vector.load %arg2[%c0_1035, %c5_1036, %c0_1037] : memref<1x32x256xf32, #tpu.memory_space<vmem>>, vector<1x1x256xf32>
    %1070 = vector.shape_cast %1069 : vector<1x1x256xf32> to vector<1x256xf32>
    %c0_1038 = arith.constant 0 : index
    %c0_1039 = arith.constant 0 : index
    %c5_1040 = arith.constant 5 : index
    %c32_1041 = arith.constant 32 : index
    %c0_1042 = arith.constant 0 : index
    %1071 = vector.load %arg3[%c0_1038, %c0_1039, %c5_1040, %c32_1041, %c0_1042] : memref<1x1x32x64x256xbf16, #tpu.memory_space<vmem>>, vector<1x1x1x8x256xbf16>
    %1072 = vector.shape_cast %1071 : vector<1x1x1x8x256xbf16> to vector<8x256xbf16>
    %1073 = arith.extf %1072 : vector<8x256xbf16> to vector<8x256xf32>
    %1074 = vector.broadcast %1070 : vector<1x256xf32> to vector<8x256xf32>
    %1075 = arith.mulf %1073, %1074 : vector<8x256xf32>
    %1076 = arith.addf %1068, %1075 : vector<8x256xf32>
    %c0_1043 = arith.constant 0 : index
    %c6_1044 = arith.constant 6 : index
    %c0_1045 = arith.constant 0 : index
    %1077 = vector.load %arg2[%c0_1043, %c6_1044, %c0_1045] : memref<1x32x256xf32, #tpu.memory_space<vmem>>, vector<1x1x256xf32>
    %1078 = vector.shape_cast %1077 : vector<1x1x256xf32> to vector<1x256xf32>
    %c0_1046 = arith.constant 0 : index
    %c0_1047 = arith.constant 0 : index
    %c6_1048 = arith.constant 6 : index
    %c32_1049 = arith.constant 32 : index
    %c0_1050 = arith.constant 0 : index
    %1079 = vector.load %arg3[%c0_1046, %c0_1047, %c6_1048, %c32_1049, %c0_1050] : memref<1x1x32x64x256xbf16, #tpu.memory_space<vmem>>, vector<1x1x1x8x256xbf16>
    %1080 = vector.shape_cast %1079 : vector<1x1x1x8x256xbf16> to vector<8x256xbf16>
    %1081 = arith.extf %1080 : vector<8x256xbf16> to vector<8x256xf32>
    %1082 = vector.broadcast %1078 : vector<1x256xf32> to vector<8x256xf32>
    %1083 = arith.mulf %1081, %1082 : vector<8x256xf32>
    %1084 = arith.addf %1076, %1083 : vector<8x256xf32>
    %c0_1051 = arith.constant 0 : index
    %c7_1052 = arith.constant 7 : index
    %c0_1053 = arith.constant 0 : index
    %1085 = vector.load %arg2[%c0_1051, %c7_1052, %c0_1053] : memref<1x32x256xf32, #tpu.memory_space<vmem>>, vector<1x1x256xf32>
    %1086 = vector.shape_cast %1085 : vector<1x1x256xf32> to vector<1x256xf32>
    %c0_1054 = arith.constant 0 : index
    %c0_1055 = arith.constant 0 : index
    %c7_1056 = arith.constant 7 : index
    %c32_1057 = arith.constant 32 : index
    %c0_1058 = arith.constant 0 : index
    %1087 = vector.load %arg3[%c0_1054, %c0_1055, %c7_1056, %c32_1057, %c0_1058] : memref<1x1x32x64x256xbf16, #tpu.memory_space<vmem>>, vector<1x1x1x8x256xbf16>
    %1088 = vector.shape_cast %1087 : vector<1x1x1x8x256xbf16> to vector<8x256xbf16>
    %1089 = arith.extf %1088 : vector<8x256xbf16> to vector<8x256xf32>
    %1090 = vector.broadcast %1086 : vector<1x256xf32> to vector<8x256xf32>
    %1091 = arith.mulf %1089, %1090 : vector<8x256xf32>
    %1092 = arith.addf %1084, %1091 : vector<8x256xf32>
    %c0_1059 = arith.constant 0 : index
    %c8_1060 = arith.constant 8 : index
    %c0_1061 = arith.constant 0 : index
    %1093 = vector.load %arg2[%c0_1059, %c8_1060, %c0_1061] : memref<1x32x256xf32, #tpu.memory_space<vmem>>, vector<1x1x256xf32>
    %1094 = vector.shape_cast %1093 : vector<1x1x256xf32> to vector<1x256xf32>
    %c0_1062 = arith.constant 0 : index
    %c0_1063 = arith.constant 0 : index
    %c8_1064 = arith.constant 8 : index
    %c32_1065 = arith.constant 32 : index
    %c0_1066 = arith.constant 0 : index
    %1095 = vector.load %arg3[%c0_1062, %c0_1063, %c8_1064, %c32_1065, %c0_1066] : memref<1x1x32x64x256xbf16, #tpu.memory_space<vmem>>, vector<1x1x1x8x256xbf16>
    %1096 = vector.shape_cast %1095 : vector<1x1x1x8x256xbf16> to vector<8x256xbf16>
    %1097 = arith.extf %1096 : vector<8x256xbf16> to vector<8x256xf32>
    %1098 = vector.broadcast %1094 : vector<1x256xf32> to vector<8x256xf32>
    %1099 = arith.mulf %1097, %1098 : vector<8x256xf32>
    %1100 = arith.addf %1092, %1099 : vector<8x256xf32>
    %c0_1067 = arith.constant 0 : index
    %c9_1068 = arith.constant 9 : index
    %c0_1069 = arith.constant 0 : index
    %1101 = vector.load %arg2[%c0_1067, %c9_1068, %c0_1069] : memref<1x32x256xf32, #tpu.memory_space<vmem>>, vector<1x1x256xf32>
    %1102 = vector.shape_cast %1101 : vector<1x1x256xf32> to vector<1x256xf32>
    %c0_1070 = arith.constant 0 : index
    %c0_1071 = arith.constant 0 : index
    %c9_1072 = arith.constant 9 : index
    %c32_1073 = arith.constant 32 : index
    %c0_1074 = arith.constant 0 : index
    %1103 = vector.load %arg3[%c0_1070, %c0_1071, %c9_1072, %c32_1073, %c0_1074] : memref<1x1x32x64x256xbf16, #tpu.memory_space<vmem>>, vector<1x1x1x8x256xbf16>
    %1104 = vector.shape_cast %1103 : vector<1x1x1x8x256xbf16> to vector<8x256xbf16>
    %1105 = arith.extf %1104 : vector<8x256xbf16> to vector<8x256xf32>
    %1106 = vector.broadcast %1102 : vector<1x256xf32> to vector<8x256xf32>
    %1107 = arith.mulf %1105, %1106 : vector<8x256xf32>
    %1108 = arith.addf %1100, %1107 : vector<8x256xf32>
    %c0_1075 = arith.constant 0 : index
    %c10_1076 = arith.constant 10 : index
    %c0_1077 = arith.constant 0 : index
    %1109 = vector.load %arg2[%c0_1075, %c10_1076, %c0_1077] : memref<1x32x256xf32, #tpu.memory_space<vmem>>, vector<1x1x256xf32>
    %1110 = vector.shape_cast %1109 : vector<1x1x256xf32> to vector<1x256xf32>
    %c0_1078 = arith.constant 0 : index
    %c0_1079 = arith.constant 0 : index
    %c10_1080 = arith.constant 10 : index
    %c32_1081 = arith.constant 32 : index
    %c0_1082 = arith.constant 0 : index
    %1111 = vector.load %arg3[%c0_1078, %c0_1079, %c10_1080, %c32_1081, %c0_1082] : memref<1x1x32x64x256xbf16, #tpu.memory_space<vmem>>, vector<1x1x1x8x256xbf16>
    %1112 = vector.shape_cast %1111 : vector<1x1x1x8x256xbf16> to vector<8x256xbf16>
    %1113 = arith.extf %1112 : vector<8x256xbf16> to vector<8x256xf32>
    %1114 = vector.broadcast %1110 : vector<1x256xf32> to vector<8x256xf32>
    %1115 = arith.mulf %1113, %1114 : vector<8x256xf32>
    %1116 = arith.addf %1108, %1115 : vector<8x256xf32>
    %c0_1083 = arith.constant 0 : index
    %c11_1084 = arith.constant 11 : index
    %c0_1085 = arith.constant 0 : index
    %1117 = vector.load %arg2[%c0_1083, %c11_1084, %c0_1085] : memref<1x32x256xf32, #tpu.memory_space<vmem>>, vector<1x1x256xf32>
    %1118 = vector.shape_cast %1117 : vector<1x1x256xf32> to vector<1x256xf32>
    %c0_1086 = arith.constant 0 : index
    %c0_1087 = arith.constant 0 : index
    %c11_1088 = arith.constant 11 : index
    %c32_1089 = arith.constant 32 : index
    %c0_1090 = arith.constant 0 : index
    %1119 = vector.load %arg3[%c0_1086, %c0_1087, %c11_1088, %c32_1089, %c0_1090] : memref<1x1x32x64x256xbf16, #tpu.memory_space<vmem>>, vector<1x1x1x8x256xbf16>
    %1120 = vector.shape_cast %1119 : vector<1x1x1x8x256xbf16> to vector<8x256xbf16>
    %1121 = arith.extf %1120 : vector<8x256xbf16> to vector<8x256xf32>
    %1122 = vector.broadcast %1118 : vector<1x256xf32> to vector<8x256xf32>
    %1123 = arith.mulf %1121, %1122 : vector<8x256xf32>
    %1124 = arith.addf %1116, %1123 : vector<8x256xf32>
    %c0_1091 = arith.constant 0 : index
    %c12_1092 = arith.constant 12 : index
    %c0_1093 = arith.constant 0 : index
    %1125 = vector.load %arg2[%c0_1091, %c12_1092, %c0_1093] : memref<1x32x256xf32, #tpu.memory_space<vmem>>, vector<1x1x256xf32>
    %1126 = vector.shape_cast %1125 : vector<1x1x256xf32> to vector<1x256xf32>
    %c0_1094 = arith.constant 0 : index
    %c0_1095 = arith.constant 0 : index
    %c12_1096 = arith.constant 12 : index
    %c32_1097 = arith.constant 32 : index
    %c0_1098 = arith.constant 0 : index
    %1127 = vector.load %arg3[%c0_1094, %c0_1095, %c12_1096, %c32_1097, %c0_1098] : memref<1x1x32x64x256xbf16, #tpu.memory_space<vmem>>, vector<1x1x1x8x256xbf16>
    %1128 = vector.shape_cast %1127 : vector<1x1x1x8x256xbf16> to vector<8x256xbf16>
    %1129 = arith.extf %1128 : vector<8x256xbf16> to vector<8x256xf32>
    %1130 = vector.broadcast %1126 : vector<1x256xf32> to vector<8x256xf32>
    %1131 = arith.mulf %1129, %1130 : vector<8x256xf32>
    %1132 = arith.addf %1124, %1131 : vector<8x256xf32>
    %c0_1099 = arith.constant 0 : index
    %c13_1100 = arith.constant 13 : index
    %c0_1101 = arith.constant 0 : index
    %1133 = vector.load %arg2[%c0_1099, %c13_1100, %c0_1101] : memref<1x32x256xf32, #tpu.memory_space<vmem>>, vector<1x1x256xf32>
    %1134 = vector.shape_cast %1133 : vector<1x1x256xf32> to vector<1x256xf32>
    %c0_1102 = arith.constant 0 : index
    %c0_1103 = arith.constant 0 : index
    %c13_1104 = arith.constant 13 : index
    %c32_1105 = arith.constant 32 : index
    %c0_1106 = arith.constant 0 : index
    %1135 = vector.load %arg3[%c0_1102, %c0_1103, %c13_1104, %c32_1105, %c0_1106] : memref<1x1x32x64x256xbf16, #tpu.memory_space<vmem>>, vector<1x1x1x8x256xbf16>
    %1136 = vector.shape_cast %1135 : vector<1x1x1x8x256xbf16> to vector<8x256xbf16>
    %1137 = arith.extf %1136 : vector<8x256xbf16> to vector<8x256xf32>
    %1138 = vector.broadcast %1134 : vector<1x256xf32> to vector<8x256xf32>
    %1139 = arith.mulf %1137, %1138 : vector<8x256xf32>
    %1140 = arith.addf %1132, %1139 : vector<8x256xf32>
    %c0_1107 = arith.constant 0 : index
    %c14_1108 = arith.constant 14 : index
    %c0_1109 = arith.constant 0 : index
    %1141 = vector.load %arg2[%c0_1107, %c14_1108, %c0_1109] : memref<1x32x256xf32, #tpu.memory_space<vmem>>, vector<1x1x256xf32>
    %1142 = vector.shape_cast %1141 : vector<1x1x256xf32> to vector<1x256xf32>
    %c0_1110 = arith.constant 0 : index
    %c0_1111 = arith.constant 0 : index
    %c14_1112 = arith.constant 14 : index
    %c32_1113 = arith.constant 32 : index
    %c0_1114 = arith.constant 0 : index
    %1143 = vector.load %arg3[%c0_1110, %c0_1111, %c14_1112, %c32_1113, %c0_1114] : memref<1x1x32x64x256xbf16, #tpu.memory_space<vmem>>, vector<1x1x1x8x256xbf16>
    %1144 = vector.shape_cast %1143 : vector<1x1x1x8x256xbf16> to vector<8x256xbf16>
    %1145 = arith.extf %1144 : vector<8x256xbf16> to vector<8x256xf32>
    %1146 = vector.broadcast %1142 : vector<1x256xf32> to vector<8x256xf32>
    %1147 = arith.mulf %1145, %1146 : vector<8x256xf32>
    %1148 = arith.addf %1140, %1147 : vector<8x256xf32>
    %c0_1115 = arith.constant 0 : index
    %c15_1116 = arith.constant 15 : index
    %c0_1117 = arith.constant 0 : index
    %1149 = vector.load %arg2[%c0_1115, %c15_1116, %c0_1117] : memref<1x32x256xf32, #tpu.memory_space<vmem>>, vector<1x1x256xf32>
    %1150 = vector.shape_cast %1149 : vector<1x1x256xf32> to vector<1x256xf32>
    %c0_1118 = arith.constant 0 : index
    %c0_1119 = arith.constant 0 : index
    %c15_1120 = arith.constant 15 : index
    %c32_1121 = arith.constant 32 : index
    %c0_1122 = arith.constant 0 : index
    %1151 = vector.load %arg3[%c0_1118, %c0_1119, %c15_1120, %c32_1121, %c0_1122] : memref<1x1x32x64x256xbf16, #tpu.memory_space<vmem>>, vector<1x1x1x8x256xbf16>
    %1152 = vector.shape_cast %1151 : vector<1x1x1x8x256xbf16> to vector<8x256xbf16>
    %1153 = arith.extf %1152 : vector<8x256xbf16> to vector<8x256xf32>
    %1154 = vector.broadcast %1150 : vector<1x256xf32> to vector<8x256xf32>
    %1155 = arith.mulf %1153, %1154 : vector<8x256xf32>
    %1156 = arith.addf %1148, %1155 : vector<8x256xf32>
    %c0_1123 = arith.constant 0 : index
    %c16_1124 = arith.constant 16 : index
    %c0_1125 = arith.constant 0 : index
    %1157 = vector.load %arg2[%c0_1123, %c16_1124, %c0_1125] : memref<1x32x256xf32, #tpu.memory_space<vmem>>, vector<1x1x256xf32>
    %1158 = vector.shape_cast %1157 : vector<1x1x256xf32> to vector<1x256xf32>
    %c0_1126 = arith.constant 0 : index
    %c0_1127 = arith.constant 0 : index
    %c16_1128 = arith.constant 16 : index
    %c32_1129 = arith.constant 32 : index
    %c0_1130 = arith.constant 0 : index
    %1159 = vector.load %arg3[%c0_1126, %c0_1127, %c16_1128, %c32_1129, %c0_1130] : memref<1x1x32x64x256xbf16, #tpu.memory_space<vmem>>, vector<1x1x1x8x256xbf16>
    %1160 = vector.shape_cast %1159 : vector<1x1x1x8x256xbf16> to vector<8x256xbf16>
    %1161 = arith.extf %1160 : vector<8x256xbf16> to vector<8x256xf32>
    %1162 = vector.broadcast %1158 : vector<1x256xf32> to vector<8x256xf32>
    %1163 = arith.mulf %1161, %1162 : vector<8x256xf32>
    %1164 = arith.addf %1156, %1163 : vector<8x256xf32>
    %c0_1131 = arith.constant 0 : index
    %c17_1132 = arith.constant 17 : index
    %c0_1133 = arith.constant 0 : index
    %1165 = vector.load %arg2[%c0_1131, %c17_1132, %c0_1133] : memref<1x32x256xf32, #tpu.memory_space<vmem>>, vector<1x1x256xf32>
    %1166 = vector.shape_cast %1165 : vector<1x1x256xf32> to vector<1x256xf32>
    %c0_1134 = arith.constant 0 : index
    %c0_1135 = arith.constant 0 : index
    %c17_1136 = arith.constant 17 : index
    %c32_1137 = arith.constant 32 : index
    %c0_1138 = arith.constant 0 : index
    %1167 = vector.load %arg3[%c0_1134, %c0_1135, %c17_1136, %c32_1137, %c0_1138] : memref<1x1x32x64x256xbf16, #tpu.memory_space<vmem>>, vector<1x1x1x8x256xbf16>
    %1168 = vector.shape_cast %1167 : vector<1x1x1x8x256xbf16> to vector<8x256xbf16>
    %1169 = arith.extf %1168 : vector<8x256xbf16> to vector<8x256xf32>
    %1170 = vector.broadcast %1166 : vector<1x256xf32> to vector<8x256xf32>
    %1171 = arith.mulf %1169, %1170 : vector<8x256xf32>
    %1172 = arith.addf %1164, %1171 : vector<8x256xf32>
    %c0_1139 = arith.constant 0 : index
    %c18_1140 = arith.constant 18 : index
    %c0_1141 = arith.constant 0 : index
    %1173 = vector.load %arg2[%c0_1139, %c18_1140, %c0_1141] : memref<1x32x256xf32, #tpu.memory_space<vmem>>, vector<1x1x256xf32>
    %1174 = vector.shape_cast %1173 : vector<1x1x256xf32> to vector<1x256xf32>
    %c0_1142 = arith.constant 0 : index
    %c0_1143 = arith.constant 0 : index
    %c18_1144 = arith.constant 18 : index
    %c32_1145 = arith.constant 32 : index
    %c0_1146 = arith.constant 0 : index
    %1175 = vector.load %arg3[%c0_1142, %c0_1143, %c18_1144, %c32_1145, %c0_1146] : memref<1x1x32x64x256xbf16, #tpu.memory_space<vmem>>, vector<1x1x1x8x256xbf16>
    %1176 = vector.shape_cast %1175 : vector<1x1x1x8x256xbf16> to vector<8x256xbf16>
    %1177 = arith.extf %1176 : vector<8x256xbf16> to vector<8x256xf32>
    %1178 = vector.broadcast %1174 : vector<1x256xf32> to vector<8x256xf32>
    %1179 = arith.mulf %1177, %1178 : vector<8x256xf32>
    %1180 = arith.addf %1172, %1179 : vector<8x256xf32>
    %c0_1147 = arith.constant 0 : index
    %c19_1148 = arith.constant 19 : index
    %c0_1149 = arith.constant 0 : index
    %1181 = vector.load %arg2[%c0_1147, %c19_1148, %c0_1149] : memref<1x32x256xf32, #tpu.memory_space<vmem>>, vector<1x1x256xf32>
    %1182 = vector.shape_cast %1181 : vector<1x1x256xf32> to vector<1x256xf32>
    %c0_1150 = arith.constant 0 : index
    %c0_1151 = arith.constant 0 : index
    %c19_1152 = arith.constant 19 : index
    %c32_1153 = arith.constant 32 : index
    %c0_1154 = arith.constant 0 : index
    %1183 = vector.load %arg3[%c0_1150, %c0_1151, %c19_1152, %c32_1153, %c0_1154] : memref<1x1x32x64x256xbf16, #tpu.memory_space<vmem>>, vector<1x1x1x8x256xbf16>
    %1184 = vector.shape_cast %1183 : vector<1x1x1x8x256xbf16> to vector<8x256xbf16>
    %1185 = arith.extf %1184 : vector<8x256xbf16> to vector<8x256xf32>
    %1186 = vector.broadcast %1182 : vector<1x256xf32> to vector<8x256xf32>
    %1187 = arith.mulf %1185, %1186 : vector<8x256xf32>
    %1188 = arith.addf %1180, %1187 : vector<8x256xf32>
    %c0_1155 = arith.constant 0 : index
    %c20_1156 = arith.constant 20 : index
    %c0_1157 = arith.constant 0 : index
    %1189 = vector.load %arg2[%c0_1155, %c20_1156, %c0_1157] : memref<1x32x256xf32, #tpu.memory_space<vmem>>, vector<1x1x256xf32>
    %1190 = vector.shape_cast %1189 : vector<1x1x256xf32> to vector<1x256xf32>
    %c0_1158 = arith.constant 0 : index
    %c0_1159 = arith.constant 0 : index
    %c20_1160 = arith.constant 20 : index
    %c32_1161 = arith.constant 32 : index
    %c0_1162 = arith.constant 0 : index
    %1191 = vector.load %arg3[%c0_1158, %c0_1159, %c20_1160, %c32_1161, %c0_1162] : memref<1x1x32x64x256xbf16, #tpu.memory_space<vmem>>, vector<1x1x1x8x256xbf16>
    %1192 = vector.shape_cast %1191 : vector<1x1x1x8x256xbf16> to vector<8x256xbf16>
    %1193 = arith.extf %1192 : vector<8x256xbf16> to vector<8x256xf32>
    %1194 = vector.broadcast %1190 : vector<1x256xf32> to vector<8x256xf32>
    %1195 = arith.mulf %1193, %1194 : vector<8x256xf32>
    %1196 = arith.addf %1188, %1195 : vector<8x256xf32>
    %c0_1163 = arith.constant 0 : index
    %c21_1164 = arith.constant 21 : index
    %c0_1165 = arith.constant 0 : index
    %1197 = vector.load %arg2[%c0_1163, %c21_1164, %c0_1165] : memref<1x32x256xf32, #tpu.memory_space<vmem>>, vector<1x1x256xf32>
    %1198 = vector.shape_cast %1197 : vector<1x1x256xf32> to vector<1x256xf32>
    %c0_1166 = arith.constant 0 : index
    %c0_1167 = arith.constant 0 : index
    %c21_1168 = arith.constant 21 : index
    %c32_1169 = arith.constant 32 : index
    %c0_1170 = arith.constant 0 : index
    %1199 = vector.load %arg3[%c0_1166, %c0_1167, %c21_1168, %c32_1169, %c0_1170] : memref<1x1x32x64x256xbf16, #tpu.memory_space<vmem>>, vector<1x1x1x8x256xbf16>
    %1200 = vector.shape_cast %1199 : vector<1x1x1x8x256xbf16> to vector<8x256xbf16>
    %1201 = arith.extf %1200 : vector<8x256xbf16> to vector<8x256xf32>
    %1202 = vector.broadcast %1198 : vector<1x256xf32> to vector<8x256xf32>
    %1203 = arith.mulf %1201, %1202 : vector<8x256xf32>
    %1204 = arith.addf %1196, %1203 : vector<8x256xf32>
    %c0_1171 = arith.constant 0 : index
    %c22_1172 = arith.constant 22 : index
    %c0_1173 = arith.constant 0 : index
    %1205 = vector.load %arg2[%c0_1171, %c22_1172, %c0_1173] : memref<1x32x256xf32, #tpu.memory_space<vmem>>, vector<1x1x256xf32>
    %1206 = vector.shape_cast %1205 : vector<1x1x256xf32> to vector<1x256xf32>
    %c0_1174 = arith.constant 0 : index
    %c0_1175 = arith.constant 0 : index
    %c22_1176 = arith.constant 22 : index
    %c32_1177 = arith.constant 32 : index
    %c0_1178 = arith.constant 0 : index
    %1207 = vector.load %arg3[%c0_1174, %c0_1175, %c22_1176, %c32_1177, %c0_1178] : memref<1x1x32x64x256xbf16, #tpu.memory_space<vmem>>, vector<1x1x1x8x256xbf16>
    %1208 = vector.shape_cast %1207 : vector<1x1x1x8x256xbf16> to vector<8x256xbf16>
    %1209 = arith.extf %1208 : vector<8x256xbf16> to vector<8x256xf32>
    %1210 = vector.broadcast %1206 : vector<1x256xf32> to vector<8x256xf32>
    %1211 = arith.mulf %1209, %1210 : vector<8x256xf32>
    %1212 = arith.addf %1204, %1211 : vector<8x256xf32>
    %c0_1179 = arith.constant 0 : index
    %c23_1180 = arith.constant 23 : index
    %c0_1181 = arith.constant 0 : index
    %1213 = vector.load %arg2[%c0_1179, %c23_1180, %c0_1181] : memref<1x32x256xf32, #tpu.memory_space<vmem>>, vector<1x1x256xf32>
    %1214 = vector.shape_cast %1213 : vector<1x1x256xf32> to vector<1x256xf32>
    %c0_1182 = arith.constant 0 : index
    %c0_1183 = arith.constant 0 : index
    %c23_1184 = arith.constant 23 : index
    %c32_1185 = arith.constant 32 : index
    %c0_1186 = arith.constant 0 : index
    %1215 = vector.load %arg3[%c0_1182, %c0_1183, %c23_1184, %c32_1185, %c0_1186] : memref<1x1x32x64x256xbf16, #tpu.memory_space<vmem>>, vector<1x1x1x8x256xbf16>
    %1216 = vector.shape_cast %1215 : vector<1x1x1x8x256xbf16> to vector<8x256xbf16>
    %1217 = arith.extf %1216 : vector<8x256xbf16> to vector<8x256xf32>
    %1218 = vector.broadcast %1214 : vector<1x256xf32> to vector<8x256xf32>
    %1219 = arith.mulf %1217, %1218 : vector<8x256xf32>
    %1220 = arith.addf %1212, %1219 : vector<8x256xf32>
    %c0_1187 = arith.constant 0 : index
    %c24_1188 = arith.constant 24 : index
    %c0_1189 = arith.constant 0 : index
    %1221 = vector.load %arg2[%c0_1187, %c24_1188, %c0_1189] : memref<1x32x256xf32, #tpu.memory_space<vmem>>, vector<1x1x256xf32>
    %1222 = vector.shape_cast %1221 : vector<1x1x256xf32> to vector<1x256xf32>
    %c0_1190 = arith.constant 0 : index
    %c0_1191 = arith.constant 0 : index
    %c24_1192 = arith.constant 24 : index
    %c32_1193 = arith.constant 32 : index
    %c0_1194 = arith.constant 0 : index
    %1223 = vector.load %arg3[%c0_1190, %c0_1191, %c24_1192, %c32_1193, %c0_1194] : memref<1x1x32x64x256xbf16, #tpu.memory_space<vmem>>, vector<1x1x1x8x256xbf16>
    %1224 = vector.shape_cast %1223 : vector<1x1x1x8x256xbf16> to vector<8x256xbf16>
    %1225 = arith.extf %1224 : vector<8x256xbf16> to vector<8x256xf32>
    %1226 = vector.broadcast %1222 : vector<1x256xf32> to vector<8x256xf32>
    %1227 = arith.mulf %1225, %1226 : vector<8x256xf32>
    %1228 = arith.addf %1220, %1227 : vector<8x256xf32>
    %c0_1195 = arith.constant 0 : index
    %c25_1196 = arith.constant 25 : index
    %c0_1197 = arith.constant 0 : index
    %1229 = vector.load %arg2[%c0_1195, %c25_1196, %c0_1197] : memref<1x32x256xf32, #tpu.memory_space<vmem>>, vector<1x1x256xf32>
    %1230 = vector.shape_cast %1229 : vector<1x1x256xf32> to vector<1x256xf32>
    %c0_1198 = arith.constant 0 : index
    %c0_1199 = arith.constant 0 : index
    %c25_1200 = arith.constant 25 : index
    %c32_1201 = arith.constant 32 : index
    %c0_1202 = arith.constant 0 : index
    %1231 = vector.load %arg3[%c0_1198, %c0_1199, %c25_1200, %c32_1201, %c0_1202] : memref<1x1x32x64x256xbf16, #tpu.memory_space<vmem>>, vector<1x1x1x8x256xbf16>
    %1232 = vector.shape_cast %1231 : vector<1x1x1x8x256xbf16> to vector<8x256xbf16>
    %1233 = arith.extf %1232 : vector<8x256xbf16> to vector<8x256xf32>
    %1234 = vector.broadcast %1230 : vector<1x256xf32> to vector<8x256xf32>
    %1235 = arith.mulf %1233, %1234 : vector<8x256xf32>
    %1236 = arith.addf %1228, %1235 : vector<8x256xf32>
    %c0_1203 = arith.constant 0 : index
    %c26_1204 = arith.constant 26 : index
    %c0_1205 = arith.constant 0 : index
    %1237 = vector.load %arg2[%c0_1203, %c26_1204, %c0_1205] : memref<1x32x256xf32, #tpu.memory_space<vmem>>, vector<1x1x256xf32>
    %1238 = vector.shape_cast %1237 : vector<1x1x256xf32> to vector<1x256xf32>
    %c0_1206 = arith.constant 0 : index
    %c0_1207 = arith.constant 0 : index
    %c26_1208 = arith.constant 26 : index
    %c32_1209 = arith.constant 32 : index
    %c0_1210 = arith.constant 0 : index
    %1239 = vector.load %arg3[%c0_1206, %c0_1207, %c26_1208, %c32_1209, %c0_1210] : memref<1x1x32x64x256xbf16, #tpu.memory_space<vmem>>, vector<1x1x1x8x256xbf16>
    %1240 = vector.shape_cast %1239 : vector<1x1x1x8x256xbf16> to vector<8x256xbf16>
    %1241 = arith.extf %1240 : vector<8x256xbf16> to vector<8x256xf32>
    %1242 = vector.broadcast %1238 : vector<1x256xf32> to vector<8x256xf32>
    %1243 = arith.mulf %1241, %1242 : vector<8x256xf32>
    %1244 = arith.addf %1236, %1243 : vector<8x256xf32>
    %c0_1211 = arith.constant 0 : index
    %c27_1212 = arith.constant 27 : index
    %c0_1213 = arith.constant 0 : index
    %1245 = vector.load %arg2[%c0_1211, %c27_1212, %c0_1213] : memref<1x32x256xf32, #tpu.memory_space<vmem>>, vector<1x1x256xf32>
    %1246 = vector.shape_cast %1245 : vector<1x1x256xf32> to vector<1x256xf32>
    %c0_1214 = arith.constant 0 : index
    %c0_1215 = arith.constant 0 : index
    %c27_1216 = arith.constant 27 : index
    %c32_1217 = arith.constant 32 : index
    %c0_1218 = arith.constant 0 : index
    %1247 = vector.load %arg3[%c0_1214, %c0_1215, %c27_1216, %c32_1217, %c0_1218] : memref<1x1x32x64x256xbf16, #tpu.memory_space<vmem>>, vector<1x1x1x8x256xbf16>
    %1248 = vector.shape_cast %1247 : vector<1x1x1x8x256xbf16> to vector<8x256xbf16>
    %1249 = arith.extf %1248 : vector<8x256xbf16> to vector<8x256xf32>
    %1250 = vector.broadcast %1246 : vector<1x256xf32> to vector<8x256xf32>
    %1251 = arith.mulf %1249, %1250 : vector<8x256xf32>
    %1252 = arith.addf %1244, %1251 : vector<8x256xf32>
    %c0_1219 = arith.constant 0 : index
    %c28_1220 = arith.constant 28 : index
    %c0_1221 = arith.constant 0 : index
    %1253 = vector.load %arg2[%c0_1219, %c28_1220, %c0_1221] : memref<1x32x256xf32, #tpu.memory_space<vmem>>, vector<1x1x256xf32>
    %1254 = vector.shape_cast %1253 : vector<1x1x256xf32> to vector<1x256xf32>
    %c0_1222 = arith.constant 0 : index
    %c0_1223 = arith.constant 0 : index
    %c28_1224 = arith.constant 28 : index
    %c32_1225 = arith.constant 32 : index
    %c0_1226 = arith.constant 0 : index
    %1255 = vector.load %arg3[%c0_1222, %c0_1223, %c28_1224, %c32_1225, %c0_1226] : memref<1x1x32x64x256xbf16, #tpu.memory_space<vmem>>, vector<1x1x1x8x256xbf16>
    %1256 = vector.shape_cast %1255 : vector<1x1x1x8x256xbf16> to vector<8x256xbf16>
    %1257 = arith.extf %1256 : vector<8x256xbf16> to vector<8x256xf32>
    %1258 = vector.broadcast %1254 : vector<1x256xf32> to vector<8x256xf32>
    %1259 = arith.mulf %1257, %1258 : vector<8x256xf32>
    %1260 = arith.addf %1252, %1259 : vector<8x256xf32>
    %c0_1227 = arith.constant 0 : index
    %c29_1228 = arith.constant 29 : index
    %c0_1229 = arith.constant 0 : index
    %1261 = vector.load %arg2[%c0_1227, %c29_1228, %c0_1229] : memref<1x32x256xf32, #tpu.memory_space<vmem>>, vector<1x1x256xf32>
    %1262 = vector.shape_cast %1261 : vector<1x1x256xf32> to vector<1x256xf32>
    %c0_1230 = arith.constant 0 : index
    %c0_1231 = arith.constant 0 : index
    %c29_1232 = arith.constant 29 : index
    %c32_1233 = arith.constant 32 : index
    %c0_1234 = arith.constant 0 : index
    %1263 = vector.load %arg3[%c0_1230, %c0_1231, %c29_1232, %c32_1233, %c0_1234] : memref<1x1x32x64x256xbf16, #tpu.memory_space<vmem>>, vector<1x1x1x8x256xbf16>
    %1264 = vector.shape_cast %1263 : vector<1x1x1x8x256xbf16> to vector<8x256xbf16>
    %1265 = arith.extf %1264 : vector<8x256xbf16> to vector<8x256xf32>
    %1266 = vector.broadcast %1262 : vector<1x256xf32> to vector<8x256xf32>
    %1267 = arith.mulf %1265, %1266 : vector<8x256xf32>
    %1268 = arith.addf %1260, %1267 : vector<8x256xf32>
    %c0_1235 = arith.constant 0 : index
    %c30_1236 = arith.constant 30 : index
    %c0_1237 = arith.constant 0 : index
    %1269 = vector.load %arg2[%c0_1235, %c30_1236, %c0_1237] : memref<1x32x256xf32, #tpu.memory_space<vmem>>, vector<1x1x256xf32>
    %1270 = vector.shape_cast %1269 : vector<1x1x256xf32> to vector<1x256xf32>
    %c0_1238 = arith.constant 0 : index
    %c0_1239 = arith.constant 0 : index
    %c30_1240 = arith.constant 30 : index
    %c32_1241 = arith.constant 32 : index
    %c0_1242 = arith.constant 0 : index
    %1271 = vector.load %arg3[%c0_1238, %c0_1239, %c30_1240, %c32_1241, %c0_1242] : memref<1x1x32x64x256xbf16, #tpu.memory_space<vmem>>, vector<1x1x1x8x256xbf16>
    %1272 = vector.shape_cast %1271 : vector<1x1x1x8x256xbf16> to vector<8x256xbf16>
    %1273 = arith.extf %1272 : vector<8x256xbf16> to vector<8x256xf32>
    %1274 = vector.broadcast %1270 : vector<1x256xf32> to vector<8x256xf32>
    %1275 = arith.mulf %1273, %1274 : vector<8x256xf32>
    %1276 = arith.addf %1268, %1275 : vector<8x256xf32>
    %c0_1243 = arith.constant 0 : index
    %c31_1244 = arith.constant 31 : index
    %c0_1245 = arith.constant 0 : index
    %1277 = vector.load %arg2[%c0_1243, %c31_1244, %c0_1245] : memref<1x32x256xf32, #tpu.memory_space<vmem>>, vector<1x1x256xf32>
    %1278 = vector.shape_cast %1277 : vector<1x1x256xf32> to vector<1x256xf32>
    %c0_1246 = arith.constant 0 : index
    %c0_1247 = arith.constant 0 : index
    %c31_1248 = arith.constant 31 : index
    %c32_1249 = arith.constant 32 : index
    %c0_1250 = arith.constant 0 : index
    %1279 = vector.load %arg3[%c0_1246, %c0_1247, %c31_1248, %c32_1249, %c0_1250] : memref<1x1x32x64x256xbf16, #tpu.memory_space<vmem>>, vector<1x1x1x8x256xbf16>
    %1280 = vector.shape_cast %1279 : vector<1x1x1x8x256xbf16> to vector<8x256xbf16>
    %1281 = arith.extf %1280 : vector<8x256xbf16> to vector<8x256xf32>
    %1282 = vector.broadcast %1278 : vector<1x256xf32> to vector<8x256xf32>
    %1283 = arith.mulf %1281, %1282 : vector<8x256xf32>
    %1284 = arith.addf %1276, %1283 : vector<8x256xf32>
    %cst_1251 = arith.constant 0.000000e+00 : f32
    %1285 = vector.broadcast %cst_1251 : f32 to vector<8x256xf32>
    %c0_1252 = arith.constant 0 : index
    %c0_1253 = arith.constant 0 : index
    %c0_1254 = arith.constant 0 : index
    %1286 = vector.load %arg2[%c0_1252, %c0_1253, %c0_1254] : memref<1x32x256xf32, #tpu.memory_space<vmem>>, vector<1x1x256xf32>
    %1287 = vector.shape_cast %1286 : vector<1x1x256xf32> to vector<1x256xf32>
    %c0_1255 = arith.constant 0 : index
    %c0_1256 = arith.constant 0 : index
    %c0_1257 = arith.constant 0 : index
    %c40 = arith.constant 40 : index
    %c0_1258 = arith.constant 0 : index
    %1288 = vector.load %arg3[%c0_1255, %c0_1256, %c0_1257, %c40, %c0_1258] : memref<1x1x32x64x256xbf16, #tpu.memory_space<vmem>>, vector<1x1x1x8x256xbf16>
    %1289 = vector.shape_cast %1288 : vector<1x1x1x8x256xbf16> to vector<8x256xbf16>
    %1290 = arith.extf %1289 : vector<8x256xbf16> to vector<8x256xf32>
    %1291 = vector.broadcast %1287 : vector<1x256xf32> to vector<8x256xf32>
    %1292 = arith.mulf %1290, %1291 : vector<8x256xf32>
    %1293 = arith.addf %1285, %1292 : vector<8x256xf32>
    %c0_1259 = arith.constant 0 : index
    %c1_1260 = arith.constant 1 : index
    %c0_1261 = arith.constant 0 : index
    %1294 = vector.load %arg2[%c0_1259, %c1_1260, %c0_1261] : memref<1x32x256xf32, #tpu.memory_space<vmem>>, vector<1x1x256xf32>
    %1295 = vector.shape_cast %1294 : vector<1x1x256xf32> to vector<1x256xf32>
    %c0_1262 = arith.constant 0 : index
    %c0_1263 = arith.constant 0 : index
    %c1_1264 = arith.constant 1 : index
    %c40_1265 = arith.constant 40 : index
    %c0_1266 = arith.constant 0 : index
    %1296 = vector.load %arg3[%c0_1262, %c0_1263, %c1_1264, %c40_1265, %c0_1266] : memref<1x1x32x64x256xbf16, #tpu.memory_space<vmem>>, vector<1x1x1x8x256xbf16>
    %1297 = vector.shape_cast %1296 : vector<1x1x1x8x256xbf16> to vector<8x256xbf16>
    %1298 = arith.extf %1297 : vector<8x256xbf16> to vector<8x256xf32>
    %1299 = vector.broadcast %1295 : vector<1x256xf32> to vector<8x256xf32>
    %1300 = arith.mulf %1298, %1299 : vector<8x256xf32>
    %1301 = arith.addf %1293, %1300 : vector<8x256xf32>
    %c0_1267 = arith.constant 0 : index
    %c2_1268 = arith.constant 2 : index
    %c0_1269 = arith.constant 0 : index
    %1302 = vector.load %arg2[%c0_1267, %c2_1268, %c0_1269] : memref<1x32x256xf32, #tpu.memory_space<vmem>>, vector<1x1x256xf32>
    %1303 = vector.shape_cast %1302 : vector<1x1x256xf32> to vector<1x256xf32>
    %c0_1270 = arith.constant 0 : index
    %c0_1271 = arith.constant 0 : index
    %c2_1272 = arith.constant 2 : index
    %c40_1273 = arith.constant 40 : index
    %c0_1274 = arith.constant 0 : index
    %1304 = vector.load %arg3[%c0_1270, %c0_1271, %c2_1272, %c40_1273, %c0_1274] : memref<1x1x32x64x256xbf16, #tpu.memory_space<vmem>>, vector<1x1x1x8x256xbf16>
    %1305 = vector.shape_cast %1304 : vector<1x1x1x8x256xbf16> to vector<8x256xbf16>
    %1306 = arith.extf %1305 : vector<8x256xbf16> to vector<8x256xf32>
    %1307 = vector.broadcast %1303 : vector<1x256xf32> to vector<8x256xf32>
    %1308 = arith.mulf %1306, %1307 : vector<8x256xf32>
    %1309 = arith.addf %1301, %1308 : vector<8x256xf32>
    %c0_1275 = arith.constant 0 : index
    %c3_1276 = arith.constant 3 : index
    %c0_1277 = arith.constant 0 : index
    %1310 = vector.load %arg2[%c0_1275, %c3_1276, %c0_1277] : memref<1x32x256xf32, #tpu.memory_space<vmem>>, vector<1x1x256xf32>
    %1311 = vector.shape_cast %1310 : vector<1x1x256xf32> to vector<1x256xf32>
    %c0_1278 = arith.constant 0 : index
    %c0_1279 = arith.constant 0 : index
    %c3_1280 = arith.constant 3 : index
    %c40_1281 = arith.constant 40 : index
    %c0_1282 = arith.constant 0 : index
    %1312 = vector.load %arg3[%c0_1278, %c0_1279, %c3_1280, %c40_1281, %c0_1282] : memref<1x1x32x64x256xbf16, #tpu.memory_space<vmem>>, vector<1x1x1x8x256xbf16>
    %1313 = vector.shape_cast %1312 : vector<1x1x1x8x256xbf16> to vector<8x256xbf16>
    %1314 = arith.extf %1313 : vector<8x256xbf16> to vector<8x256xf32>
    %1315 = vector.broadcast %1311 : vector<1x256xf32> to vector<8x256xf32>
    %1316 = arith.mulf %1314, %1315 : vector<8x256xf32>
    %1317 = arith.addf %1309, %1316 : vector<8x256xf32>
    %c0_1283 = arith.constant 0 : index
    %c4_1284 = arith.constant 4 : index
    %c0_1285 = arith.constant 0 : index
    %1318 = vector.load %arg2[%c0_1283, %c4_1284, %c0_1285] : memref<1x32x256xf32, #tpu.memory_space<vmem>>, vector<1x1x256xf32>
    %1319 = vector.shape_cast %1318 : vector<1x1x256xf32> to vector<1x256xf32>
    %c0_1286 = arith.constant 0 : index
    %c0_1287 = arith.constant 0 : index
    %c4_1288 = arith.constant 4 : index
    %c40_1289 = arith.constant 40 : index
    %c0_1290 = arith.constant 0 : index
    %1320 = vector.load %arg3[%c0_1286, %c0_1287, %c4_1288, %c40_1289, %c0_1290] : memref<1x1x32x64x256xbf16, #tpu.memory_space<vmem>>, vector<1x1x1x8x256xbf16>
    %1321 = vector.shape_cast %1320 : vector<1x1x1x8x256xbf16> to vector<8x256xbf16>
    %1322 = arith.extf %1321 : vector<8x256xbf16> to vector<8x256xf32>
    %1323 = vector.broadcast %1319 : vector<1x256xf32> to vector<8x256xf32>
    %1324 = arith.mulf %1322, %1323 : vector<8x256xf32>
    %1325 = arith.addf %1317, %1324 : vector<8x256xf32>
    %c0_1291 = arith.constant 0 : index
    %c5_1292 = arith.constant 5 : index
    %c0_1293 = arith.constant 0 : index
    %1326 = vector.load %arg2[%c0_1291, %c5_1292, %c0_1293] : memref<1x32x256xf32, #tpu.memory_space<vmem>>, vector<1x1x256xf32>
    %1327 = vector.shape_cast %1326 : vector<1x1x256xf32> to vector<1x256xf32>
    %c0_1294 = arith.constant 0 : index
    %c0_1295 = arith.constant 0 : index
    %c5_1296 = arith.constant 5 : index
    %c40_1297 = arith.constant 40 : index
    %c0_1298 = arith.constant 0 : index
    %1328 = vector.load %arg3[%c0_1294, %c0_1295, %c5_1296, %c40_1297, %c0_1298] : memref<1x1x32x64x256xbf16, #tpu.memory_space<vmem>>, vector<1x1x1x8x256xbf16>
    %1329 = vector.shape_cast %1328 : vector<1x1x1x8x256xbf16> to vector<8x256xbf16>
    %1330 = arith.extf %1329 : vector<8x256xbf16> to vector<8x256xf32>
    %1331 = vector.broadcast %1327 : vector<1x256xf32> to vector<8x256xf32>
    %1332 = arith.mulf %1330, %1331 : vector<8x256xf32>
    %1333 = arith.addf %1325, %1332 : vector<8x256xf32>
    %c0_1299 = arith.constant 0 : index
    %c6_1300 = arith.constant 6 : index
    %c0_1301 = arith.constant 0 : index
    %1334 = vector.load %arg2[%c0_1299, %c6_1300, %c0_1301] : memref<1x32x256xf32, #tpu.memory_space<vmem>>, vector<1x1x256xf32>
    %1335 = vector.shape_cast %1334 : vector<1x1x256xf32> to vector<1x256xf32>
    %c0_1302 = arith.constant 0 : index
    %c0_1303 = arith.constant 0 : index
    %c6_1304 = arith.constant 6 : index
    %c40_1305 = arith.constant 40 : index
    %c0_1306 = arith.constant 0 : index
    %1336 = vector.load %arg3[%c0_1302, %c0_1303, %c6_1304, %c40_1305, %c0_1306] : memref<1x1x32x64x256xbf16, #tpu.memory_space<vmem>>, vector<1x1x1x8x256xbf16>
    %1337 = vector.shape_cast %1336 : vector<1x1x1x8x256xbf16> to vector<8x256xbf16>
    %1338 = arith.extf %1337 : vector<8x256xbf16> to vector<8x256xf32>
    %1339 = vector.broadcast %1335 : vector<1x256xf32> to vector<8x256xf32>
    %1340 = arith.mulf %1338, %1339 : vector<8x256xf32>
    %1341 = arith.addf %1333, %1340 : vector<8x256xf32>
    %c0_1307 = arith.constant 0 : index
    %c7_1308 = arith.constant 7 : index
    %c0_1309 = arith.constant 0 : index
    %1342 = vector.load %arg2[%c0_1307, %c7_1308, %c0_1309] : memref<1x32x256xf32, #tpu.memory_space<vmem>>, vector<1x1x256xf32>
    %1343 = vector.shape_cast %1342 : vector<1x1x256xf32> to vector<1x256xf32>
    %c0_1310 = arith.constant 0 : index
    %c0_1311 = arith.constant 0 : index
    %c7_1312 = arith.constant 7 : index
    %c40_1313 = arith.constant 40 : index
    %c0_1314 = arith.constant 0 : index
    %1344 = vector.load %arg3[%c0_1310, %c0_1311, %c7_1312, %c40_1313, %c0_1314] : memref<1x1x32x64x256xbf16, #tpu.memory_space<vmem>>, vector<1x1x1x8x256xbf16>
    %1345 = vector.shape_cast %1344 : vector<1x1x1x8x256xbf16> to vector<8x256xbf16>
    %1346 = arith.extf %1345 : vector<8x256xbf16> to vector<8x256xf32>
    %1347 = vector.broadcast %1343 : vector<1x256xf32> to vector<8x256xf32>
    %1348 = arith.mulf %1346, %1347 : vector<8x256xf32>
    %1349 = arith.addf %1341, %1348 : vector<8x256xf32>
    %c0_1315 = arith.constant 0 : index
    %c8_1316 = arith.constant 8 : index
    %c0_1317 = arith.constant 0 : index
    %1350 = vector.load %arg2[%c0_1315, %c8_1316, %c0_1317] : memref<1x32x256xf32, #tpu.memory_space<vmem>>, vector<1x1x256xf32>
    %1351 = vector.shape_cast %1350 : vector<1x1x256xf32> to vector<1x256xf32>
    %c0_1318 = arith.constant 0 : index
    %c0_1319 = arith.constant 0 : index
    %c8_1320 = arith.constant 8 : index
    %c40_1321 = arith.constant 40 : index
    %c0_1322 = arith.constant 0 : index
    %1352 = vector.load %arg3[%c0_1318, %c0_1319, %c8_1320, %c40_1321, %c0_1322] : memref<1x1x32x64x256xbf16, #tpu.memory_space<vmem>>, vector<1x1x1x8x256xbf16>
    %1353 = vector.shape_cast %1352 : vector<1x1x1x8x256xbf16> to vector<8x256xbf16>
    %1354 = arith.extf %1353 : vector<8x256xbf16> to vector<8x256xf32>
    %1355 = vector.broadcast %1351 : vector<1x256xf32> to vector<8x256xf32>
    %1356 = arith.mulf %1354, %1355 : vector<8x256xf32>
    %1357 = arith.addf %1349, %1356 : vector<8x256xf32>
    %c0_1323 = arith.constant 0 : index
    %c9_1324 = arith.constant 9 : index
    %c0_1325 = arith.constant 0 : index
    %1358 = vector.load %arg2[%c0_1323, %c9_1324, %c0_1325] : memref<1x32x256xf32, #tpu.memory_space<vmem>>, vector<1x1x256xf32>
    %1359 = vector.shape_cast %1358 : vector<1x1x256xf32> to vector<1x256xf32>
    %c0_1326 = arith.constant 0 : index
    %c0_1327 = arith.constant 0 : index
    %c9_1328 = arith.constant 9 : index
    %c40_1329 = arith.constant 40 : index
    %c0_1330 = arith.constant 0 : index
    %1360 = vector.load %arg3[%c0_1326, %c0_1327, %c9_1328, %c40_1329, %c0_1330] : memref<1x1x32x64x256xbf16, #tpu.memory_space<vmem>>, vector<1x1x1x8x256xbf16>
    %1361 = vector.shape_cast %1360 : vector<1x1x1x8x256xbf16> to vector<8x256xbf16>
    %1362 = arith.extf %1361 : vector<8x256xbf16> to vector<8x256xf32>
    %1363 = vector.broadcast %1359 : vector<1x256xf32> to vector<8x256xf32>
    %1364 = arith.mulf %1362, %1363 : vector<8x256xf32>
    %1365 = arith.addf %1357, %1364 : vector<8x256xf32>
    %c0_1331 = arith.constant 0 : index
    %c10_1332 = arith.constant 10 : index
    %c0_1333 = arith.constant 0 : index
    %1366 = vector.load %arg2[%c0_1331, %c10_1332, %c0_1333] : memref<1x32x256xf32, #tpu.memory_space<vmem>>, vector<1x1x256xf32>
    %1367 = vector.shape_cast %1366 : vector<1x1x256xf32> to vector<1x256xf32>
    %c0_1334 = arith.constant 0 : index
    %c0_1335 = arith.constant 0 : index
    %c10_1336 = arith.constant 10 : index
    %c40_1337 = arith.constant 40 : index
    %c0_1338 = arith.constant 0 : index
    %1368 = vector.load %arg3[%c0_1334, %c0_1335, %c10_1336, %c40_1337, %c0_1338] : memref<1x1x32x64x256xbf16, #tpu.memory_space<vmem>>, vector<1x1x1x8x256xbf16>
    %1369 = vector.shape_cast %1368 : vector<1x1x1x8x256xbf16> to vector<8x256xbf16>
    %1370 = arith.extf %1369 : vector<8x256xbf16> to vector<8x256xf32>
    %1371 = vector.broadcast %1367 : vector<1x256xf32> to vector<8x256xf32>
    %1372 = arith.mulf %1370, %1371 : vector<8x256xf32>
    %1373 = arith.addf %1365, %1372 : vector<8x256xf32>
    %c0_1339 = arith.constant 0 : index
    %c11_1340 = arith.constant 11 : index
    %c0_1341 = arith.constant 0 : index
    %1374 = vector.load %arg2[%c0_1339, %c11_1340, %c0_1341] : memref<1x32x256xf32, #tpu.memory_space<vmem>>, vector<1x1x256xf32>
    %1375 = vector.shape_cast %1374 : vector<1x1x256xf32> to vector<1x256xf32>
    %c0_1342 = arith.constant 0 : index
    %c0_1343 = arith.constant 0 : index
    %c11_1344 = arith.constant 11 : index
    %c40_1345 = arith.constant 40 : index
    %c0_1346 = arith.constant 0 : index
    %1376 = vector.load %arg3[%c0_1342, %c0_1343, %c11_1344, %c40_1345, %c0_1346] : memref<1x1x32x64x256xbf16, #tpu.memory_space<vmem>>, vector<1x1x1x8x256xbf16>
    %1377 = vector.shape_cast %1376 : vector<1x1x1x8x256xbf16> to vector<8x256xbf16>
    %1378 = arith.extf %1377 : vector<8x256xbf16> to vector<8x256xf32>
    %1379 = vector.broadcast %1375 : vector<1x256xf32> to vector<8x256xf32>
    %1380 = arith.mulf %1378, %1379 : vector<8x256xf32>
    %1381 = arith.addf %1373, %1380 : vector<8x256xf32>
    %c0_1347 = arith.constant 0 : index
    %c12_1348 = arith.constant 12 : index
    %c0_1349 = arith.constant 0 : index
    %1382 = vector.load %arg2[%c0_1347, %c12_1348, %c0_1349] : memref<1x32x256xf32, #tpu.memory_space<vmem>>, vector<1x1x256xf32>
    %1383 = vector.shape_cast %1382 : vector<1x1x256xf32> to vector<1x256xf32>
    %c0_1350 = arith.constant 0 : index
    %c0_1351 = arith.constant 0 : index
    %c12_1352 = arith.constant 12 : index
    %c40_1353 = arith.constant 40 : index
    %c0_1354 = arith.constant 0 : index
    %1384 = vector.load %arg3[%c0_1350, %c0_1351, %c12_1352, %c40_1353, %c0_1354] : memref<1x1x32x64x256xbf16, #tpu.memory_space<vmem>>, vector<1x1x1x8x256xbf16>
    %1385 = vector.shape_cast %1384 : vector<1x1x1x8x256xbf16> to vector<8x256xbf16>
    %1386 = arith.extf %1385 : vector<8x256xbf16> to vector<8x256xf32>
    %1387 = vector.broadcast %1383 : vector<1x256xf32> to vector<8x256xf32>
    %1388 = arith.mulf %1386, %1387 : vector<8x256xf32>
    %1389 = arith.addf %1381, %1388 : vector<8x256xf32>
    %c0_1355 = arith.constant 0 : index
    %c13_1356 = arith.constant 13 : index
    %c0_1357 = arith.constant 0 : index
    %1390 = vector.load %arg2[%c0_1355, %c13_1356, %c0_1357] : memref<1x32x256xf32, #tpu.memory_space<vmem>>, vector<1x1x256xf32>
    %1391 = vector.shape_cast %1390 : vector<1x1x256xf32> to vector<1x256xf32>
    %c0_1358 = arith.constant 0 : index
    %c0_1359 = arith.constant 0 : index
    %c13_1360 = arith.constant 13 : index
    %c40_1361 = arith.constant 40 : index
    %c0_1362 = arith.constant 0 : index
    %1392 = vector.load %arg3[%c0_1358, %c0_1359, %c13_1360, %c40_1361, %c0_1362] : memref<1x1x32x64x256xbf16, #tpu.memory_space<vmem>>, vector<1x1x1x8x256xbf16>
    %1393 = vector.shape_cast %1392 : vector<1x1x1x8x256xbf16> to vector<8x256xbf16>
    %1394 = arith.extf %1393 : vector<8x256xbf16> to vector<8x256xf32>
    %1395 = vector.broadcast %1391 : vector<1x256xf32> to vector<8x256xf32>
    %1396 = arith.mulf %1394, %1395 : vector<8x256xf32>
    %1397 = arith.addf %1389, %1396 : vector<8x256xf32>
    %c0_1363 = arith.constant 0 : index
    %c14_1364 = arith.constant 14 : index
    %c0_1365 = arith.constant 0 : index
    %1398 = vector.load %arg2[%c0_1363, %c14_1364, %c0_1365] : memref<1x32x256xf32, #tpu.memory_space<vmem>>, vector<1x1x256xf32>
    %1399 = vector.shape_cast %1398 : vector<1x1x256xf32> to vector<1x256xf32>
    %c0_1366 = arith.constant 0 : index
    %c0_1367 = arith.constant 0 : index
    %c14_1368 = arith.constant 14 : index
    %c40_1369 = arith.constant 40 : index
    %c0_1370 = arith.constant 0 : index
    %1400 = vector.load %arg3[%c0_1366, %c0_1367, %c14_1368, %c40_1369, %c0_1370] : memref<1x1x32x64x256xbf16, #tpu.memory_space<vmem>>, vector<1x1x1x8x256xbf16>
    %1401 = vector.shape_cast %1400 : vector<1x1x1x8x256xbf16> to vector<8x256xbf16>
    %1402 = arith.extf %1401 : vector<8x256xbf16> to vector<8x256xf32>
    %1403 = vector.broadcast %1399 : vector<1x256xf32> to vector<8x256xf32>
    %1404 = arith.mulf %1402, %1403 : vector<8x256xf32>
    %1405 = arith.addf %1397, %1404 : vector<8x256xf32>
    %c0_1371 = arith.constant 0 : index
    %c15_1372 = arith.constant 15 : index
    %c0_1373 = arith.constant 0 : index
    %1406 = vector.load %arg2[%c0_1371, %c15_1372, %c0_1373] : memref<1x32x256xf32, #tpu.memory_space<vmem>>, vector<1x1x256xf32>
    %1407 = vector.shape_cast %1406 : vector<1x1x256xf32> to vector<1x256xf32>
    %c0_1374 = arith.constant 0 : index
    %c0_1375 = arith.constant 0 : index
    %c15_1376 = arith.constant 15 : index
    %c40_1377 = arith.constant 40 : index
    %c0_1378 = arith.constant 0 : index
    %1408 = vector.load %arg3[%c0_1374, %c0_1375, %c15_1376, %c40_1377, %c0_1378] : memref<1x1x32x64x256xbf16, #tpu.memory_space<vmem>>, vector<1x1x1x8x256xbf16>
    %1409 = vector.shape_cast %1408 : vector<1x1x1x8x256xbf16> to vector<8x256xbf16>
    %1410 = arith.extf %1409 : vector<8x256xbf16> to vector<8x256xf32>
    %1411 = vector.broadcast %1407 : vector<1x256xf32> to vector<8x256xf32>
    %1412 = arith.mulf %1410, %1411 : vector<8x256xf32>
    %1413 = arith.addf %1405, %1412 : vector<8x256xf32>
    %c0_1379 = arith.constant 0 : index
    %c16_1380 = arith.constant 16 : index
    %c0_1381 = arith.constant 0 : index
    %1414 = vector.load %arg2[%c0_1379, %c16_1380, %c0_1381] : memref<1x32x256xf32, #tpu.memory_space<vmem>>, vector<1x1x256xf32>
    %1415 = vector.shape_cast %1414 : vector<1x1x256xf32> to vector<1x256xf32>
    %c0_1382 = arith.constant 0 : index
    %c0_1383 = arith.constant 0 : index
    %c16_1384 = arith.constant 16 : index
    %c40_1385 = arith.constant 40 : index
    %c0_1386 = arith.constant 0 : index
    %1416 = vector.load %arg3[%c0_1382, %c0_1383, %c16_1384, %c40_1385, %c0_1386] : memref<1x1x32x64x256xbf16, #tpu.memory_space<vmem>>, vector<1x1x1x8x256xbf16>
    %1417 = vector.shape_cast %1416 : vector<1x1x1x8x256xbf16> to vector<8x256xbf16>
    %1418 = arith.extf %1417 : vector<8x256xbf16> to vector<8x256xf32>
    %1419 = vector.broadcast %1415 : vector<1x256xf32> to vector<8x256xf32>
    %1420 = arith.mulf %1418, %1419 : vector<8x256xf32>
    %1421 = arith.addf %1413, %1420 : vector<8x256xf32>
    %c0_1387 = arith.constant 0 : index
    %c17_1388 = arith.constant 17 : index
    %c0_1389 = arith.constant 0 : index
    %1422 = vector.load %arg2[%c0_1387, %c17_1388, %c0_1389] : memref<1x32x256xf32, #tpu.memory_space<vmem>>, vector<1x1x256xf32>
    %1423 = vector.shape_cast %1422 : vector<1x1x256xf32> to vector<1x256xf32>
    %c0_1390 = arith.constant 0 : index
    %c0_1391 = arith.constant 0 : index
    %c17_1392 = arith.constant 17 : index
    %c40_1393 = arith.constant 40 : index
    %c0_1394 = arith.constant 0 : index
    %1424 = vector.load %arg3[%c0_1390, %c0_1391, %c17_1392, %c40_1393, %c0_1394] : memref<1x1x32x64x256xbf16, #tpu.memory_space<vmem>>, vector<1x1x1x8x256xbf16>
    %1425 = vector.shape_cast %1424 : vector<1x1x1x8x256xbf16> to vector<8x256xbf16>
    %1426 = arith.extf %1425 : vector<8x256xbf16> to vector<8x256xf32>
    %1427 = vector.broadcast %1423 : vector<1x256xf32> to vector<8x256xf32>
    %1428 = arith.mulf %1426, %1427 : vector<8x256xf32>
    %1429 = arith.addf %1421, %1428 : vector<8x256xf32>
    %c0_1395 = arith.constant 0 : index
    %c18_1396 = arith.constant 18 : index
    %c0_1397 = arith.constant 0 : index
    %1430 = vector.load %arg2[%c0_1395, %c18_1396, %c0_1397] : memref<1x32x256xf32, #tpu.memory_space<vmem>>, vector<1x1x256xf32>
    %1431 = vector.shape_cast %1430 : vector<1x1x256xf32> to vector<1x256xf32>
    %c0_1398 = arith.constant 0 : index
    %c0_1399 = arith.constant 0 : index
    %c18_1400 = arith.constant 18 : index
    %c40_1401 = arith.constant 40 : index
    %c0_1402 = arith.constant 0 : index
    %1432 = vector.load %arg3[%c0_1398, %c0_1399, %c18_1400, %c40_1401, %c0_1402] : memref<1x1x32x64x256xbf16, #tpu.memory_space<vmem>>, vector<1x1x1x8x256xbf16>
    %1433 = vector.shape_cast %1432 : vector<1x1x1x8x256xbf16> to vector<8x256xbf16>
    %1434 = arith.extf %1433 : vector<8x256xbf16> to vector<8x256xf32>
    %1435 = vector.broadcast %1431 : vector<1x256xf32> to vector<8x256xf32>
    %1436 = arith.mulf %1434, %1435 : vector<8x256xf32>
    %1437 = arith.addf %1429, %1436 : vector<8x256xf32>
    %c0_1403 = arith.constant 0 : index
    %c19_1404 = arith.constant 19 : index
    %c0_1405 = arith.constant 0 : index
    %1438 = vector.load %arg2[%c0_1403, %c19_1404, %c0_1405] : memref<1x32x256xf32, #tpu.memory_space<vmem>>, vector<1x1x256xf32>
    %1439 = vector.shape_cast %1438 : vector<1x1x256xf32> to vector<1x256xf32>
    %c0_1406 = arith.constant 0 : index
    %c0_1407 = arith.constant 0 : index
    %c19_1408 = arith.constant 19 : index
    %c40_1409 = arith.constant 40 : index
    %c0_1410 = arith.constant 0 : index
    %1440 = vector.load %arg3[%c0_1406, %c0_1407, %c19_1408, %c40_1409, %c0_1410] : memref<1x1x32x64x256xbf16, #tpu.memory_space<vmem>>, vector<1x1x1x8x256xbf16>
    %1441 = vector.shape_cast %1440 : vector<1x1x1x8x256xbf16> to vector<8x256xbf16>
    %1442 = arith.extf %1441 : vector<8x256xbf16> to vector<8x256xf32>
    %1443 = vector.broadcast %1439 : vector<1x256xf32> to vector<8x256xf32>
    %1444 = arith.mulf %1442, %1443 : vector<8x256xf32>
    %1445 = arith.addf %1437, %1444 : vector<8x256xf32>
    %c0_1411 = arith.constant 0 : index
    %c20_1412 = arith.constant 20 : index
    %c0_1413 = arith.constant 0 : index
    %1446 = vector.load %arg2[%c0_1411, %c20_1412, %c0_1413] : memref<1x32x256xf32, #tpu.memory_space<vmem>>, vector<1x1x256xf32>
    %1447 = vector.shape_cast %1446 : vector<1x1x256xf32> to vector<1x256xf32>
    %c0_1414 = arith.constant 0 : index
    %c0_1415 = arith.constant 0 : index
    %c20_1416 = arith.constant 20 : index
    %c40_1417 = arith.constant 40 : index
    %c0_1418 = arith.constant 0 : index
    %1448 = vector.load %arg3[%c0_1414, %c0_1415, %c20_1416, %c40_1417, %c0_1418] : memref<1x1x32x64x256xbf16, #tpu.memory_space<vmem>>, vector<1x1x1x8x256xbf16>
    %1449 = vector.shape_cast %1448 : vector<1x1x1x8x256xbf16> to vector<8x256xbf16>
    %1450 = arith.extf %1449 : vector<8x256xbf16> to vector<8x256xf32>
    %1451 = vector.broadcast %1447 : vector<1x256xf32> to vector<8x256xf32>
    %1452 = arith.mulf %1450, %1451 : vector<8x256xf32>
    %1453 = arith.addf %1445, %1452 : vector<8x256xf32>
    %c0_1419 = arith.constant 0 : index
    %c21_1420 = arith.constant 21 : index
    %c0_1421 = arith.constant 0 : index
    %1454 = vector.load %arg2[%c0_1419, %c21_1420, %c0_1421] : memref<1x32x256xf32, #tpu.memory_space<vmem>>, vector<1x1x256xf32>
    %1455 = vector.shape_cast %1454 : vector<1x1x256xf32> to vector<1x256xf32>
    %c0_1422 = arith.constant 0 : index
    %c0_1423 = arith.constant 0 : index
    %c21_1424 = arith.constant 21 : index
    %c40_1425 = arith.constant 40 : index
    %c0_1426 = arith.constant 0 : index
    %1456 = vector.load %arg3[%c0_1422, %c0_1423, %c21_1424, %c40_1425, %c0_1426] : memref<1x1x32x64x256xbf16, #tpu.memory_space<vmem>>, vector<1x1x1x8x256xbf16>
    %1457 = vector.shape_cast %1456 : vector<1x1x1x8x256xbf16> to vector<8x256xbf16>
    %1458 = arith.extf %1457 : vector<8x256xbf16> to vector<8x256xf32>
    %1459 = vector.broadcast %1455 : vector<1x256xf32> to vector<8x256xf32>
    %1460 = arith.mulf %1458, %1459 : vector<8x256xf32>
    %1461 = arith.addf %1453, %1460 : vector<8x256xf32>
    %c0_1427 = arith.constant 0 : index
    %c22_1428 = arith.constant 22 : index
    %c0_1429 = arith.constant 0 : index
    %1462 = vector.load %arg2[%c0_1427, %c22_1428, %c0_1429] : memref<1x32x256xf32, #tpu.memory_space<vmem>>, vector<1x1x256xf32>
    %1463 = vector.shape_cast %1462 : vector<1x1x256xf32> to vector<1x256xf32>
    %c0_1430 = arith.constant 0 : index
    %c0_1431 = arith.constant 0 : index
    %c22_1432 = arith.constant 22 : index
    %c40_1433 = arith.constant 40 : index
    %c0_1434 = arith.constant 0 : index
    %1464 = vector.load %arg3[%c0_1430, %c0_1431, %c22_1432, %c40_1433, %c0_1434] : memref<1x1x32x64x256xbf16, #tpu.memory_space<vmem>>, vector<1x1x1x8x256xbf16>
    %1465 = vector.shape_cast %1464 : vector<1x1x1x8x256xbf16> to vector<8x256xbf16>
    %1466 = arith.extf %1465 : vector<8x256xbf16> to vector<8x256xf32>
    %1467 = vector.broadcast %1463 : vector<1x256xf32> to vector<8x256xf32>
    %1468 = arith.mulf %1466, %1467 : vector<8x256xf32>
    %1469 = arith.addf %1461, %1468 : vector<8x256xf32>
    %c0_1435 = arith.constant 0 : index
    %c23_1436 = arith.constant 23 : index
    %c0_1437 = arith.constant 0 : index
    %1470 = vector.load %arg2[%c0_1435, %c23_1436, %c0_1437] : memref<1x32x256xf32, #tpu.memory_space<vmem>>, vector<1x1x256xf32>
    %1471 = vector.shape_cast %1470 : vector<1x1x256xf32> to vector<1x256xf32>
    %c0_1438 = arith.constant 0 : index
    %c0_1439 = arith.constant 0 : index
    %c23_1440 = arith.constant 23 : index
    %c40_1441 = arith.constant 40 : index
    %c0_1442 = arith.constant 0 : index
    %1472 = vector.load %arg3[%c0_1438, %c0_1439, %c23_1440, %c40_1441, %c0_1442] : memref<1x1x32x64x256xbf16, #tpu.memory_space<vmem>>, vector<1x1x1x8x256xbf16>
    %1473 = vector.shape_cast %1472 : vector<1x1x1x8x256xbf16> to vector<8x256xbf16>
    %1474 = arith.extf %1473 : vector<8x256xbf16> to vector<8x256xf32>
    %1475 = vector.broadcast %1471 : vector<1x256xf32> to vector<8x256xf32>
    %1476 = arith.mulf %1474, %1475 : vector<8x256xf32>
    %1477 = arith.addf %1469, %1476 : vector<8x256xf32>
    %c0_1443 = arith.constant 0 : index
    %c24_1444 = arith.constant 24 : index
    %c0_1445 = arith.constant 0 : index
    %1478 = vector.load %arg2[%c0_1443, %c24_1444, %c0_1445] : memref<1x32x256xf32, #tpu.memory_space<vmem>>, vector<1x1x256xf32>
    %1479 = vector.shape_cast %1478 : vector<1x1x256xf32> to vector<1x256xf32>
    %c0_1446 = arith.constant 0 : index
    %c0_1447 = arith.constant 0 : index
    %c24_1448 = arith.constant 24 : index
    %c40_1449 = arith.constant 40 : index
    %c0_1450 = arith.constant 0 : index
    %1480 = vector.load %arg3[%c0_1446, %c0_1447, %c24_1448, %c40_1449, %c0_1450] : memref<1x1x32x64x256xbf16, #tpu.memory_space<vmem>>, vector<1x1x1x8x256xbf16>
    %1481 = vector.shape_cast %1480 : vector<1x1x1x8x256xbf16> to vector<8x256xbf16>
    %1482 = arith.extf %1481 : vector<8x256xbf16> to vector<8x256xf32>
    %1483 = vector.broadcast %1479 : vector<1x256xf32> to vector<8x256xf32>
    %1484 = arith.mulf %1482, %1483 : vector<8x256xf32>
    %1485 = arith.addf %1477, %1484 : vector<8x256xf32>
    %c0_1451 = arith.constant 0 : index
    %c25_1452 = arith.constant 25 : index
    %c0_1453 = arith.constant 0 : index
    %1486 = vector.load %arg2[%c0_1451, %c25_1452, %c0_1453] : memref<1x32x256xf32, #tpu.memory_space<vmem>>, vector<1x1x256xf32>
    %1487 = vector.shape_cast %1486 : vector<1x1x256xf32> to vector<1x256xf32>
    %c0_1454 = arith.constant 0 : index
    %c0_1455 = arith.constant 0 : index
    %c25_1456 = arith.constant 25 : index
    %c40_1457 = arith.constant 40 : index
    %c0_1458 = arith.constant 0 : index
    %1488 = vector.load %arg3[%c0_1454, %c0_1455, %c25_1456, %c40_1457, %c0_1458] : memref<1x1x32x64x256xbf16, #tpu.memory_space<vmem>>, vector<1x1x1x8x256xbf16>
    %1489 = vector.shape_cast %1488 : vector<1x1x1x8x256xbf16> to vector<8x256xbf16>
    %1490 = arith.extf %1489 : vector<8x256xbf16> to vector<8x256xf32>
    %1491 = vector.broadcast %1487 : vector<1x256xf32> to vector<8x256xf32>
    %1492 = arith.mulf %1490, %1491 : vector<8x256xf32>
    %1493 = arith.addf %1485, %1492 : vector<8x256xf32>
    %c0_1459 = arith.constant 0 : index
    %c26_1460 = arith.constant 26 : index
    %c0_1461 = arith.constant 0 : index
    %1494 = vector.load %arg2[%c0_1459, %c26_1460, %c0_1461] : memref<1x32x256xf32, #tpu.memory_space<vmem>>, vector<1x1x256xf32>
    %1495 = vector.shape_cast %1494 : vector<1x1x256xf32> to vector<1x256xf32>
    %c0_1462 = arith.constant 0 : index
    %c0_1463 = arith.constant 0 : index
    %c26_1464 = arith.constant 26 : index
    %c40_1465 = arith.constant 40 : index
    %c0_1466 = arith.constant 0 : index
    %1496 = vector.load %arg3[%c0_1462, %c0_1463, %c26_1464, %c40_1465, %c0_1466] : memref<1x1x32x64x256xbf16, #tpu.memory_space<vmem>>, vector<1x1x1x8x256xbf16>
    %1497 = vector.shape_cast %1496 : vector<1x1x1x8x256xbf16> to vector<8x256xbf16>
    %1498 = arith.extf %1497 : vector<8x256xbf16> to vector<8x256xf32>
    %1499 = vector.broadcast %1495 : vector<1x256xf32> to vector<8x256xf32>
    %1500 = arith.mulf %1498, %1499 : vector<8x256xf32>
    %1501 = arith.addf %1493, %1500 : vector<8x256xf32>
    %c0_1467 = arith.constant 0 : index
    %c27_1468 = arith.constant 27 : index
    %c0_1469 = arith.constant 0 : index
    %1502 = vector.load %arg2[%c0_1467, %c27_1468, %c0_1469] : memref<1x32x256xf32, #tpu.memory_space<vmem>>, vector<1x1x256xf32>
    %1503 = vector.shape_cast %1502 : vector<1x1x256xf32> to vector<1x256xf32>
    %c0_1470 = arith.constant 0 : index
    %c0_1471 = arith.constant 0 : index
    %c27_1472 = arith.constant 27 : index
    %c40_1473 = arith.constant 40 : index
    %c0_1474 = arith.constant 0 : index
    %1504 = vector.load %arg3[%c0_1470, %c0_1471, %c27_1472, %c40_1473, %c0_1474] : memref<1x1x32x64x256xbf16, #tpu.memory_space<vmem>>, vector<1x1x1x8x256xbf16>
    %1505 = vector.shape_cast %1504 : vector<1x1x1x8x256xbf16> to vector<8x256xbf16>
    %1506 = arith.extf %1505 : vector<8x256xbf16> to vector<8x256xf32>
    %1507 = vector.broadcast %1503 : vector<1x256xf32> to vector<8x256xf32>
    %1508 = arith.mulf %1506, %1507 : vector<8x256xf32>
    %1509 = arith.addf %1501, %1508 : vector<8x256xf32>
    %c0_1475 = arith.constant 0 : index
    %c28_1476 = arith.constant 28 : index
    %c0_1477 = arith.constant 0 : index
    %1510 = vector.load %arg2[%c0_1475, %c28_1476, %c0_1477] : memref<1x32x256xf32, #tpu.memory_space<vmem>>, vector<1x1x256xf32>
    %1511 = vector.shape_cast %1510 : vector<1x1x256xf32> to vector<1x256xf32>
    %c0_1478 = arith.constant 0 : index
    %c0_1479 = arith.constant 0 : index
    %c28_1480 = arith.constant 28 : index
    %c40_1481 = arith.constant 40 : index
    %c0_1482 = arith.constant 0 : index
    %1512 = vector.load %arg3[%c0_1478, %c0_1479, %c28_1480, %c40_1481, %c0_1482] : memref<1x1x32x64x256xbf16, #tpu.memory_space<vmem>>, vector<1x1x1x8x256xbf16>
    %1513 = vector.shape_cast %1512 : vector<1x1x1x8x256xbf16> to vector<8x256xbf16>
    %1514 = arith.extf %1513 : vector<8x256xbf16> to vector<8x256xf32>
    %1515 = vector.broadcast %1511 : vector<1x256xf32> to vector<8x256xf32>
    %1516 = arith.mulf %1514, %1515 : vector<8x256xf32>
    %1517 = arith.addf %1509, %1516 : vector<8x256xf32>
    %c0_1483 = arith.constant 0 : index
    %c29_1484 = arith.constant 29 : index
    %c0_1485 = arith.constant 0 : index
    %1518 = vector.load %arg2[%c0_1483, %c29_1484, %c0_1485] : memref<1x32x256xf32, #tpu.memory_space<vmem>>, vector<1x1x256xf32>
    %1519 = vector.shape_cast %1518 : vector<1x1x256xf32> to vector<1x256xf32>
    %c0_1486 = arith.constant 0 : index
    %c0_1487 = arith.constant 0 : index
    %c29_1488 = arith.constant 29 : index
    %c40_1489 = arith.constant 40 : index
    %c0_1490 = arith.constant 0 : index
    %1520 = vector.load %arg3[%c0_1486, %c0_1487, %c29_1488, %c40_1489, %c0_1490] : memref<1x1x32x64x256xbf16, #tpu.memory_space<vmem>>, vector<1x1x1x8x256xbf16>
    %1521 = vector.shape_cast %1520 : vector<1x1x1x8x256xbf16> to vector<8x256xbf16>
    %1522 = arith.extf %1521 : vector<8x256xbf16> to vector<8x256xf32>
    %1523 = vector.broadcast %1519 : vector<1x256xf32> to vector<8x256xf32>
    %1524 = arith.mulf %1522, %1523 : vector<8x256xf32>
    %1525 = arith.addf %1517, %1524 : vector<8x256xf32>
    %c0_1491 = arith.constant 0 : index
    %c30_1492 = arith.constant 30 : index
    %c0_1493 = arith.constant 0 : index
    %1526 = vector.load %arg2[%c0_1491, %c30_1492, %c0_1493] : memref<1x32x256xf32, #tpu.memory_space<vmem>>, vector<1x1x256xf32>
    %1527 = vector.shape_cast %1526 : vector<1x1x256xf32> to vector<1x256xf32>
    %c0_1494 = arith.constant 0 : index
    %c0_1495 = arith.constant 0 : index
    %c30_1496 = arith.constant 30 : index
    %c40_1497 = arith.constant 40 : index
    %c0_1498 = arith.constant 0 : index
    %1528 = vector.load %arg3[%c0_1494, %c0_1495, %c30_1496, %c40_1497, %c0_1498] : memref<1x1x32x64x256xbf16, #tpu.memory_space<vmem>>, vector<1x1x1x8x256xbf16>
    %1529 = vector.shape_cast %1528 : vector<1x1x1x8x256xbf16> to vector<8x256xbf16>
    %1530 = arith.extf %1529 : vector<8x256xbf16> to vector<8x256xf32>
    %1531 = vector.broadcast %1527 : vector<1x256xf32> to vector<8x256xf32>
    %1532 = arith.mulf %1530, %1531 : vector<8x256xf32>
    %1533 = arith.addf %1525, %1532 : vector<8x256xf32>
    %c0_1499 = arith.constant 0 : index
    %c31_1500 = arith.constant 31 : index
    %c0_1501 = arith.constant 0 : index
    %1534 = vector.load %arg2[%c0_1499, %c31_1500, %c0_1501] : memref<1x32x256xf32, #tpu.memory_space<vmem>>, vector<1x1x256xf32>
    %1535 = vector.shape_cast %1534 : vector<1x1x256xf32> to vector<1x256xf32>
    %c0_1502 = arith.constant 0 : index
    %c0_1503 = arith.constant 0 : index
    %c31_1504 = arith.constant 31 : index
    %c40_1505 = arith.constant 40 : index
    %c0_1506 = arith.constant 0 : index
    %1536 = vector.load %arg3[%c0_1502, %c0_1503, %c31_1504, %c40_1505, %c0_1506] : memref<1x1x32x64x256xbf16, #tpu.memory_space<vmem>>, vector<1x1x1x8x256xbf16>
    %1537 = vector.shape_cast %1536 : vector<1x1x1x8x256xbf16> to vector<8x256xbf16>
    %1538 = arith.extf %1537 : vector<8x256xbf16> to vector<8x256xf32>
    %1539 = vector.broadcast %1535 : vector<1x256xf32> to vector<8x256xf32>
    %1540 = arith.mulf %1538, %1539 : vector<8x256xf32>
    %1541 = arith.addf %1533, %1540 : vector<8x256xf32>
    %cst_1507 = arith.constant 0.000000e+00 : f32
    %1542 = vector.broadcast %cst_1507 : f32 to vector<8x256xf32>
    %c0_1508 = arith.constant 0 : index
    %c0_1509 = arith.constant 0 : index
    %c0_1510 = arith.constant 0 : index
    %1543 = vector.load %arg2[%c0_1508, %c0_1509, %c0_1510] : memref<1x32x256xf32, #tpu.memory_space<vmem>>, vector<1x1x256xf32>
    %1544 = vector.shape_cast %1543 : vector<1x1x256xf32> to vector<1x256xf32>
    %c0_1511 = arith.constant 0 : index
    %c0_1512 = arith.constant 0 : index
    %c0_1513 = arith.constant 0 : index
    %c48 = arith.constant 48 : index
    %c0_1514 = arith.constant 0 : index
    %1545 = vector.load %arg3[%c0_1511, %c0_1512, %c0_1513, %c48, %c0_1514] : memref<1x1x32x64x256xbf16, #tpu.memory_space<vmem>>, vector<1x1x1x8x256xbf16>
    %1546 = vector.shape_cast %1545 : vector<1x1x1x8x256xbf16> to vector<8x256xbf16>
    %1547 = arith.extf %1546 : vector<8x256xbf16> to vector<8x256xf32>
    %1548 = vector.broadcast %1544 : vector<1x256xf32> to vector<8x256xf32>
    %1549 = arith.mulf %1547, %1548 : vector<8x256xf32>
    %1550 = arith.addf %1542, %1549 : vector<8x256xf32>
    %c0_1515 = arith.constant 0 : index
    %c1_1516 = arith.constant 1 : index
    %c0_1517 = arith.constant 0 : index
    %1551 = vector.load %arg2[%c0_1515, %c1_1516, %c0_1517] : memref<1x32x256xf32, #tpu.memory_space<vmem>>, vector<1x1x256xf32>
    %1552 = vector.shape_cast %1551 : vector<1x1x256xf32> to vector<1x256xf32>
    %c0_1518 = arith.constant 0 : index
    %c0_1519 = arith.constant 0 : index
    %c1_1520 = arith.constant 1 : index
    %c48_1521 = arith.constant 48 : index
    %c0_1522 = arith.constant 0 : index
    %1553 = vector.load %arg3[%c0_1518, %c0_1519, %c1_1520, %c48_1521, %c0_1522] : memref<1x1x32x64x256xbf16, #tpu.memory_space<vmem>>, vector<1x1x1x8x256xbf16>
    %1554 = vector.shape_cast %1553 : vector<1x1x1x8x256xbf16> to vector<8x256xbf16>
    %1555 = arith.extf %1554 : vector<8x256xbf16> to vector<8x256xf32>
    %1556 = vector.broadcast %1552 : vector<1x256xf32> to vector<8x256xf32>
    %1557 = arith.mulf %1555, %1556 : vector<8x256xf32>
    %1558 = arith.addf %1550, %1557 : vector<8x256xf32>
    %c0_1523 = arith.constant 0 : index
    %c2_1524 = arith.constant 2 : index
    %c0_1525 = arith.constant 0 : index
    %1559 = vector.load %arg2[%c0_1523, %c2_1524, %c0_1525] : memref<1x32x256xf32, #tpu.memory_space<vmem>>, vector<1x1x256xf32>
    %1560 = vector.shape_cast %1559 : vector<1x1x256xf32> to vector<1x256xf32>
    %c0_1526 = arith.constant 0 : index
    %c0_1527 = arith.constant 0 : index
    %c2_1528 = arith.constant 2 : index
    %c48_1529 = arith.constant 48 : index
    %c0_1530 = arith.constant 0 : index
    %1561 = vector.load %arg3[%c0_1526, %c0_1527, %c2_1528, %c48_1529, %c0_1530] : memref<1x1x32x64x256xbf16, #tpu.memory_space<vmem>>, vector<1x1x1x8x256xbf16>
    %1562 = vector.shape_cast %1561 : vector<1x1x1x8x256xbf16> to vector<8x256xbf16>
    %1563 = arith.extf %1562 : vector<8x256xbf16> to vector<8x256xf32>
    %1564 = vector.broadcast %1560 : vector<1x256xf32> to vector<8x256xf32>
    %1565 = arith.mulf %1563, %1564 : vector<8x256xf32>
    %1566 = arith.addf %1558, %1565 : vector<8x256xf32>
    %c0_1531 = arith.constant 0 : index
    %c3_1532 = arith.constant 3 : index
    %c0_1533 = arith.constant 0 : index
    %1567 = vector.load %arg2[%c0_1531, %c3_1532, %c0_1533] : memref<1x32x256xf32, #tpu.memory_space<vmem>>, vector<1x1x256xf32>
    %1568 = vector.shape_cast %1567 : vector<1x1x256xf32> to vector<1x256xf32>
    %c0_1534 = arith.constant 0 : index
    %c0_1535 = arith.constant 0 : index
    %c3_1536 = arith.constant 3 : index
    %c48_1537 = arith.constant 48 : index
    %c0_1538 = arith.constant 0 : index
    %1569 = vector.load %arg3[%c0_1534, %c0_1535, %c3_1536, %c48_1537, %c0_1538] : memref<1x1x32x64x256xbf16, #tpu.memory_space<vmem>>, vector<1x1x1x8x256xbf16>
    %1570 = vector.shape_cast %1569 : vector<1x1x1x8x256xbf16> to vector<8x256xbf16>
    %1571 = arith.extf %1570 : vector<8x256xbf16> to vector<8x256xf32>
    %1572 = vector.broadcast %1568 : vector<1x256xf32> to vector<8x256xf32>
    %1573 = arith.mulf %1571, %1572 : vector<8x256xf32>
    %1574 = arith.addf %1566, %1573 : vector<8x256xf32>
    %c0_1539 = arith.constant 0 : index
    %c4_1540 = arith.constant 4 : index
    %c0_1541 = arith.constant 0 : index
    %1575 = vector.load %arg2[%c0_1539, %c4_1540, %c0_1541] : memref<1x32x256xf32, #tpu.memory_space<vmem>>, vector<1x1x256xf32>
    %1576 = vector.shape_cast %1575 : vector<1x1x256xf32> to vector<1x256xf32>
    %c0_1542 = arith.constant 0 : index
    %c0_1543 = arith.constant 0 : index
    %c4_1544 = arith.constant 4 : index
    %c48_1545 = arith.constant 48 : index
    %c0_1546 = arith.constant 0 : index
    %1577 = vector.load %arg3[%c0_1542, %c0_1543, %c4_1544, %c48_1545, %c0_1546] : memref<1x1x32x64x256xbf16, #tpu.memory_space<vmem>>, vector<1x1x1x8x256xbf16>
    %1578 = vector.shape_cast %1577 : vector<1x1x1x8x256xbf16> to vector<8x256xbf16>
    %1579 = arith.extf %1578 : vector<8x256xbf16> to vector<8x256xf32>
    %1580 = vector.broadcast %1576 : vector<1x256xf32> to vector<8x256xf32>
    %1581 = arith.mulf %1579, %1580 : vector<8x256xf32>
    %1582 = arith.addf %1574, %1581 : vector<8x256xf32>
    %c0_1547 = arith.constant 0 : index
    %c5_1548 = arith.constant 5 : index
    %c0_1549 = arith.constant 0 : index
    %1583 = vector.load %arg2[%c0_1547, %c5_1548, %c0_1549] : memref<1x32x256xf32, #tpu.memory_space<vmem>>, vector<1x1x256xf32>
    %1584 = vector.shape_cast %1583 : vector<1x1x256xf32> to vector<1x256xf32>
    %c0_1550 = arith.constant 0 : index
    %c0_1551 = arith.constant 0 : index
    %c5_1552 = arith.constant 5 : index
    %c48_1553 = arith.constant 48 : index
    %c0_1554 = arith.constant 0 : index
    %1585 = vector.load %arg3[%c0_1550, %c0_1551, %c5_1552, %c48_1553, %c0_1554] : memref<1x1x32x64x256xbf16, #tpu.memory_space<vmem>>, vector<1x1x1x8x256xbf16>
    %1586 = vector.shape_cast %1585 : vector<1x1x1x8x256xbf16> to vector<8x256xbf16>
    %1587 = arith.extf %1586 : vector<8x256xbf16> to vector<8x256xf32>
    %1588 = vector.broadcast %1584 : vector<1x256xf32> to vector<8x256xf32>
    %1589 = arith.mulf %1587, %1588 : vector<8x256xf32>
    %1590 = arith.addf %1582, %1589 : vector<8x256xf32>
    %c0_1555 = arith.constant 0 : index
    %c6_1556 = arith.constant 6 : index
    %c0_1557 = arith.constant 0 : index
    %1591 = vector.load %arg2[%c0_1555, %c6_1556, %c0_1557] : memref<1x32x256xf32, #tpu.memory_space<vmem>>, vector<1x1x256xf32>
    %1592 = vector.shape_cast %1591 : vector<1x1x256xf32> to vector<1x256xf32>
    %c0_1558 = arith.constant 0 : index
    %c0_1559 = arith.constant 0 : index
    %c6_1560 = arith.constant 6 : index
    %c48_1561 = arith.constant 48 : index
    %c0_1562 = arith.constant 0 : index
    %1593 = vector.load %arg3[%c0_1558, %c0_1559, %c6_1560, %c48_1561, %c0_1562] : memref<1x1x32x64x256xbf16, #tpu.memory_space<vmem>>, vector<1x1x1x8x256xbf16>
    %1594 = vector.shape_cast %1593 : vector<1x1x1x8x256xbf16> to vector<8x256xbf16>
    %1595 = arith.extf %1594 : vector<8x256xbf16> to vector<8x256xf32>
    %1596 = vector.broadcast %1592 : vector<1x256xf32> to vector<8x256xf32>
    %1597 = arith.mulf %1595, %1596 : vector<8x256xf32>
    %1598 = arith.addf %1590, %1597 : vector<8x256xf32>
    %c0_1563 = arith.constant 0 : index
    %c7_1564 = arith.constant 7 : index
    %c0_1565 = arith.constant 0 : index
    %1599 = vector.load %arg2[%c0_1563, %c7_1564, %c0_1565] : memref<1x32x256xf32, #tpu.memory_space<vmem>>, vector<1x1x256xf32>
    %1600 = vector.shape_cast %1599 : vector<1x1x256xf32> to vector<1x256xf32>
    %c0_1566 = arith.constant 0 : index
    %c0_1567 = arith.constant 0 : index
    %c7_1568 = arith.constant 7 : index
    %c48_1569 = arith.constant 48 : index
    %c0_1570 = arith.constant 0 : index
    %1601 = vector.load %arg3[%c0_1566, %c0_1567, %c7_1568, %c48_1569, %c0_1570] : memref<1x1x32x64x256xbf16, #tpu.memory_space<vmem>>, vector<1x1x1x8x256xbf16>
    %1602 = vector.shape_cast %1601 : vector<1x1x1x8x256xbf16> to vector<8x256xbf16>
    %1603 = arith.extf %1602 : vector<8x256xbf16> to vector<8x256xf32>
    %1604 = vector.broadcast %1600 : vector<1x256xf32> to vector<8x256xf32>
    %1605 = arith.mulf %1603, %1604 : vector<8x256xf32>
    %1606 = arith.addf %1598, %1605 : vector<8x256xf32>
    %c0_1571 = arith.constant 0 : index
    %c8_1572 = arith.constant 8 : index
    %c0_1573 = arith.constant 0 : index
    %1607 = vector.load %arg2[%c0_1571, %c8_1572, %c0_1573] : memref<1x32x256xf32, #tpu.memory_space<vmem>>, vector<1x1x256xf32>
    %1608 = vector.shape_cast %1607 : vector<1x1x256xf32> to vector<1x256xf32>
    %c0_1574 = arith.constant 0 : index
    %c0_1575 = arith.constant 0 : index
    %c8_1576 = arith.constant 8 : index
    %c48_1577 = arith.constant 48 : index
    %c0_1578 = arith.constant 0 : index
    %1609 = vector.load %arg3[%c0_1574, %c0_1575, %c8_1576, %c48_1577, %c0_1578] : memref<1x1x32x64x256xbf16, #tpu.memory_space<vmem>>, vector<1x1x1x8x256xbf16>
    %1610 = vector.shape_cast %1609 : vector<1x1x1x8x256xbf16> to vector<8x256xbf16>
    %1611 = arith.extf %1610 : vector<8x256xbf16> to vector<8x256xf32>
    %1612 = vector.broadcast %1608 : vector<1x256xf32> to vector<8x256xf32>
    %1613 = arith.mulf %1611, %1612 : vector<8x256xf32>
    %1614 = arith.addf %1606, %1613 : vector<8x256xf32>
    %c0_1579 = arith.constant 0 : index
    %c9_1580 = arith.constant 9 : index
    %c0_1581 = arith.constant 0 : index
    %1615 = vector.load %arg2[%c0_1579, %c9_1580, %c0_1581] : memref<1x32x256xf32, #tpu.memory_space<vmem>>, vector<1x1x256xf32>
    %1616 = vector.shape_cast %1615 : vector<1x1x256xf32> to vector<1x256xf32>
    %c0_1582 = arith.constant 0 : index
    %c0_1583 = arith.constant 0 : index
    %c9_1584 = arith.constant 9 : index
    %c48_1585 = arith.constant 48 : index
    %c0_1586 = arith.constant 0 : index
    %1617 = vector.load %arg3[%c0_1582, %c0_1583, %c9_1584, %c48_1585, %c0_1586] : memref<1x1x32x64x256xbf16, #tpu.memory_space<vmem>>, vector<1x1x1x8x256xbf16>
    %1618 = vector.shape_cast %1617 : vector<1x1x1x8x256xbf16> to vector<8x256xbf16>
    %1619 = arith.extf %1618 : vector<8x256xbf16> to vector<8x256xf32>
    %1620 = vector.broadcast %1616 : vector<1x256xf32> to vector<8x256xf32>
    %1621 = arith.mulf %1619, %1620 : vector<8x256xf32>
    %1622 = arith.addf %1614, %1621 : vector<8x256xf32>
    %c0_1587 = arith.constant 0 : index
    %c10_1588 = arith.constant 10 : index
    %c0_1589 = arith.constant 0 : index
    %1623 = vector.load %arg2[%c0_1587, %c10_1588, %c0_1589] : memref<1x32x256xf32, #tpu.memory_space<vmem>>, vector<1x1x256xf32>
    %1624 = vector.shape_cast %1623 : vector<1x1x256xf32> to vector<1x256xf32>
    %c0_1590 = arith.constant 0 : index
    %c0_1591 = arith.constant 0 : index
    %c10_1592 = arith.constant 10 : index
    %c48_1593 = arith.constant 48 : index
    %c0_1594 = arith.constant 0 : index
    %1625 = vector.load %arg3[%c0_1590, %c0_1591, %c10_1592, %c48_1593, %c0_1594] : memref<1x1x32x64x256xbf16, #tpu.memory_space<vmem>>, vector<1x1x1x8x256xbf16>
    %1626 = vector.shape_cast %1625 : vector<1x1x1x8x256xbf16> to vector<8x256xbf16>
    %1627 = arith.extf %1626 : vector<8x256xbf16> to vector<8x256xf32>
    %1628 = vector.broadcast %1624 : vector<1x256xf32> to vector<8x256xf32>
    %1629 = arith.mulf %1627, %1628 : vector<8x256xf32>
    %1630 = arith.addf %1622, %1629 : vector<8x256xf32>
    %c0_1595 = arith.constant 0 : index
    %c11_1596 = arith.constant 11 : index
    %c0_1597 = arith.constant 0 : index
    %1631 = vector.load %arg2[%c0_1595, %c11_1596, %c0_1597] : memref<1x32x256xf32, #tpu.memory_space<vmem>>, vector<1x1x256xf32>
    %1632 = vector.shape_cast %1631 : vector<1x1x256xf32> to vector<1x256xf32>
    %c0_1598 = arith.constant 0 : index
    %c0_1599 = arith.constant 0 : index
    %c11_1600 = arith.constant 11 : index
    %c48_1601 = arith.constant 48 : index
    %c0_1602 = arith.constant 0 : index
    %1633 = vector.load %arg3[%c0_1598, %c0_1599, %c11_1600, %c48_1601, %c0_1602] : memref<1x1x32x64x256xbf16, #tpu.memory_space<vmem>>, vector<1x1x1x8x256xbf16>
    %1634 = vector.shape_cast %1633 : vector<1x1x1x8x256xbf16> to vector<8x256xbf16>
    %1635 = arith.extf %1634 : vector<8x256xbf16> to vector<8x256xf32>
    %1636 = vector.broadcast %1632 : vector<1x256xf32> to vector<8x256xf32>
    %1637 = arith.mulf %1635, %1636 : vector<8x256xf32>
    %1638 = arith.addf %1630, %1637 : vector<8x256xf32>
    %c0_1603 = arith.constant 0 : index
    %c12_1604 = arith.constant 12 : index
    %c0_1605 = arith.constant 0 : index
    %1639 = vector.load %arg2[%c0_1603, %c12_1604, %c0_1605] : memref<1x32x256xf32, #tpu.memory_space<vmem>>, vector<1x1x256xf32>
    %1640 = vector.shape_cast %1639 : vector<1x1x256xf32> to vector<1x256xf32>
    %c0_1606 = arith.constant 0 : index
    %c0_1607 = arith.constant 0 : index
    %c12_1608 = arith.constant 12 : index
    %c48_1609 = arith.constant 48 : index
    %c0_1610 = arith.constant 0 : index
    %1641 = vector.load %arg3[%c0_1606, %c0_1607, %c12_1608, %c48_1609, %c0_1610] : memref<1x1x32x64x256xbf16, #tpu.memory_space<vmem>>, vector<1x1x1x8x256xbf16>
    %1642 = vector.shape_cast %1641 : vector<1x1x1x8x256xbf16> to vector<8x256xbf16>
    %1643 = arith.extf %1642 : vector<8x256xbf16> to vector<8x256xf32>
    %1644 = vector.broadcast %1640 : vector<1x256xf32> to vector<8x256xf32>
    %1645 = arith.mulf %1643, %1644 : vector<8x256xf32>
    %1646 = arith.addf %1638, %1645 : vector<8x256xf32>
    %c0_1611 = arith.constant 0 : index
    %c13_1612 = arith.constant 13 : index
    %c0_1613 = arith.constant 0 : index
    %1647 = vector.load %arg2[%c0_1611, %c13_1612, %c0_1613] : memref<1x32x256xf32, #tpu.memory_space<vmem>>, vector<1x1x256xf32>
    %1648 = vector.shape_cast %1647 : vector<1x1x256xf32> to vector<1x256xf32>
    %c0_1614 = arith.constant 0 : index
    %c0_1615 = arith.constant 0 : index
    %c13_1616 = arith.constant 13 : index
    %c48_1617 = arith.constant 48 : index
    %c0_1618 = arith.constant 0 : index
    %1649 = vector.load %arg3[%c0_1614, %c0_1615, %c13_1616, %c48_1617, %c0_1618] : memref<1x1x32x64x256xbf16, #tpu.memory_space<vmem>>, vector<1x1x1x8x256xbf16>
    %1650 = vector.shape_cast %1649 : vector<1x1x1x8x256xbf16> to vector<8x256xbf16>
    %1651 = arith.extf %1650 : vector<8x256xbf16> to vector<8x256xf32>
    %1652 = vector.broadcast %1648 : vector<1x256xf32> to vector<8x256xf32>
    %1653 = arith.mulf %1651, %1652 : vector<8x256xf32>
    %1654 = arith.addf %1646, %1653 : vector<8x256xf32>
    %c0_1619 = arith.constant 0 : index
    %c14_1620 = arith.constant 14 : index
    %c0_1621 = arith.constant 0 : index
    %1655 = vector.load %arg2[%c0_1619, %c14_1620, %c0_1621] : memref<1x32x256xf32, #tpu.memory_space<vmem>>, vector<1x1x256xf32>
    %1656 = vector.shape_cast %1655 : vector<1x1x256xf32> to vector<1x256xf32>
    %c0_1622 = arith.constant 0 : index
    %c0_1623 = arith.constant 0 : index
    %c14_1624 = arith.constant 14 : index
    %c48_1625 = arith.constant 48 : index
    %c0_1626 = arith.constant 0 : index
    %1657 = vector.load %arg3[%c0_1622, %c0_1623, %c14_1624, %c48_1625, %c0_1626] : memref<1x1x32x64x256xbf16, #tpu.memory_space<vmem>>, vector<1x1x1x8x256xbf16>
    %1658 = vector.shape_cast %1657 : vector<1x1x1x8x256xbf16> to vector<8x256xbf16>
    %1659 = arith.extf %1658 : vector<8x256xbf16> to vector<8x256xf32>
    %1660 = vector.broadcast %1656 : vector<1x256xf32> to vector<8x256xf32>
    %1661 = arith.mulf %1659, %1660 : vector<8x256xf32>
    %1662 = arith.addf %1654, %1661 : vector<8x256xf32>
    %c0_1627 = arith.constant 0 : index
    %c15_1628 = arith.constant 15 : index
    %c0_1629 = arith.constant 0 : index
    %1663 = vector.load %arg2[%c0_1627, %c15_1628, %c0_1629] : memref<1x32x256xf32, #tpu.memory_space<vmem>>, vector<1x1x256xf32>
    %1664 = vector.shape_cast %1663 : vector<1x1x256xf32> to vector<1x256xf32>
    %c0_1630 = arith.constant 0 : index
    %c0_1631 = arith.constant 0 : index
    %c15_1632 = arith.constant 15 : index
    %c48_1633 = arith.constant 48 : index
    %c0_1634 = arith.constant 0 : index
    %1665 = vector.load %arg3[%c0_1630, %c0_1631, %c15_1632, %c48_1633, %c0_1634] : memref<1x1x32x64x256xbf16, #tpu.memory_space<vmem>>, vector<1x1x1x8x256xbf16>
    %1666 = vector.shape_cast %1665 : vector<1x1x1x8x256xbf16> to vector<8x256xbf16>
    %1667 = arith.extf %1666 : vector<8x256xbf16> to vector<8x256xf32>
    %1668 = vector.broadcast %1664 : vector<1x256xf32> to vector<8x256xf32>
    %1669 = arith.mulf %1667, %1668 : vector<8x256xf32>
    %1670 = arith.addf %1662, %1669 : vector<8x256xf32>
    %c0_1635 = arith.constant 0 : index
    %c16_1636 = arith.constant 16 : index
    %c0_1637 = arith.constant 0 : index
    %1671 = vector.load %arg2[%c0_1635, %c16_1636, %c0_1637] : memref<1x32x256xf32, #tpu.memory_space<vmem>>, vector<1x1x256xf32>
    %1672 = vector.shape_cast %1671 : vector<1x1x256xf32> to vector<1x256xf32>
    %c0_1638 = arith.constant 0 : index
    %c0_1639 = arith.constant 0 : index
    %c16_1640 = arith.constant 16 : index
    %c48_1641 = arith.constant 48 : index
    %c0_1642 = arith.constant 0 : index
    %1673 = vector.load %arg3[%c0_1638, %c0_1639, %c16_1640, %c48_1641, %c0_1642] : memref<1x1x32x64x256xbf16, #tpu.memory_space<vmem>>, vector<1x1x1x8x256xbf16>
    %1674 = vector.shape_cast %1673 : vector<1x1x1x8x256xbf16> to vector<8x256xbf16>
    %1675 = arith.extf %1674 : vector<8x256xbf16> to vector<8x256xf32>
    %1676 = vector.broadcast %1672 : vector<1x256xf32> to vector<8x256xf32>
    %1677 = arith.mulf %1675, %1676 : vector<8x256xf32>
    %1678 = arith.addf %1670, %1677 : vector<8x256xf32>
    %c0_1643 = arith.constant 0 : index
    %c17_1644 = arith.constant 17 : index
    %c0_1645 = arith.constant 0 : index
    %1679 = vector.load %arg2[%c0_1643, %c17_1644, %c0_1645] : memref<1x32x256xf32, #tpu.memory_space<vmem>>, vector<1x1x256xf32>
    %1680 = vector.shape_cast %1679 : vector<1x1x256xf32> to vector<1x256xf32>
    %c0_1646 = arith.constant 0 : index
    %c0_1647 = arith.constant 0 : index
    %c17_1648 = arith.constant 17 : index
    %c48_1649 = arith.constant 48 : index
    %c0_1650 = arith.constant 0 : index
    %1681 = vector.load %arg3[%c0_1646, %c0_1647, %c17_1648, %c48_1649, %c0_1650] : memref<1x1x32x64x256xbf16, #tpu.memory_space<vmem>>, vector<1x1x1x8x256xbf16>
    %1682 = vector.shape_cast %1681 : vector<1x1x1x8x256xbf16> to vector<8x256xbf16>
    %1683 = arith.extf %1682 : vector<8x256xbf16> to vector<8x256xf32>
    %1684 = vector.broadcast %1680 : vector<1x256xf32> to vector<8x256xf32>
    %1685 = arith.mulf %1683, %1684 : vector<8x256xf32>
    %1686 = arith.addf %1678, %1685 : vector<8x256xf32>
    %c0_1651 = arith.constant 0 : index
    %c18_1652 = arith.constant 18 : index
    %c0_1653 = arith.constant 0 : index
    %1687 = vector.load %arg2[%c0_1651, %c18_1652, %c0_1653] : memref<1x32x256xf32, #tpu.memory_space<vmem>>, vector<1x1x256xf32>
    %1688 = vector.shape_cast %1687 : vector<1x1x256xf32> to vector<1x256xf32>
    %c0_1654 = arith.constant 0 : index
    %c0_1655 = arith.constant 0 : index
    %c18_1656 = arith.constant 18 : index
    %c48_1657 = arith.constant 48 : index
    %c0_1658 = arith.constant 0 : index
    %1689 = vector.load %arg3[%c0_1654, %c0_1655, %c18_1656, %c48_1657, %c0_1658] : memref<1x1x32x64x256xbf16, #tpu.memory_space<vmem>>, vector<1x1x1x8x256xbf16>
    %1690 = vector.shape_cast %1689 : vector<1x1x1x8x256xbf16> to vector<8x256xbf16>
    %1691 = arith.extf %1690 : vector<8x256xbf16> to vector<8x256xf32>
    %1692 = vector.broadcast %1688 : vector<1x256xf32> to vector<8x256xf32>
    %1693 = arith.mulf %1691, %1692 : vector<8x256xf32>
    %1694 = arith.addf %1686, %1693 : vector<8x256xf32>
    %c0_1659 = arith.constant 0 : index
    %c19_1660 = arith.constant 19 : index
    %c0_1661 = arith.constant 0 : index
    %1695 = vector.load %arg2[%c0_1659, %c19_1660, %c0_1661] : memref<1x32x256xf32, #tpu.memory_space<vmem>>, vector<1x1x256xf32>
    %1696 = vector.shape_cast %1695 : vector<1x1x256xf32> to vector<1x256xf32>
    %c0_1662 = arith.constant 0 : index
    %c0_1663 = arith.constant 0 : index
    %c19_1664 = arith.constant 19 : index
    %c48_1665 = arith.constant 48 : index
    %c0_1666 = arith.constant 0 : index
    %1697 = vector.load %arg3[%c0_1662, %c0_1663, %c19_1664, %c48_1665, %c0_1666] : memref<1x1x32x64x256xbf16, #tpu.memory_space<vmem>>, vector<1x1x1x8x256xbf16>
    %1698 = vector.shape_cast %1697 : vector<1x1x1x8x256xbf16> to vector<8x256xbf16>
    %1699 = arith.extf %1698 : vector<8x256xbf16> to vector<8x256xf32>
    %1700 = vector.broadcast %1696 : vector<1x256xf32> to vector<8x256xf32>
    %1701 = arith.mulf %1699, %1700 : vector<8x256xf32>
    %1702 = arith.addf %1694, %1701 : vector<8x256xf32>
    %c0_1667 = arith.constant 0 : index
    %c20_1668 = arith.constant 20 : index
    %c0_1669 = arith.constant 0 : index
    %1703 = vector.load %arg2[%c0_1667, %c20_1668, %c0_1669] : memref<1x32x256xf32, #tpu.memory_space<vmem>>, vector<1x1x256xf32>
    %1704 = vector.shape_cast %1703 : vector<1x1x256xf32> to vector<1x256xf32>
    %c0_1670 = arith.constant 0 : index
    %c0_1671 = arith.constant 0 : index
    %c20_1672 = arith.constant 20 : index
    %c48_1673 = arith.constant 48 : index
    %c0_1674 = arith.constant 0 : index
    %1705 = vector.load %arg3[%c0_1670, %c0_1671, %c20_1672, %c48_1673, %c0_1674] : memref<1x1x32x64x256xbf16, #tpu.memory_space<vmem>>, vector<1x1x1x8x256xbf16>
    %1706 = vector.shape_cast %1705 : vector<1x1x1x8x256xbf16> to vector<8x256xbf16>
    %1707 = arith.extf %1706 : vector<8x256xbf16> to vector<8x256xf32>
    %1708 = vector.broadcast %1704 : vector<1x256xf32> to vector<8x256xf32>
    %1709 = arith.mulf %1707, %1708 : vector<8x256xf32>
    %1710 = arith.addf %1702, %1709 : vector<8x256xf32>
    %c0_1675 = arith.constant 0 : index
    %c21_1676 = arith.constant 21 : index
    %c0_1677 = arith.constant 0 : index
    %1711 = vector.load %arg2[%c0_1675, %c21_1676, %c0_1677] : memref<1x32x256xf32, #tpu.memory_space<vmem>>, vector<1x1x256xf32>
    %1712 = vector.shape_cast %1711 : vector<1x1x256xf32> to vector<1x256xf32>
    %c0_1678 = arith.constant 0 : index
    %c0_1679 = arith.constant 0 : index
    %c21_1680 = arith.constant 21 : index
    %c48_1681 = arith.constant 48 : index
    %c0_1682 = arith.constant 0 : index
    %1713 = vector.load %arg3[%c0_1678, %c0_1679, %c21_1680, %c48_1681, %c0_1682] : memref<1x1x32x64x256xbf16, #tpu.memory_space<vmem>>, vector<1x1x1x8x256xbf16>
    %1714 = vector.shape_cast %1713 : vector<1x1x1x8x256xbf16> to vector<8x256xbf16>
    %1715 = arith.extf %1714 : vector<8x256xbf16> to vector<8x256xf32>
    %1716 = vector.broadcast %1712 : vector<1x256xf32> to vector<8x256xf32>
    %1717 = arith.mulf %1715, %1716 : vector<8x256xf32>
    %1718 = arith.addf %1710, %1717 : vector<8x256xf32>
    %c0_1683 = arith.constant 0 : index
    %c22_1684 = arith.constant 22 : index
    %c0_1685 = arith.constant 0 : index
    %1719 = vector.load %arg2[%c0_1683, %c22_1684, %c0_1685] : memref<1x32x256xf32, #tpu.memory_space<vmem>>, vector<1x1x256xf32>
    %1720 = vector.shape_cast %1719 : vector<1x1x256xf32> to vector<1x256xf32>
    %c0_1686 = arith.constant 0 : index
    %c0_1687 = arith.constant 0 : index
    %c22_1688 = arith.constant 22 : index
    %c48_1689 = arith.constant 48 : index
    %c0_1690 = arith.constant 0 : index
    %1721 = vector.load %arg3[%c0_1686, %c0_1687, %c22_1688, %c48_1689, %c0_1690] : memref<1x1x32x64x256xbf16, #tpu.memory_space<vmem>>, vector<1x1x1x8x256xbf16>
    %1722 = vector.shape_cast %1721 : vector<1x1x1x8x256xbf16> to vector<8x256xbf16>
    %1723 = arith.extf %1722 : vector<8x256xbf16> to vector<8x256xf32>
    %1724 = vector.broadcast %1720 : vector<1x256xf32> to vector<8x256xf32>
    %1725 = arith.mulf %1723, %1724 : vector<8x256xf32>
    %1726 = arith.addf %1718, %1725 : vector<8x256xf32>
    %c0_1691 = arith.constant 0 : index
    %c23_1692 = arith.constant 23 : index
    %c0_1693 = arith.constant 0 : index
    %1727 = vector.load %arg2[%c0_1691, %c23_1692, %c0_1693] : memref<1x32x256xf32, #tpu.memory_space<vmem>>, vector<1x1x256xf32>
    %1728 = vector.shape_cast %1727 : vector<1x1x256xf32> to vector<1x256xf32>
    %c0_1694 = arith.constant 0 : index
    %c0_1695 = arith.constant 0 : index
    %c23_1696 = arith.constant 23 : index
    %c48_1697 = arith.constant 48 : index
    %c0_1698 = arith.constant 0 : index
    %1729 = vector.load %arg3[%c0_1694, %c0_1695, %c23_1696, %c48_1697, %c0_1698] : memref<1x1x32x64x256xbf16, #tpu.memory_space<vmem>>, vector<1x1x1x8x256xbf16>
    %1730 = vector.shape_cast %1729 : vector<1x1x1x8x256xbf16> to vector<8x256xbf16>
    %1731 = arith.extf %1730 : vector<8x256xbf16> to vector<8x256xf32>
    %1732 = vector.broadcast %1728 : vector<1x256xf32> to vector<8x256xf32>
    %1733 = arith.mulf %1731, %1732 : vector<8x256xf32>
    %1734 = arith.addf %1726, %1733 : vector<8x256xf32>
    %c0_1699 = arith.constant 0 : index
    %c24_1700 = arith.constant 24 : index
    %c0_1701 = arith.constant 0 : index
    %1735 = vector.load %arg2[%c0_1699, %c24_1700, %c0_1701] : memref<1x32x256xf32, #tpu.memory_space<vmem>>, vector<1x1x256xf32>
    %1736 = vector.shape_cast %1735 : vector<1x1x256xf32> to vector<1x256xf32>
    %c0_1702 = arith.constant 0 : index
    %c0_1703 = arith.constant 0 : index
    %c24_1704 = arith.constant 24 : index
    %c48_1705 = arith.constant 48 : index
    %c0_1706 = arith.constant 0 : index
    %1737 = vector.load %arg3[%c0_1702, %c0_1703, %c24_1704, %c48_1705, %c0_1706] : memref<1x1x32x64x256xbf16, #tpu.memory_space<vmem>>, vector<1x1x1x8x256xbf16>
    %1738 = vector.shape_cast %1737 : vector<1x1x1x8x256xbf16> to vector<8x256xbf16>
    %1739 = arith.extf %1738 : vector<8x256xbf16> to vector<8x256xf32>
    %1740 = vector.broadcast %1736 : vector<1x256xf32> to vector<8x256xf32>
    %1741 = arith.mulf %1739, %1740 : vector<8x256xf32>
    %1742 = arith.addf %1734, %1741 : vector<8x256xf32>
    %c0_1707 = arith.constant 0 : index
    %c25_1708 = arith.constant 25 : index
    %c0_1709 = arith.constant 0 : index
    %1743 = vector.load %arg2[%c0_1707, %c25_1708, %c0_1709] : memref<1x32x256xf32, #tpu.memory_space<vmem>>, vector<1x1x256xf32>
    %1744 = vector.shape_cast %1743 : vector<1x1x256xf32> to vector<1x256xf32>
    %c0_1710 = arith.constant 0 : index
    %c0_1711 = arith.constant 0 : index
    %c25_1712 = arith.constant 25 : index
    %c48_1713 = arith.constant 48 : index
    %c0_1714 = arith.constant 0 : index
    %1745 = vector.load %arg3[%c0_1710, %c0_1711, %c25_1712, %c48_1713, %c0_1714] : memref<1x1x32x64x256xbf16, #tpu.memory_space<vmem>>, vector<1x1x1x8x256xbf16>
    %1746 = vector.shape_cast %1745 : vector<1x1x1x8x256xbf16> to vector<8x256xbf16>
    %1747 = arith.extf %1746 : vector<8x256xbf16> to vector<8x256xf32>
    %1748 = vector.broadcast %1744 : vector<1x256xf32> to vector<8x256xf32>
    %1749 = arith.mulf %1747, %1748 : vector<8x256xf32>
    %1750 = arith.addf %1742, %1749 : vector<8x256xf32>
    %c0_1715 = arith.constant 0 : index
    %c26_1716 = arith.constant 26 : index
    %c0_1717 = arith.constant 0 : index
    %1751 = vector.load %arg2[%c0_1715, %c26_1716, %c0_1717] : memref<1x32x256xf32, #tpu.memory_space<vmem>>, vector<1x1x256xf32>
    %1752 = vector.shape_cast %1751 : vector<1x1x256xf32> to vector<1x256xf32>
    %c0_1718 = arith.constant 0 : index
    %c0_1719 = arith.constant 0 : index
    %c26_1720 = arith.constant 26 : index
    %c48_1721 = arith.constant 48 : index
    %c0_1722 = arith.constant 0 : index
    %1753 = vector.load %arg3[%c0_1718, %c0_1719, %c26_1720, %c48_1721, %c0_1722] : memref<1x1x32x64x256xbf16, #tpu.memory_space<vmem>>, vector<1x1x1x8x256xbf16>
    %1754 = vector.shape_cast %1753 : vector<1x1x1x8x256xbf16> to vector<8x256xbf16>
    %1755 = arith.extf %1754 : vector<8x256xbf16> to vector<8x256xf32>
    %1756 = vector.broadcast %1752 : vector<1x256xf32> to vector<8x256xf32>
    %1757 = arith.mulf %1755, %1756 : vector<8x256xf32>
    %1758 = arith.addf %1750, %1757 : vector<8x256xf32>
    %c0_1723 = arith.constant 0 : index
    %c27_1724 = arith.constant 27 : index
    %c0_1725 = arith.constant 0 : index
    %1759 = vector.load %arg2[%c0_1723, %c27_1724, %c0_1725] : memref<1x32x256xf32, #tpu.memory_space<vmem>>, vector<1x1x256xf32>
    %1760 = vector.shape_cast %1759 : vector<1x1x256xf32> to vector<1x256xf32>
    %c0_1726 = arith.constant 0 : index
    %c0_1727 = arith.constant 0 : index
    %c27_1728 = arith.constant 27 : index
    %c48_1729 = arith.constant 48 : index
    %c0_1730 = arith.constant 0 : index
    %1761 = vector.load %arg3[%c0_1726, %c0_1727, %c27_1728, %c48_1729, %c0_1730] : memref<1x1x32x64x256xbf16, #tpu.memory_space<vmem>>, vector<1x1x1x8x256xbf16>
    %1762 = vector.shape_cast %1761 : vector<1x1x1x8x256xbf16> to vector<8x256xbf16>
    %1763 = arith.extf %1762 : vector<8x256xbf16> to vector<8x256xf32>
    %1764 = vector.broadcast %1760 : vector<1x256xf32> to vector<8x256xf32>
    %1765 = arith.mulf %1763, %1764 : vector<8x256xf32>
    %1766 = arith.addf %1758, %1765 : vector<8x256xf32>
    %c0_1731 = arith.constant 0 : index
    %c28_1732 = arith.constant 28 : index
    %c0_1733 = arith.constant 0 : index
    %1767 = vector.load %arg2[%c0_1731, %c28_1732, %c0_1733] : memref<1x32x256xf32, #tpu.memory_space<vmem>>, vector<1x1x256xf32>
    %1768 = vector.shape_cast %1767 : vector<1x1x256xf32> to vector<1x256xf32>
    %c0_1734 = arith.constant 0 : index
    %c0_1735 = arith.constant 0 : index
    %c28_1736 = arith.constant 28 : index
    %c48_1737 = arith.constant 48 : index
    %c0_1738 = arith.constant 0 : index
    %1769 = vector.load %arg3[%c0_1734, %c0_1735, %c28_1736, %c48_1737, %c0_1738] : memref<1x1x32x64x256xbf16, #tpu.memory_space<vmem>>, vector<1x1x1x8x256xbf16>
    %1770 = vector.shape_cast %1769 : vector<1x1x1x8x256xbf16> to vector<8x256xbf16>
    %1771 = arith.extf %1770 : vector<8x256xbf16> to vector<8x256xf32>
    %1772 = vector.broadcast %1768 : vector<1x256xf32> to vector<8x256xf32>
    %1773 = arith.mulf %1771, %1772 : vector<8x256xf32>
    %1774 = arith.addf %1766, %1773 : vector<8x256xf32>
    %c0_1739 = arith.constant 0 : index
    %c29_1740 = arith.constant 29 : index
    %c0_1741 = arith.constant 0 : index
    %1775 = vector.load %arg2[%c0_1739, %c29_1740, %c0_1741] : memref<1x32x256xf32, #tpu.memory_space<vmem>>, vector<1x1x256xf32>
    %1776 = vector.shape_cast %1775 : vector<1x1x256xf32> to vector<1x256xf32>
    %c0_1742 = arith.constant 0 : index
    %c0_1743 = arith.constant 0 : index
    %c29_1744 = arith.constant 29 : index
    %c48_1745 = arith.constant 48 : index
    %c0_1746 = arith.constant 0 : index
    %1777 = vector.load %arg3[%c0_1742, %c0_1743, %c29_1744, %c48_1745, %c0_1746] : memref<1x1x32x64x256xbf16, #tpu.memory_space<vmem>>, vector<1x1x1x8x256xbf16>
    %1778 = vector.shape_cast %1777 : vector<1x1x1x8x256xbf16> to vector<8x256xbf16>
    %1779 = arith.extf %1778 : vector<8x256xbf16> to vector<8x256xf32>
    %1780 = vector.broadcast %1776 : vector<1x256xf32> to vector<8x256xf32>
    %1781 = arith.mulf %1779, %1780 : vector<8x256xf32>
    %1782 = arith.addf %1774, %1781 : vector<8x256xf32>
    %c0_1747 = arith.constant 0 : index
    %c30_1748 = arith.constant 30 : index
    %c0_1749 = arith.constant 0 : index
    %1783 = vector.load %arg2[%c0_1747, %c30_1748, %c0_1749] : memref<1x32x256xf32, #tpu.memory_space<vmem>>, vector<1x1x256xf32>
    %1784 = vector.shape_cast %1783 : vector<1x1x256xf32> to vector<1x256xf32>
    %c0_1750 = arith.constant 0 : index
    %c0_1751 = arith.constant 0 : index
    %c30_1752 = arith.constant 30 : index
    %c48_1753 = arith.constant 48 : index
    %c0_1754 = arith.constant 0 : index
    %1785 = vector.load %arg3[%c0_1750, %c0_1751, %c30_1752, %c48_1753, %c0_1754] : memref<1x1x32x64x256xbf16, #tpu.memory_space<vmem>>, vector<1x1x1x8x256xbf16>
    %1786 = vector.shape_cast %1785 : vector<1x1x1x8x256xbf16> to vector<8x256xbf16>
    %1787 = arith.extf %1786 : vector<8x256xbf16> to vector<8x256xf32>
    %1788 = vector.broadcast %1784 : vector<1x256xf32> to vector<8x256xf32>
    %1789 = arith.mulf %1787, %1788 : vector<8x256xf32>
    %1790 = arith.addf %1782, %1789 : vector<8x256xf32>
    %c0_1755 = arith.constant 0 : index
    %c31_1756 = arith.constant 31 : index
    %c0_1757 = arith.constant 0 : index
    %1791 = vector.load %arg2[%c0_1755, %c31_1756, %c0_1757] : memref<1x32x256xf32, #tpu.memory_space<vmem>>, vector<1x1x256xf32>
    %1792 = vector.shape_cast %1791 : vector<1x1x256xf32> to vector<1x256xf32>
    %c0_1758 = arith.constant 0 : index
    %c0_1759 = arith.constant 0 : index
    %c31_1760 = arith.constant 31 : index
    %c48_1761 = arith.constant 48 : index
    %c0_1762 = arith.constant 0 : index
    %1793 = vector.load %arg3[%c0_1758, %c0_1759, %c31_1760, %c48_1761, %c0_1762] : memref<1x1x32x64x256xbf16, #tpu.memory_space<vmem>>, vector<1x1x1x8x256xbf16>
    %1794 = vector.shape_cast %1793 : vector<1x1x1x8x256xbf16> to vector<8x256xbf16>
    %1795 = arith.extf %1794 : vector<8x256xbf16> to vector<8x256xf32>
    %1796 = vector.broadcast %1792 : vector<1x256xf32> to vector<8x256xf32>
    %1797 = arith.mulf %1795, %1796 : vector<8x256xf32>
    %1798 = arith.addf %1790, %1797 : vector<8x256xf32>
    %cst_1763 = arith.constant 0.000000e+00 : f32
    %1799 = vector.broadcast %cst_1763 : f32 to vector<8x256xf32>
    %c0_1764 = arith.constant 0 : index
    %c0_1765 = arith.constant 0 : index
    %c0_1766 = arith.constant 0 : index
    %1800 = vector.load %arg2[%c0_1764, %c0_1765, %c0_1766] : memref<1x32x256xf32, #tpu.memory_space<vmem>>, vector<1x1x256xf32>
    %1801 = vector.shape_cast %1800 : vector<1x1x256xf32> to vector<1x256xf32>
    %c0_1767 = arith.constant 0 : index
    %c0_1768 = arith.constant 0 : index
    %c0_1769 = arith.constant 0 : index
    %c56 = arith.constant 56 : index
    %c0_1770 = arith.constant 0 : index
    %1802 = vector.load %arg3[%c0_1767, %c0_1768, %c0_1769, %c56, %c0_1770] : memref<1x1x32x64x256xbf16, #tpu.memory_space<vmem>>, vector<1x1x1x8x256xbf16>
    %1803 = vector.shape_cast %1802 : vector<1x1x1x8x256xbf16> to vector<8x256xbf16>
    %1804 = arith.extf %1803 : vector<8x256xbf16> to vector<8x256xf32>
    %1805 = vector.broadcast %1801 : vector<1x256xf32> to vector<8x256xf32>
    %1806 = arith.mulf %1804, %1805 : vector<8x256xf32>
    %1807 = arith.addf %1799, %1806 : vector<8x256xf32>
    %c0_1771 = arith.constant 0 : index
    %c1_1772 = arith.constant 1 : index
    %c0_1773 = arith.constant 0 : index
    %1808 = vector.load %arg2[%c0_1771, %c1_1772, %c0_1773] : memref<1x32x256xf32, #tpu.memory_space<vmem>>, vector<1x1x256xf32>
    %1809 = vector.shape_cast %1808 : vector<1x1x256xf32> to vector<1x256xf32>
    %c0_1774 = arith.constant 0 : index
    %c0_1775 = arith.constant 0 : index
    %c1_1776 = arith.constant 1 : index
    %c56_1777 = arith.constant 56 : index
    %c0_1778 = arith.constant 0 : index
    %1810 = vector.load %arg3[%c0_1774, %c0_1775, %c1_1776, %c56_1777, %c0_1778] : memref<1x1x32x64x256xbf16, #tpu.memory_space<vmem>>, vector<1x1x1x8x256xbf16>
    %1811 = vector.shape_cast %1810 : vector<1x1x1x8x256xbf16> to vector<8x256xbf16>
    %1812 = arith.extf %1811 : vector<8x256xbf16> to vector<8x256xf32>
    %1813 = vector.broadcast %1809 : vector<1x256xf32> to vector<8x256xf32>
    %1814 = arith.mulf %1812, %1813 : vector<8x256xf32>
    %1815 = arith.addf %1807, %1814 : vector<8x256xf32>
    %c0_1779 = arith.constant 0 : index
    %c2_1780 = arith.constant 2 : index
    %c0_1781 = arith.constant 0 : index
    %1816 = vector.load %arg2[%c0_1779, %c2_1780, %c0_1781] : memref<1x32x256xf32, #tpu.memory_space<vmem>>, vector<1x1x256xf32>
    %1817 = vector.shape_cast %1816 : vector<1x1x256xf32> to vector<1x256xf32>
    %c0_1782 = arith.constant 0 : index
    %c0_1783 = arith.constant 0 : index
    %c2_1784 = arith.constant 2 : index
    %c56_1785 = arith.constant 56 : index
    %c0_1786 = arith.constant 0 : index
    %1818 = vector.load %arg3[%c0_1782, %c0_1783, %c2_1784, %c56_1785, %c0_1786] : memref<1x1x32x64x256xbf16, #tpu.memory_space<vmem>>, vector<1x1x1x8x256xbf16>
    %1819 = vector.shape_cast %1818 : vector<1x1x1x8x256xbf16> to vector<8x256xbf16>
    %1820 = arith.extf %1819 : vector<8x256xbf16> to vector<8x256xf32>
    %1821 = vector.broadcast %1817 : vector<1x256xf32> to vector<8x256xf32>
    %1822 = arith.mulf %1820, %1821 : vector<8x256xf32>
    %1823 = arith.addf %1815, %1822 : vector<8x256xf32>
    %c0_1787 = arith.constant 0 : index
    %c3_1788 = arith.constant 3 : index
    %c0_1789 = arith.constant 0 : index
    %1824 = vector.load %arg2[%c0_1787, %c3_1788, %c0_1789] : memref<1x32x256xf32, #tpu.memory_space<vmem>>, vector<1x1x256xf32>
    %1825 = vector.shape_cast %1824 : vector<1x1x256xf32> to vector<1x256xf32>
    %c0_1790 = arith.constant 0 : index
    %c0_1791 = arith.constant 0 : index
    %c3_1792 = arith.constant 3 : index
    %c56_1793 = arith.constant 56 : index
    %c0_1794 = arith.constant 0 : index
    %1826 = vector.load %arg3[%c0_1790, %c0_1791, %c3_1792, %c56_1793, %c0_1794] : memref<1x1x32x64x256xbf16, #tpu.memory_space<vmem>>, vector<1x1x1x8x256xbf16>
    %1827 = vector.shape_cast %1826 : vector<1x1x1x8x256xbf16> to vector<8x256xbf16>
    %1828 = arith.extf %1827 : vector<8x256xbf16> to vector<8x256xf32>
    %1829 = vector.broadcast %1825 : vector<1x256xf32> to vector<8x256xf32>
    %1830 = arith.mulf %1828, %1829 : vector<8x256xf32>
    %1831 = arith.addf %1823, %1830 : vector<8x256xf32>
    %c0_1795 = arith.constant 0 : index
    %c4_1796 = arith.constant 4 : index
    %c0_1797 = arith.constant 0 : index
    %1832 = vector.load %arg2[%c0_1795, %c4_1796, %c0_1797] : memref<1x32x256xf32, #tpu.memory_space<vmem>>, vector<1x1x256xf32>
    %1833 = vector.shape_cast %1832 : vector<1x1x256xf32> to vector<1x256xf32>
    %c0_1798 = arith.constant 0 : index
    %c0_1799 = arith.constant 0 : index
    %c4_1800 = arith.constant 4 : index
    %c56_1801 = arith.constant 56 : index
    %c0_1802 = arith.constant 0 : index
    %1834 = vector.load %arg3[%c0_1798, %c0_1799, %c4_1800, %c56_1801, %c0_1802] : memref<1x1x32x64x256xbf16, #tpu.memory_space<vmem>>, vector<1x1x1x8x256xbf16>
    %1835 = vector.shape_cast %1834 : vector<1x1x1x8x256xbf16> to vector<8x256xbf16>
    %1836 = arith.extf %1835 : vector<8x256xbf16> to vector<8x256xf32>
    %1837 = vector.broadcast %1833 : vector<1x256xf32> to vector<8x256xf32>
    %1838 = arith.mulf %1836, %1837 : vector<8x256xf32>
    %1839 = arith.addf %1831, %1838 : vector<8x256xf32>
    %c0_1803 = arith.constant 0 : index
    %c5_1804 = arith.constant 5 : index
    %c0_1805 = arith.constant 0 : index
    %1840 = vector.load %arg2[%c0_1803, %c5_1804, %c0_1805] : memref<1x32x256xf32, #tpu.memory_space<vmem>>, vector<1x1x256xf32>
    %1841 = vector.shape_cast %1840 : vector<1x1x256xf32> to vector<1x256xf32>
    %c0_1806 = arith.constant 0 : index
    %c0_1807 = arith.constant 0 : index
    %c5_1808 = arith.constant 5 : index
    %c56_1809 = arith.constant 56 : index
    %c0_1810 = arith.constant 0 : index
    %1842 = vector.load %arg3[%c0_1806, %c0_1807, %c5_1808, %c56_1809, %c0_1810] : memref<1x1x32x64x256xbf16, #tpu.memory_space<vmem>>, vector<1x1x1x8x256xbf16>
    %1843 = vector.shape_cast %1842 : vector<1x1x1x8x256xbf16> to vector<8x256xbf16>
    %1844 = arith.extf %1843 : vector<8x256xbf16> to vector<8x256xf32>
    %1845 = vector.broadcast %1841 : vector<1x256xf32> to vector<8x256xf32>
    %1846 = arith.mulf %1844, %1845 : vector<8x256xf32>
    %1847 = arith.addf %1839, %1846 : vector<8x256xf32>
    %c0_1811 = arith.constant 0 : index
    %c6_1812 = arith.constant 6 : index
    %c0_1813 = arith.constant 0 : index
    %1848 = vector.load %arg2[%c0_1811, %c6_1812, %c0_1813] : memref<1x32x256xf32, #tpu.memory_space<vmem>>, vector<1x1x256xf32>
    %1849 = vector.shape_cast %1848 : vector<1x1x256xf32> to vector<1x256xf32>
    %c0_1814 = arith.constant 0 : index
    %c0_1815 = arith.constant 0 : index
    %c6_1816 = arith.constant 6 : index
    %c56_1817 = arith.constant 56 : index
    %c0_1818 = arith.constant 0 : index
    %1850 = vector.load %arg3[%c0_1814, %c0_1815, %c6_1816, %c56_1817, %c0_1818] : memref<1x1x32x64x256xbf16, #tpu.memory_space<vmem>>, vector<1x1x1x8x256xbf16>
    %1851 = vector.shape_cast %1850 : vector<1x1x1x8x256xbf16> to vector<8x256xbf16>
    %1852 = arith.extf %1851 : vector<8x256xbf16> to vector<8x256xf32>
    %1853 = vector.broadcast %1849 : vector<1x256xf32> to vector<8x256xf32>
    %1854 = arith.mulf %1852, %1853 : vector<8x256xf32>
    %1855 = arith.addf %1847, %1854 : vector<8x256xf32>
    %c0_1819 = arith.constant 0 : index
    %c7_1820 = arith.constant 7 : index
    %c0_1821 = arith.constant 0 : index
    %1856 = vector.load %arg2[%c0_1819, %c7_1820, %c0_1821] : memref<1x32x256xf32, #tpu.memory_space<vmem>>, vector<1x1x256xf32>
    %1857 = vector.shape_cast %1856 : vector<1x1x256xf32> to vector<1x256xf32>
    %c0_1822 = arith.constant 0 : index
    %c0_1823 = arith.constant 0 : index
    %c7_1824 = arith.constant 7 : index
    %c56_1825 = arith.constant 56 : index
    %c0_1826 = arith.constant 0 : index
    %1858 = vector.load %arg3[%c0_1822, %c0_1823, %c7_1824, %c56_1825, %c0_1826] : memref<1x1x32x64x256xbf16, #tpu.memory_space<vmem>>, vector<1x1x1x8x256xbf16>
    %1859 = vector.shape_cast %1858 : vector<1x1x1x8x256xbf16> to vector<8x256xbf16>
    %1860 = arith.extf %1859 : vector<8x256xbf16> to vector<8x256xf32>
    %1861 = vector.broadcast %1857 : vector<1x256xf32> to vector<8x256xf32>
    %1862 = arith.mulf %1860, %1861 : vector<8x256xf32>
    %1863 = arith.addf %1855, %1862 : vector<8x256xf32>
    %c0_1827 = arith.constant 0 : index
    %c8_1828 = arith.constant 8 : index
    %c0_1829 = arith.constant 0 : index
    %1864 = vector.load %arg2[%c0_1827, %c8_1828, %c0_1829] : memref<1x32x256xf32, #tpu.memory_space<vmem>>, vector<1x1x256xf32>
    %1865 = vector.shape_cast %1864 : vector<1x1x256xf32> to vector<1x256xf32>
    %c0_1830 = arith.constant 0 : index
    %c0_1831 = arith.constant 0 : index
    %c8_1832 = arith.constant 8 : index
    %c56_1833 = arith.constant 56 : index
    %c0_1834 = arith.constant 0 : index
    %1866 = vector.load %arg3[%c0_1830, %c0_1831, %c8_1832, %c56_1833, %c0_1834] : memref<1x1x32x64x256xbf16, #tpu.memory_space<vmem>>, vector<1x1x1x8x256xbf16>
    %1867 = vector.shape_cast %1866 : vector<1x1x1x8x256xbf16> to vector<8x256xbf16>
    %1868 = arith.extf %1867 : vector<8x256xbf16> to vector<8x256xf32>
    %1869 = vector.broadcast %1865 : vector<1x256xf32> to vector<8x256xf32>
    %1870 = arith.mulf %1868, %1869 : vector<8x256xf32>
    %1871 = arith.addf %1863, %1870 : vector<8x256xf32>
    %c0_1835 = arith.constant 0 : index
    %c9_1836 = arith.constant 9 : index
    %c0_1837 = arith.constant 0 : index
    %1872 = vector.load %arg2[%c0_1835, %c9_1836, %c0_1837] : memref<1x32x256xf32, #tpu.memory_space<vmem>>, vector<1x1x256xf32>
    %1873 = vector.shape_cast %1872 : vector<1x1x256xf32> to vector<1x256xf32>
    %c0_1838 = arith.constant 0 : index
    %c0_1839 = arith.constant 0 : index
    %c9_1840 = arith.constant 9 : index
    %c56_1841 = arith.constant 56 : index
    %c0_1842 = arith.constant 0 : index
    %1874 = vector.load %arg3[%c0_1838, %c0_1839, %c9_1840, %c56_1841, %c0_1842] : memref<1x1x32x64x256xbf16, #tpu.memory_space<vmem>>, vector<1x1x1x8x256xbf16>
    %1875 = vector.shape_cast %1874 : vector<1x1x1x8x256xbf16> to vector<8x256xbf16>
    %1876 = arith.extf %1875 : vector<8x256xbf16> to vector<8x256xf32>
    %1877 = vector.broadcast %1873 : vector<1x256xf32> to vector<8x256xf32>
    %1878 = arith.mulf %1876, %1877 : vector<8x256xf32>
    %1879 = arith.addf %1871, %1878 : vector<8x256xf32>
    %c0_1843 = arith.constant 0 : index
    %c10_1844 = arith.constant 10 : index
    %c0_1845 = arith.constant 0 : index
    %1880 = vector.load %arg2[%c0_1843, %c10_1844, %c0_1845] : memref<1x32x256xf32, #tpu.memory_space<vmem>>, vector<1x1x256xf32>
    %1881 = vector.shape_cast %1880 : vector<1x1x256xf32> to vector<1x256xf32>
    %c0_1846 = arith.constant 0 : index
    %c0_1847 = arith.constant 0 : index
    %c10_1848 = arith.constant 10 : index
    %c56_1849 = arith.constant 56 : index
    %c0_1850 = arith.constant 0 : index
    %1882 = vector.load %arg3[%c0_1846, %c0_1847, %c10_1848, %c56_1849, %c0_1850] : memref<1x1x32x64x256xbf16, #tpu.memory_space<vmem>>, vector<1x1x1x8x256xbf16>
    %1883 = vector.shape_cast %1882 : vector<1x1x1x8x256xbf16> to vector<8x256xbf16>
    %1884 = arith.extf %1883 : vector<8x256xbf16> to vector<8x256xf32>
    %1885 = vector.broadcast %1881 : vector<1x256xf32> to vector<8x256xf32>
    %1886 = arith.mulf %1884, %1885 : vector<8x256xf32>
    %1887 = arith.addf %1879, %1886 : vector<8x256xf32>
    %c0_1851 = arith.constant 0 : index
    %c11_1852 = arith.constant 11 : index
    %c0_1853 = arith.constant 0 : index
    %1888 = vector.load %arg2[%c0_1851, %c11_1852, %c0_1853] : memref<1x32x256xf32, #tpu.memory_space<vmem>>, vector<1x1x256xf32>
    %1889 = vector.shape_cast %1888 : vector<1x1x256xf32> to vector<1x256xf32>
    %c0_1854 = arith.constant 0 : index
    %c0_1855 = arith.constant 0 : index
    %c11_1856 = arith.constant 11 : index
    %c56_1857 = arith.constant 56 : index
    %c0_1858 = arith.constant 0 : index
    %1890 = vector.load %arg3[%c0_1854, %c0_1855, %c11_1856, %c56_1857, %c0_1858] : memref<1x1x32x64x256xbf16, #tpu.memory_space<vmem>>, vector<1x1x1x8x256xbf16>
    %1891 = vector.shape_cast %1890 : vector<1x1x1x8x256xbf16> to vector<8x256xbf16>
    %1892 = arith.extf %1891 : vector<8x256xbf16> to vector<8x256xf32>
    %1893 = vector.broadcast %1889 : vector<1x256xf32> to vector<8x256xf32>
    %1894 = arith.mulf %1892, %1893 : vector<8x256xf32>
    %1895 = arith.addf %1887, %1894 : vector<8x256xf32>
    %c0_1859 = arith.constant 0 : index
    %c12_1860 = arith.constant 12 : index
    %c0_1861 = arith.constant 0 : index
    %1896 = vector.load %arg2[%c0_1859, %c12_1860, %c0_1861] : memref<1x32x256xf32, #tpu.memory_space<vmem>>, vector<1x1x256xf32>
    %1897 = vector.shape_cast %1896 : vector<1x1x256xf32> to vector<1x256xf32>
    %c0_1862 = arith.constant 0 : index
    %c0_1863 = arith.constant 0 : index
    %c12_1864 = arith.constant 12 : index
    %c56_1865 = arith.constant 56 : index
    %c0_1866 = arith.constant 0 : index
    %1898 = vector.load %arg3[%c0_1862, %c0_1863, %c12_1864, %c56_1865, %c0_1866] : memref<1x1x32x64x256xbf16, #tpu.memory_space<vmem>>, vector<1x1x1x8x256xbf16>
    %1899 = vector.shape_cast %1898 : vector<1x1x1x8x256xbf16> to vector<8x256xbf16>
    %1900 = arith.extf %1899 : vector<8x256xbf16> to vector<8x256xf32>
    %1901 = vector.broadcast %1897 : vector<1x256xf32> to vector<8x256xf32>
    %1902 = arith.mulf %1900, %1901 : vector<8x256xf32>
    %1903 = arith.addf %1895, %1902 : vector<8x256xf32>
    %c0_1867 = arith.constant 0 : index
    %c13_1868 = arith.constant 13 : index
    %c0_1869 = arith.constant 0 : index
    %1904 = vector.load %arg2[%c0_1867, %c13_1868, %c0_1869] : memref<1x32x256xf32, #tpu.memory_space<vmem>>, vector<1x1x256xf32>
    %1905 = vector.shape_cast %1904 : vector<1x1x256xf32> to vector<1x256xf32>
    %c0_1870 = arith.constant 0 : index
    %c0_1871 = arith.constant 0 : index
    %c13_1872 = arith.constant 13 : index
    %c56_1873 = arith.constant 56 : index
    %c0_1874 = arith.constant 0 : index
    %1906 = vector.load %arg3[%c0_1870, %c0_1871, %c13_1872, %c56_1873, %c0_1874] : memref<1x1x32x64x256xbf16, #tpu.memory_space<vmem>>, vector<1x1x1x8x256xbf16>
    %1907 = vector.shape_cast %1906 : vector<1x1x1x8x256xbf16> to vector<8x256xbf16>
    %1908 = arith.extf %1907 : vector<8x256xbf16> to vector<8x256xf32>
    %1909 = vector.broadcast %1905 : vector<1x256xf32> to vector<8x256xf32>
    %1910 = arith.mulf %1908, %1909 : vector<8x256xf32>
    %1911 = arith.addf %1903, %1910 : vector<8x256xf32>
    %c0_1875 = arith.constant 0 : index
    %c14_1876 = arith.constant 14 : index
    %c0_1877 = arith.constant 0 : index
    %1912 = vector.load %arg2[%c0_1875, %c14_1876, %c0_1877] : memref<1x32x256xf32, #tpu.memory_space<vmem>>, vector<1x1x256xf32>
    %1913 = vector.shape_cast %1912 : vector<1x1x256xf32> to vector<1x256xf32>
    %c0_1878 = arith.constant 0 : index
    %c0_1879 = arith.constant 0 : index
    %c14_1880 = arith.constant 14 : index
    %c56_1881 = arith.constant 56 : index
    %c0_1882 = arith.constant 0 : index
    %1914 = vector.load %arg3[%c0_1878, %c0_1879, %c14_1880, %c56_1881, %c0_1882] : memref<1x1x32x64x256xbf16, #tpu.memory_space<vmem>>, vector<1x1x1x8x256xbf16>
    %1915 = vector.shape_cast %1914 : vector<1x1x1x8x256xbf16> to vector<8x256xbf16>
    %1916 = arith.extf %1915 : vector<8x256xbf16> to vector<8x256xf32>
    %1917 = vector.broadcast %1913 : vector<1x256xf32> to vector<8x256xf32>
    %1918 = arith.mulf %1916, %1917 : vector<8x256xf32>
    %1919 = arith.addf %1911, %1918 : vector<8x256xf32>
    %c0_1883 = arith.constant 0 : index
    %c15_1884 = arith.constant 15 : index
    %c0_1885 = arith.constant 0 : index
    %1920 = vector.load %arg2[%c0_1883, %c15_1884, %c0_1885] : memref<1x32x256xf32, #tpu.memory_space<vmem>>, vector<1x1x256xf32>
    %1921 = vector.shape_cast %1920 : vector<1x1x256xf32> to vector<1x256xf32>
    %c0_1886 = arith.constant 0 : index
    %c0_1887 = arith.constant 0 : index
    %c15_1888 = arith.constant 15 : index
    %c56_1889 = arith.constant 56 : index
    %c0_1890 = arith.constant 0 : index
    %1922 = vector.load %arg3[%c0_1886, %c0_1887, %c15_1888, %c56_1889, %c0_1890] : memref<1x1x32x64x256xbf16, #tpu.memory_space<vmem>>, vector<1x1x1x8x256xbf16>
    %1923 = vector.shape_cast %1922 : vector<1x1x1x8x256xbf16> to vector<8x256xbf16>
    %1924 = arith.extf %1923 : vector<8x256xbf16> to vector<8x256xf32>
    %1925 = vector.broadcast %1921 : vector<1x256xf32> to vector<8x256xf32>
    %1926 = arith.mulf %1924, %1925 : vector<8x256xf32>
    %1927 = arith.addf %1919, %1926 : vector<8x256xf32>
    %c0_1891 = arith.constant 0 : index
    %c16_1892 = arith.constant 16 : index
    %c0_1893 = arith.constant 0 : index
    %1928 = vector.load %arg2[%c0_1891, %c16_1892, %c0_1893] : memref<1x32x256xf32, #tpu.memory_space<vmem>>, vector<1x1x256xf32>
    %1929 = vector.shape_cast %1928 : vector<1x1x256xf32> to vector<1x256xf32>
    %c0_1894 = arith.constant 0 : index
    %c0_1895 = arith.constant 0 : index
    %c16_1896 = arith.constant 16 : index
    %c56_1897 = arith.constant 56 : index
    %c0_1898 = arith.constant 0 : index
    %1930 = vector.load %arg3[%c0_1894, %c0_1895, %c16_1896, %c56_1897, %c0_1898] : memref<1x1x32x64x256xbf16, #tpu.memory_space<vmem>>, vector<1x1x1x8x256xbf16>
    %1931 = vector.shape_cast %1930 : vector<1x1x1x8x256xbf16> to vector<8x256xbf16>
    %1932 = arith.extf %1931 : vector<8x256xbf16> to vector<8x256xf32>
    %1933 = vector.broadcast %1929 : vector<1x256xf32> to vector<8x256xf32>
    %1934 = arith.mulf %1932, %1933 : vector<8x256xf32>
    %1935 = arith.addf %1927, %1934 : vector<8x256xf32>
    %c0_1899 = arith.constant 0 : index
    %c17_1900 = arith.constant 17 : index
    %c0_1901 = arith.constant 0 : index
    %1936 = vector.load %arg2[%c0_1899, %c17_1900, %c0_1901] : memref<1x32x256xf32, #tpu.memory_space<vmem>>, vector<1x1x256xf32>
    %1937 = vector.shape_cast %1936 : vector<1x1x256xf32> to vector<1x256xf32>
    %c0_1902 = arith.constant 0 : index
    %c0_1903 = arith.constant 0 : index
    %c17_1904 = arith.constant 17 : index
    %c56_1905 = arith.constant 56 : index
    %c0_1906 = arith.constant 0 : index
    %1938 = vector.load %arg3[%c0_1902, %c0_1903, %c17_1904, %c56_1905, %c0_1906] : memref<1x1x32x64x256xbf16, #tpu.memory_space<vmem>>, vector<1x1x1x8x256xbf16>
    %1939 = vector.shape_cast %1938 : vector<1x1x1x8x256xbf16> to vector<8x256xbf16>
    %1940 = arith.extf %1939 : vector<8x256xbf16> to vector<8x256xf32>
    %1941 = vector.broadcast %1937 : vector<1x256xf32> to vector<8x256xf32>
    %1942 = arith.mulf %1940, %1941 : vector<8x256xf32>
    %1943 = arith.addf %1935, %1942 : vector<8x256xf32>
    %c0_1907 = arith.constant 0 : index
    %c18_1908 = arith.constant 18 : index
    %c0_1909 = arith.constant 0 : index
    %1944 = vector.load %arg2[%c0_1907, %c18_1908, %c0_1909] : memref<1x32x256xf32, #tpu.memory_space<vmem>>, vector<1x1x256xf32>
    %1945 = vector.shape_cast %1944 : vector<1x1x256xf32> to vector<1x256xf32>
    %c0_1910 = arith.constant 0 : index
    %c0_1911 = arith.constant 0 : index
    %c18_1912 = arith.constant 18 : index
    %c56_1913 = arith.constant 56 : index
    %c0_1914 = arith.constant 0 : index
    %1946 = vector.load %arg3[%c0_1910, %c0_1911, %c18_1912, %c56_1913, %c0_1914] : memref<1x1x32x64x256xbf16, #tpu.memory_space<vmem>>, vector<1x1x1x8x256xbf16>
    %1947 = vector.shape_cast %1946 : vector<1x1x1x8x256xbf16> to vector<8x256xbf16>
    %1948 = arith.extf %1947 : vector<8x256xbf16> to vector<8x256xf32>
    %1949 = vector.broadcast %1945 : vector<1x256xf32> to vector<8x256xf32>
    %1950 = arith.mulf %1948, %1949 : vector<8x256xf32>
    %1951 = arith.addf %1943, %1950 : vector<8x256xf32>
    %c0_1915 = arith.constant 0 : index
    %c19_1916 = arith.constant 19 : index
    %c0_1917 = arith.constant 0 : index
    %1952 = vector.load %arg2[%c0_1915, %c19_1916, %c0_1917] : memref<1x32x256xf32, #tpu.memory_space<vmem>>, vector<1x1x256xf32>
    %1953 = vector.shape_cast %1952 : vector<1x1x256xf32> to vector<1x256xf32>
    %c0_1918 = arith.constant 0 : index
    %c0_1919 = arith.constant 0 : index
    %c19_1920 = arith.constant 19 : index
    %c56_1921 = arith.constant 56 : index
    %c0_1922 = arith.constant 0 : index
    %1954 = vector.load %arg3[%c0_1918, %c0_1919, %c19_1920, %c56_1921, %c0_1922] : memref<1x1x32x64x256xbf16, #tpu.memory_space<vmem>>, vector<1x1x1x8x256xbf16>
    %1955 = vector.shape_cast %1954 : vector<1x1x1x8x256xbf16> to vector<8x256xbf16>
    %1956 = arith.extf %1955 : vector<8x256xbf16> to vector<8x256xf32>
    %1957 = vector.broadcast %1953 : vector<1x256xf32> to vector<8x256xf32>
    %1958 = arith.mulf %1956, %1957 : vector<8x256xf32>
    %1959 = arith.addf %1951, %1958 : vector<8x256xf32>
    %c0_1923 = arith.constant 0 : index
    %c20_1924 = arith.constant 20 : index
    %c0_1925 = arith.constant 0 : index
    %1960 = vector.load %arg2[%c0_1923, %c20_1924, %c0_1925] : memref<1x32x256xf32, #tpu.memory_space<vmem>>, vector<1x1x256xf32>
    %1961 = vector.shape_cast %1960 : vector<1x1x256xf32> to vector<1x256xf32>
    %c0_1926 = arith.constant 0 : index
    %c0_1927 = arith.constant 0 : index
    %c20_1928 = arith.constant 20 : index
    %c56_1929 = arith.constant 56 : index
    %c0_1930 = arith.constant 0 : index
    %1962 = vector.load %arg3[%c0_1926, %c0_1927, %c20_1928, %c56_1929, %c0_1930] : memref<1x1x32x64x256xbf16, #tpu.memory_space<vmem>>, vector<1x1x1x8x256xbf16>
    %1963 = vector.shape_cast %1962 : vector<1x1x1x8x256xbf16> to vector<8x256xbf16>
    %1964 = arith.extf %1963 : vector<8x256xbf16> to vector<8x256xf32>
    %1965 = vector.broadcast %1961 : vector<1x256xf32> to vector<8x256xf32>
    %1966 = arith.mulf %1964, %1965 : vector<8x256xf32>
    %1967 = arith.addf %1959, %1966 : vector<8x256xf32>
    %c0_1931 = arith.constant 0 : index
    %c21_1932 = arith.constant 21 : index
    %c0_1933 = arith.constant 0 : index
    %1968 = vector.load %arg2[%c0_1931, %c21_1932, %c0_1933] : memref<1x32x256xf32, #tpu.memory_space<vmem>>, vector<1x1x256xf32>
    %1969 = vector.shape_cast %1968 : vector<1x1x256xf32> to vector<1x256xf32>
    %c0_1934 = arith.constant 0 : index
    %c0_1935 = arith.constant 0 : index
    %c21_1936 = arith.constant 21 : index
    %c56_1937 = arith.constant 56 : index
    %c0_1938 = arith.constant 0 : index
    %1970 = vector.load %arg3[%c0_1934, %c0_1935, %c21_1936, %c56_1937, %c0_1938] : memref<1x1x32x64x256xbf16, #tpu.memory_space<vmem>>, vector<1x1x1x8x256xbf16>
    %1971 = vector.shape_cast %1970 : vector<1x1x1x8x256xbf16> to vector<8x256xbf16>
    %1972 = arith.extf %1971 : vector<8x256xbf16> to vector<8x256xf32>
    %1973 = vector.broadcast %1969 : vector<1x256xf32> to vector<8x256xf32>
    %1974 = arith.mulf %1972, %1973 : vector<8x256xf32>
    %1975 = arith.addf %1967, %1974 : vector<8x256xf32>
    %c0_1939 = arith.constant 0 : index
    %c22_1940 = arith.constant 22 : index
    %c0_1941 = arith.constant 0 : index
    %1976 = vector.load %arg2[%c0_1939, %c22_1940, %c0_1941] : memref<1x32x256xf32, #tpu.memory_space<vmem>>, vector<1x1x256xf32>
    %1977 = vector.shape_cast %1976 : vector<1x1x256xf32> to vector<1x256xf32>
    %c0_1942 = arith.constant 0 : index
    %c0_1943 = arith.constant 0 : index
    %c22_1944 = arith.constant 22 : index
    %c56_1945 = arith.constant 56 : index
    %c0_1946 = arith.constant 0 : index
    %1978 = vector.load %arg3[%c0_1942, %c0_1943, %c22_1944, %c56_1945, %c0_1946] : memref<1x1x32x64x256xbf16, #tpu.memory_space<vmem>>, vector<1x1x1x8x256xbf16>
    %1979 = vector.shape_cast %1978 : vector<1x1x1x8x256xbf16> to vector<8x256xbf16>
    %1980 = arith.extf %1979 : vector<8x256xbf16> to vector<8x256xf32>
    %1981 = vector.broadcast %1977 : vector<1x256xf32> to vector<8x256xf32>
    %1982 = arith.mulf %1980, %1981 : vector<8x256xf32>
    %1983 = arith.addf %1975, %1982 : vector<8x256xf32>
    %c0_1947 = arith.constant 0 : index
    %c23_1948 = arith.constant 23 : index
    %c0_1949 = arith.constant 0 : index
    %1984 = vector.load %arg2[%c0_1947, %c23_1948, %c0_1949] : memref<1x32x256xf32, #tpu.memory_space<vmem>>, vector<1x1x256xf32>
    %1985 = vector.shape_cast %1984 : vector<1x1x256xf32> to vector<1x256xf32>
    %c0_1950 = arith.constant 0 : index
    %c0_1951 = arith.constant 0 : index
    %c23_1952 = arith.constant 23 : index
    %c56_1953 = arith.constant 56 : index
    %c0_1954 = arith.constant 0 : index
    %1986 = vector.load %arg3[%c0_1950, %c0_1951, %c23_1952, %c56_1953, %c0_1954] : memref<1x1x32x64x256xbf16, #tpu.memory_space<vmem>>, vector<1x1x1x8x256xbf16>
    %1987 = vector.shape_cast %1986 : vector<1x1x1x8x256xbf16> to vector<8x256xbf16>
    %1988 = arith.extf %1987 : vector<8x256xbf16> to vector<8x256xf32>
    %1989 = vector.broadcast %1985 : vector<1x256xf32> to vector<8x256xf32>
    %1990 = arith.mulf %1988, %1989 : vector<8x256xf32>
    %1991 = arith.addf %1983, %1990 : vector<8x256xf32>
    %c0_1955 = arith.constant 0 : index
    %c24_1956 = arith.constant 24 : index
    %c0_1957 = arith.constant 0 : index
    %1992 = vector.load %arg2[%c0_1955, %c24_1956, %c0_1957] : memref<1x32x256xf32, #tpu.memory_space<vmem>>, vector<1x1x256xf32>
    %1993 = vector.shape_cast %1992 : vector<1x1x256xf32> to vector<1x256xf32>
    %c0_1958 = arith.constant 0 : index
    %c0_1959 = arith.constant 0 : index
    %c24_1960 = arith.constant 24 : index
    %c56_1961 = arith.constant 56 : index
    %c0_1962 = arith.constant 0 : index
    %1994 = vector.load %arg3[%c0_1958, %c0_1959, %c24_1960, %c56_1961, %c0_1962] : memref<1x1x32x64x256xbf16, #tpu.memory_space<vmem>>, vector<1x1x1x8x256xbf16>
    %1995 = vector.shape_cast %1994 : vector<1x1x1x8x256xbf16> to vector<8x256xbf16>
    %1996 = arith.extf %1995 : vector<8x256xbf16> to vector<8x256xf32>
    %1997 = vector.broadcast %1993 : vector<1x256xf32> to vector<8x256xf32>
    %1998 = arith.mulf %1996, %1997 : vector<8x256xf32>
    %1999 = arith.addf %1991, %1998 : vector<8x256xf32>
    %c0_1963 = arith.constant 0 : index
    %c25_1964 = arith.constant 25 : index
    %c0_1965 = arith.constant 0 : index
    %2000 = vector.load %arg2[%c0_1963, %c25_1964, %c0_1965] : memref<1x32x256xf32, #tpu.memory_space<vmem>>, vector<1x1x256xf32>
    %2001 = vector.shape_cast %2000 : vector<1x1x256xf32> to vector<1x256xf32>
    %c0_1966 = arith.constant 0 : index
    %c0_1967 = arith.constant 0 : index
    %c25_1968 = arith.constant 25 : index
    %c56_1969 = arith.constant 56 : index
    %c0_1970 = arith.constant 0 : index
    %2002 = vector.load %arg3[%c0_1966, %c0_1967, %c25_1968, %c56_1969, %c0_1970] : memref<1x1x32x64x256xbf16, #tpu.memory_space<vmem>>, vector<1x1x1x8x256xbf16>
    %2003 = vector.shape_cast %2002 : vector<1x1x1x8x256xbf16> to vector<8x256xbf16>
    %2004 = arith.extf %2003 : vector<8x256xbf16> to vector<8x256xf32>
    %2005 = vector.broadcast %2001 : vector<1x256xf32> to vector<8x256xf32>
    %2006 = arith.mulf %2004, %2005 : vector<8x256xf32>
    %2007 = arith.addf %1999, %2006 : vector<8x256xf32>
    %c0_1971 = arith.constant 0 : index
    %c26_1972 = arith.constant 26 : index
    %c0_1973 = arith.constant 0 : index
    %2008 = vector.load %arg2[%c0_1971, %c26_1972, %c0_1973] : memref<1x32x256xf32, #tpu.memory_space<vmem>>, vector<1x1x256xf32>
    %2009 = vector.shape_cast %2008 : vector<1x1x256xf32> to vector<1x256xf32>
    %c0_1974 = arith.constant 0 : index
    %c0_1975 = arith.constant 0 : index
    %c26_1976 = arith.constant 26 : index
    %c56_1977 = arith.constant 56 : index
    %c0_1978 = arith.constant 0 : index
    %2010 = vector.load %arg3[%c0_1974, %c0_1975, %c26_1976, %c56_1977, %c0_1978] : memref<1x1x32x64x256xbf16, #tpu.memory_space<vmem>>, vector<1x1x1x8x256xbf16>
    %2011 = vector.shape_cast %2010 : vector<1x1x1x8x256xbf16> to vector<8x256xbf16>
    %2012 = arith.extf %2011 : vector<8x256xbf16> to vector<8x256xf32>
    %2013 = vector.broadcast %2009 : vector<1x256xf32> to vector<8x256xf32>
    %2014 = arith.mulf %2012, %2013 : vector<8x256xf32>
    %2015 = arith.addf %2007, %2014 : vector<8x256xf32>
    %c0_1979 = arith.constant 0 : index
    %c27_1980 = arith.constant 27 : index
    %c0_1981 = arith.constant 0 : index
    %2016 = vector.load %arg2[%c0_1979, %c27_1980, %c0_1981] : memref<1x32x256xf32, #tpu.memory_space<vmem>>, vector<1x1x256xf32>
    %2017 = vector.shape_cast %2016 : vector<1x1x256xf32> to vector<1x256xf32>
    %c0_1982 = arith.constant 0 : index
    %c0_1983 = arith.constant 0 : index
    %c27_1984 = arith.constant 27 : index
    %c56_1985 = arith.constant 56 : index
    %c0_1986 = arith.constant 0 : index
    %2018 = vector.load %arg3[%c0_1982, %c0_1983, %c27_1984, %c56_1985, %c0_1986] : memref<1x1x32x64x256xbf16, #tpu.memory_space<vmem>>, vector<1x1x1x8x256xbf16>
    %2019 = vector.shape_cast %2018 : vector<1x1x1x8x256xbf16> to vector<8x256xbf16>
    %2020 = arith.extf %2019 : vector<8x256xbf16> to vector<8x256xf32>
    %2021 = vector.broadcast %2017 : vector<1x256xf32> to vector<8x256xf32>
    %2022 = arith.mulf %2020, %2021 : vector<8x256xf32>
    %2023 = arith.addf %2015, %2022 : vector<8x256xf32>
    %c0_1987 = arith.constant 0 : index
    %c28_1988 = arith.constant 28 : index
    %c0_1989 = arith.constant 0 : index
    %2024 = vector.load %arg2[%c0_1987, %c28_1988, %c0_1989] : memref<1x32x256xf32, #tpu.memory_space<vmem>>, vector<1x1x256xf32>
    %2025 = vector.shape_cast %2024 : vector<1x1x256xf32> to vector<1x256xf32>
    %c0_1990 = arith.constant 0 : index
    %c0_1991 = arith.constant 0 : index
    %c28_1992 = arith.constant 28 : index
    %c56_1993 = arith.constant 56 : index
    %c0_1994 = arith.constant 0 : index
    %2026 = vector.load %arg3[%c0_1990, %c0_1991, %c28_1992, %c56_1993, %c0_1994] : memref<1x1x32x64x256xbf16, #tpu.memory_space<vmem>>, vector<1x1x1x8x256xbf16>
    %2027 = vector.shape_cast %2026 : vector<1x1x1x8x256xbf16> to vector<8x256xbf16>
    %2028 = arith.extf %2027 : vector<8x256xbf16> to vector<8x256xf32>
    %2029 = vector.broadcast %2025 : vector<1x256xf32> to vector<8x256xf32>
    %2030 = arith.mulf %2028, %2029 : vector<8x256xf32>
    %2031 = arith.addf %2023, %2030 : vector<8x256xf32>
    %c0_1995 = arith.constant 0 : index
    %c29_1996 = arith.constant 29 : index
    %c0_1997 = arith.constant 0 : index
    %2032 = vector.load %arg2[%c0_1995, %c29_1996, %c0_1997] : memref<1x32x256xf32, #tpu.memory_space<vmem>>, vector<1x1x256xf32>
    %2033 = vector.shape_cast %2032 : vector<1x1x256xf32> to vector<1x256xf32>
    %c0_1998 = arith.constant 0 : index
    %c0_1999 = arith.constant 0 : index
    %c29_2000 = arith.constant 29 : index
    %c56_2001 = arith.constant 56 : index
    %c0_2002 = arith.constant 0 : index
    %2034 = vector.load %arg3[%c0_1998, %c0_1999, %c29_2000, %c56_2001, %c0_2002] : memref<1x1x32x64x256xbf16, #tpu.memory_space<vmem>>, vector<1x1x1x8x256xbf16>
    %2035 = vector.shape_cast %2034 : vector<1x1x1x8x256xbf16> to vector<8x256xbf16>
    %2036 = arith.extf %2035 : vector<8x256xbf16> to vector<8x256xf32>
    %2037 = vector.broadcast %2033 : vector<1x256xf32> to vector<8x256xf32>
    %2038 = arith.mulf %2036, %2037 : vector<8x256xf32>
    %2039 = arith.addf %2031, %2038 : vector<8x256xf32>
    %c0_2003 = arith.constant 0 : index
    %c30_2004 = arith.constant 30 : index
    %c0_2005 = arith.constant 0 : index
    %2040 = vector.load %arg2[%c0_2003, %c30_2004, %c0_2005] : memref<1x32x256xf32, #tpu.memory_space<vmem>>, vector<1x1x256xf32>
    %2041 = vector.shape_cast %2040 : vector<1x1x256xf32> to vector<1x256xf32>
    %c0_2006 = arith.constant 0 : index
    %c0_2007 = arith.constant 0 : index
    %c30_2008 = arith.constant 30 : index
    %c56_2009 = arith.constant 56 : index
    %c0_2010 = arith.constant 0 : index
    %2042 = vector.load %arg3[%c0_2006, %c0_2007, %c30_2008, %c56_2009, %c0_2010] : memref<1x1x32x64x256xbf16, #tpu.memory_space<vmem>>, vector<1x1x1x8x256xbf16>
    %2043 = vector.shape_cast %2042 : vector<1x1x1x8x256xbf16> to vector<8x256xbf16>
    %2044 = arith.extf %2043 : vector<8x256xbf16> to vector<8x256xf32>
    %2045 = vector.broadcast %2041 : vector<1x256xf32> to vector<8x256xf32>
    %2046 = arith.mulf %2044, %2045 : vector<8x256xf32>
    %2047 = arith.addf %2039, %2046 : vector<8x256xf32>
    %c0_2011 = arith.constant 0 : index
    %c31_2012 = arith.constant 31 : index
    %c0_2013 = arith.constant 0 : index
    %2048 = vector.load %arg2[%c0_2011, %c31_2012, %c0_2013] : memref<1x32x256xf32, #tpu.memory_space<vmem>>, vector<1x1x256xf32>
    %2049 = vector.shape_cast %2048 : vector<1x1x256xf32> to vector<1x256xf32>
    %c0_2014 = arith.constant 0 : index
    %c0_2015 = arith.constant 0 : index
    %c31_2016 = arith.constant 31 : index
    %c56_2017 = arith.constant 56 : index
    %c0_2018 = arith.constant 0 : index
    %2050 = vector.load %arg3[%c0_2014, %c0_2015, %c31_2016, %c56_2017, %c0_2018] : memref<1x1x32x64x256xbf16, #tpu.memory_space<vmem>>, vector<1x1x1x8x256xbf16>
    %2051 = vector.shape_cast %2050 : vector<1x1x1x8x256xbf16> to vector<8x256xbf16>
    %2052 = arith.extf %2051 : vector<8x256xbf16> to vector<8x256xf32>
    %2053 = vector.broadcast %2049 : vector<1x256xf32> to vector<8x256xf32>
    %2054 = arith.mulf %2052, %2053 : vector<8x256xf32>
    %2055 = arith.addf %2047, %2054 : vector<8x256xf32>
    %2056 = tpu.concatenate %256, %513, %770, %1027, %1284, %1541, %1798, %2055 in 0 : vector<8x256xf32>, vector<8x256xf32>, vector<8x256xf32>, vector<8x256xf32>, vector<8x256xf32>, vector<8x256xf32>, vector<8x256xf32>, vector<8x256xf32> -> vector<64x256xf32>
    %c0_2019 = arith.constant 0 : index
    %c0_2020 = arith.constant 0 : index
    %2057 = vector.load %arg4[%c0_2019, %c0_2020] : memref<64x64xf32, #tpu.memory_space<vmem>>, vector<64x64xf32>
    %cst_2021 = arith.constant dense<0.000000e+00> : vector<64x256xf32>
    %2058 = tpu.matmul %2057, %2056, %cst_2021 {dimension_numbers = #tpu.dot_dimension_numbers<[1], [0], [0], [1], [0, 0, 1, 1], [], []>} : vector<64x64xf32>, vector<64x256xf32>, vector<64x256xf32> -> vector<64x256xf32>
    %c0_2022 = arith.constant 0 : index
    %c0_2023 = arith.constant 0 : index
    %2059 = vector.load %arg5[%c0_2022, %c0_2023] : memref<64x1xf32, #tpu.memory_space<vmem>>, vector<64x1xf32>
    %2060 = vector.broadcast %2059 : vector<64x1xf32> to vector<64x256xf32>
    %2061 = arith.addf %2058, %2060 : vector<64x256xf32>
    %cst_2024 = arith.constant 0.000000e+00 : f32
    %2062 = vector.broadcast %cst_2024 : f32 to vector<64x256xf32>
    %2063 = arith.maximumf %2061, %2062 : vector<64x256xf32>
    %c0_2025 = arith.constant 0 : index
    %c0_2026 = arith.constant 0 : index
    %2064 = vector.load %arg6[%c0_2025, %c0_2026] : memref<1x64xf32, #tpu.memory_space<vmem>>, vector<1x64xf32>
    %cst_2027 = arith.constant dense<0.000000e+00> : vector<1x256xf32>
    %2065 = tpu.matmul %2064, %2063, %cst_2027 {dimension_numbers = #tpu.dot_dimension_numbers<[1], [0], [0], [1], [0, 0, 1, 1], [], []>} : vector<1x64xf32>, vector<64x256xf32>, vector<1x256xf32> -> vector<1x256xf32>
    %c0_2028 = arith.constant 0 : index
    %c0_2029 = arith.constant 0 : index
    %2066 = vector.load %arg7[%c0_2028, %c0_2029] : memref<1x1xf32, #tpu.memory_space<vmem>>, vector<1x1xf32>
    %2067 = vector.broadcast %2066 : vector<1x1xf32> to vector<1x256xf32>
    %2068 = arith.addf %2065, %2067 : vector<1x256xf32>
    %2069 = arith.negf %2068 : vector<1x256xf32>
    %2070 = math.exp %2069 : vector<1x256xf32>
    %cst_2030 = arith.constant 1.000000e+00 : f32
    %2071 = vector.broadcast %cst_2030 : f32 to vector<1x256xf32>
    %2072 = arith.addf %2071, %2070 : vector<1x256xf32>
    %2073 = arith.divf %2071, %2072 : vector<1x256xf32>
    %cst_2031 = arith.constant 1.900000e+00 : f32
    %2074 = vector.broadcast %cst_2031 : f32 to vector<1x256xf32>
    %2075 = arith.mulf %2074, %2073 : vector<1x256xf32>
    %cst_2032 = arith.constant 1.000000e-01 : f32
    %2076 = vector.broadcast %cst_2032 : f32 to vector<1x256xf32>
    %2077 = arith.addf %2076, %2075 : vector<1x256xf32>
    %2078 = tpu.reciprocal %2077 : vector<1x256xf32> -> vector<1x256xf32>
    %c0_2033 = arith.constant 0 : index
    %c0_2034 = arith.constant 0 : index
    %c0_2035 = arith.constant 0 : index
    %2079 = vector.load %arg8[%c0_2033, %c0_2034, %c0_2035] : memref<1x1x256xf32, #tpu.memory_space<vmem>>, vector<1x1x256xf32>
    %2080 = vector.shape_cast %2079 : vector<1x1x256xf32> to vector<1x256xf32>
    %2081 = vector.shape_cast %2078 : vector<1x256xf32> to vector<1x1x256xf32>
    tpu.vector_store %arg8[%c0_2033, %c0_2034, %c0_2035], %2081 {strides = array<i32>} : memref<1x1x256xf32, #tpu.memory_space<vmem>>, vector<1x1x256xf32>,
    %c0_2036 = arith.constant 0 : index
    %c0_2037 = arith.constant 0 : index
    %c0_2038 = arith.constant 0 : index
    %2082 = vector.load %arg9[%c0_2036, %c0_2037, %c0_2038] : memref<1x1x256xf32, #tpu.memory_space<vmem>>, vector<1x1x256xf32>
    %2083 = vector.shape_cast %2082 : vector<1x1x256xf32> to vector<1x256xf32>
    %2084 = vector.shape_cast %2077 : vector<1x256xf32> to vector<1x1x256xf32>
    tpu.vector_store %arg9[%c0_2036, %c0_2037, %c0_2038], %2084 {strides = array<i32>} : memref<1x1x256xf32, #tpu.memory_space<vmem>>, vector<1x1x256xf32>,
    return
  }
  func.func @transform_0(%arg0: i32, %arg1: i32) -> (i32, i32, i32) {
    %c0_i32 = arith.constant 0 : i32
    %c0_i32_0 = arith.constant 0 : i32
    return %arg0, %c0_i32, %arg1 : i32, i32, i32
  }
  func.func @transform_1(%arg0: i32, %arg1: i32) -> (i32, i32, i32, i32, i32) {
    %c0_i32 = arith.constant 0 : i32
    %c0_i32_0 = arith.constant 0 : i32
    %c0_i32_1 = arith.constant 0 : i32
    %c0_i32_2 = arith.constant 0 : i32
    return %arg0, %c0_i32, %c0_i32_0, %c0_i32_1, %arg1 : i32, i32, i32, i32, i32
  }
  func.func @transform_2(%arg0: i32, %arg1: i32) -> (i32, i32) {
    %c0_i32 = arith.constant 0 : i32
    %c0_i32_0 = arith.constant 0 : i32
    %c0_i32_1 = arith.constant 0 : i32
    return %c0_i32, %c0_i32_0 : i32, i32
  }
  func.func @transform_3(%arg0: i32, %arg1: i32) -> (i32, i32) {
    %c0_i32 = arith.constant 0 : i32
    %c0_i32_0 = arith.constant 0 : i32
    %c0_i32_1 = arith.constant 0 : i32
    return %c0_i32, %c0_i32_0 : i32, i32
  }
  func.func @transform_4(%arg0: i32, %arg1: i32) -> (i32, i32) {
    %c0_i32 = arith.constant 0 : i32
    %c0_i32_0 = arith.constant 0 : i32
    %c0_i32_1 = arith.constant 0 : i32
    return %c0_i32, %c0_i32_0 : i32, i32
  }
  func.func @transform_5(%arg0: i32, %arg1: i32) -> (i32, i32) {
    %c0_i32 = arith.constant 0 : i32
    %c0_i32_0 = arith.constant 0 : i32
    %c0_i32_1 = arith.constant 0 : i32
    return %c0_i32, %c0_i32_0 : i32, i32
  }
  func.func @transform_6(%arg0: i32, %arg1: i32) -> (i32, i32, i32) {
    %c0_i32 = arith.constant 0 : i32
    %c0_i32_0 = arith.constant 0 : i32
    return %arg0, %c0_i32, %arg1 : i32, i32, i32
  }
  func.func @transform_7(%arg0: i32, %arg1: i32) -> (i32, i32, i32) {
    %c0_i32 = arith.constant 0 : i32
    %c0_i32_0 = arith.constant 0 : i32
    return %arg0, %c0_i32, %arg1 : i32, i32, i32
  }
}

</mosaic_0001>

<bundles_post_ra>
// kernel: tpu_custom_call.1
= control target key start
LH: loop header
LB: loop body
LE: loop exit
PB: predicated region body
PF: predicated region fallthrough
CT: control target
= control target key end

     0   :  { %s6733_s0 = inlined_call_operand.hbm [shape: f32[2,32,256], index: 0, kind: input, shape index: {}]   ;;  %s6734_s1 = inlined_call_operand.hbm [shape: bf16[2,1,32,64,256], index: 1, kind: input, shape index: {}]   ;;  %s6735_s2 = inlined_call_operand.hbm [shape: f32[64,64], index: 2, kind: input, shape index: {}]   ;;  %s6736_s3 = inlined_call_operand.vmem [shape: f32[64,1], index: 3, kind: input, shape index: {}]   ;;  %s6737_s4 = inlined_call_operand.hbm [shape: f32[1,64], index: 4, kind: input, shape index: {}]   ;;  %s6738_s5 = inlined_call_operand.<no memory space> [shape: f32[1,1], index: 5, kind: input, shape index: {}]   ;;  %s6739_s6 = inlined_call_operand.hbm [shape: f32[2,1,256], index: 6, kind: output, shape index: {0}]   ;;  %s6740_s7 = inlined_call_operand.hbm [shape: f32[2,1,256], index: 7, kind: output, shape index: {1}]  }
   0x1   :  { %7212 = sst [smem:[#allocation132_spill]] %s6733_s0  ;;  %v13_v0 = vstv %s6738_s5 }
   0x2   :  { %7213 = sst [smem:[#allocation133_spill]] %s6735_s2  ;;  %14 = vst [vmem:[#allocation2] sm:$0x1] %v13_v0 }
   0x3   :  { %7214 = sst [smem:[#allocation134_spill]] %s6737_s4 }
   0x4   :  { %15 = vsyncpa [#allocation4], 0 }
   0x5   :  { %17 = vsyncpa [#allocation4 + $0x1], 0 }
   0x6   :  { %18 = vsyncpa [#allocation7], 0 }
   0x7   :  { %20 = vsyncpa [#allocation7 + $0x1], 0 }
   0x8   :  { %21 = vsyncpa [#allocation10], 0 }
   0x9   :  { %22 = vsyncpa [#allocation5], 0 }
   0xa   :  { %24 = vsyncpa [#allocation5 + $0x1], 0 }
   0xb   :  { %25 = vsyncpa [#allocation13], 0 }
   0xc   :  { %27 = vsyncpa [#allocation13 + $0x1], 0  ;;  %s3967_s26 = smov 0   ;;  %s3969_s27 = smov 0  }
   0xd   :  { %s3971_s28 = smov 0   ;;  %s3973_s29 = smov 0  }
   0xe   :  { %s3975_s30 = smov 0   ;;  %s3977_s5 = smov 0  }
   0xf LB: > { %7215 = sst [smem:[#allocation20_spill]] %s3897_s28  ;;  %s3998_s8 = sadd.s32 4294967295, %s3909_s5   ;;  %s3909_s5 = sphi %s3977_s5, %s33_s5   ;;  %s3905_s30 = sphi %s3975_s30, %s7932_s30   ;;  %s3901_s29 = sphi %s3973_s29, %s7931_s29   ;;  %s3897_s28 = sphi %s3971_s28, %s7927_s28   ;;  %s3893_s27 = sphi %s3969_s27, %s7930_s27   ;;  %s3889_s26 = sphi %s3967_s26, %s7929_s26  }
  0x10   : > { %s3201_s9 = sadd.s32 4294967294, %s3909_s5   ;;  %p67_p0 = scmp.ne.s32.totalorder %s3893_s27, %s3889_s26 }
  0x11   : > { %p6741_p1 = scmp.eq.s32.totalorder %s3998_s8, 0  ;;  %p211_p3 = scmp.eq.s32.totalorder %s3201_s9, 1 }
  0x12   : > { %p3202_p5 = scmp.ge.s32.totalorder %s3909_s5, 1  ;;  %p246_p7 = scmp.lt.s32.totalorder %s3909_s5, 3 }
  0x13   : > { %p4007_p4 = por %p6741_p1, %p67_p0  ;;  %p4012_p6 = por %p211_p3, %p67_p0 }
  0x14   : > { %p4017_p8 = pnand %p3202_p5, %p246_p7  ;;  %s3911_s13 = smov [#allocation8]  }
  0x15   : > { %s7216_s10 = scalar_select %p4007_p4, 1, 0 }
  0x16   : > { %s7217_s11 = scalar_select %p4012_p6, 1, 0 }
  0x17   : > { %s258_s14 = sshll.u32 %s3911_s13, 4  ;;  %p3569_p9 = pneg %p4017_p8  ;;  %s4021_s14 = int_to_ptr.vmem [resolvable:$true] %s258_s14 }
  0x18   : > { %s3912_s16 = smov [#allocation9]   ;;  %s7220_s2 = sld [smem:[#allocation133_spill]] }
  0x19   : > { %p4028_p11 = pnand %p3569_p9, %p6741_p1  ;;  %s275_s17 = sshll.u32 %s3912_s16, 4  ;;  %s4032_s17 = int_to_ptr.vmem [resolvable:$true] %s275_s17 }
  0x1b   : > { %p3669_p13 = pneg %p4028_p11 }
  0x1e   : > { %s3667_s20 = scalar_lea.hbm %s7220_s2, 1024 }
  0x1f   : > { %p3668_p12 = scmp.ne.s32.totalorder %s7220_s2, %s3667_s20  ;;  %p3674_p5 = scmp.lt.u32.totalorder %s3667_s20, %s7220_s2 }
  0x21   : > { %p3670_p0 = pnand %p3669_p13, %p3668_p12 }
  0x23   : > { %p3671_p3 = pneg %p3670_p0 }
  0x25   : > { %p3676_p7 = pnand %p3674_p5, %p3671_p3 }
  0x27   : > { %3679 = shalt.err (!%p3676_p7)
}
  0x28   : > { %s3680_s25 = scalar_lea.vmem %s4021_s14, 1024  ;;  %p3688_p2 = scmp.lt.s32.totalorder %s4021_s14, %s4021_s14 }
  0x29   : > { %p3681_p9 = scmp.ne.s32.totalorder %s4021_s14, %s3680_s25  ;;  %p3689_p12 = scmp.lt.s32.totalorder %s3680_s25, %s3680_s25 }
  0x2b   : > { %p3683_p10 = pnand %p3681_p9, %p3669_p13  ;;  %p3690_p0 = por %p3689_p12, %p3688_p2 }
  0x2d   : > { %p3684_p1 = pneg %p3683_p10 }
  0x2f   : > { %p3691_p6 = pnand %p3690_p0, %p3684_p1 }
  0x31   : > { %3694 = shalt.err (!%p3691_p6)
}
  0x32   : > { %s6742_s9 = smov 128   ;;  %s6743_s13 = smov 8  }
  0x33   : > { %3572 = dma.hbm_to_vmem [thread:$0]  (!%p4028_p11), %s7220_s2, 1024, %s4021_s14, [#allocation7], %s6742_s9, %s6742_s9, %s6743_s13  }
  0x34   : > { %s7221_s4 = sld [smem:[#allocation134_spill]] }
  0x3a   : > { %s3695_s21 = scalar_lea.hbm %s7221_s4, 16 }
  0x3b   : > { %p3696_p1 = scmp.ne.s32.totalorder %s7221_s4, %s3695_s21  ;;  %p3702_p10 = scmp.lt.u32.totalorder %s3695_s21, %s7221_s4 }
  0x3d   : > { %p3698_p2 = pnand %p3696_p1, %p3669_p13 }
  0x3f   : > { %p3699_p6 = pneg %p3698_p2 }
  0x41   : > { %p3704_p3 = pnand %p3702_p10, %p3699_p6 }
  0x43   : > { %3707 = shalt.err (!%p3704_p3)
}
  0x44   : > { %s3708_s14 = scalar_lea.vmem %s4032_s17, 16  ;;  %s3715_s16 = scalar_lea.vmem %s4032_s17, 32 }
  0x45   : > { %p3709_p5 = scmp.ne.s32.totalorder %s4032_s17, %s3708_s14  ;;  %p3716_p12 = scmp.lt.s32.totalorder %s4032_s17, %s4032_s17 }
  0x46   : > { %p3717_p0 = scmp.lt.s32.totalorder %s3715_s16, %s3708_s14 }
  0x47   : > { %p3711_p7 = pnand %p3709_p5, %p3669_p13 }
  0x48   : > { %p3718_p1 = por %p3717_p0, %p3716_p12 }
  0x49   : > { %p3712_p9 = pneg %p3711_p7 }
  0x4b   : > { %p3719_p2 = pnand %p3718_p1, %p3712_p9 }
  0x4d   : > { %3722 = shalt.err (!%p3719_p2)
}
  0x4e   : > { %3575 = dma.hbm_to_vmem [thread:$0]  (!%p4028_p11), %s7221_s4, 16, %s4032_s17, [#allocation10]  }
  0x4f   : > { %s45_s20 = sadd.s32 1, %s3905_s30  ;;  %s54_s21 = sadd.s32 1, %s3897_s28 }
  0x50   : > { %p47_p13 = scmp.ge.s32.totalorder %s45_s20, 2  ;;  %p61_p6 = scmp.ne.s32.totalorder %s3897_s28, %s3893_s27 }
  0x51   : > { %p62_p10 = scmp.eq.s32.totalorder %s3909_s5, 0  ;;  %p3592_p3 = scmp.lt.s32.totalorder %s3909_s5, 2 }
  0x52   : > { %s7934_s20 = smov (%p47_p13, %s45_s20), 0  ;;  %p7223_p7 = scmp.eq.s32.totalorder %s3998_s8, 1 }
  0x53   : > { %7222 = sst [smem:[#allocation21_spill]] %s7934_s20  ;;  %p63_p5 = por %p62_p10, %p61_p6 }
  0x54   : > { %p4100_p9 = por %p7223_p7, %p61_p6  ;;  %s49_s22 = ssub.s32 %s3905_s30, %s7934_s20 }
  0x55   : > { %s4107_s23 = sand.u32 1, %s3897_s28   ;;  %p52_p11 = scmp.eq.s32.totalorder %s49_s22, 0 }
  0x56   : > { %s7224_s15 = scalar_select %p4100_p9, 1, 0 }
  0x57   : > { %s3206_s17 = sshll.u32 %s4107_s23, 6  ;;  %s3517_s24 = sshll.u32 %s3905_s30, 10 }
  0x58   : > { %s4112_s25 = scalar_select %p52_p11, %s3897_s28, %s54_s21  }
  0x59   : > { %s7226_s0 = sld [smem:[#allocation132_spill]]  ;;  %s293_s19 = scalar_lea.vmem [#allocation3], %s3206_s17 }
  0x5a   : > { %7225 = sst [smem:[#allocation22_spill]] %s4112_s25  ;;  %s302_s9 = sshll.u32 %s293_s19, 4  ;;  %s4125_s9 = int_to_ptr.vmem [resolvable:$true] %s302_s9 }
  0x5b   : > { %p4121_p12 = pnand %p3592_p3, %p63_p5 }
  0x5d   : > { %p3725_p1 = pneg %p4121_p12 }
  0x5f   : > { %s4117_s18 = scalar_lea.hbm %s7226_s0, %s3517_s24  ;;  %s3728_s14 = scalar_lea.hbm %s7226_s0, 2048 }
  0x60   : > { %s3723_s22 = scalar_lea.hbm %s4117_s18, 1024  ;;  %p3729_p6 = scmp.lt.u32.totalorder %s4117_s18, %s7226_s0 }
  0x61   : > { %p3724_p0 = scmp.ne.s32.totalorder %s4117_s18, %s3723_s22  ;;  %p3730_p10 = scmp.lt.u32.totalorder %s3728_s14, %s3723_s22 }
  0x62   : > { %p3732_p5 = scmp.lt.u32.totalorder %s3723_s22, %s4117_s18 }
  0x63   : > { %p3726_p2 = pnand %p3725_p1, %p3724_p0  ;;  %p3731_p3 = por %p3730_p10, %p3729_p6 }
  0x65   : > { %p3727_p13 = pneg %p3726_p2  ;;  %p3733_p7 = por %p3732_p5, %p3731_p3 }
  0x67   : > { %p3734_p11 = pnand %p3733_p7, %p3727_p13 }
  0x69   : > { %3737 = shalt.err (!%p3734_p11)
}
  0x6a   : > { %s3738_s21 = scalar_lea.vmem %s4125_s9, 1024  ;;  %s3915_s17 = smov [#allocation3]  }
  0x6b   : > { %p3739_p0 = scmp.ne.s32.totalorder %s4125_s9, %s3738_s21  ;;  %s3743_s24 = sshll.u32 %s3915_s17, 4  ;;  %s3744_s24 = int_to_ptr.vmem [resolvable:$false] %s3743_s24 }
  0x6c   : > { %s3745_s16 = scalar_lea.vmem %s3744_s24, 2048  ;;  %p3746_p4 = scmp.lt.s32.totalorder %s4125_s9, %s3744_s24 }
  0x6d   : > { %p3741_p2 = pnand %p3739_p0, %p3725_p1  ;;  %p3747_p6 = scmp.lt.s32.totalorder %s3745_s16, %s3738_s21 }
  0x6f   : > { %p3742_p9 = pneg %p3741_p2  ;;  %p3748_p10 = por %p3747_p6, %p3746_p4 }
  0x71   : > { %p3749_p3 = pnand %p3748_p10, %p3742_p9 }
  0x73   : > { %3752 = shalt.err (!%p3749_p3)
}
  0x74   : > { %s3916_s22 = smov 256   ;;  %s3917_s14 = smov 16  }
  0x75   : > { %s7228_s19 = scalar_lea.sflag [#allocation4], %s4107_s23  ;;  %s312_s17 = sand.u32 1, %s3909_s5  }
  0x76   : > { %3579 = dma.hbm_to_vmem [thread:$0]  (!%p4121_p12), %s4117_s18, 1024, %s4125_s9, %s7228_s19, %s3916_s22, %s3916_s22, %s3917_s14  }
  0x77   : > { %s3209_s0 = sshll.u32 %s4107_s23, 11  ;;  %s3518_s24 = sshll.u32 %s3905_s30, 15 }
  0x78   : > { %s316_s21 = scalar_lea.vmem [#allocation6], %s3209_s0  ;;  %s4161_s20 = scalar_lea.hbm %s6734_s1, %s3518_s24 }
  0x79   : > { %s325_s16 = sshll.u32 %s316_s21, 4  ;;  %s4165_s25 = scalar_lea.sflag [#allocation7], %s312_s17  ;;  %s4163_s16 = int_to_ptr.vmem [resolvable:$true] %s325_s16 }
  0x7a   : > { %s3753_s28 = scalar_lea.hbm %s4161_s20, 32768  ;;  %s3758_s2 = scalar_lea.hbm %s6734_s1, 65536 }
  0x7b   : > { %p3754_p4 = scmp.ne.s32.totalorder %s4161_s20, %s3753_s28  ;;  %p3759_p5 = scmp.lt.u32.totalorder %s4161_s20, %s6734_s1 }
  0x7c   : > { %p3760_p7 = scmp.lt.u32.totalorder %s3758_s2, %s3753_s28  ;;  %p3762_p0 = scmp.lt.u32.totalorder %s3753_s28, %s4161_s20 }
  0x7d   : > { %p3756_p9 = pnand %p3754_p4, %p3725_p1 }
  0x7e   : > { %p3761_p11 = por %p3760_p7, %p3759_p5 }
  0x7f   : > { %p3757_p13 = pneg %p3756_p9 }
  0x80   : > { %p3763_p2 = por %p3762_p0, %p3761_p11 }
  0x82   : > { %p3764_p6 = pnand %p3763_p2, %p3757_p13 }
  0x84   : > { %3767 = shalt.err (!%p3764_p6)
}
  0x85   : > { %s3768_s18 = scalar_lea.vmem %s4163_s16, 32768  ;;  %s3918_s22 = smov [#allocation6]  }
  0x86   : > { %p3769_p10 = scmp.ne.s32.totalorder %s4163_s16, %s3768_s18  ;;  %s3773_s14 = sshll.u32 %s3918_s22, 4  ;;  %s3774_s14 = int_to_ptr.vmem [resolvable:$false] %s3773_s14 }
  0x87   : > { %s3775_s19 = scalar_lea.vmem %s3774_s14, 65536  ;;  %p3776_p9 = scmp.lt.s32.totalorder %s4163_s16, %s3774_s14 }
  0x88   : > { %p3771_p3 = pnand %p3769_p10, %p3725_p1  ;;  %p3777_p5 = scmp.lt.s32.totalorder %s3775_s19, %s3768_s18 }
  0x8a   : > { %p3772_p4 = pneg %p3771_p3  ;;  %p3778_p7 = por %p3777_p5, %p3776_p9 }
  0x8c   : > { %p3779_p11 = pnand %p3778_p7, %p3772_p4 }
  0x8e   : > { %3782 = shalt.err (!%p3779_p11)
}
  0x8f   : > { %s7229_s28 = smov 8   ;;  %s7230_s17 = smov 128  }
  0x90   : > { %3582 = dma.hbm_to_vmem [thread:$0]  (!%p4121_p12), %s4161_s20, 32768, %s4163_s16, %s4165_s25, %s7230_s17, %s7230_s17, %s7229_s28  }
  0x91   : > { %337 = sbr.rel (%p4017_p8) target bundleno = 1147 (0x47b), region = 44 }
  0x98   : > { %s4197_s24 = sand.u32 1, %s3893_s27   ;;  %p7231_p1 = scmp.ne.s32.totalorder %s7216_s10, 0 }
  0x99   : > { %s3213_s21 = sshll.u32 %s4197_s24, 6  ;;  %s340_s0 = scalar_lea.sflag [#allocation4], %s4197_s24 }
  0x9a   : > { %s4201_s9 = scalar_lea.vmem [#allocation3], %s3213_s21 }
  0x9b   : > { %3864 = dma.done.wait (%p7231_p1), %s340_s0, 1024  }
  0x9c   : > { %3866 = vsyncadd (%p7231_p1), %s340_s0, 4294966272  ;;  %s348_s12 = sand.u32 1, %s3998_s8   ;;  %s3214_s13 = sshll.u32 %s4197_s24, 11 }
  0x9d   : > { %s349_s20 = scalar_lea.sflag [#allocation7], %s348_s12  ;;  %s4209_s25 = scalar_lea.vmem [#allocation6], %s3214_s13 }
  0x9e   : > { %3868 = dma.done.wait (%p7231_p1), %s349_s20, 32768  }
  0x9f   : > { %3870 = vsyncadd (%p7231_p1), %s349_s20, 4294934528  ;;  %p7232_p8 = scmp.eq.s32.totalorder %s3998_s8, 0 }
  0xa1   : > { %3872 = dma.done.wait (%p7232_p8), [#allocation7], 1024   ;;  %p7233_p12 = pmov %p7232_p8 }
  0xa2   : > { %p7234_p13 = pmov %p7232_p8 }
  0xa3   : > { %3874 = vsyncadd (%p7233_p12), [#allocation7], 4294966272 }
  0xa4   : > { %3876 = dma.done.wait (%p7234_p13), [#allocation10], 16   ;;  %p7235_p0 = pmov %p7232_p8 }
  0xa5   : > { %v6748_v1 = vlaneseq  ;;  %v4230_v4 = vld [vmem:[%s4201_s9] ss:$8 sm:$0x3]  ;;  %v4244_v9 = vld [vmem:[%s4201_s9 + $0x1] ss:$8 sm:$0x3] }
  0xa6   : > { %3878 = vsyncadd (%p7235_p0), [#allocation10], 4294967280  ;;  %v4233_v5 = vld [vmem:[%s4209_s25] sm:$0xff]  ;;  %v4318_v41 = vld [vmem:[%s4201_s9 + $0x10] ss:$8 sm:$0x3] }
  0xa7   : > { %v4224_v2 = vshrl.u32 %v6748_v1, 7  ;;  %v4236_v6 = vld [vmem:[%s4209_s25 + $0x40] sm:$0xff]  ;;  %v408_v7 = vunpack.c.h.bf16 %v4233_v5  ;;  %7246 = vst [vmem:[#allocation33_spill] sm:$0xff] %v4318_v41  ;;  %v4330_v47 = vld [vmem:[%s4201_s9 + $0x11] ss:$8 sm:$0x3] }
  0xa8   : > { %v429_v10 = vunpack.c.h.bf16 %v4236_v6  ;;  %v4248_v11 = vld [vmem:[%s4201_s9 + $0x2] ss:$8 sm:$0x3]  ;;  %v4262_v15 = vld [vmem:[%s4201_s9 + $0x3] ss:$8 sm:$0x3] }
  0xa9   : > { %7236 = vst [vmem:[#allocation23_spill] sm:$0xff] %v4224_v2  ;;  %v4227_v3 = vsub.s32 1, %v4224_v2  ;;  %v4255_v13 = vld [vmem:[%s4209_s25 + $0x80] sm:$0xff]  ;;  %7249 = vst [vmem:[#allocation36_spill] sm:$0xff] %v4330_v47  ;;  %vm2699_vm0 = vcmask 523264   ;;  %s3217_s13 = sshll.u32 %s4197_s24, 1 }
  0xaa   : > { %v4265_v16 = vld [vmem:[%s4209_s25 + $0xc0] sm:$0xff]  ;;  %v450_v18 = vunpack.c.h.bf16 %v4255_v13  ;;  %v4342_v53 = vld [vmem:[%s4201_s9 + $0x12] ss:$8 sm:$0x3]  ;;  %s3519_s20 = sshll.u32 %s3901_s29, 5  ;;  %s3004_s4 = scalar_lea.sflag [#allocation13], %s4197_s24 }
  0xab   : > { %v4241_v8 = vrot.slane %v4230_v4, %v4227_v3  ;;  %v4252_v12 = vrot.slane %v4244_v9, %v4227_v3  ;;  %v4259_v14 = vrot.slane %v4248_v11, %v4227_v3  ;;  %v471_v19 = vunpack.c.h.bf16 %v4265_v16  ;;  %v4275_v21 = vld [vmem:[%s4201_s9 + $0x4] ss:$8 sm:$0x3]  ;;  %v4290_v27 = vld [vmem:[%s4201_s9 + $0x5] ss:$8 sm:$0x3]  ;;  %s6647_s2 = scalar_lea.hbm %s6740_s7, %s3519_s20 }
  0xac   : > { %v4272_v20 = vrot.slane %v4262_v15, %v4227_v3  ;;  %v4278_v22 = vld [vmem:[%s4209_s25 + $0x100] sm:$0xff]  ;;  %v4287_v26 = vrot.slane %v4275_v21, %v4227_v3  ;;  %v4303_v34 = vrot.slane %v4290_v27, %v4227_v3  ;;  %v4339_v52 = vrot.slane %v4318_v41, %v4227_v3  ;;  %7252 = vst [vmem:[#allocation39_spill] sm:$0xff] %v4342_v53  ;;  %v4354_v59 = vld [vmem:[%s4201_s9 + $0x13] ss:$8 sm:$0x3]  ;;  %p7923_p6 = scmp.ne.s32.totalorder %s7224_s15, 0 }
  0xad   : > { %7237 = vst [vmem:[#allocation24_spill] sm:$0xff] %v4241_v8  ;;  %7238 = vst [vmem:[#allocation25_spill] sm:$0xff] %v4252_v12  ;;  %v421_v17 = vmul.f32 %v4241_v8, %v408_v7  ;;  %v4281_v23 = vld [vmem:[%s4209_s25 + $0x140] sm:$0xff]  ;;  %v442_v24 = vmul.f32 %v4252_v12, %v429_v10  ;;  %v492_v25 = vunpack.c.h.bf16 %v4278_v22  ;;  %v463_v28 = vmul.f32 %v4259_v14, %v450_v18  ;;  %v4365_v63 = vld [vmem:[%s4201_s9 + $0x14] ss:$8 sm:$0x3] }
  0xae   : > { %7239 = vst [vmem:[#allocation26_spill] sm:$0xff] %v4259_v14  ;;  %7240 = vst [vmem:[#allocation27_spill] sm:$0xff] %v4272_v20  ;;  %v4294_v29 = vld [vmem:[%s4201_s9 + $0x6] ss:$8 sm:$0x3]  ;;  %v484_v32 = vmul.f32 %v4272_v20, %v471_v19  ;;  %v513_v33 = vunpack.c.h.bf16 %v4281_v23  ;;  %v4351_v58 = vrot.slane %v4330_v47, %v4227_v3  ;;  %v4362_v62 = vrot.slane %v4342_v53, %v4227_v3  ;;  %s3922_s18 = smov [#allocation12]  }
  0xaf   : > { %7241 = vst [vmem:[#allocation28_spill] sm:$0xff] %v4287_v26  ;;  %v4297_v30 = vld [vmem:[%s4209_s25 + $0x180] sm:$0xff]  ;;  %v444_v31 = vadd.f32 %v442_v24, %v421_v17  ;;  %7242 = vst [vmem:[#allocation29_spill] sm:$0xff] %v4303_v34  ;;  %v505_v38 = vmul.f32 %v4287_v26, %v492_v25  ;;  %v4315_v40 = vrot.slane %v4294_v29, %v4227_v3  ;;  %v4375_v18 = vld [vmem:[%s4201_s9 + $0x15] ss:$8 sm:$0x3] }
  0xb0   : > { %v4306_v35 = vld [vmem:[%s4201_s9 + $0x7] ss:$8 sm:$0x3]  ;;  %v534_v39 = vunpack.c.h.bf16 %v4297_v30  ;;  %v526_v44 = vmul.f32 %v4303_v34, %v513_v33  ;;  %7251 = vst [vmem:[#allocation38_spill] sm:$0xff] %v4339_v52  ;;  %7254 = vst [vmem:[#allocation41_spill] sm:$0xff] %v4351_v58  ;;  %v4381_v24 = vsub.s32 0, %v4224_v2 }
  0xb1   : > { %7243 = vst [vmem:[#allocation30_spill] sm:$0xff] %v4306_v35  ;;  %v4309_v36 = vld [vmem:[%s4209_s25 + $0x1c0] sm:$0xff]  ;;  %v465_v37 = vadd.f32 %v463_v28, %v444_v31  ;;  %7245 = vst [vmem:[#allocation32_spill] sm:$0xff] %v4315_v40  ;;  %v4327_v46 = vrot.slane %v4306_v35, %v4227_v3  ;;  %v4378_v19 = vld [vmem:[%s4201_s9 + $0x16] ss:$8 sm:$0x3] }
  0xb2   : > { %7244 = vst [vmem:[#allocation31_spill] sm:$0xff] %v4309_v36  ;;  %v4321_v42 = vld [vmem:[%s4209_s25 + $0x200] sm:$0xff]  ;;  %v555_v45 = vunpack.c.h.bf16 %v4309_v36  ;;  %v547_v50 = vmul.f32 %v4315_v40, %v534_v39  ;;  %7255 = vst [vmem:[#allocation42_spill] sm:$0xff] %v4354_v59  ;;  %v4387_v28 = vld [vmem:[%s4201_s9 + $0x17] ss:$8 sm:$0x3] }
  0xb3   : > { %7247 = vst [vmem:[#allocation34_spill] sm:$0xff] %v4321_v42  ;;  %v486_v43 = vadd.f32 %v484_v32, %v465_v37  ;;  %7248 = vst [vmem:[#allocation35_spill] sm:$0xff] %v4327_v46  ;;  %v4333_v48 = vld [vmem:[%s4209_s25 + $0x240] sm:$0xff]  ;;  %v576_v51 = vunpack.c.h.bf16 %v4321_v42  ;;  %v4393_v37 = vrot.slane %v4354_v59, %v4227_v3  ;;  %v4429_v2 = vrot.slane %v4387_v28, %v4227_v3  ;;  %v4478_v53 = vld [vmem:[%s4209_s25 + $0x8] sm:$0xff]  ;;  %s3787_s22 = sshll.u32 %s3922_s18, 4  ;;  %s3788_s22 = int_to_ptr.vmem [resolvable:$false] %s3787_s22 }
  0xb4   : > { %7250 = vst [vmem:[#allocation37_spill] sm:$0xff] %v4333_v48  ;;  %v4345_v54 = vld [vmem:[%s4209_s25 + $0x280] sm:$0xff]  ;;  %v568_v56 = vmul.f32 %v4327_v46, %v555_v45  ;;  %v597_v57 = vunpack.c.h.bf16 %v4333_v48  ;;  %7257 = vst [vmem:[#allocation44_spill] sm:$0xff] %v4362_v62  ;;  %v4498_v47 = vld [vmem:[%s4209_s25 + $0xc8] sm:$0xff]  ;;  %s3789_s14 = scalar_lea.vmem %s3788_s22, 64 }
  0xb5   : > { %v507_v49 = vadd.f32 %v505_v38, %v486_v43  ;;  %7253 = vst [vmem:[#allocation40_spill] sm:$0xff] %v4345_v54  ;;  %v4357_v60 = vld [vmem:[%s4209_s25 + $0x2c0] sm:$0xff]  ;;  %v618_v61 = vunpack.c.h.bf16 %v4345_v54  ;;  %7258 = vst [vmem:[#allocation45_spill] sm:$0xff] %v4365_v63  ;;  %v589_v17 = vmul.f32 %v4339_v52, %v576_v51  ;;  %v4481_v54 = vld [vmem:[%s4209_s25 + $0x48] sm:$0xff] }
  0xb6   : > { %7256 = vst [vmem:[#allocation43_spill] sm:$0xff] %v4357_v60  ;;  %v4368_v0 = vld [vmem:[%s4209_s25 + $0x300] sm:$0xff]  ;;  %7261 = vst [vmem:[#allocation48_spill] sm:$0xff] %v4375_v18  ;;  %v610_v32 = vmul.f32 %v4351_v58, %v597_v57  ;;  %v639_v33 = vunpack.c.h.bf16 %v4357_v60  ;;  %v4419_v57 = vrot.slane %v4375_v18, %v4227_v3 }
  0xb7   : > { %v528_v55 = vadd.f32 %v526_v44, %v507_v49  ;;  %7259 = vst [vmem:[#allocation46_spill] sm:$0xff] %v4368_v0  ;;  %v4371_v7 = vld [vmem:[%s4209_s25 + $0x340] sm:$0xff]  ;;  %7262 = vst [vmem:[#allocation49_spill] sm:$0xff] %v4378_v19  ;;  %v631_v44 = vmul.f32 %v4362_v62, %v618_v61  ;;  %v660_v45 = vunpack.c.h.bf16 %v4368_v0  ;;  %v4408_v49 = vrot.slane %v4365_v63, %v4227_v3 }
  0xb8   : > { %7260 = vst [vmem:[#allocation47_spill] sm:$0xff] %v4371_v7  ;;  %7263 = vst [vmem:[#allocation50_spill] sm:$0xff] %v4381_v24  ;;  %v4384_v25 = vld [vmem:[%s4209_s25 + $0x380] sm:$0xff]  ;;  %v652_v18 = vmul.f32 %v4393_v37, %v639_v33  ;;  %v4467_v0 = vrot.slane %v4230_v4, %v4381_v24 }
  0xb9   : > { %v549_v10 = vadd.f32 %v547_v50, %v528_v55  ;;  %7264 = vst [vmem:[#allocation51_spill] sm:$0xff] %v4384_v25  ;;  %7265 = vst [vmem:[#allocation52_spill] sm:$0xff] %v4387_v28  ;;  %v4396_v38 = vld [vmem:[%s4209_s25 + $0x3c0] sm:$0xff]  ;;  %v681_v50 = vunpack.c.h.bf16 %v4371_v7  ;;  %v702_v61 = vunpack.c.h.bf16 %v4384_v25 }
  0xba   : > { %7266 = vst [vmem:[#allocation53_spill] sm:$0xff] %v4393_v37  ;;  %7267 = vst [vmem:[#allocation54_spill] sm:$0xff] %v4396_v38  ;;  %v4399_v39 = vld [vmem:[%s4201_s9 + $0x20] ss:$8 sm:$0x3]  ;;  %v723_v1 = vunpack.c.h.bf16 %v4396_v38 }
  0xbb   : > { %v570_v31 = vadd.f32 %v568_v56, %v549_v10  ;;  %7268 = vst [vmem:[#allocation55_spill] sm:$0xff] %v4399_v39  ;;  %v4402_v43 = vld [vmem:[%s4209_s25 + $0x400] sm:$0xff]  ;;  %7270 = vst [vmem:[#allocation57_spill] sm:$0xff] %v4408_v49  ;;  %v4424_v10 = vrot.slane %v4378_v19, %v4227_v3 }
  0xbc   : > { %7269 = vst [vmem:[#allocation56_spill] sm:$0xff] %v4402_v43  ;;  %v4412_v51 = vld [vmem:[%s4201_s9 + $0x21] ss:$8 sm:$0x3]  ;;  %7273 = vst [vmem:[#allocation60_spill] sm:$0xff] %v4419_v57 }
  0xbd   : > { %7271 = vst [vmem:[#allocation58_spill] sm:$0xff] %v4412_v51  ;;  %v4415_v55 = vld [vmem:[%s4209_s25 + $0x440] sm:$0xff]  ;;  %v591_v56 = vadd.f32 %v589_v17, %v570_v31  ;;  %7274 = vst [vmem:[#allocation61_spill] sm:$0xff] %v4424_v10  ;;  %v744_v17 = vunpack.c.h.bf16 %v4402_v43  ;;  %v4434_v31 = vrot.slane %v4399_v39, %v4227_v3  ;;  %v4440_v38 = vrot.slane %v4412_v51, %v4227_v3 }
  0xbe   : > { %7272 = vst [vmem:[#allocation59_spill] sm:$0xff] %v4415_v55  ;;  %7275 = vst [vmem:[#allocation62_spill] sm:$0xff] %v4429_v2  ;;  %v765_v19 = vunpack.c.h.bf16 %v4415_v55  ;;  %v4443_v7 = vld [vmem:[%s4201_s9 + $0x22] ss:$8 sm:$0x3] }
  0xbf   : > { %7276 = vst [vmem:[#allocation63_spill] sm:$0xff] %v4434_v31  ;;  %v612_v25 = vadd.f32 %v610_v32, %v591_v56  ;;  %7277 = vst [vmem:[#allocation64_spill] sm:$0xff] %v4440_v38  ;;  %v4446_v28 = vld [vmem:[%s4209_s25 + $0x480] sm:$0xff]  ;;  %v673_v56 = vmul.f32 %v4408_v49, %v660_v45  ;;  %v694_v32 = vmul.f32 %v4419_v57, %v681_v50 }
  0xc0   : > { %7278 = vst [vmem:[#allocation65_spill] sm:$0xff] %v4443_v7  ;;  %7279 = vst [vmem:[#allocation66_spill] sm:$0xff] %v4446_v28  ;;  %v4449_v43 = vld [vmem:[%s4201_s9 + $0x23] ss:$8 sm:$0x3]  ;;  %v757_v45 = vmul.f32 %v4434_v31, %v744_v17  ;;  %v4484_v59 = vmul.f32 %v4440_v38, %v765_v19  ;;  %v786_v50 = vunpack.c.h.bf16 %v4446_v28 }
  0xc1   : > { %7280 = vst [vmem:[#allocation67_spill] sm:$0xff] %v4449_v43  ;;  %v4452_v39 = vld [vmem:[%s4209_s25 + $0x4c0] sm:$0xff]  ;;  %v633_v33 = vadd.f32 %v631_v44, %v612_v25  ;;  %7285 = vst [vmem:[#allocation72_spill] sm:$0xff] %v4467_v0  ;;  %v715_v25 = vmul.f32 %v4424_v10, %v702_v61  ;;  %v736_v44 = vmul.f32 %v4429_v2, %v723_v1  ;;  %v4495_v17 = vld [vmem:[%s4209_s25 + $0x88] sm:$0xff] }
  0xc2   : > { %7281 = vst [vmem:[#allocation68_spill] sm:$0xff] %v4452_v39  ;;  %v4457_v55 = vld [vmem:[%s4201_s9 + $0x24] ss:$8 sm:$0x3]  ;;  %7287 = vst [vmem:[#allocation74_spill] sm:$0xff] %v4478_v53  ;;  %v4489_v1 = vrot.slane %v4443_v7, %v4227_v3  ;;  %v807_v48 = vunpack.c.h.bf16 %v4452_v39  ;;  %v1091_v36 = vunpack.c.h.bf16 %v4495_v17 }
  0xc3   : > { %7282 = vst [vmem:[#allocation69_spill] sm:$0xff] %v4457_v55  ;;  %v4460_v51 = vld [vmem:[%s4209_s25 + $0x500] sm:$0xff]  ;;  %7288 = vst [vmem:[#allocation75_spill] sm:$0xff] %v4481_v54  ;;  %v654_v4 = vadd.f32 %v652_v18, %v633_v33  ;;  %v4503_v18 = vrot.slane %v4449_v43, %v4227_v3  ;;  %v4508_v33 = vrot.slane %v4457_v55, %v4227_v3  ;;  %v4514_v28 = vld [vmem:[%s4209_s25 + $0x108] sm:$0xff]  ;;  %v1077_v43 = vunpack.c.h.bf16 %v4478_v53 }
  0xc4   : > { %7283 = vst [vmem:[#allocation70_spill] sm:$0xff] %v4460_v51  ;;  %v4463_v63 = vld [vmem:[%s4209_s25 + $0x540] sm:$0xff]  ;;  %7289 = vst [vmem:[#allocation76_spill] sm:$0xff] %v4489_v1  ;;  %v828_v19 = vunpack.c.h.bf16 %v4460_v51  ;;  %v1084_v51 = vunpack.c.h.bf16 %v4481_v54  ;;  %v4536_v31 = vld [vmem:[%s4201_s9 + $0x30] ss:$8 sm:$0x3] }
  0xc5   : > { %7284 = vst [vmem:[#allocation71_spill] sm:$0xff] %v4463_v63  ;;  %v4475_v60 = vld [vmem:[%s4201_s9 + $0x25] ss:$8 sm:$0x3]  ;;  %7291 = vst [vmem:[#allocation78_spill] sm:$0xff] %v4495_v17  ;;  %v675_v41 = vadd.f32 %v673_v56, %v654_v4  ;;  %v849_v39 = vunpack.c.h.bf16 %v4463_v63  ;;  %v1098_v56 = vunpack.c.h.bf16 %v4498_v47  ;;  %v1079_v54 = vmul.f32 %v1077_v43, %v4241_v8 }
  0xc6   : > { %7286 = vst [vmem:[#allocation73_spill] sm:$0xff] %v4475_v60  ;;  %v4492_v61 = vld [vmem:[%s4209_s25 + $0x580] sm:$0xff]  ;;  %7292 = vst [vmem:[#allocation79_spill] sm:$0xff] %v4498_v47  ;;  %v4527_v55 = vrot.slane %v4475_v60, %v4227_v3  ;;  %v4533_v4 = vld [vmem:[%s4209_s25 + $0x148] sm:$0xff]  ;;  %v1086_v53 = vmul.f32 %v1084_v51, %v4252_v12  ;;  %v1105_v60 = vunpack.c.h.bf16 %v4514_v28  ;;  %v1093_v43 = vmul.f32 %v1091_v36, %v4259_v14 }
  0xc7   : > { %7290 = vst [vmem:[#allocation77_spill] sm:$0xff] %v4492_v61  ;;  %7293 = vst [vmem:[#allocation80_spill] sm:$0xff] %v4503_v18  ;;  %v4511_v7 = vld [vmem:[%s4201_s9 + $0x26] ss:$8 sm:$0x3]  ;;  %v870_v35 = vunpack.c.h.bf16 %v4492_v61  ;;  %v696_v63 = vadd.f32 %v694_v32, %v675_v41  ;;  %v1100_v8 = vmul.f32 %v1098_v56, %v4272_v20  ;;  %v841_v20 = vmul.f32 %v4508_v33, %v828_v19 }
  0xc8   : > { %7294 = vst [vmem:[#allocation81_spill] sm:$0xff] %v4508_v33  ;;  %7295 = vst [vmem:[#allocation82_spill] sm:$0xff] %v4511_v7  ;;  %v4518_v42 = vld [vmem:[%s4201_s9 + $0x27] ss:$8 sm:$0x3]  ;;  %v4546_v61 = vrot.slane %v4511_v7, %v4227_v3  ;;  %v1088_v12 = vadd.f32 %v1086_v53, %v1079_v54  ;;  %v799_v7 = vmul.f32 %v4489_v1, %v786_v50 }
  0xc9   : > { %7296 = vst [vmem:[#allocation83_spill] sm:$0xff] %v4514_v28  ;;  %7297 = vst [vmem:[#allocation84_spill] sm:$0xff] %v4518_v42  ;;  %v4521_v38 = vld [vmem:[%s4209_s25 + $0x5c0] sm:$0xff]  ;;  %v4551_v41 = vrot.slane %v4518_v42, %v4227_v3  ;;  %v4555_v32 = vld [vmem:[%s4209_s25 + $0x188] sm:$0xff]  ;;  %v717_v51 = vadd.f32 %v715_v25, %v696_v63  ;;  %v1112_v28 = vunpack.c.h.bf16 %v4533_v4  ;;  %v4564_v42 = vrot.slane %v4536_v31, %v4227_v3 }
  0xca   : > { %7298 = vst [vmem:[#allocation85_spill] sm:$0xff] %v4521_v38  ;;  %7299 = vst [vmem:[#allocation86_spill] sm:$0xff] %v4527_v55  ;;  %v4539_v2 = vld [vmem:[%s4209_s25 + $0x600] sm:$0xff]  ;;  %v891_v47 = vunpack.c.h.bf16 %v4521_v38  ;;  %v820_v38 = vmul.f32 %v4503_v18, %v807_v48  ;;  %v4567_v36 = vld [vmem:[%s4209_s25 + $0x1c8] sm:$0xff]  ;;  %v1095_v48 = vadd.f32 %v1093_v43, %v1088_v12  ;;  %v1107_v50 = vmul.f32 %v1105_v60, %v4287_v26 }
  0xcb   : > { %7300 = vst [vmem:[#allocation87_spill] sm:$0xff] %v4533_v4  ;;  %7301 = vst [vmem:[#allocation88_spill] sm:$0xff] %v4536_v31  ;;  %v912_v17 = vunpack.c.h.bf16 %v4539_v2  ;;  %v738_v53 = vadd.f32 %v736_v44, %v717_v51  ;;  %v4570_v54 = vld [vmem:[%s4201_s9 + $0x31] ss:$8 sm:$0x3]  ;;  %v4573_v63 = vld [vmem:[%s4209_s25 + $0x640] sm:$0xff]  ;;  %v1119_v56 = vunpack.c.h.bf16 %v4555_v32  ;;  %v862_v14 = vmul.f32 %v4527_v55, %v849_v39 }
  0xcc   : > { %7302 = vst [vmem:[#allocation89_spill] sm:$0xff] %v4539_v2  ;;  %7303 = vst [vmem:[#allocation90_spill] sm:$0xff] %v4546_v61  ;;  %v4576_v25 = vld [vmem:[%s4209_s25 + $0x680] sm:$0xff]  ;;  %v4583_v31 = vmul.f32 %v4546_v61, %v870_v35  ;;  %v4586_v44 = vmul.f32 %v4551_v41, %v891_v47  ;;  %v4589_v51 = vld [vmem:[%s4201_s9 + $0x32] ss:$8 sm:$0x3]  ;;  %v1102_v35 = vadd.f32 %v1100_v8, %v1095_v48  ;;  %v1126_v47 = vunpack.c.h.bf16 %v4567_v36 }
  0xcd   : > { %7304 = vst [vmem:[#allocation91_spill] sm:$0xff] %v4551_v41  ;;  %7305 = vst [vmem:[#allocation92_spill] sm:$0xff] %v4555_v32  ;;  %v4592_v12 = vld [vmem:[%s4209_s25 + $0x208] sm:$0xff]  ;;  %v759_v60 = vadd.f32 %v757_v45, %v738_v53  ;;  %v4595_v43 = vld [vmem:[%s4201_s9 + $0x33] ss:$8 sm:$0x3]  ;;  %v1114_v26 = vmul.f32 %v1112_v28, %v4303_v34  ;;  %v4606_v2 = vmul.f32 %v4564_v42, %v912_v17  ;;  %v933_v32 = vunpack.c.h.bf16 %v4573_v63 }
  0xce   : > { %7306 = vst [vmem:[#allocation93_spill] sm:$0xff] %v4564_v42  ;;  %7307 = vst [vmem:[#allocation94_spill] sm:$0xff] %v4567_v36  ;;  %v4598_v19 = vld [vmem:[%s4209_s25 + $0x6c0] sm:$0xff]  ;;  %v4611_v45 = vrot.slane %v4570_v54, %v4227_v3  ;;  %v954_v53 = vunpack.c.h.bf16 %v4576_v25  ;;  %v4615_v4 = vld [vmem:[%s4201_s9 + $0x34] ss:$8 sm:$0x3]  ;;  %v4634_v36 = vrot.slane %v4589_v51, %v4227_v3 }
  0xcf   : > { %7308 = vst [vmem:[#allocation95_spill] sm:$0xff] %v4570_v54  ;;  %7309 = vst [vmem:[#allocation96_spill] sm:$0xff] %v4573_v63  ;;  %v4601_v39 = vld [vmem:[%s4209_s25 + $0x700] sm:$0xff]  ;;  %v4618_v8 = vld [vmem:[%s4209_s25 + $0x248] sm:$0xff]  ;;  %v780_v28 = vadd.f32 %v4484_v59, %v759_v60  ;;  %v1109_v54 = vadd.f32 %v1107_v50, %v1102_v35  ;;  %v1121_v63 = vmul.f32 %v1119_v56, %v4315_v40  ;;  %v975_v42 = vunpack.c.h.bf16 %v4598_v19 }
  0xd0   : > { %7310 = vst [vmem:[#allocation97_spill] sm:$0xff] %v4576_v25  ;;  %7311 = vst [vmem:[#allocation98_spill] sm:$0xff] %v4589_v51  ;;  %v4622_v17 = vld [vmem:[%s4201_s9 + $0x35] ss:$8 sm:$0x3]  ;;  %v4625_v48 = vld [vmem:[%s4209_s25 + $0x740] sm:$0xff]  ;;  %v1133_v25 = vunpack.c.h.bf16 %v4592_v12  ;;  %v4639_v59 = vrot.slane %v4595_v43, %v4227_v3  ;;  %v996_v60 = vunpack.c.h.bf16 %v4601_v39 }
  0xd1   : > { %7312 = vst [vmem:[#allocation99_spill] sm:$0xff] %v4592_v12  ;;  %7313 = vst [vmem:[#allocation100_spill] sm:$0xff] %v4595_v43  ;;  %v4628_v34 = vld [vmem:[%s4209_s25 + $0x780] sm:$0xff]  ;;  %v4643_v41 = vld [vmem:[%s4201_s9 + $0x36] ss:$8 sm:$0x3]  ;;  %v801_v56 = vadd.f32 %v799_v7, %v780_v28  ;;  %v1116_v51 = vadd.f32 %v1114_v26, %v1109_v54  ;;  %v1128_v12 = vmul.f32 %v1126_v47, %v4327_v46  ;;  %v1017_v43 = vunpack.c.h.bf16 %v4625_v48 }
  0xd2   : > { %7314 = vst [vmem:[#allocation101_spill] sm:$0xff] %v4598_v19  ;;  %7315 = vst [vmem:[#allocation102_spill] sm:$0xff] %v4601_v39  ;;  %v4646_v50 = vld [vmem:[%s4209_s25 + $0x288] sm:$0xff]  ;;  %v4649_v35 = vld [vmem:[%s4201_s9 + $0x37] ss:$8 sm:$0x3]  ;;  %v1140_v19 = vunpack.c.h.bf16 %v4618_v8  ;;  %v4661_v39 = vrot.slane %v4615_v4, %v4227_v3  ;;  %v4666_v7 = vrot.slane %v4622_v17, %v4227_v3  ;;  %v1038_v28 = vunpack.c.h.bf16 %v4628_v34 }
  0xd3   : > { %7316 = vst [vmem:[#allocation103_spill] sm:$0xff] %v4611_v45  ;;  %7317 = vst [vmem:[#allocation104_spill] sm:$0xff] %v4615_v4  ;;  %v4652_v40 = vld [vmem:[%s4209_s25 + $0x7c0] sm:$0xff]  ;;  %v4657_v61 = vld [vmem:[%s4209_s25 + $0x2c8] sm:$0xff]  ;;  %v822_v54 = vadd.f32 %v820_v38, %v801_v56  ;;  %v1123_v47 = vadd.f32 %v1121_v63, %v1116_v51  ;;  %v1135_v46 = vmul.f32 %v1133_v25, %v4339_v52 }
  0xd4   : > { %7318 = vst [vmem:[#allocation105_spill] sm:$0xff] %v4618_v8  ;;  %7319 = vst [vmem:[#allocation106_spill] sm:$0xff] %v4622_v17  ;;  %v4670_v26 = vld [vmem:[%s4209_s25 + $0x308] sm:$0xff]  ;;  %v1147_v8 = vunpack.c.h.bf16 %v4646_v50  ;;  %v4676_v4 = vrot.slane %v4643_v41, %v4227_v3  ;;  %v4681_v17 = vrot.slane %v4649_v35, %v4227_v3  ;;  %v1142_v25 = vmul.f32 %v1140_v19, %v4351_v58 }
  0xd5   : > { %7320 = vst [vmem:[#allocation107_spill] sm:$0xff] %v4625_v48  ;;  %7321 = vst [vmem:[#allocation108_spill] sm:$0xff] %v4628_v34  ;;  %v1059_v48 = vunpack.c.h.bf16 %v4652_v40  ;;  %v1154_v34 = vunpack.c.h.bf16 %v4657_v61  ;;  %v4685_v38 = vld [vmem:[%s4209_s25 + $0x348] sm:$0xff]  ;;  %v843_v63 = vadd.f32 %v841_v20, %v822_v54  ;;  %v1130_v51 = vadd.f32 %v1128_v12, %v1123_v47 }
  0xd6   : > { %7322 = vst [vmem:[#allocation109_spill] sm:$0xff] %v4634_v36  ;;  %7323 = vst [vmem:[#allocation110_spill] sm:$0xff] %v4639_v59  ;;  %v1161_v56 = vunpack.c.h.bf16 %v4670_v26  ;;  %v4690_v52 = vmul.f32 %v4611_v45, %v933_v32  ;;  %v4696_v3 = vmul.f32 %v4639_v59, %v975_v42  ;;  %v1149_v19 = vmul.f32 %v1147_v8, %v4362_v62  ;;  %v4707_v47 = vld [vmem:[%s4209_s25 + $0x3c8] sm:$0xff] }
  0xd7   : > { %7324 = vst [vmem:[#allocation111_spill] sm:$0xff] %v4643_v41  ;;  %7325 = vst [vmem:[#allocation112_spill] sm:$0xff] %v4649_v35  ;;  %v4699_v35 = vmul.f32 %v4661_v39, %v996_v60  ;;  %v4702_v41 = vld [vmem:[%s4209_s25 + $0x388] sm:$0xff]  ;;  %v864_v20 = vadd.f32 %v862_v14, %v843_v63  ;;  %v1137_v12 = vadd.f32 %v1135_v46, %v1130_v51  ;;  %v1168_v54 = vunpack.c.h.bf16 %v4685_v38 }
  0xd8   : > { %7326 = vst [vmem:[#allocation113_spill] sm:$0xff] %v4652_v40  ;;  %7327 = vst [vmem:[#allocation114_spill] sm:$0xff] %v4661_v39  ;;  %v4693_v40 = vmul.f32 %v4634_v36, %v954_v53  ;;  %v4710_v32 = vmul.f32 %v4666_v7, %v1017_v43  ;;  %v4713_v53 = vmul.f32 %v4676_v4, %v1038_v28  ;;  %v4720_v46 = vld [vmem:[%s4209_s25 + $0x408] sm:$0xff]  ;;  %v1175_v43 = vunpack.c.h.bf16 %v4702_v41 }
  0xd9   : > { %7328 = vst [vmem:[#allocation115_spill] sm:$0xff] %v4666_v7  ;;  %7329 = vst [vmem:[#allocation116_spill] sm:$0xff] %v4676_v4  ;;  %v4716_v42 = vmul.f32 %v4681_v17, %v1059_v48  ;;  %v1156_v14 = vmul.f32 %v1154_v34, %v4393_v37  ;;  %v885_v8 = vadd.f32 %v4583_v31, %v864_v20  ;;  %v1182_v51 = vunpack.c.h.bf16 %v4707_v47  ;;  %v4741_v20 = vld [vmem:[%s4209_s25 + $0x448] sm:$0xff] }
  0xda   : > { %7330 = vst [vmem:[#allocation117_spill] sm:$0xff] %v4681_v17  ;;  %7331 = vst [vmem:[#allocation118_spill] sm:$0xff] %v4720_v46  ;;  %v1144_v60 = vadd.f32 %v1142_v25, %v1137_v12  ;;  %v1163_v63 = vmul.f32 %v1161_v56, %v4408_v49  ;;  %v7332_v28 = vunpack.c.l.bf16 %v4233_v5  ;;  %v4731_v48 = vrot.slane %v4244_v9, %v4381_v24  ;;  %v4744_v5 = vld [vmem:[%s4209_s25 + $0x488] sm:$0xff] }
  0xdb   : > { %v449_v34 = vunpack.c.l.bf16 %v4255_v13  ;;  %v1170_v31 = vmul.f32 %v1168_v54, %v4419_v57  ;;  %v1189_v25 = vunpack.c.h.bf16 %v4720_v46  ;;  %v4738_v56 = vrot.slane %v4248_v11, %v4381_v24  ;;  %7335 = vst [vmem:[#allocation121_spill] sm:$0xff] %v4741_v20  ;;  %7336 = vst [vmem:[#allocation122_spill] sm:$0xff] %v4744_v5 }
  0xdc   : > { %v420_v62 = vmul.f32 %v4467_v0, %v7332_v28  ;;  %7333 = vst [vmem:[#allocation119_spill] sm:$0xff] %v4731_v48  ;;  %v1151_v37 = vadd.f32 %v1149_v19, %v1144_v60  ;;  %v7337_v12 = vunpack.c.l.bf16 %v4236_v6  ;;  %v470_v13 = vunpack.c.l.bf16 %v4265_v16 }
  0xdd   : > { %7334 = vst [vmem:[#allocation120_spill] sm:$0xff] %v4738_v56  ;;  %v4752_v19 = vrot.slane %v4262_v15, %v4381_v24  ;;  %v491_v54 = vunpack.c.l.bf16 %v4278_v22  ;;  %v906_v11 = vadd.f32 %v4586_v44, %v885_v8  ;;  %v462_v28 = vmul.f32 %v4738_v56, %v449_v34 }
  0xde   : > { %v441_v9 = vmul.f32 %v4731_v48, %v7337_v12  ;;  %v1158_v60 = vadd.f32 %v1156_v14, %v1151_v37  ;;  %v4759_v57 = vrot.slane %v4275_v21, %v4381_v24  ;;  %v512_v16 = vunpack.c.l.bf16 %v4281_v23  ;;  %v4771_v21 = vld [vmem:[%s4209_s25 + $0x4c8] sm:$0xff] }
  0xdf   : > { %7338 = vst [vmem:[#allocation123_spill] sm:$0xff] %v4752_v19  ;;  %v483_v12 = vmul.f32 %v4752_v19, %v470_v13  ;;  %v4765_v15 = vrot.slane %v4290_v27, %v4381_v24  ;;  %v1177_v37 = vmul.f32 %v1175_v43, %v4424_v10  ;;  %v1196_v44 = vunpack.c.h.bf16 %v4741_v20  ;;  %7341 = vst [vmem:[#allocation126_spill] sm:$0xff] %v4771_v21  ;;  %v7343_v43 = vld [vmem:[#allocation62_spill] sm:$0xff]  ;;  %v7344_v13 = vld [vmem:[#allocation63_spill] sm:$0xff] }
  0xe0   : > { %7339 = vst [vmem:[#allocation124_spill] sm:$0xff] %v4759_v57  ;;  %v443_v6 = vadd.f32 %v441_v9, %v420_v62  ;;  %v1165_v22 = vadd.f32 %v1163_v63, %v1158_v60  ;;  %v1203_v14 = vunpack.c.h.bf16 %v4744_v5  ;;  %v504_v8 = vmul.f32 %v4759_v57, %v491_v54  ;;  %v4783_v10 = vld [vmem:[%s4209_s25 + $0x508] sm:$0xff] }
  0xe1   : > { %7340 = vst [vmem:[#allocation125_spill] sm:$0xff] %v4765_v15  ;;  %v533_v34 = vunpack.c.l.bf16 %v4297_v30  ;;  %v4777_v23 = vrot.slane %v4294_v29, %v4381_v24  ;;  %v927_v27 = vadd.f32 %v4606_v2, %v906_v11  ;;  %v1184_v9 = vmul.f32 %v1182_v51, %v7343_v43  ;;  %7345 = vst [vmem:[#allocation128_spill] sm:$0xff] %v4783_v10  ;;  %v7348_v29 = vld [vmem:[#allocation30_spill] sm:$0xff]  ;;  %v7354_v43 = vld [vmem:[#allocation33_spill] sm:$0xff] }
  0xe2   : > { %v464_v62 = vadd.f32 %v462_v28, %v443_v6  ;;  %v1172_v63 = vadd.f32 %v1170_v31, %v1165_v22  ;;  %v1191_v60 = vmul.f32 %v1189_v25, %v7344_v13  ;;  %v4786_v28 = vld [vmem:[%s4209_s25 + $0x548] sm:$0xff]  ;;  %v525_v30 = vmul.f32 %v4765_v15, %v512_v16  ;;  %v7350_v31 = vld [vmem:[#allocation64_spill] sm:$0xff] }
  0xe3   : > { %7342 = vst [vmem:[#allocation127_spill] sm:$0xff] %v4777_v23  ;;  %7346 = vst [vmem:[#allocation129_spill] sm:$0xff] %v4786_v28  ;;  %v7347_v6 = vld [vmem:[#allocation31_spill] sm:$0xff]  ;;  %v4792_v58 = vrot.slane %v7348_v29, %v4381_v24  ;;  %v1198_v11 = vmul.f32 %v1196_v44, %v7350_v31  ;;  %v1205_v51 = vmul.f32 %v1203_v14, %v4489_v1  ;;  %v1210_v25 = vunpack.c.h.bf16 %v4771_v21 }
  0xe4   : > { %v485_v54 = vadd.f32 %v483_v12, %v464_v62  ;;  %v554_v49 = vunpack.c.l.bf16 %v7347_v6  ;;  %v1179_v2 = vadd.f32 %v1177_v37, %v1172_v63  ;;  %v4798_v22 = vld [vmem:[%s4209_s25 + $0x588] sm:$0xff]  ;;  %v546_v16 = vmul.f32 %v4777_v23, %v533_v34  ;;  %v7357_v34 = vld [vmem:[#allocation37_spill] sm:$0xff] }
  0xe5   : > { %7349 = vst [vmem:[#allocation31_spill] sm:$0xff] %v4792_v58  ;;  %7351 = vst [vmem:[#allocation30_spill] sm:$0xff] %v4798_v22  ;;  %v4801_v13 = vld [vmem:[%s4209_s25 + $0x5c8] sm:$0xff]  ;;  %v4807_v29 = vrot.slane %v7354_v43, %v4381_v24  ;;  %v948_v37 = vadd.f32 %v4690_v52, %v927_v27  ;;  %v1217_v14 = vunpack.c.h.bf16 %v4783_v10  ;;  %v1224_v63 = vunpack.c.h.bf16 %v4786_v28 }
  0xe6   : > { %7352 = vst [vmem:[#allocation130_spill] sm:$0xff] %v4801_v13  ;;  %v506_v12 = vadd.f32 %v504_v8, %v485_v54  ;;  %v7353_v62 = vld [vmem:[#allocation34_spill] sm:$0xff]  ;;  %v1186_v44 = vadd.f32 %v1184_v9, %v1179_v2  ;;  %v567_v8 = vmul.f32 %v4792_v58, %v554_v49  ;;  %v596_v54 = vunpack.c.l.bf16 %v7357_v34  ;;  %v7361_v49 = vld [vmem:[#allocation39_spill] sm:$0xff] }
  0xe7   : > { %v575_v6 = vunpack.c.l.bf16 %v7353_v62  ;;  %7355 = vst [vmem:[#allocation34_spill] sm:$0xff] %v4807_v29  ;;  %v4813_v1 = vld [vmem:[%s4209_s25 + $0x608] sm:$0xff]  ;;  %v7358_v62 = vld [vmem:[#allocation36_spill] sm:$0xff]  ;;  %v1212_v52 = vmul.f32 %v1210_v25, %v4503_v18  ;;  %v1231_v27 = vunpack.c.h.bf16 %v4798_v22  ;;  %v1238_v9 = vunpack.c.h.bf16 %v4801_v13 }
  0xe8   : > { %7356 = vst [vmem:[#allocation33_spill] sm:$0xff] %v4813_v1  ;;  %v527_v31 = vadd.f32 %v525_v30, %v506_v12  ;;  %v4819_v21 = vrot.slane %v7358_v62, %v4381_v24  ;;  %v1193_v43 = vadd.f32 %v1191_v60, %v1186_v44  ;;  %v7360_v30 = vld [vmem:[#allocation40_spill] sm:$0xff]  ;;  %v4828_v34 = vrot.slane %v7361_v49, %v4381_v24  ;;  %v4834_v18 = vld [vmem:[%s4209_s25 + $0x648] sm:$0xff] }
  0xe9   : > { %v588_v28 = vmul.f32 %v4807_v29, %v575_v6  ;;  %v617_v12 = vunpack.c.l.bf16 %v7360_v30  ;;  %v969_v60 = vadd.f32 %v4693_v40, %v948_v37  ;;  %v1219_v25 = vmul.f32 %v1217_v14, %v4508_v33  ;;  %7363 = vst [vmem:[#allocation40_spill] sm:$0xff] %v4834_v18  ;;  %v7364_v6 = vld [vmem:[#allocation43_spill] sm:$0xff]  ;;  %v7365_v13 = vld [vmem:[#allocation42_spill] sm:$0xff] }
  0xea   : > { %7359 = vst [vmem:[#allocation37_spill] sm:$0xff] %v4819_v21  ;;  %v548_v2 = vadd.f32 %v546_v16, %v527_v31  ;;  %7362 = vst [vmem:[#allocation36_spill] sm:$0xff] %v4828_v34  ;;  %v1200_v44 = vadd.f32 %v1198_v11, %v1193_v43  ;;  %v1245_v62 = vunpack.c.h.bf16 %v4813_v1  ;;  %v609_v16 = vmul.f32 %v4819_v21, %v596_v54  ;;  %v7367_v40 = vld [vmem:[#allocation90_spill] sm:$0xff]  ;;  %v7368_v37 = vld [vmem:[#allocation91_spill] sm:$0xff] }
  0xeb   : > { %v638_v30 = vunpack.c.l.bf16 %v7364_v6  ;;  %v4840_v22 = vrot.slane %v7365_v13, %v4381_v24  ;;  %v1226_v10 = vmul.f32 %v1224_v63, %v4527_v55  ;;  %v1233_v11 = vmul.f32 %v1231_v27, %v7367_v40  ;;  %v4846_v43 = vld [vmem:[%s4209_s25 + $0x688] sm:$0xff]  ;;  %v7377_v1 = vld [vmem:[#allocation48_spill] sm:$0xff] }
  0xec   : > { %v569_v31 = vadd.f32 %v567_v8, %v548_v2  ;;  %v1207_v49 = vadd.f32 %v1205_v51, %v1200_v44  ;;  %v1240_v14 = vmul.f32 %v1238_v9, %v7368_v37  ;;  %7369 = vst [vmem:[#allocation43_spill] sm:$0xff] %v4846_v43  ;;  %v4849_v33 = vld [vmem:[%s4209_s25 + $0x6c8] sm:$0xff]  ;;  %v630_v2 = vmul.f32 %v4828_v34, %v617_v12  ;;  %v7373_v51 = vld [vmem:[#allocation45_spill] sm:$0xff] }
  0xed   : > { %7366 = vst [vmem:[#allocation39_spill] sm:$0xff] %v4840_v22  ;;  %7370 = vst [vmem:[#allocation42_spill] sm:$0xff] %v4849_v33  ;;  %v4852_v8 = vld [vmem:[%s4209_s25 + $0x708] sm:$0xff]  ;;  %v4858_v63 = vrot.slane %v7373_v51, %v4381_v24  ;;  %v990_v27 = vadd.f32 %v4696_v3, %v969_v60  ;;  %v7375_v44 = vld [vmem:[#allocation93_spill] sm:$0xff]  ;;  %v1252_v40 = vunpack.c.h.bf16 %v4834_v18  ;;  %v1259_v51 = vunpack.c.h.bf16 %v4846_v43 }
  0xee   : > { %7371 = vst [vmem:[#allocation131_spill] sm:$0xff] %v4852_v8  ;;  %v590_v54 = vadd.f32 %v588_v28, %v569_v31  ;;  %v7372_v6 = vld [vmem:[#allocation46_spill] sm:$0xff]  ;;  %v1214_v9 = vadd.f32 %v1212_v52, %v1207_v49  ;;  %v1247_v37 = vmul.f32 %v1245_v62, %v7375_v44  ;;  %v651_v28 = vmul.f32 %v4840_v22, %v638_v30  ;;  %v7376_v31 = vld [vmem:[#allocation47_spill] sm:$0xff] }
  0xef   : > { %v659_v13 = vunpack.c.l.bf16 %v7372_v6  ;;  %7374 = vst [vmem:[#allocation46_spill] sm:$0xff] %v4858_v63  ;;  %v680_v12 = vunpack.c.l.bf16 %v7376_v31  ;;  %v4867_v6 = vrot.slane %v7377_v1, %v4381_v24  ;;  %v1266_v20 = vunpack.c.h.bf16 %v4849_v33  ;;  %v4873_v52 = vld [vmem:[%s4209_s25 + $0x748] sm:$0xff]  ;;  %v7381_v1 = vld [vmem:[#allocation49_spill] sm:$0xff]  ;;  %v7384_v33 = vld [vmem:[#allocation52_spill] sm:$0xff] }
  0xf0   : > { %v611_v55 = vadd.f32 %v609_v16, %v590_v54  ;;  %v1221_v5 = vadd.f32 %v1219_v25, %v1214_v9  ;;  %v1273_v3 = vunpack.c.h.bf16 %v4852_v8  ;;  %v4876_v60 = vld [vmem:[%s4209_s25 + $0x788] sm:$0xff]  ;;  %v4885_v25 = vrot.slane %v7381_v1, %v4381_v24 }
  0xf1   : > { %7378 = vst [vmem:[#allocation45_spill] sm:$0xff] %v4867_v6  ;;  %v4879_v62 = vld [vmem:[%s4209_s25 + $0x7c8] sm:$0xff]  ;;  %v672_v30 = vmul.f32 %v4858_v63, %v659_v13  ;;  %v1011_v9 = vadd.f32 %v4699_v35, %v990_v27  ;;  %v4891_v43 = vrot.slane %v7384_v33, %v4381_v24  ;;  %v1254_v18 = vmul.f32 %v1252_v40, %v4611_v45  ;;  %v7386_v27 = vld [vmem:[#allocation56_spill] sm:$0xff] }
  0xf2   : > { %7379 = vst [vmem:[#allocation47_spill] sm:$0xff] %v4879_v62  ;;  %v632_v16 = vadd.f32 %v630_v2, %v611_v55  ;;  %v7380_v49 = vld [vmem:[#allocation51_spill] sm:$0xff]  ;;  %7382 = vst [vmem:[#allocation48_spill] sm:$0xff] %v4885_v25  ;;  %v1228_v31 = vadd.f32 %v1226_v10, %v1221_v5  ;;  %v7383_v44 = vld [vmem:[#allocation54_spill] sm:$0xff]  ;;  %v1280_v55 = vunpack.c.h.bf16 %v4873_v52  ;;  %v693_v13 = vmul.f32 %v4867_v6, %v680_v12 }
  0xf3   : > { %v701_v54 = vunpack.c.l.bf16 %v7380_v49  ;;  %v722_v8 = vunpack.c.l.bf16 %v7383_v44  ;;  %7385 = vst [vmem:[#allocation51_spill] sm:$0xff] %v4891_v43  ;;  %v1261_v1 = vmul.f32 %v1259_v51, %v4634_v36  ;;  %v1287_v46 = vunpack.c.h.bf16 %v4876_v60  ;;  %v7387_v44 = vld [vmem:[#allocation55_spill] sm:$0xff]  ;;  %v7390_v36 = vld [vmem:[#allocation58_spill] sm:$0xff] }
  0xf4   : > { %v653_v2 = vadd.f32 %v651_v28, %v632_v16  ;;  %v1235_v49 = vadd.f32 %v1233_v11, %v1228_v31  ;;  %v1294_v10 = vunpack.c.h.bf16 %v4879_v62  ;;  %v743_v33 = vunpack.c.l.bf16 %v7386_v27  ;;  %v7389_v12 = vld [vmem:[#allocation59_spill] sm:$0xff] }
  0xf5   : > { %v714_v5 = vmul.f32 %v4885_v25, %v701_v54  ;;  %v4903_v40 = vrot.slane %v7387_v44, %v4381_v24  ;;  %v1032_v28 = vadd.f32 %v4710_v32, %v1011_v9  ;;  %v735_v11 = vmul.f32 %v4891_v43, %v722_v8  ;;  %v7395_v32 = vld [vmem:[#allocation68_spill] sm:$0xff]  ;;  %v7396_v8 = vld [vmem:[#allocation67_spill] sm:$0xff] }
  0xf6   : > { %v674_v35 = vadd.f32 %v672_v30, %v653_v2  ;;  %v1242_v16 = vadd.f32 %v1240_v14, %v1235_v49  ;;  %v764_v51 = vunpack.c.l.bf16 %v7389_v12  ;;  %v4910_v45 = vrot.slane %v7390_v36, %v4381_v24  ;;  %v7392_v30 = vld [vmem:[#allocation66_spill] sm:$0xff]  ;;  %v7393_v2 = vld [vmem:[#allocation65_spill] sm:$0xff] }
  0xf7   : > { %7388 = vst [vmem:[#allocation49_spill] sm:$0xff] %v4903_v40  ;;  %v785_v54 = vunpack.c.l.bf16 %v7392_v30  ;;  %v4915_v27 = vrot.slane %v7393_v2, %v4381_v24  ;;  %v1268_v62 = vmul.f32 %v1266_v20, %v4639_v59  ;;  %v806_v14 = vunpack.c.l.bf16 %v7395_v32 }
  0xf8   : > { %v695_v31 = vadd.f32 %v693_v13, %v674_v35  ;;  %7391 = vst [vmem:[#allocation54_spill] sm:$0xff] %v4910_v45  ;;  %v1249_v44 = vadd.f32 %v1247_v37, %v1242_v16  ;;  %v4921_v9 = vrot.slane %v7396_v8, %v4381_v24  ;;  %v1275_v13 = vmul.f32 %v1273_v3, %v4661_v39  ;;  %v7398_v8 = vld [vmem:[#allocation70_spill] sm:$0xff] }
  0xf9   : > { %7394 = vst [vmem:[#allocation52_spill] sm:$0xff] %v4915_v27  ;;  %v1282_v36 = vmul.f32 %v1280_v55, %v4666_v7  ;;  %v756_v35 = vmul.f32 %v4903_v40, %v743_v33  ;;  %v1053_v12 = vadd.f32 %v4713_v53, %v1032_v28  ;;  %v1289_v37 = vmul.f32 %v1287_v46, %v4676_v4  ;;  %v7401_v53 = vld [vmem:[#allocation74_spill] sm:$0xff]  ;;  %v7402_v46 = vld [vmem:[#allocation71_spill] sm:$0xff] }
  0xfa   : > { %7397 = vst [vmem:[#allocation56_spill] sm:$0xff] %v4921_v9  ;;  %v716_v49 = vadd.f32 %v714_v5, %v695_v31  ;;  %v1256_v30 = vadd.f32 %v1254_v18, %v1249_v44  ;;  %v1296_v20 = vmul.f32 %v1294_v10, %v4681_v17  ;;  %v777_v2 = vmul.f32 %v4910_v45, %v764_v51  ;;  %v7399_v5 = vld [vmem:[#allocation69_spill] sm:$0xff]  ;;  %v7403_v10 = vld [vmem:[#allocation75_spill] sm:$0xff]  ;;  %v7404_v44 = vld [vmem:[#allocation78_spill] sm:$0xff] }
  0xfb   : > { %v798_v32 = vmul.f32 %v4915_v27, %v785_v54  ;;  %v827_v59 = vunpack.c.l.bf16 %v7398_v8  ;;  %v819_v55 = vmul.f32 %v4921_v9, %v806_v14  ;;  %v4935_v33 = vrot.slane %v7399_v5, %v4381_v24  ;;  %v7405_v54 = vld [vmem:[#allocation73_spill] sm:$0xff]  ;;  %v7407_v14 = vld [vmem:[#allocation79_spill] sm:$0xff] }
  0xfc   : > { %v737_v16 = vadd.f32 %v735_v11, %v716_v49  ;;  %v1263_v3 = vadd.f32 %v1261_v1, %v1256_v30  ;;  %v1076_v18 = vunpack.c.l.bf16 %v7401_v53  ;;  %v848_v31 = vunpack.c.l.bf16 %v7402_v46 }
  0xfd   : > { %7400 = vst [vmem:[#allocation55_spill] sm:$0xff] %v4935_v33  ;;  %v1083_v11 = vunpack.c.l.bf16 %v7403_v10  ;;  %v1090_v51 = vunpack.c.l.bf16 %v7404_v44  ;;  %v4943_v8 = vrot.slane %v7405_v54, %v4381_v24  ;;  %v1097_v30 = vunpack.c.l.bf16 %v7407_v14  ;;  %v7409_v44 = vld [vmem:[#allocation77_spill] sm:$0xff] }
  0xfe   : > { %v758_v28 = vadd.f32 %v756_v35, %v737_v16  ;;  %v1270_v49 = vadd.f32 %v1268_v62, %v1263_v3  ;;  %v1078_v1 = vmul.f32 %v1076_v18, %v4467_v0  ;;  %v7408_v16 = vld [vmem:[#allocation83_spill] sm:$0xff]  ;;  %v840_v10 = vmul.f32 %v4935_v33, %v827_v59  ;;  %v7410_v3 = vld [vmem:[#allocation82_spill] sm:$0xff] }
  0xff   : > { %7406 = vst [vmem:[#allocation59_spill] sm:$0xff] %v4943_v8  ;;  %v1085_v17 = vmul.f32 %v1083_v11, %v4731_v48  ;;  %v1092_v35 = vmul.f32 %v1090_v51, %v4738_v56  ;;  %v1104_v53 = vunpack.c.l.bf16 %v7408_v16  ;;  %v869_v62 = vunpack.c.l.bf16 %v7409_v44  ;;  %v7414_v48 = vld [vmem:[#allocation92_spill] sm:$0xff] }
 0x100   : > { %v779_v5 = vadd.f32 %v777_v2, %v758_v28  ;;  %v1277_v46 = vadd.f32 %v1275_v13, %v1270_v49  ;;  %v4954_v54 = vrot.slane %v7410_v3, %v4381_v24  ;;  %v1099_v14 = vmul.f32 %v1097_v30, %v4752_v19  ;;  %v7412_v2 = vld [vmem:[#allocation87_spill] sm:$0xff]  ;;  %v7413_v13 = vld [vmem:[#allocation85_spill] sm:$0xff] }
 0x101   : > { %v1087_v18 = vadd.f32 %v1085_v17, %v1078_v1  ;;  %v1111_v28 = vunpack.c.l.bf16 %v7412_v2  ;;  %v1074_v11 = vadd.f32 %v4716_v42, %v1053_v12  ;;  %v861_v16 = vmul.f32 %v4943_v8, %v848_v31  ;;  %v7417_v30 = vld [vmem:[#allocation89_spill] sm:$0xff] }
 0x102   : > { %7411 = vst [vmem:[#allocation58_spill] sm:$0xff] %v4954_v54  ;;  %v800_v4 = vadd.f32 %v798_v32, %v779_v5  ;;  %v1284_v51 = vadd.f32 %v1282_v36, %v1277_v46  ;;  %v890_v49 = vunpack.c.l.bf16 %v7413_v13  ;;  %v1106_v44 = vmul.f32 %v1104_v53, %v4759_v57  ;;  %v7415_v32 = vld [vmem:[#allocation84_spill] sm:$0xff]  ;;  %v7418_v5 = vld [vmem:[#allocation94_spill] sm:$0xff]  ;;  %v7422_v46 = vld [vmem:[#allocation95_spill] sm:$0xff] }
 0x103   : > { %v1094_v56 = vadd.f32 %v1092_v35, %v1087_v18  ;;  %v1118_v3 = vunpack.c.l.bf16 %v7414_v48  ;;  %v882_v17 = vmul.f32 %v4954_v54, %v869_v62  ;;  %v4966_v1 = vrot.slane %v7415_v32, %v4381_v24  ;;  %v7419_v35 = vld [vmem:[#allocation88_spill] sm:$0xff]  ;;  %v7426_v13 = vld [vmem:[#allocation98_spill] sm:$0xff] }
 0x104   : > { %v821_v59 = vadd.f32 %v819_v55, %v800_v4  ;;  %v1291_v0 = vadd.f32 %v1289_v37, %v1284_v51  ;;  %v911_v42 = vunpack.c.l.bf16 %v7417_v30  ;;  %v1113_v31 = vmul.f32 %v1111_v28, %v4765_v15  ;;  %v7421_v48 = vld [vmem:[#allocation96_spill] sm:$0xff] }
 0x105   : > { %7416 = vst [vmem:[#allocation66_spill] sm:$0xff] %v4966_v1  ;;  %v1101_v12 = vadd.f32 %v1099_v14, %v1094_v56  ;;  %v1125_v4 = vunpack.c.l.bf16 %v7418_v5  ;;  %v4973_v53 = vrot.slane %v7419_v35, %v4381_v24  ;;  %v932_v37 = vunpack.c.l.bf16 %v7421_v48  ;;  %v7424_v56 = vld [vmem:[#allocation99_spill] sm:$0xff]  ;;  %v7428_v35 = vld [vmem:[#allocation105_spill] sm:$0xff]  ;;  %v7454_v15 = vld [vmem:[#allocation128_spill] sm:$0xff] }
 0x106   : > { %v842_v36 = vadd.f32 %v840_v10, %v821_v59  ;;  %v1298_v55 = vadd.f32 %v1296_v20, %v1291_v0  ;;  %v4978_v62 = vrot.slane %v7422_v46, %v4381_v24  ;;  %v1120_v10 = vmul.f32 %v1118_v3, %v4777_v23  ;;  %v7425_v0 = vld [vmem:[#allocation97_spill] sm:$0xff]  ;;  %v7453_v23 = vld [vmem:[#allocation126_spill] sm:$0xff]  ;;  %v5083_v57 = vld [vmem:[%s4209_s25 + $0x1d0] sm:$0xff] }
 0x107   : > { %7420 = vst [vmem:[#allocation65_spill] sm:$0xff] %v4973_v53  ;;  %v1108_v2 = vadd.f32 %v1106_v44, %v1101_v12  ;;  %v1132_v14 = vunpack.c.l.bf16 %v7424_v56  ;;  %v903_v51 = vmul.f32 %v4966_v1, %v890_v49  ;;  %v953_v20 = vunpack.c.l.bf16 %v7425_v0  ;;  %v7430_v49 = vld [vmem:[#allocation100_spill] sm:$0xff]  ;;  %v7436_v56 = vld [vmem:[#allocation106_spill] sm:$0xff] }
 0x108   : > { %7423 = vst [vmem:[#allocation68_spill] sm:$0xff] %v4978_v62  ;;  %v863_v18 = vadd.f32 %v861_v16, %v842_v36  ;;  %v3521_v28 = vpack.c.bf16 %v1298_v55, %v1074_v11  ;;  %v4986_v59 = vrot.slane %v7426_v13, %v4381_v24  ;;  %v1127_v5 = vmul.f32 %v1125_v4, %v4792_v58  ;;  %v7429_v11 = vld [vmem:[#allocation101_spill] sm:$0xff]  ;;  %v7432_v55 = vld [vmem:[#allocation102_spill] sm:$0xff]  ;;  %v7438_v0 = vld [vmem:[#allocation108_spill] sm:$0xff] }
 0x109   : > { %v1115_v30 = vadd.f32 %v1113_v31, %v1108_v2  ;;  %v1139_v16 = vunpack.c.l.bf16 %v7428_v35  ;;  %v924_v44 = vmul.f32 %v4973_v53, %v911_v42  ;;  %v945_v3 = vmul.f32 %v4978_v62, %v932_v37  ;;  %v7435_v37 = vld [vmem:[#allocation107_spill] sm:$0xff] }
 0x10a   : > { %7427 = vst [vmem:[#allocation67_spill] sm:$0xff] %v4986_v59  ;;  %v884_v32 = vadd.f32 %v882_v17, %v863_v18  ;;  %3522 = vmatprep.subr.bf16.mxu0 %v3521_v28  ;;  %v974_v36 = vunpack.c.l.bf16 %v7429_v11  ;;  %v4995_v12 = vrot.slane %v7430_v49, %v4381_v24  ;;  %v995_v48 = vunpack.c.l.bf16 %v7432_v55  ;;  %v7433_v18 = vld [vmem:[#allocation104_spill] sm:$0xff] }
 0x10b   : > { %v1122_v46 = vadd.f32 %v1120_v10, %v1115_v30  ;;  %v1134_v17 = vmul.f32 %v1132_v14, %v4807_v29  ;;  %v1146_v31 = vunpack.c.l.bf16 %v4646_v50  ;;  %v5002_v42 = vrot.slane %v7433_v18, %v4381_v24  ;;  %v7439_v14 = vld [vmem:[#allocation111_spill] sm:$0xff]  ;;  %v7442_v11 = vld [vmem:[#allocation112_spill] sm:$0xff] }
 0x10c   : > { %7431 = vst [vmem:[#allocation70_spill] sm:$0xff] %v4995_v12  ;;  %v905_v4 = vadd.f32 %v903_v51, %v884_v32  ;;  %v1016_v2 = vunpack.c.l.bf16 %v7435_v37  ;;  %v5007_v28 = vrot.slane %v7436_v56, %v4381_v24  ;;  %v1037_v13 = vunpack.c.l.bf16 %v7438_v0  ;;  %v7441_v32 = vld [vmem:[#allocation113_spill] sm:$0xff] }
 0x10d   : > { %7434 = vst [vmem:[#allocation69_spill] sm:$0xff] %v5002_v42  ;;  %v1129_v35 = vadd.f32 %v1127_v5, %v1122_v46  ;;  %v1141_v10 = vmul.f32 %v1139_v16, %v4819_v21  ;;  %v1153_v50 = vunpack.c.l.bf16 %v4657_v61  ;;  %v5014_v51 = vrot.slane %v7439_v14, %v4381_v24  ;;  %v5026_v46 = vld [vmem:[%s4209_s25 + $0x10] sm:$0xff] }
 0x10e   : > { %7437 = vst [vmem:[#allocation74_spill] sm:$0xff] %v5007_v28  ;;  %v1058_v30 = vunpack.c.l.bf16 %v7441_v32  ;;  %v5019_v49 = vrot.slane %v7442_v11, %v4381_v24  ;;  %v1160_v55 = vunpack.c.l.bf16 %v4670_v26  ;;  %v1148_v5 = vmul.f32 %v1146_v31, %v4828_v34  ;;  %v5034_v26 = vld [vmem:[%s4209_s25 + $0x50] sm:$0xff]  ;;  %v7445_v11 = vld [vmem:[#allocation118_spill] sm:$0xff] }
 0x10f   : > { %7440 = vst [vmem:[#allocation71_spill] sm:$0xff] %v5014_v51  ;;  %v1136_v18 = vadd.f32 %v1134_v17, %v1129_v35  ;;  %v1167_v16 = vunpack.c.l.bf16 %v4685_v38  ;;  %v1174_v61 = vunpack.c.l.bf16 %v4702_v41  ;;  %v926_v37 = vadd.f32 %v924_v44, %v905_v4  ;;  %v5042_v44 = vld [vmem:[%s4209_s25 + $0x90] sm:$0xff]  ;;  %v7450_v34 = vld [vmem:[#allocation122_spill] sm:$0xff] }
 0x110   : > { %7443 = vst [vmem:[#allocation75_spill] sm:$0xff] %v5019_v49  ;;  %v966_v56 = vmul.f32 %v4986_v59, %v953_v20  ;;  %v987_v0 = vmul.f32 %v4995_v12, %v974_v36  ;;  %v5031_v14 = vmul.f32 %v5002_v42, %v995_v48  ;;  %v5037_v17 = vmul.f32 %v5007_v28, %v1016_v2  ;;  %v5053_v2 = vld [vmem:[%s4209_s25 + $0xd0] sm:$0xff] }
 0x111   : > { %v1143_v38 = vadd.f32 %v1141_v10, %v1136_v18  ;;  %v1155_v41 = vmul.f32 %v1153_v50, %v4840_v22  ;;  %v1181_v31 = vunpack.c.l.bf16 %v4707_v47  ;;  %v5045_v20 = vmul.f32 %v5014_v51, %v1037_v13  ;;  %v5059_v32 = vld [vmem:[%s4209_s25 + $0x110] sm:$0xff] }
 0x112   : > { %v5048_v36 = vmul.f32 %v5019_v49, %v1058_v30  ;;  %v1162_v48 = vmul.f32 %v1160_v55, %v4858_v63  ;;  %v1301_v4 = vunpack.c.h.bf16 %v5026_v46  ;;  %v1169_v10 = vmul.f32 %v1167_v16, %v4867_v6  ;;  %7444 = vst [vmem:[#allocation78_spill] sm:$0xff] %v5059_v32  ;;  %v7446_v18 = vld [vmem:[#allocation24_spill] sm:$0xff]  ;;  %v7448_v16 = vld [vmem:[#allocation25_spill] sm:$0xff] }
 0x113   : > { %v1150_v35 = vadd.f32 %v1148_v5, %v1143_v38  ;;  %v1176_v47 = vmul.f32 %v1174_v61, %v4885_v25  ;;  %v1308_v50 = vunpack.c.h.bf16 %v5034_v26  ;;  %v947_v13 = vadd.f32 %v945_v3, %v926_v37  ;;  %v5065_v63 = vld [vmem:[%s4209_s25 + $0x150] sm:$0xff]  ;;  %v7449_v25 = vld [vmem:[#allocation121_spill] sm:$0xff]  ;;  %v7451_v37 = vld [vmem:[#allocation26_spill] sm:$0xff] }
 0x114   : > { %v1188_v30 = vunpack.c.l.bf16 %v7445_v11  ;;  %v1303_v24 = vmul.f32 %v1301_v4, %v7446_v18  ;;  %v1315_v55 = vunpack.c.h.bf16 %v5042_v44  ;;  %7447 = vst [vmem:[#allocation73_spill] sm:$0xff] %v5065_v63  ;;  %v1183_v5 = vmul.f32 %v1181_v31, %v4891_v43  ;;  %v5075_v21 = vld [vmem:[%s4209_s25 + $0x190] sm:$0xff] }
 0x115   : > { %v1157_v22 = vadd.f32 %v1155_v41, %v1150_v35  ;;  %v1310_v61 = vmul.f32 %v1308_v50, %v7448_v16  ;;  %v1322_v38 = vunpack.c.h.bf16 %v5053_v2  ;;  %v1195_v6 = vunpack.c.l.bf16 %v7449_v25  ;;  %v7452_v41 = vld [vmem:[#allocation27_spill] sm:$0xff] }
 0x116   : > { %v1202_v3 = vunpack.c.l.bf16 %v7450_v34  ;;  %v1317_v11 = vmul.f32 %v1315_v55, %v7451_v37  ;;  %v1329_v4 = vunpack.c.h.bf16 %v5059_v32  ;;  %v1336_v35 = vunpack.c.h.bf16 %v5065_v63  ;;  %v7455_v32 = vld [vmem:[#allocation28_spill] sm:$0xff]  ;;  %v7459_v63 = vld [vmem:[#allocation29_spill] sm:$0xff] }
 0x117   : > { %v1164_v29 = vadd.f32 %v1162_v48, %v1157_v22  ;;  %v1312_v58 = vadd.f32 %v1310_v61, %v1303_v24  ;;  %v1324_v31 = vmul.f32 %v1322_v38, %v7452_v41  ;;  %v968_v50 = vadd.f32 %v966_v56, %v947_v13  ;;  %v7456_v56 = vld [vmem:[#allocation129_spill] sm:$0xff] }
 0x118   : > { %v1190_v43 = vmul.f32 %v1188_v30, %v4903_v40  ;;  %v1209_v25 = vunpack.c.l.bf16 %v7453_v23  ;;  %v1216_v34 = vunpack.c.l.bf16 %v7454_v15  ;;  %v1331_v22 = vmul.f32 %v1329_v4, %v7455_v32  ;;  %v7457_v30 = vld [vmem:[#allocation30_spill] sm:$0xff]  ;;  %v5092_v23 = vld [vmem:[%s4209_s25 + $0x210] sm:$0xff] }
 0x119   : > { %v1171_v55 = vadd.f32 %v1169_v10, %v1164_v29  ;;  %v1319_v19 = vadd.f32 %v1317_v11, %v1312_v58  ;;  %v1343_v24 = vunpack.c.h.bf16 %v5075_v21  ;;  %v1197_v48 = vmul.f32 %v1195_v6, %v4910_v45  ;;  %7458 = vst [vmem:[#allocation79_spill] sm:$0xff] %v5092_v23  ;;  %v7460_v4 = vld [vmem:[#allocation130_spill] sm:$0xff]  ;;  %v7461_v45 = vld [vmem:[#allocation32_spill] sm:$0xff] }
 0x11a   : > { %v1204_v61 = vmul.f32 %v1202_v3, %v4915_v27  ;;  %v1223_v13 = vunpack.c.l.bf16 %v7456_v56  ;;  %v1230_v38 = vunpack.c.l.bf16 %v7457_v30  ;;  %v1338_v58 = vmul.f32 %v1336_v35, %v7459_v63  ;;  %v5100_v27 = vld [vmem:[%s4209_s25 + $0x250] sm:$0xff] }
 0x11b   : > { %v1178_v15 = vadd.f32 %v1176_v47, %v1171_v55  ;;  %v1326_v40 = vadd.f32 %v1324_v31, %v1319_v19  ;;  %v1350_v29 = vunpack.c.h.bf16 %v5083_v57  ;;  %v989_v10 = vadd.f32 %v987_v0, %v968_v50  ;;  %v7462_v0 = vld [vmem:[#allocation33_spill] sm:$0xff]  ;;  %v5111_v55 = vld [vmem:[%s4209_s25 + $0x290] sm:$0xff] }
 0x11c   : > { %v1211_v11 = vmul.f32 %v1209_v25, %v4921_v9  ;;  %v1218_v6 = vmul.f32 %v1216_v34, %v4935_v33  ;;  %v1237_v3 = vunpack.c.l.bf16 %v7460_v4  ;;  %v1345_v47 = vmul.f32 %v1343_v24, %v7461_v45  ;;  %v7463_v25 = vld [vmem:[#allocation40_spill] sm:$0xff] }
 0x11d   : > { %v1185_v56 = vadd.f32 %v1183_v5, %v1178_v15  ;;  %v1333_v30 = vadd.f32 %v1331_v22, %v1326_v40  ;;  %v1357_v19 = vunpack.c.h.bf16 %v5092_v23  ;;  %v1225_v31 = vmul.f32 %v1223_v13, %v4943_v8  ;;  %v7464_v40 = vld [vmem:[#allocation35_spill] sm:$0xff]  ;;  %v7466_v8 = vld [vmem:[#allocation42_spill] sm:$0xff] }
 0x11e   : > { %v5106_v35 = vmul.f32 %v1230_v38, %v4954_v54  ;;  %v1244_v50 = vunpack.c.l.bf16 %v7462_v0  ;;  %v1251_v34 = vunpack.c.l.bf16 %v7463_v25  ;;  %v1352_v22 = vmul.f32 %v1350_v29, %v7464_v40  ;;  %v7465_v38 = vld [vmem:[#allocation43_spill] sm:$0xff]  ;;  %v7467_v23 = vld [vmem:[#allocation38_spill] sm:$0xff] }
 0x11f   : > { %v1192_v4 = vadd.f32 %v1190_v43, %v1185_v56  ;;  %v1340_v5 = vadd.f32 %v1338_v58, %v1333_v30  ;;  %v1364_v24 = vunpack.c.h.bf16 %v5100_v27  ;;  %v1010_v15 = vadd.f32 %v5031_v14, %v989_v10  ;;  %v5122_v33 = vld [vmem:[%s4209_s25 + $0x2d0] sm:$0xff] }
 0x120   : > { %v5117_v13 = vmul.f32 %v1237_v3, %v4966_v1  ;;  %v1258_v54 = vunpack.c.l.bf16 %v7465_v38  ;;  %v1265_v0 = vunpack.c.l.bf16 %v7466_v8  ;;  %v1359_v43 = vmul.f32 %v1357_v19, %v7467_v23  ;;  %v5127_v29 = vld [vmem:[%s4209_s25 + $0x310] sm:$0xff]  ;;  %v5197_v1 = vld [vmem:[%s4209_s25 + $0x118] sm:$0xff] }
 0x121   : > { %v1199_v25 = vadd.f32 %v1197_v48, %v1192_v4  ;;  %v1347_v9 = vadd.f32 %v1345_v47, %v1340_v5  ;;  %v1371_v58 = vunpack.c.h.bf16 %v5111_v55  ;;  %v5130_v14 = vmul.f32 %v1244_v50, %v4973_v53  ;;  %v7468_v10 = vld [vmem:[#allocation131_spill] sm:$0xff]  ;;  %v7469_v47 = vld [vmem:[#allocation41_spill] sm:$0xff]  ;;  %7482 = vst [vmem:[#allocation94_spill] sm:$0xff] %v5197_v1 }
 0x122   : > { %v1272_v3 = vunpack.c.l.bf16 %v7468_v10  ;;  %v1279_v56 = vunpack.c.l.bf16 %v4873_v52  ;;  %v1286_v8 = vunpack.c.l.bf16 %v4876_v60  ;;  %v1366_v4 = vmul.f32 %v1364_v24, %v7469_v47  ;;  %v7470_v38 = vld [vmem:[#allocation47_spill] sm:$0xff] }
 0x123   : > { %v1206_v30 = vadd.f32 %v1204_v61, %v1199_v25  ;;  %v1354_v48 = vadd.f32 %v1352_v22, %v1347_v9  ;;  %v1378_v19 = vunpack.c.h.bf16 %v5122_v33  ;;  %v1031_v5 = vadd.f32 %v5037_v17, %v1010_v15  ;;  %v5144_v53 = vld [vmem:[%s4209_s25 + $0x350] sm:$0xff] }
 0x124   : > { %v5139_v50 = vmul.f32 %v1251_v34, %v4978_v62  ;;  %v1293_v10 = vunpack.c.l.bf16 %v7470_v38  ;;  %v1385_v52 = vunpack.c.h.bf16 %v5127_v29  ;;  %v5147_v9 = vmul.f32 %v1258_v54, %v4986_v59  ;;  %v7471_v22 = vld [vmem:[#allocation44_spill] sm:$0xff] }
 0x125   : > { %v1213_v60 = vadd.f32 %v1211_v11, %v1206_v30  ;;  %v1361_v61 = vadd.f32 %v1359_v43, %v1354_v48  ;;  %v1373_v17 = vmul.f32 %v1371_v58, %v7471_v22  ;;  %v5151_v24 = vld [vmem:[%s4209_s25 + $0x390] sm:$0xff]  ;;  %v5154_v34 = vmul.f32 %v1265_v0, %v4995_v12  ;;  %v5172_v58 = vld [vmem:[%s4209_s25 + $0x18] sm:$0xff] }
 0x126   : > { %7472 = vst [vmem:[#allocation83_spill] sm:$0xff] %v5151_v24  ;;  %v5157_v15 = vmul.f32 %v1272_v3, %v5002_v42  ;;  %v5160_v25 = vmul.f32 %v1279_v56, %v5007_v28  ;;  %v5163_v11 = vmul.f32 %v1286_v8, %v5014_v51  ;;  %v5166_v54 = vld [vmem:[%s4209_s25 + $0x3d0] sm:$0xff]  ;;  %7475 = vst [vmem:[#allocation87_spill] sm:$0xff] %v5172_v58  ;;  %v7476_v48 = vld [vmem:[#allocation53_spill] sm:$0xff]  ;;  %v1392_v3 = vunpack.c.h.bf16 %v5144_v53 }
 0x127   : > { %7473 = vst [vmem:[#allocation77_spill] sm:$0xff] %v5166_v54  ;;  %v5169_v43 = vld [vmem:[%s4209_s25 + $0x410] sm:$0xff]  ;;  %v1220_v30 = vadd.f32 %v1218_v6, %v1213_v60  ;;  %v1368_v0 = vadd.f32 %v1366_v4, %v1361_v61  ;;  %v1380_v38 = vmul.f32 %v1378_v19, %v7476_v48  ;;  %v5177_v42 = vld [vmem:[%s4209_s25 + $0x58] sm:$0xff]  ;;  %v1052_v51 = vadd.f32 %v5045_v20, %v1031_v5 }
 0x128   : > { %7474 = vst [vmem:[#allocation82_spill] sm:$0xff] %v5169_v43  ;;  %7477 = vst [vmem:[#allocation85_spill] sm:$0xff] %v5177_v42  ;;  %v5180_v56 = vld [vmem:[%s4209_s25 + $0x98] sm:$0xff]  ;;  %v5187_v28 = vmul.f32 %v1293_v10, %v5019_v49  ;;  %v1399_v6 = vunpack.c.h.bf16 %v5151_v24  ;;  %v1406_v60 = vunpack.c.h.bf16 %v5166_v54  ;;  %v5193_v61 = vld [vmem:[%s4209_s25 + $0x450] sm:$0xff]  ;;  %v1525_v62 = vunpack.c.h.bf16 %v5172_v58 }
 0x129   : > { %7478 = vst [vmem:[#allocation92_spill] sm:$0xff] %v5180_v56  ;;  %v5183_v8 = vld [vmem:[%s4209_s25 + $0xd8] sm:$0xff]  ;;  %v1227_v4 = vadd.f32 %v1225_v31, %v1220_v30  ;;  %v1375_v19 = vadd.f32 %v1373_v17, %v1368_v0  ;;  %7481 = vst [vmem:[#allocation89_spill] sm:$0xff] %v5193_v61  ;;  %v1413_v20 = vunpack.c.h.bf16 %v5169_v43  ;;  %v1532_v5 = vunpack.c.h.bf16 %v5177_v42  ;;  %v5211_v54 = vld [vmem:[%s4209_s25 + $0x490] sm:$0xff] }
 0x12a   : > { %7479 = vst [vmem:[#allocation84_spill] sm:$0xff] %v5183_v8  ;;  %v7480_v12 = vld [vmem:[#allocation57_spill] sm:$0xff]  ;;  %v1539_v10 = vunpack.c.h.bf16 %v5180_v56  ;;  %v7483_v30 = vld [vmem:[#allocation60_spill] sm:$0xff]  ;;  %v1527_v49 = vmul.f32 %v1525_v62, %v7446_v18  ;;  %v1420_v43 = vunpack.c.h.bf16 %v5193_v61  ;;  %7485 = vst [vmem:[#allocation96_spill] sm:$0xff] %v5211_v54 }
 0x12b   : > { %v1387_v59 = vmul.f32 %v1385_v52, %v7480_v12  ;;  %v1546_v52 = vunpack.c.h.bf16 %v5183_v8  ;;  %v1234_v31 = vadd.f32 %v5106_v35, %v1227_v4  ;;  %v1382_v17 = vadd.f32 %v1380_v38, %v1375_v19  ;;  %v5207_v58 = vld [vmem:[%s4209_s25 + $0x158] sm:$0xff]  ;;  %v7488_v18 = vld [vmem:[#allocation62_spill] sm:$0xff] }
 0x12c   : > { %v1394_v0 = vmul.f32 %v1392_v3, %v7483_v30  ;;  %7484 = vst [vmem:[#allocation88_spill] sm:$0xff] %v5207_v58  ;;  %v1534_v56 = vmul.f32 %v1532_v5, %v7448_v16  ;;  %v1541_v42 = vmul.f32 %v1539_v10, %v7451_v37  ;;  %v1553_v8 = vunpack.c.h.bf16 %v5197_v1  ;;  %v7486_v3 = vld [vmem:[#allocation61_spill] sm:$0xff]  ;;  %v5226_v5 = vld [vmem:[%s4209_s25 + $0x4d0] sm:$0xff] }
 0x12d   : > { %v5217_v35 = vadd.f32 %v5048_v36, %v1052_v51  ;;  %v1241_v38 = vadd.f32 %v5117_v13, %v1234_v31  ;;  %v1389_v62 = vadd.f32 %v1387_v59, %v1382_v17  ;;  %v1401_v4 = vmul.f32 %v1399_v6, %v7486_v3  ;;  %v5222_v19 = vld [vmem:[%s4209_s25 + $0x198] sm:$0xff]  ;;  %7489 = vst [vmem:[#allocation99_spill] sm:$0xff] %v5226_v5  ;;  %v5229_v10 = vld [vmem:[%s4209_s25 + $0x510] sm:$0xff] }
 0x12e   : > { %7487 = vst [vmem:[#allocation95_spill] sm:$0xff] %v5222_v19  ;;  %v1408_v61 = vmul.f32 %v1406_v60, %v7488_v18  ;;  %7490 = vst [vmem:[#allocation97_spill] sm:$0xff] %v5229_v10  ;;  %v1536_v37 = vadd.f32 %v1534_v56, %v1527_v49  ;;  %v1548_v16 = vmul.f32 %v1546_v52, %v7452_v41  ;;  %v1560_v51 = vunpack.c.h.bf16 %v5207_v58  ;;  %v7491_v13 = vld [vmem:[#allocation63_spill] sm:$0xff]  ;;  %v5240_v60 = vld [vmem:[%s4209_s25 + $0x1d8] sm:$0xff] }
 0x12f   : > { %v1248_v36 = vadd.f32 %v5130_v14, %v1241_v38  ;;  %v1396_v59 = vadd.f32 %v1394_v0, %v1389_v62  ;;  %v1415_v6 = vmul.f32 %v1413_v20, %v7491_v13  ;;  %v1427_v31 = vunpack.c.h.bf16 %v5211_v54  ;;  %v5237_v17 = vld [vmem:[%s4209_s25 + $0x550] sm:$0xff]  ;;  %7493 = vst [vmem:[#allocation105_spill] sm:$0xff] %v5240_v60  ;;  %v5255_v54 = vld [vmem:[%s4209_s25 + $0x218] sm:$0xff] }
 0x130   : > { %7492 = vst [vmem:[#allocation98_spill] sm:$0xff] %v5237_v17  ;;  %v7494_v1 = vld [vmem:[#allocation64_spill] sm:$0xff]  ;;  %v1543_v56 = vadd.f32 %v1541_v42, %v1536_v37  ;;  %v1555_v52 = vmul.f32 %v1553_v8, %v7455_v32  ;;  %v1567_v14 = vunpack.c.h.bf16 %v5222_v19  ;;  %v1434_v38 = vunpack.c.h.bf16 %v5226_v5  ;;  %7497 = vst [vmem:[#allocation102_spill] sm:$0xff] %v5255_v54 }
 0x131   : > { %v1422_v24 = vmul.f32 %v1420_v43, %v7494_v1  ;;  %v5244_v49 = vld [vmem:[%s4209_s25 + $0x590] sm:$0xff]  ;;  %v1255_v0 = vadd.f32 %v5139_v50, %v1248_v36  ;;  %v1403_v20 = vadd.f32 %v1401_v4, %v1396_v59  ;;  %v1441_v62 = vunpack.c.h.bf16 %v5229_v10  ;;  %v5264_v10 = vld [vmem:[%s4209_s25 + $0x258] sm:$0xff] }
 0x132   : > { %7495 = vst [vmem:[#allocation101_spill] sm:$0xff] %v5244_v49  ;;  %v5252_v41 = vld [vmem:[%s4209_s25 + $0x5d0] sm:$0xff]  ;;  %v1448_v43 = vunpack.c.h.bf16 %v5237_v17  ;;  %v1550_v42 = vadd.f32 %v1548_v16, %v1543_v56  ;;  %v1562_v37 = vmul.f32 %v1560_v51, %v7459_v63  ;;  %v1574_v8 = vunpack.c.h.bf16 %v5240_v60 }
 0x133   : > { %7496 = vst [vmem:[#allocation100_spill] sm:$0xff] %v5252_v41  ;;  %v1262_v50 = vadd.f32 %v5147_v9, %v1255_v0  ;;  %v1410_v4 = vadd.f32 %v1408_v61, %v1403_v20  ;;  %v7498_v36 = vld [vmem:[#allocation76_spill] sm:$0xff]  ;;  %v1455_v32 = vunpack.c.h.bf16 %v5244_v49  ;;  %v1462_v5 = vunpack.c.h.bf16 %v5252_v41  ;;  %v7501_v20 = vld [vmem:[#allocation81_spill] sm:$0xff]  ;;  %v7502_v41 = vld [vmem:[#allocation86_spill] sm:$0xff] }
 0x134   : > { %v1429_v59 = vmul.f32 %v1427_v31, %v7498_v36  ;;  %v5268_v17 = vld [vmem:[%s4209_s25 + $0x610] sm:$0xff]  ;;  %v1557_v16 = vadd.f32 %v1555_v52, %v1550_v42  ;;  %v1569_v51 = vmul.f32 %v1567_v14, %v7461_v45  ;;  %v1581_v56 = vunpack.c.h.bf16 %v5255_v54  ;;  %v5276_v49 = vld [vmem:[%s4209_s25 + $0x298] sm:$0xff] }
 0x135   : > { %7499 = vst [vmem:[#allocation104_spill] sm:$0xff] %v5268_v17  ;;  %v1269_v9 = vadd.f32 %v5154_v34, %v1262_v50  ;;  %v1417_v61 = vadd.f32 %v1415_v6, %v1410_v4  ;;  %v7500_v0 = vld [vmem:[#allocation80_spill] sm:$0xff]  ;;  %v1443_v63 = vmul.f32 %v1441_v62, %v7501_v20  ;;  %v1450_v60 = vmul.f32 %v1448_v43, %v7502_v41  ;;  %v7505_v50 = vld [vmem:[#allocation90_spill] sm:$0xff]  ;;  %v7508_v54 = vld [vmem:[#allocation91_spill] sm:$0xff] }
 0x136   : > { %v1436_v31 = vmul.f32 %v1434_v38, %v7500_v0  ;;  %v5280_v19 = vld [vmem:[%s4209_s25 + $0x650] sm:$0xff]  ;;  %v1564_v14 = vadd.f32 %v1562_v37, %v1557_v16  ;;  %v1576_v42 = vmul.f32 %v1574_v8, %v7464_v40  ;;  %v1588_v34 = vunpack.c.h.bf16 %v5264_v10  ;;  %v5294_v43 = vld [vmem:[%s4209_s25 + $0x2d8] sm:$0xff] }
 0x137   : > { %7503 = vst [vmem:[#allocation107_spill] sm:$0xff] %v5280_v19  ;;  %v5283_v52 = vld [vmem:[%s4209_s25 + $0x690] sm:$0xff]  ;;  %v1276_v6 = vadd.f32 %v5157_v15, %v1269_v9  ;;  %v1424_v38 = vadd.f32 %v1422_v24, %v1417_v61  ;;  %v1457_v62 = vmul.f32 %v1455_v32, %v7505_v50  ;;  %v1469_v4 = vunpack.c.h.bf16 %v5268_v17  ;;  %7507 = vst [vmem:[#allocation111_spill] sm:$0xff] %v5294_v43  ;;  %v5309_v17 = vld [vmem:[%s4209_s25 + $0x318] sm:$0xff] }
 0x138   : > { %7504 = vst [vmem:[#allocation106_spill] sm:$0xff] %v5283_v52  ;;  %v5291_v45 = vld [vmem:[%s4209_s25 + $0x6d0] sm:$0xff]  ;;  %v1464_v58 = vmul.f32 %v1462_v5, %v7508_v54  ;;  %v1571_v8 = vadd.f32 %v1569_v51, %v1564_v14  ;;  %v1583_v16 = vmul.f32 %v1581_v56, %v7467_v23  ;;  %v1595_v15 = vunpack.c.h.bf16 %v5276_v49  ;;  %7511 = vst [vmem:[#allocation118_spill] sm:$0xff] %v5309_v17 }
 0x139   : > { %7506 = vst [vmem:[#allocation108_spill] sm:$0xff] %v5291_v45  ;;  %v5298_v37 = vld [vmem:[%s4209_s25 + $0x710] sm:$0xff]  ;;  %v1283_v24 = vadd.f32 %v5160_v25, %v1276_v6  ;;  %v1431_v9 = vadd.f32 %v1429_v59, %v1424_v38  ;;  %v1476_v32 = vunpack.c.h.bf16 %v5280_v19  ;;  %v1483_v61 = vunpack.c.h.bf16 %v5283_v52  ;;  %v7512_v6 = vld [vmem:[#allocation93_spill] sm:$0xff] }
 0x13a   : > { %7509 = vst [vmem:[#allocation113_spill] sm:$0xff] %v5298_v37  ;;  %v5306_v40 = vld [vmem:[%s4209_s25 + $0x750] sm:$0xff]  ;;  %v1490_v5 = vunpack.c.h.bf16 %v5291_v45  ;;  %v1578_v51 = vadd.f32 %v1576_v42, %v1571_v8  ;;  %v1590_v56 = vmul.f32 %v1588_v34, %v7469_v47  ;;  %v1602_v14 = vunpack.c.h.bf16 %v5294_v43  ;;  %v5318_v52 = vld [vmem:[%s4209_s25 + $0x358] sm:$0xff] }
 0x13b   : > { %7510 = vst [vmem:[#allocation112_spill] sm:$0xff] %v5306_v40  ;;  %v1290_v25 = vadd.f32 %v5163_v11, %v1283_v24  ;;  %v1438_v59 = vadd.f32 %v1436_v31, %v1431_v9  ;;  %v1471_v38 = vmul.f32 %v1469_v4, %v7512_v6  ;;  %v1497_v23 = vunpack.c.h.bf16 %v5298_v37  ;;  %7513 = vst [vmem:[#allocation121_spill] sm:$0xff] %v5318_v52  ;;  %v5324_v8 = vld [vmem:[%s4209_s25 + $0x398] sm:$0xff]  ;;  %v7515_v31 = vld [vmem:[#allocation103_spill] sm:$0xff] }
 0x13c   : > { %v1504_v19 = vunpack.c.h.bf16 %v5306_v40  ;;  %v1585_v45 = vadd.f32 %v1583_v16, %v1578_v51  ;;  %v1597_v42 = vmul.f32 %v1595_v15, %v7471_v22  ;;  %v1609_v34 = vunpack.c.h.bf16 %v5309_v17  ;;  %7514 = vst [vmem:[#allocation122_spill] sm:$0xff] %v5324_v8  ;;  %v7516_v4 = vld [vmem:[#allocation109_spill] sm:$0xff]  ;;  %v5334_v37 = vld [vmem:[%s4209_s25 + $0x790] sm:$0xff]  ;;  %v7518_v40 = vld [vmem:[#allocation110_spill] sm:$0xff] }
 0x13d   : > { %v1297_v11 = vadd.f32 %v5187_v28, %v1290_v25  ;;  %v1445_v24 = vadd.f32 %v1443_v63, %v1438_v59  ;;  %v5328_v9 = vmul.f32 %v1476_v32, %v7515_v31  ;;  %v5331_v47 = vmul.f32 %v1483_v61, %v7516_v4  ;;  %7517 = vst [vmem:[#allocation126_spill] sm:$0xff] %v5334_v37  ;;  %v5340_v15 = vld [vmem:[%s4209_s25 + $0x7d0] sm:$0xff]  ;;  %v5345_v63 = vld [vmem:[%s4209_s25 + $0x3d8] sm:$0xff] }
 0x13e   : > { %v5337_v16 = vmul.f32 %v1490_v5, %v7518_v40  ;;  %7519 = vst [vmem:[#allocation128_spill] sm:$0xff] %v5340_v15  ;;  %v1592_v51 = vadd.f32 %v1590_v56, %v1585_v45  ;;  %v1604_v22 = vmul.f32 %v1602_v14, %v7476_v48  ;;  %v1616_v28 = vunpack.c.h.bf16 %v5318_v52  ;;  %7520 = vst [vmem:[#allocation129_spill] sm:$0xff] %v5345_v63  ;;  %v5358_v48 = vld [vmem:[%s4209_s25 + $0x418] sm:$0xff] }
 0x13f   : > { %v3523_v32 = vpack.c.bf16 %v1297_v11, %v5217_v35  ;;  %v1452_v61 = vadd.f32 %v1450_v60, %v1445_v24  ;;  %v5349_v25 = vmul.f32 %v1497_v23, %v4661_v39  ;;  %v1623_v59 = vunpack.c.h.bf16 %v5324_v8  ;;  %7521 = vst [vmem:[#allocation30_spill] sm:$0xff] %v5358_v48  ;;  %v5365_v8 = vld [vmem:[%s4209_s25 + $0x458] sm:$0xff] }
 0x140   : > { %v5353_v5 = vmul.f32 %v1504_v19, %v4666_v7  ;;  %v1511_v45 = vunpack.c.h.bf16 %v5334_v37  ;;  %v1599_v56 = vadd.f32 %v1597_v42, %v1592_v51  ;;  %v1611_v14 = vmul.f32 %v1609_v34, %v7480_v12  ;;  %7522 = vst [vmem:[#allocation130_spill] sm:$0xff] %v5365_v8  ;;  %v5404_v17 = vld [vmem:[%s4209_s25 + $0x5d8] sm:$0xff] }
 0x141   : > { %3524 = vmatpush1.bf16.msra.mxu0 %v3523_v32  ;;  %v1459_v35 = vadd.f32 %v1457_v62, %v1452_v61  ;;  %v1518_v60 = vunpack.c.h.bf16 %v5340_v15  ;;  %v1630_v23 = vunpack.c.h.bf16 %v5345_v63  ;;  %v1300_v11 = vunpack.c.l.bf16 %v5026_v46  ;;  %v7523_v61 = vld [vmem:[#allocation72_spill] sm:$0xff] }
 0x142   : > { %v1606_v24 = vadd.f32 %v1604_v22, %v1599_v56  ;;  %v1618_v19 = vmul.f32 %v1616_v28, %v7483_v30  ;;  %v1307_v42 = vunpack.c.l.bf16 %v5034_v26  ;;  %v1314_v34 = vunpack.c.l.bf16 %v5042_v44  ;;  %v5373_v22 = vld [vmem:[%s4209_s25 + $0x498] sm:$0xff]  ;;  %v7525_v28 = vld [vmem:[#allocation119_spill] sm:$0xff] }
 0x143   : > { %v1466_v51 = vadd.f32 %v1464_v58, %v1459_v35  ;;  %v1625_v62 = vmul.f32 %v1623_v59, %v7486_v3  ;;  %v1637_v32 = vunpack.c.h.bf16 %v5358_v48  ;;  %v1302_v12 = vmul.f32 %v1300_v11, %v7523_v61  ;;  %7524 = vst [vmem:[#allocation33_spill] sm:$0xff] %v5373_v22  ;;  %v7526_v30 = vld [vmem:[#allocation120_spill] sm:$0xff]  ;;  %v7528_v35 = vld [vmem:[#allocation78_spill] sm:$0xff] }
 0x144   : > { %v1613_v46 = vadd.f32 %v1611_v14, %v1606_v24  ;;  %v1309_v56 = vmul.f32 %v1307_v42, %v7525_v28  ;;  %v1316_v63 = vmul.f32 %v1314_v34, %v7526_v30  ;;  %v1321_v26 = vunpack.c.l.bf16 %v5053_v2  ;;  %v7527_v15 = vld [vmem:[#allocation116_spill] sm:$0xff]  ;;  %v7530_v2 = vld [vmem:[#allocation123_spill] sm:$0xff] }
 0x145   : > { %v5379_v44 = vmul.f32 %v1511_v45, %v7527_v15  ;;  %v1632_v58 = vmul.f32 %v1630_v23, %v7488_v18  ;;  %v1644_v59 = vunpack.c.h.bf16 %v5365_v8  ;;  %v1328_v11 = vunpack.c.l.bf16 %v7528_v35  ;;  %v5385_v24 = vld [vmem:[%s4209_s25 + $0x4d8] sm:$0xff] }
 0x146   : > { %v1620_v14 = vadd.f32 %v1618_v19, %v1613_v46  ;;  %v5388_v3 = vld [vmem:[%s4209_s25 + $0x518] sm:$0xff]  ;;  %v1311_v34 = vadd.f32 %v1309_v56, %v1302_v12  ;;  %v1323_v48 = vmul.f32 %v1321_v26, %v7530_v2  ;;  %v1473_v52 = vadd.f32 %v1471_v38, %v1466_v51 }
 0x147   : > { %v5391_v42 = vld [vmem:[%s4209_s25 + $0x558] sm:$0xff]  ;;  %v1639_v8 = vmul.f32 %v1637_v32, %v7491_v13  ;;  %v1651_v19 = vunpack.c.h.bf16 %v5373_v22  ;;  %v1342_v26 = vunpack.c.l.bf16 %v5075_v21  ;;  %v1646_v38 = vmul.f32 %v1644_v59, %v7494_v1 }
 0x148   : > { %7529 = vst [vmem:[#allocation40_spill] sm:$0xff] %v5391_v42  ;;  %v7531_v45 = vld [vmem:[#allocation73_spill] sm:$0xff]  ;;  %v1627_v46 = vadd.f32 %v1625_v62, %v1620_v14  ;;  %v1318_v43 = vadd.f32 %v1316_v63, %v1311_v34  ;;  %v7533_v12 = vld [vmem:[#allocation124_spill] sm:$0xff]  ;;  %v1665_v51 = vunpack.c.h.bf16 %v5388_v3  ;;  %v1672_v32 = vunpack.c.h.bf16 %v5391_v42 }
 0x149   : > { %v1335_v37 = vunpack.c.l.bf16 %v7531_v45  ;;  %v7532_v23 = vld [vmem:[#allocation117_spill] sm:$0xff]  ;;  %v1330_v56 = vmul.f32 %v1328_v11, %v7533_v12  ;;  %v1349_v63 = vunpack.c.l.bf16 %v5083_v57  ;;  %v1480_v21 = vadd.f32 %v5328_v9, %v1473_v52 }
 0x14a   : > { %v5396_v18 = vmul.f32 %v1518_v60, %v7532_v23  ;;  %v5401_v35 = vld [vmem:[%s4209_s25 + $0x598] sm:$0xff]  ;;  %v1658_v60 = vunpack.c.h.bf16 %v5385_v24  ;;  %v1634_v45 = vadd.f32 %v1632_v58, %v1627_v46  ;;  %v1325_v14 = vadd.f32 %v1323_v48, %v1318_v43  ;;  %v7537_v48 = vld [vmem:[#allocation127_spill] sm:$0xff] }
 0x14b   : > { %v5413_v62 = vld [vmem:[%s4209_s25 + $0x618] sm:$0xff]  ;;  %v1653_v59 = vmul.f32 %v1651_v19, %v7498_v36  ;;  %v1679_v11 = vunpack.c.h.bf16 %v5401_v35  ;;  %v1686_v34 = vunpack.c.h.bf16 %v5404_v17  ;;  %v1344_v43 = vmul.f32 %v1342_v26, %v7537_v48 }
 0x14c   : > { %7534 = vst [vmem:[#allocation43_spill] sm:$0xff] %v5413_v62  ;;  %v7535_v13 = vld [vmem:[#allocation125_spill] sm:$0xff]  ;;  %v1641_v1 = vadd.f32 %v1639_v8, %v1634_v45  ;;  %v1332_v46 = vadd.f32 %v1330_v56, %v1325_v14  ;;  %v1660_v57 = vmul.f32 %v1658_v60, %v7500_v0  ;;  %v1667_v52 = vmul.f32 %v1665_v51, %v7501_v20  ;;  %v7542_v14 = vld [vmem:[#allocation31_spill] sm:$0xff] }
 0x14d   : > { %v1337_v22 = vmul.f32 %v1335_v37, %v7535_v13  ;;  %v5422_v58 = vld [vmem:[%s4209_s25 + $0x658] sm:$0xff]  ;;  %v7538_v37 = vld [vmem:[#allocation79_spill] sm:$0xff]  ;;  %v1674_v9 = vmul.f32 %v1672_v32, %v7502_v41  ;;  %v1693_v19 = vunpack.c.h.bf16 %v5413_v62  ;;  %v1363_v60 = vunpack.c.l.bf16 %v5100_v27 }
 0x14e   : > { %7536 = vst [vmem:[#allocation42_spill] sm:$0xff] %v5422_v58  ;;  %v1356_v42 = vunpack.c.l.bf16 %v7538_v37  ;;  %v1648_v36 = vadd.f32 %v1646_v38, %v1641_v1  ;;  %v5431_v8 = vld [vmem:[%s4209_s25 + $0x698] sm:$0xff]  ;;  %v1351_v37 = vmul.f32 %v1349_v63, %v7542_v14  ;;  %v1487_v51 = vadd.f32 %v5331_v47, %v1480_v21 }
 0x14f   : > { %7539 = vst [vmem:[#allocation131_spill] sm:$0xff] %v5431_v8  ;;  %v5434_v45 = vld [vmem:[%s4209_s25 + $0x6d8] sm:$0xff]  ;;  %v1339_v26 = vadd.f32 %v1337_v22, %v1332_v46  ;;  %v1681_v20 = vmul.f32 %v1679_v11, %v7505_v50  ;;  %v1688_v32 = vmul.f32 %v1686_v34, %v7508_v54  ;;  %v1700_v41 = vunpack.c.h.bf16 %v5422_v58  ;;  %v7545_v46 = vld [vmem:[#allocation34_spill] sm:$0xff] }
 0x150   : > { %7540 = vst [vmem:[#allocation47_spill] sm:$0xff] %v5434_v45  ;;  %v5437_v56 = vld [vmem:[%s4209_s25 + $0x718] sm:$0xff]  ;;  %v1655_v1 = vadd.f32 %v1653_v59, %v1648_v36  ;;  %v1358_v63 = vmul.f32 %v1356_v42, %v7545_v46  ;;  %v1370_v27 = vunpack.c.l.bf16 %v5111_v55  ;;  %v1695_v47 = vmul.f32 %v1693_v19, %v7512_v6 }
 0x151   : > { %7541 = vst [vmem:[#allocation72_spill] sm:$0xff] %v5437_v56  ;;  %v5446_v38 = vld [vmem:[%s4209_s25 + $0x758] sm:$0xff]  ;;  %v1346_v22 = vadd.f32 %v1344_v43, %v1339_v26  ;;  %v1707_v21 = vunpack.c.h.bf16 %v5431_v8  ;;  %v1714_v11 = vunpack.c.h.bf16 %v5434_v45  ;;  %v1721_v34 = vunpack.c.h.bf16 %v5437_v56 }
 0x152   : > { %v5449_v0 = vld [vmem:[%s4209_s25 + $0x798] sm:$0xff]  ;;  %v1662_v36 = vadd.f32 %v1660_v57, %v1655_v1  ;;  %v1377_v58 = vunpack.c.l.bf16 %v5122_v33  ;;  %v1728_v43 = vunpack.c.h.bf16 %v5446_v38  ;;  %v1384_v19 = vunpack.c.l.bf16 %v5127_v29 }
 0x153   : > { %7543 = vst [vmem:[#allocation78_spill] sm:$0xff] %v5449_v0  ;;  %v5452_v62 = vld [vmem:[%s4209_s25 + $0x7d8] sm:$0xff]  ;;  %v1353_v59 = vadd.f32 %v1351_v37, %v1346_v22  ;;  %v1735_v42 = vunpack.c.h.bf16 %v5449_v0  ;;  %v1494_v26 = vadd.f32 %v5337_v16, %v1487_v51  ;;  %v1702_v57 = vmul.f32 %v1700_v41, %v7515_v31  ;;  %v7548_v0 = vld [vmem:[#allocation39_spill] sm:$0xff] }
 0x154   : > { %7544 = vst [vmem:[#allocation73_spill] sm:$0xff] %v5452_v62  ;;  %v7546_v54 = vld [vmem:[#allocation37_spill] sm:$0xff]  ;;  %v1742_v55 = vunpack.c.h.bf16 %v5452_v62  ;;  %v1669_v6 = vadd.f32 %v1667_v52, %v1662_v36  ;;  %v7547_v8 = vld [vmem:[#allocation36_spill] sm:$0xff]  ;;  %v1709_v37 = vmul.f32 %v1707_v21, %v7516_v4  ;;  %v1716_v33 = vmul.f32 %v1714_v11, %v7518_v40  ;;  %v7549_v41 = vld [vmem:[#allocation83_spill] sm:$0xff] }
 0x155   : > { %v1365_v50 = vmul.f32 %v1363_v60, %v7546_v54  ;;  %v1360_v45 = vadd.f32 %v1358_v63, %v1353_v59  ;;  %v1372_v56 = vmul.f32 %v1370_v27, %v7547_v8  ;;  %v1723_v60 = vmul.f32 %v1721_v34, %v4661_v39  ;;  %v7553_v34 = vld [vmem:[#allocation87_spill] sm:$0xff]  ;;  %v7554_v59 = vld [vmem:[#allocation85_spill] sm:$0xff]  ;;  %v7557_v39 = vld [vmem:[#allocation48_spill] sm:$0xff] }
 0x156   : > { %v1676_v1 = vadd.f32 %v1674_v9, %v1669_v6  ;;  %v1379_v62 = vmul.f32 %v1377_v58, %v7548_v0  ;;  %v1391_v29 = vunpack.c.l.bf16 %v5144_v53  ;;  %v1730_v16 = vmul.f32 %v1728_v43, %v4666_v7  ;;  %v7550_v6 = vld [vmem:[#allocation46_spill] sm:$0xff]  ;;  %v7551_v9 = vld [vmem:[#allocation77_spill] sm:$0xff]  ;;  %v7556_v7 = vld [vmem:[#allocation92_spill] sm:$0xff] }
 0x157   : > { %v1367_v22 = vadd.f32 %v1365_v50, %v1360_v45  ;;  %v5476_v52 = vmul.f32 %v1735_v42, %v7527_v15  ;;  %v5479_v51 = vmul.f32 %v1742_v55, %v7532_v23  ;;  %v1398_v63 = vunpack.c.l.bf16 %v7549_v41  ;;  %v7552_v45 = vld [vmem:[#allocation82_spill] sm:$0xff]  ;;  %v7555_v55 = vld [vmem:[#allocation45_spill] sm:$0xff] }
 0x158   : > { %v1501_v27 = vadd.f32 %v5349_v25, %v1494_v26  ;;  %v1683_v21 = vadd.f32 %v1681_v20, %v1676_v1  ;;  %v1386_v50 = vmul.f32 %v1384_v19, %v7550_v6  ;;  %v1405_v58 = vunpack.c.l.bf16 %v7551_v9  ;;  %v7558_v20 = vld [vmem:[#allocation89_spill] sm:$0xff] }
 0x159   : > { %v1374_v11 = vadd.f32 %v1372_v56, %v1367_v22  ;;  %v1412_v53 = vunpack.c.l.bf16 %v7552_v45  ;;  %v1524_v36 = vunpack.c.l.bf16 %v7553_v34  ;;  %v1531_v43 = vunpack.c.l.bf16 %v7554_v59  ;;  %v7559_v45 = vld [vmem:[#allocation84_spill] sm:$0xff] }
 0x15a   : > { %v1690_v42 = vadd.f32 %v1688_v32, %v1683_v21  ;;  %v1393_v23 = vmul.f32 %v1391_v29, %v7555_v55  ;;  %v1538_v41 = vunpack.c.l.bf16 %v7556_v7  ;;  %v1400_v25 = vmul.f32 %v1398_v63, %v7557_v39  ;;  %v7560_v29 = vld [vmem:[#allocation94_spill] sm:$0xff]  ;;  %v7561_v7 = vld [vmem:[#allocation88_spill] sm:$0xff] }
 0x15b   : > { %v1381_v15 = vadd.f32 %v1379_v62, %v1374_v11  ;;  %v1419_v56 = vunpack.c.l.bf16 %v7558_v20  ;;  %v1526_v19 = vmul.f32 %v1524_v36, %v7523_v61  ;;  %v1533_v26 = vmul.f32 %v1531_v43, %v7525_v28  ;;  %v7562_v20 = vld [vmem:[#allocation51_spill] sm:$0xff]  ;;  %v7563_v43 = vld [vmem:[#allocation49_spill] sm:$0xff] }
 0x15c   : > { %v1697_v1 = vadd.f32 %v1695_v47, %v1690_v42  ;;  %v1540_v9 = vmul.f32 %v1538_v41, %v7526_v30  ;;  %v1545_v34 = vunpack.c.l.bf16 %v7559_v45  ;;  %v1508_v62 = vadd.f32 %v5353_v5, %v1501_v27  ;;  %v7564_v42 = vld [vmem:[#allocation95_spill] sm:$0xff]  ;;  %v7565_v27 = vld [vmem:[#allocation54_spill] sm:$0xff]  ;;  %v7613_v28 = vld [vmem:[#allocation29_spill] sm:$0xff] }
 0x15d   : > { %v1388_v22 = vadd.f32 %v1386_v50, %v1381_v15  ;;  %v1535_v32 = vadd.f32 %v1533_v26, %v1526_v19  ;;  %v1552_v21 = vunpack.c.l.bf16 %v7560_v29  ;;  %v1559_v11 = vunpack.c.l.bf16 %v7561_v7  ;;  %v7566_v26 = vld [vmem:[#allocation96_spill] sm:$0xff] }
 0x15e   : > { %v1704_v63 = vadd.f32 %v1702_v57, %v1697_v1  ;;  %v1407_v40 = vmul.f32 %v1405_v58, %v7562_v20  ;;  %v1547_v36 = vmul.f32 %v1545_v34, %v7530_v2  ;;  %v1414_v47 = vmul.f32 %v1412_v53, %v7563_v43  ;;  %v7567_v1 = vld [vmem:[#allocation105_spill] sm:$0xff] }
 0x15f   : > { %v1395_v59 = vadd.f32 %v1393_v23, %v1388_v22  ;;  %v1542_v15 = vadd.f32 %v1540_v9, %v1535_v32  ;;  %v1554_v50 = vmul.f32 %v1552_v21, %v7533_v12  ;;  %v1566_v41 = vunpack.c.l.bf16 %v7564_v42  ;;  %v7568_v9 = vld [vmem:[#allocation99_spill] sm:$0xff]  ;;  %v7569_v21 = vld [vmem:[#allocation97_spill] sm:$0xff]  ;;  %v7570_v42 = vld [vmem:[#allocation98_spill] sm:$0xff] }
 0x160   : > { %v1711_v45 = vadd.f32 %v1709_v37, %v1704_v63  ;;  %v1421_v19 = vmul.f32 %v1419_v56, %v7565_v27  ;;  %v1426_v29 = vunpack.c.l.bf16 %v7566_v26  ;;  %v1515_v57 = vadd.f32 %v5379_v44, %v1508_v62  ;;  %v7571_v63 = vld [vmem:[#allocation102_spill] sm:$0xff]  ;;  %v7572_v62 = vld [vmem:[#allocation52_spill] sm:$0xff] }
 0x161   : > { %v1402_v5 = vadd.f32 %v1400_v25, %v1395_v59  ;;  %v1549_v23 = vadd.f32 %v1547_v36, %v1542_v15  ;;  %v1561_v58 = vmul.f32 %v1559_v11, %v7535_v13  ;;  %v1573_v22 = vunpack.c.l.bf16 %v7567_v1  ;;  %v7573_v11 = vld [vmem:[#allocation101_spill] sm:$0xff] }
 0x162   : > { %v1718_v34 = vadd.f32 %v1716_v33, %v1711_v45  ;;  %v1433_v32 = vunpack.c.l.bf16 %v7568_v9  ;;  %v1440_v7 = vunpack.c.l.bf16 %v7569_v21  ;;  %v1447_v37 = vunpack.c.l.bf16 %v7570_v42  ;;  %v7576_v42 = vld [vmem:[#allocation59_spill] sm:$0xff] }
 0x163   : > { %v1409_v53 = vadd.f32 %v1407_v40, %v1402_v5  ;;  %v1556_v25 = vadd.f32 %v1554_v50, %v1549_v23  ;;  %v1568_v56 = vmul.f32 %v1566_v41, %v7537_v48  ;;  %v1580_v59 = vunpack.c.l.bf16 %v7571_v63  ;;  %v7574_v50 = vld [vmem:[#allocation56_spill] sm:$0xff]  ;;  %v7575_v41 = vld [vmem:[#allocation55_spill] sm:$0xff] }
 0x164   : > { %v1725_v26 = vadd.f32 %v1723_v60, %v1718_v34  ;;  %v1428_v36 = vmul.f32 %v1426_v29, %v7572_v62  ;;  %v1454_v15 = vunpack.c.l.bf16 %v7573_v11  ;;  %v1522_v33 = vadd.f32 %v5396_v18, %v1515_v57 }
 0x165   : > { %v1416_v44 = vadd.f32 %v1414_v47, %v1409_v53  ;;  %v1563_v40 = vadd.f32 %v1561_v58, %v1556_v25  ;;  %v1575_v45 = vmul.f32 %v1573_v22, %v7542_v14  ;;  %v1587_v5 = vunpack.c.l.bf16 %v5264_v10  ;;  %v7577_v58 = vld [vmem:[#allocation58_spill] sm:$0xff]  ;;  %v7578_v53 = vld [vmem:[#allocation100_spill] sm:$0xff] }
 0x166   : > { %v1732_v1 = vadd.f32 %v1730_v16, %v1725_v26  ;;  %v1435_v23 = vmul.f32 %v1433_v32, %v7574_v50  ;;  %v1442_v21 = vmul.f32 %v1440_v7, %v7575_v41  ;;  %v1449_v60 = vmul.f32 %v1447_v37, %v7576_v42  ;;  %v7579_v16 = vld [vmem:[#allocation104_spill] sm:$0xff]  ;;  %v7580_v7 = vld [vmem:[#allocation111_spill] sm:$0xff]  ;;  %v7606_v14 = vld [vmem:[#allocation26_spill] sm:$0xff] }
 0x167   : > { %v1423_v9 = vadd.f32 %v1421_v19, %v1416_v44  ;;  %v1570_v47 = vadd.f32 %v1568_v56, %v1563_v40  ;;  %v1582_v29 = vmul.f32 %v1580_v59, %v7545_v46  ;;  %v1594_v34 = vunpack.c.l.bf16 %v5276_v49  ;;  %v7581_v59 = vld [vmem:[#allocation107_spill] sm:$0xff]  ;;  %v7582_v49 = vld [vmem:[#allocation106_spill] sm:$0xff] }
 0x168   : > { %v1739_v18 = vadd.f32 %v5476_v52, %v1732_v1  ;;  %v1456_v22 = vmul.f32 %v1454_v15, %v7577_v58  ;;  %v1461_v10 = vunpack.c.l.bf16 %v7578_v53  ;;  %v1468_v19 = vunpack.c.l.bf16 %v7579_v16  ;;  %v7583_v52 = vld [vmem:[#allocation108_spill] sm:$0xff]  ;;  %v7584_v40 = vld [vmem:[#allocation118_spill] sm:$0xff]  ;;  %v7586_v53 = vld [vmem:[#allocation113_spill] sm:$0xff] }
 0x169   : > { %v1430_v57 = vadd.f32 %v1428_v36, %v1423_v9  ;;  %v1577_v25 = vadd.f32 %v1575_v45, %v1570_v47  ;;  %v1589_v32 = vmul.f32 %v1587_v5, %v7546_v54  ;;  %v1601_v63 = vunpack.c.l.bf16 %v7580_v7  ;;  %v7585_v5 = vld [vmem:[#allocation66_spill] sm:$0xff]  ;;  %v7588_v7 = vld [vmem:[#allocation121_spill] sm:$0xff] }
 0x16a   : > { %v1746_v37 = vadd.f32 %v5479_v51, %v1739_v18  ;;  %v1475_v26 = vunpack.c.l.bf16 %v7581_v59  ;;  %v1482_v44 = vunpack.c.l.bf16 %v7582_v49  ;;  %v1489_v36 = vunpack.c.l.bf16 %v7583_v52  ;;  %v7590_v49 = vld [vmem:[#allocation67_spill] sm:$0xff]  ;;  %v5583_v54 = vld [vmem:[%s4209_s25 + $0x160] sm:$0xff] }
 0x16b   : > { %v1437_v56 = vadd.f32 %v1435_v23, %v1430_v57  ;;  %v1584_v11 = vadd.f32 %v1582_v29, %v1577_v25  ;;  %v1596_v15 = vmul.f32 %v1594_v34, %v7547_v8  ;;  %v1608_v1 = vunpack.c.l.bf16 %v7584_v40  ;;  %v7587_v23 = vld [vmem:[#allocation65_spill] sm:$0xff]  ;;  %v7589_v34 = vld [vmem:[#allocation68_spill] sm:$0xff]  ;;  %v7599_v8 = vld [vmem:[#allocation74_spill] sm:$0xff]  ;;  %7603 = vst [vmem:[#allocation77_spill] sm:$0xff] %v5583_v54 }
 0x16c   : > { %v3525_v45 = vpack.c.bf16 %v1746_v37, %v1522_v33  ;;  %v1463_v47 = vmul.f32 %v1461_v10, %v7585_v5  ;;  %v1496_v51 = vunpack.c.l.bf16 %v7586_v53  ;;  %v1470_v18 = vmul.f32 %v1468_v19, %v7587_v23  ;;  %v5547_v37 = vld [vmem:[%s4209_s25 + $0x20] sm:$0xff] }
 0x16d   : > { %v1444_v9 = vadd.f32 %v1442_v21, %v1437_v56  ;;  %v1591_v57 = vadd.f32 %v1589_v32, %v1584_v11  ;;  %v1603_v16 = vmul.f32 %v1601_v63, %v7548_v0  ;;  %v1615_v29 = vunpack.c.l.bf16 %v7588_v7  ;;  %v7591_v21 = vld [vmem:[#allocation112_spill] sm:$0xff]  ;;  %v7592_v56 = vld [vmem:[#allocation70_spill] sm:$0xff]  ;;  %v7594_v40 = vld [vmem:[#allocation69_spill] sm:$0xff] }
 0x16e   : > { %3526 = vmatprep.subr.bf16.mxu0 %v3525_v45  ;;  %v1477_v59 = vmul.f32 %v1475_v26, %v7589_v34  ;;  %v5543_v33 = vmul.f32 %v1482_v44, %v7590_v49  ;;  %v1503_v10 = vunpack.c.l.bf16 %v7591_v21  ;;  %v5550_v52 = vmul.f32 %v1489_v36, %v7592_v56  ;;  %v7593_v63 = vld [vmem:[#allocation122_spill] sm:$0xff]  ;;  %v7596_v7 = vld [vmem:[#allocation128_spill] sm:$0xff] }
 0x16f   : > { %v1451_v25 = vadd.f32 %v1449_v60, %v1444_v9  ;;  %v1598_v19 = vadd.f32 %v1596_v15, %v1591_v57  ;;  %v1610_v32 = vmul.f32 %v1608_v1, %v7550_v6  ;;  %v1622_v11 = vunpack.c.l.bf16 %v7593_v63  ;;  %v5555_v60 = vld [vmem:[%s4209_s25 + $0x60] sm:$0xff] }
 0x170   : > { %v5558_v26 = vld [vmem:[%s4209_s25 + $0xa0] sm:$0xff]  ;;  %v5561_v45 = vmul.f32 %v1496_v51, %v7594_v40  ;;  %v1517_v36 = vunpack.c.l.bf16 %v7596_v7  ;;  %v1617_v15 = vmul.f32 %v1615_v29, %v7555_v55  ;;  %v1749_v63 = vunpack.c.h.bf16 %v5547_v37 }
 0x171   : > { %v1458_v44 = vadd.f32 %v1456_v22, %v1451_v25  ;;  %v7595_v9 = vld [vmem:[#allocation126_spill] sm:$0xff]  ;;  %v1605_v21 = vadd.f32 %v1603_v16, %v1598_v19  ;;  %v7597_v1 = vld [vmem:[#allocation129_spill] sm:$0xff]  ;;  %v5572_v22 = vmul.f32 %v1503_v10, %v7599_v8  ;;  %v1756_v51 = vunpack.c.h.bf16 %v5555_v60 }
 0x172   : > { %v1510_v53 = vunpack.c.l.bf16 %v7595_v9  ;;  %v1629_v57 = vunpack.c.l.bf16 %v7597_v1  ;;  %v5569_v6 = vld [vmem:[%s4209_s25 + $0xe0] sm:$0xff]  ;;  %v1763_v25 = vunpack.c.h.bf16 %v5558_v26  ;;  %v1624_v29 = vmul.f32 %v1622_v11, %v7557_v39  ;;  %v7602_v1 = vld [vmem:[#allocation24_spill] sm:$0xff] }
 0x173   : > { %7598 = vst [vmem:[#allocation79_spill] sm:$0xff] %v5569_v6  ;;  %v1465_v0 = vadd.f32 %v1463_v47, %v1458_v44  ;;  %v5577_v9 = vld [vmem:[%s4209_s25 + $0x120] sm:$0xff]  ;;  %v1612_v16 = vadd.f32 %v1610_v32, %v1605_v21  ;;  %v1751_v55 = vmul.f32 %v1749_v63, %v7602_v1  ;;  %v1770_v13 = vunpack.c.h.bf16 %v5569_v6  ;;  %v7607_v63 = vld [vmem:[#allocation71_spill] sm:$0xff] }
 0x174   : > { %7600 = vst [vmem:[#allocation83_spill] sm:$0xff] %v5577_v9  ;;  %v7601_v19 = vld [vmem:[#allocation30_spill] sm:$0xff]  ;;  %v7605_v10 = vld [vmem:[#allocation25_spill] sm:$0xff]  ;;  %v1765_v48 = vmul.f32 %v1763_v25, %v7606_v14  ;;  %v1631_v32 = vmul.f32 %v1629_v57, %v7562_v20  ;;  %v1777_v11 = vunpack.c.h.bf16 %v5577_v9  ;;  %v1784_v30 = vunpack.c.h.bf16 %v5583_v54 }
 0x175   : > { %v1636_v7 = vunpack.c.l.bf16 %v7601_v19  ;;  %v7604_v47 = vld [vmem:[#allocation130_spill] sm:$0xff]  ;;  %v1758_v46 = vmul.f32 %v1756_v51, %v7605_v10  ;;  %v1472_v12 = vadd.f32 %v1470_v18, %v1465_v0  ;;  %v1619_v2 = vadd.f32 %v1617_v15, %v1612_v16  ;;  %v7609_v0 = vld [vmem:[#allocation33_spill] sm:$0xff] }
 0x176   : > { %v1643_v44 = vunpack.c.l.bf16 %v7604_v47  ;;  %v5592_v21 = vld [vmem:[%s4209_s25 + $0x1a0] sm:$0xff]  ;;  %v5595_v19 = vmul.f32 %v1510_v53, %v7607_v63  ;;  %v7608_v47 = vld [vmem:[#allocation27_spill] sm:$0xff]  ;;  %v1650_v18 = vunpack.c.l.bf16 %v7609_v0  ;;  %v1657_v15 = vunpack.c.l.bf16 %v5385_v24  ;;  %v7610_v53 = vld [vmem:[#allocation28_spill] sm:$0xff] }
 0x177   : > { %v1760_v39 = vadd.f32 %v1758_v46, %v1751_v55  ;;  %v1772_v51 = vmul.f32 %v1770_v13, %v7608_v47  ;;  %v1626_v25 = vadd.f32 %v1624_v29, %v1619_v2  ;;  %v1638_v6 = vmul.f32 %v1636_v7, %v7563_v43  ;;  %v5603_v57 = vld [vmem:[%s4209_s25 + $0x1e0] sm:$0xff]  ;;  %v7611_v29 = vld [vmem:[#allocation40_spill] sm:$0xff]  ;;  %v7612_v0 = vld [vmem:[#allocation75_spill] sm:$0xff] }
 0x178   : > { %v1645_v16 = vmul.f32 %v1643_v44, %v7565_v27  ;;  %v1779_v46 = vmul.f32 %v1777_v11, %v7610_v53  ;;  %v1791_v55 = vunpack.c.h.bf16 %v5592_v21  ;;  %v1479_v13 = vadd.f32 %v1477_v59, %v1472_v12  ;;  %v5611_v43 = vld [vmem:[%s4209_s25 + $0x220] sm:$0xff] }
 0x179   : > { %v1767_v20 = vadd.f32 %v1765_v48, %v1760_v39  ;;  %v1633_v9 = vadd.f32 %v1631_v32, %v1626_v25  ;;  %v1664_v2 = vunpack.c.l.bf16 %v5388_v3  ;;  %v1671_v7 = vunpack.c.l.bf16 %v7611_v29  ;;  %v5622_v59 = vld [vmem:[%s4209_s25 + $0x260] sm:$0xff] }
 0x17a   : > { %v5614_v24 = vmul.f32 %v1517_v36, %v7612_v0  ;;  %v1786_v39 = vmul.f32 %v1784_v30, %v7613_v28  ;;  %v1798_v48 = vunpack.c.h.bf16 %v5603_v57  ;;  %v1652_v11 = vmul.f32 %v1650_v18, %v7572_v62  ;;  %v7614_v36 = vld [vmem:[#allocation32_spill] sm:$0xff]  ;;  %v5631_v18 = vld [vmem:[%s4209_s25 + $0x2a0] sm:$0xff]  ;;  %v7616_v62 = vld [vmem:[#allocation35_spill] sm:$0xff] }
 0x17b   : > { %v1774_v54 = vadd.f32 %v1772_v51, %v1767_v20  ;;  %v1640_v44 = vadd.f32 %v1638_v6, %v1633_v9  ;;  %v1659_v12 = vmul.f32 %v1657_v15, %v7574_v50  ;;  %v1678_v3 = vunpack.c.l.bf16 %v5401_v35  ;;  %v7615_v35 = vld [vmem:[#allocation43_spill] sm:$0xff]  ;;  %v7617_v27 = vld [vmem:[#allocation42_spill] sm:$0xff] }
 0x17c   : > { %v1685_v32 = vunpack.c.l.bf16 %v5404_v17  ;;  %v1793_v20 = vmul.f32 %v1791_v55, %v7614_v36  ;;  %v1805_v51 = vunpack.c.h.bf16 %v5611_v43  ;;  %v1486_v30 = vadd.f32 %v5543_v33, %v1479_v13 }
 0x17d   : > { %v1781_v25 = vadd.f32 %v1779_v46, %v1774_v54  ;;  %v1647_v29 = vadd.f32 %v1645_v16, %v1640_v44  ;;  %v1666_v6 = vmul.f32 %v1664_v2, %v7575_v41  ;;  %v1673_v9 = vmul.f32 %v1671_v7, %v7576_v42  ;;  %v7618_v16 = vld [vmem:[#allocation131_spill] sm:$0xff]  ;;  %v5640_v2 = vld [vmem:[%s4209_s25 + $0x2e0] sm:$0xff] }
 0x17e   : > { %v1692_v15 = vunpack.c.l.bf16 %v7615_v35  ;;  %v1800_v54 = vmul.f32 %v1798_v48, %v7616_v62  ;;  %v1812_v17 = vunpack.c.h.bf16 %v5622_v59  ;;  %v1680_v55 = vmul.f32 %v1678_v3, %v7577_v58  ;;  %v7619_v42 = vld [vmem:[#allocation38_spill] sm:$0xff]  ;;  %v7621_v3 = vld [vmem:[#allocation72_spill] sm:$0xff] }
 0x17f   : > { %v1788_v50 = vadd.f32 %v1786_v39, %v1781_v25  ;;  %v1654_v46 = vadd.f32 %v1652_v11, %v1647_v29  ;;  %v1699_v33 = vunpack.c.l.bf16 %v7617_v27  ;;  %v1706_v13 = vunpack.c.l.bf16 %v7618_v16  ;;  %v7620_v11 = vld [vmem:[#allocation47_spill] sm:$0xff]  ;;  %v5649_v58 = vld [vmem:[%s4209_s25 + $0x320] sm:$0xff] }
 0x180   : > { %v1687_v7 = vmul.f32 %v1685_v32, %v7585_v5  ;;  %v1807_v39 = vmul.f32 %v1805_v51, %v7619_v42  ;;  %v1819_v25 = vunpack.c.h.bf16 %v5631_v18  ;;  %v1493_v48 = vadd.f32 %v5550_v52, %v1486_v30  ;;  %v7622_v32 = vld [vmem:[#allocation41_spill] sm:$0xff]  ;;  %v7623_v30 = vld [vmem:[#allocation78_spill] sm:$0xff] }
 0x181   : > { %v1795_v44 = vadd.f32 %v1793_v20, %v1788_v50  ;;  %v1661_v35 = vadd.f32 %v1659_v12, %v1654_v46  ;;  %v1713_v29 = vunpack.c.l.bf16 %v7620_v11  ;;  %v1720_v27 = vunpack.c.l.bf16 %v7621_v3  ;;  %v5658_v11 = vld [vmem:[%s4209_s25 + $0x360] sm:$0xff] }
 0x182   : > { %v1694_v16 = vmul.f32 %v1692_v15, %v7587_v23  ;;  %v1814_v50 = vmul.f32 %v1812_v17, %v7622_v32  ;;  %v1826_v20 = vunpack.c.h.bf16 %v5640_v2  ;;  %v1701_v52 = vmul.f32 %v1699_v33, %v7589_v34  ;;  %7624 = vst [vmem:[#allocation82_spill] sm:$0xff] %v5658_v11  ;;  %v5664_v23 = vld [vmem:[%s4209_s25 + $0x3a0] sm:$0xff] }
 0x183   : > { %v1802_v41 = vadd.f32 %v1800_v54, %v1795_v44  ;;  %v1668_v51 = vadd.f32 %v1666_v6, %v1661_v35  ;;  %v1727_v12 = vunpack.c.l.bf16 %v5446_v38  ;;  %v1734_v46 = vunpack.c.l.bf16 %v7623_v30  ;;  %v7625_v54 = vld [vmem:[#allocation44_spill] sm:$0xff]  ;;  %7626 = vst [vmem:[#allocation87_spill] sm:$0xff] %v5664_v23  ;;  %v5672_v30 = vld [vmem:[%s4209_s25 + $0x3e0] sm:$0xff] }
 0x184   : > { %v1708_v3 = vmul.f32 %v1706_v13, %v7590_v49  ;;  %v1821_v17 = vmul.f32 %v1819_v25, %v7625_v54  ;;  %v1833_v44 = vunpack.c.h.bf16 %v5649_v58  ;;  %v1500_v6 = vadd.f32 %v5561_v45, %v1493_v48  ;;  %7627 = vst [vmem:[#allocation85_spill] sm:$0xff] %v5672_v30  ;;  %v5675_v13 = vld [vmem:[%s4209_s25 + $0x420] sm:$0xff]  ;;  %v5681_v45 = vld [vmem:[%s4209_s25 + $0x28] sm:$0xff] }
 0x185   : > { %v1809_v15 = vadd.f32 %v1807_v39, %v1802_v41  ;;  %v1675_v33 = vadd.f32 %v1673_v9, %v1668_v51  ;;  %v1715_v38 = vmul.f32 %v1713_v29, %v7592_v56  ;;  %v5669_v35 = vmul.f32 %v1720_v27, %v7594_v40  ;;  %7628 = vst [vmem:[#allocation92_spill] sm:$0xff] %v5675_v13  ;;  %v7629_v41 = vld [vmem:[#allocation73_spill] sm:$0xff]  ;;  %v5684_v9 = vld [vmem:[%s4209_s25 + $0x68] sm:$0xff] }
 0x186   : > { %v1741_v39 = vunpack.c.l.bf16 %v7629_v41  ;;  %v7630_v49 = vld [vmem:[#allocation53_spill] sm:$0xff]  ;;  %v1840_v5 = vunpack.c.h.bf16 %v5658_v11  ;;  %7631 = vst [vmem:[#allocation89_spill] sm:$0xff] %v5681_v45  ;;  %7632 = vst [vmem:[#allocation84_spill] sm:$0xff] %v5684_v9  ;;  %v5687_v29 = vmul.f32 %v1727_v12, %v7599_v8  ;;  %v5690_v27 = vmul.f32 %v1734_v46, %v7607_v63  ;;  %v5706_v8 = vld [vmem:[%s4209_s25 + $0xe8] sm:$0xff] }
 0x187   : > { %v1816_v25 = vadd.f32 %v1814_v50, %v1809_v15  ;;  %v1828_v34 = vmul.f32 %v1826_v20, %v7630_v49  ;;  %v1682_v48 = vadd.f32 %v1680_v55, %v1675_v33  ;;  %v1847_v51 = vunpack.c.h.bf16 %v5664_v23  ;;  %v5694_v50 = vld [vmem:[%s4209_s25 + $0x460] sm:$0xff]  ;;  %v5697_v20 = vld [vmem:[%s4209_s25 + $0xa8] sm:$0xff]  ;;  %7635 = vst [vmem:[#allocation88_spill] sm:$0xff] %v5706_v8 }
 0x188   : > { %7633 = vst [vmem:[#allocation94_spill] sm:$0xff] %v5697_v20  ;;  %v7634_v41 = vld [vmem:[#allocation57_spill] sm:$0xff]  ;;  %v1854_v56 = vunpack.c.h.bf16 %v5672_v30  ;;  %v1861_v55 = vunpack.c.h.bf16 %v5675_v13  ;;  %v1507_v12 = vadd.f32 %v5572_v22, %v1500_v6  ;;  %v1973_v46 = vunpack.c.h.bf16 %v5681_v45  ;;  %v5709_v23 = vld [vmem:[%s4209_s25 + $0x128] sm:$0xff] }
 0x189   : > { %v1823_v15 = vadd.f32 %v1821_v17, %v1816_v25  ;;  %v1835_v40 = vmul.f32 %v1833_v44, %v7634_v41  ;;  %v1689_v33 = vadd.f32 %v1687_v7, %v1682_v48  ;;  %v1980_v63 = vunpack.c.h.bf16 %v5684_v9  ;;  %7636 = vst [vmem:[#allocation95_spill] sm:$0xff] %v5709_v23  ;;  %v7637_v17 = vld [vmem:[#allocation60_spill] sm:$0xff]  ;;  %v5715_v30 = vld [vmem:[%s4209_s25 + $0x168] sm:$0xff]  ;;  %v7639_v7 = vld [vmem:[#allocation61_spill] sm:$0xff] }
 0x18a   : > { %v1842_v44 = vmul.f32 %v1840_v5, %v7637_v17  ;;  %v1868_v25 = vunpack.c.h.bf16 %v5694_v50  ;;  %v1987_v13 = vunpack.c.h.bf16 %v5697_v20  ;;  %7638 = vst [vmem:[#allocation96_spill] sm:$0xff] %v5715_v30  ;;  %v1849_v6 = vmul.f32 %v1847_v51, %v7639_v7  ;;  %v5724_v20 = vld [vmem:[%s4209_s25 + $0x1a8] sm:$0xff] }
 0x18b   : > { %v1830_v11 = vadd.f32 %v1828_v34, %v1823_v15  ;;  %v1696_v22 = vadd.f32 %v1694_v16, %v1689_v33  ;;  %v1975_v48 = vmul.f32 %v1973_v46, %v7602_v1  ;;  %v1982_v9 = vmul.f32 %v1980_v63, %v7605_v10  ;;  %v5730_v33 = vld [vmem:[%s4209_s25 + $0x4a0] sm:$0xff] }
 0x18c   : > { %v1989_v34 = vmul.f32 %v1987_v13, %v7606_v14  ;;  %v1994_v5 = vunpack.c.h.bf16 %v5706_v8  ;;  %v2001_v15 = vunpack.c.h.bf16 %v5709_v23  ;;  %v5727_v51 = vmul.f32 %v1741_v39, %v7612_v0  ;;  %v7641_v14 = vld [vmem:[#allocation63_spill] sm:$0xff]  ;;  %v5743_v39 = vld [vmem:[%s4209_s25 + $0x520] sm:$0xff] }
 0x18d   : > { %v1837_v45 = vadd.f32 %v1835_v40, %v1830_v11  ;;  %v1703_v16 = vadd.f32 %v1701_v52, %v1696_v22  ;;  %v1984_v46 = vadd.f32 %v1982_v9, %v1975_v48  ;;  %v2008_v40 = vunpack.c.h.bf16 %v5715_v30  ;;  %v7640_v11 = vld [vmem:[#allocation62_spill] sm:$0xff]  ;;  %7643 = vst [vmem:[#allocation99_spill] sm:$0xff] %v5743_v39  ;;  %v7645_v48 = vld [vmem:[#allocation64_spill] sm:$0xff] }
 0x18e   : > { %v1856_v13 = vmul.f32 %v1854_v56, %v7640_v11  ;;  %v1863_v10 = vmul.f32 %v1861_v55, %v7641_v14  ;;  %v1996_v1 = vmul.f32 %v1994_v5, %v7608_v47  ;;  %v5737_v23 = vld [vmem:[%s4209_s25 + $0x1e8] sm:$0xff]  ;;  %v5740_v22 = vld [vmem:[%s4209_s25 + $0x4e0] sm:$0xff]  ;;  %v2015_v56 = vunpack.c.h.bf16 %v5724_v20 }
 0x18f   : > { %v1844_v63 = vadd.f32 %v1842_v44, %v1837_v45  ;;  %7642 = vst [vmem:[#allocation105_spill] sm:$0xff] %v5737_v23  ;;  %v1710_v52 = vadd.f32 %v1708_v3, %v1703_v16  ;;  %v5746_v0 = vld [vmem:[%s4209_s25 + $0x560] sm:$0xff]  ;;  %v1991_v9 = vadd.f32 %v1989_v34, %v1984_v46  ;;  %v2003_v45 = vmul.f32 %v2001_v15, %v7610_v53  ;;  %v5754_v3 = vld [vmem:[%s4209_s25 + $0x228] sm:$0xff] }
 0x190   : > { %7644 = vst [vmem:[#allocation97_spill] sm:$0xff] %v5746_v0  ;;  %v1514_v55 = vadd.f32 %v5595_v19, %v1507_v12  ;;  %v1870_v5 = vmul.f32 %v1868_v25, %v7645_v48  ;;  %v1875_v47 = vunpack.c.h.bf16 %v5730_v33  ;;  %7646 = vst [vmem:[#allocation98_spill] sm:$0xff] %v5754_v3  ;;  %v5757_v30 = vld [vmem:[%s4209_s25 + $0x5a0] sm:$0xff]  ;;  %v2010_v34 = vmul.f32 %v2008_v40, %v7613_v28  ;;  %v5774_v53 = vld [vmem:[%s4209_s25 + $0x2a8] sm:$0xff] }
 0x191   : > { %v1851_v44 = vadd.f32 %v1849_v6, %v1844_v63  ;;  %v1717_v16 = vadd.f32 %v1715_v38, %v1710_v52  ;;  %7647 = vst [vmem:[#allocation102_spill] sm:$0xff] %v5757_v30  ;;  %v1998_v8 = vadd.f32 %v1996_v1, %v1991_v9  ;;  %v2022_v15 = vunpack.c.h.bf16 %v5737_v23  ;;  %v5765_v6 = vld [vmem:[%s4209_s25 + $0x268] sm:$0xff]  ;;  %v7649_v9 = vld [vmem:[#allocation76_spill] sm:$0xff]  ;;  %7650 = vst [vmem:[#allocation100_spill] sm:$0xff] %v5774_v53 }
 0x192   : > { %v1882_v19 = vunpack.c.h.bf16 %v5740_v22  ;;  %v1889_v12 = vunpack.c.h.bf16 %v5743_v39  ;;  %v1896_v25 = vunpack.c.h.bf16 %v5746_v0  ;;  %7648 = vst [vmem:[#allocation101_spill] sm:$0xff] %v5765_v6  ;;  %v2017_v63 = vmul.f32 %v2015_v56, %v7614_v36  ;;  %v5784_v56 = vld [vmem:[%s4209_s25 + $0x660] sm:$0xff] }
 0x193   : > { %v1858_v46 = vadd.f32 %v1856_v13, %v1851_v44  ;;  %v1724_v38 = vadd.f32 %v5669_v35, %v1717_v16  ;;  %v2005_v1 = vadd.f32 %v2003_v45, %v1998_v8  ;;  %v2029_v40 = vunpack.c.h.bf16 %v5754_v3  ;;  %v5778_v8 = vld [vmem:[%s4209_s25 + $0x5e0] sm:$0xff]  ;;  %7653 = vst [vmem:[#allocation107_spill] sm:$0xff] %v5784_v56  ;;  %v7654_v16 = vld [vmem:[#allocation80_spill] sm:$0xff] }
 0x194   : > { %v1521_v52 = vadd.f32 %v5614_v24, %v1514_v55  ;;  %v1877_v44 = vmul.f32 %v1875_v47, %v7649_v9  ;;  %v1903_v28 = vunpack.c.h.bf16 %v5757_v30  ;;  %7651 = vst [vmem:[#allocation104_spill] sm:$0xff] %v5778_v8  ;;  %v5781_v45 = vld [vmem:[%s4209_s25 + $0x620] sm:$0xff]  ;;  %v2036_v47 = vunpack.c.h.bf16 %v5765_v6 }
 0x195   : > { %v1865_v13 = vadd.f32 %v1863_v10, %v1858_v46  ;;  %v1731_v35 = vadd.f32 %v5687_v29, %v1724_v38  ;;  %7652 = vst [vmem:[#allocation111_spill] sm:$0xff] %v5781_v45  ;;  %v2012_v24 = vadd.f32 %v2010_v34, %v2005_v1  ;;  %v2024_v10 = vmul.f32 %v2022_v15, %v7616_v62  ;;  %v7655_v36 = vld [vmem:[#allocation81_spill] sm:$0xff]  ;;  %v7656_v3 = vld [vmem:[#allocation86_spill] sm:$0xff] }
 0x196   : > { %v1884_v46 = vmul.f32 %v1882_v19, %v7654_v16  ;;  %v1891_v30 = vmul.f32 %v1889_v12, %v7655_v36  ;;  %v1898_v0 = vmul.f32 %v1896_v25, %v7656_v3  ;;  %v5792_v29 = vld [vmem:[%s4209_s25 + $0x2e8] sm:$0xff]  ;;  %v5796_v39 = vld [vmem:[%s4209_s25 + $0x6a0] sm:$0xff]  ;;  %v2043_v19 = vunpack.c.h.bf16 %v5774_v53 }
 0x197   : > { %v1872_v55 = vadd.f32 %v1870_v5, %v1865_v13  ;;  %7657 = vst [vmem:[#allocation106_spill] sm:$0xff] %v5792_v29  ;;  %v1738_v38 = vadd.f32 %v5690_v27, %v1731_v35  ;;  %7658 = vst [vmem:[#allocation108_spill] sm:$0xff] %v5796_v39  ;;  %v5799_v23 = vld [vmem:[%s4209_s25 + $0x6e0] sm:$0xff]  ;;  %v2019_v15 = vadd.f32 %v2017_v63, %v2012_v24  ;;  %v1910_v25 = vunpack.c.h.bf16 %v5778_v8  ;;  %v5810_v13 = vld [vmem:[%s4209_s25 + $0x328] sm:$0xff] }
 0x198   : > { %7659 = vst [vmem:[#allocation118_spill] sm:$0xff] %v5799_v23  ;;  %v5802_v34 = vld [vmem:[%s4209_s25 + $0x720] sm:$0xff]  ;;  %v2031_v5 = vmul.f32 %v2029_v40, %v7619_v42  ;;  %v1917_v1 = vunpack.c.h.bf16 %v5781_v45  ;;  %v1924_v27 = vunpack.c.h.bf16 %v5784_v56  ;;  %7661 = vst [vmem:[#allocation121_spill] sm:$0xff] %v5810_v13  ;;  %v2038_v63 = vmul.f32 %v2036_v47, %v7622_v32  ;;  %v5819_v56 = vld [vmem:[%s4209_s25 + $0x368] sm:$0xff] }
 0x199   : > { %7660 = vst [vmem:[#allocation113_spill] sm:$0xff] %v5802_v34  ;;  %v1879_v12 = vadd.f32 %v1877_v44, %v1872_v55  ;;  %v1745_v35 = vadd.f32 %v5727_v51, %v1738_v38  ;;  %v2026_v62 = vadd.f32 %v2024_v10, %v2019_v15  ;;  %v2050_v40 = vunpack.c.h.bf16 %v5792_v29  ;;  %7662 = vst [vmem:[#allocation112_spill] sm:$0xff] %v5819_v56  ;;  %v5822_v8 = vld [vmem:[%s4209_s25 + $0x760] sm:$0xff]  ;;  %v5830_v29 = vld [vmem:[%s4209_s25 + $0x3a8] sm:$0xff] }
 0x19a   : > { %v1931_v42 = vunpack.c.h.bf16 %v5796_v39  ;;  %v1938_v44 = vunpack.c.h.bf16 %v5799_v23  ;;  %v1945_v55 = vunpack.c.h.bf16 %v5802_v34  ;;  %7663 = vst [vmem:[#allocation122_spill] sm:$0xff] %v5822_v8  ;;  %v2045_v10 = vmul.f32 %v2043_v19, %v7625_v54  ;;  %v7664_v38 = vld [vmem:[#allocation90_spill] sm:$0xff]  ;;  %v7666_v23 = vld [vmem:[#allocation93_spill] sm:$0xff]  ;;  %7667 = vst [vmem:[#allocation126_spill] sm:$0xff] %v5830_v29 }
 0x19b   : > { %v1886_v24 = vadd.f32 %v1884_v46, %v1879_v12  ;;  %v3527_v45 = vpack.c.bf16 %v1745_v35, %v1521_v52  ;;  %v2033_v51 = vadd.f32 %v2031_v5, %v2026_v62  ;;  %v2057_v47 = vunpack.c.h.bf16 %v5810_v13  ;;  %v7665_v12 = vld [vmem:[#allocation91_spill] sm:$0xff]  ;;  %v5836_v35 = vld [vmem:[%s4209_s25 + $0x7a0] sm:$0xff] }
 0x19c   : > { %v1905_v15 = vmul.f32 %v1903_v28, %v7664_v38  ;;  %v1912_v32 = vmul.f32 %v1910_v25, %v7665_v12  ;;  %v1919_v39 = vmul.f32 %v1917_v1, %v7666_v23  ;;  %v5833_v52 = vmul.f32 %v1924_v27, %v7515_v31  ;;  %7668 = vst [vmem:[#allocation128_spill] sm:$0xff] %v5836_v35  ;;  %v5839_v62 = vld [vmem:[%s4209_s25 + $0x7e0] sm:$0xff]  ;;  %v5844_v19 = vld [vmem:[%s4209_s25 + $0x3e8] sm:$0xff] }
 0x19d   : > { %v1893_v46 = vadd.f32 %v1891_v30, %v1886_v24  ;;  %3528 = vmatpush1.bf16.msra.mxu0 %v3527_v45  ;;  %7669 = vst [vmem:[#allocation129_spill] sm:$0xff] %v5839_v62  ;;  %v2040_v5 = vadd.f32 %v2038_v63, %v2033_v51  ;;  %v2052_v30 = vmul.f32 %v2050_v40, %v7630_v49  ;;  %v2064_v28 = vunpack.c.h.bf16 %v5819_v56  ;;  %v7671_v45 = vld [vmem:[#allocation110_spill] sm:$0xff]  ;;  %v7682_v53 = vld [vmem:[#allocation123_spill] sm:$0xff] }
 0x19e   : > { %7670 = vst [vmem:[#allocation30_spill] sm:$0xff] %v5844_v19  ;;  %v5847_v1 = vmul.f32 %v1931_v42, %v7516_v4  ;;  %v5850_v24 = vmul.f32 %v1938_v44, %v7671_v45  ;;  %v1952_v27 = vunpack.c.h.bf16 %v5822_v8  ;;  %v7672_v54 = vld [vmem:[#allocation114_spill] sm:$0xff]  ;;  %v2059_v40 = vmul.f32 %v2057_v47, %v7634_v41  ;;  %v7675_v41 = vld [vmem:[#allocation115_spill] sm:$0xff] }
 0x19f   : > { %v1900_v25 = vadd.f32 %v1898_v0, %v1893_v46  ;;  %v5854_v13 = vmul.f32 %v1945_v55, %v7672_v54  ;;  %v2047_v63 = vadd.f32 %v2045_v10, %v2040_v5  ;;  %v2071_v51 = vunpack.c.h.bf16 %v5830_v29  ;;  %v5859_v49 = vld [vmem:[%s4209_s25 + $0x428] sm:$0xff] }
 0x1a0   : > { %7673 = vst [vmem:[#allocation130_spill] sm:$0xff] %v5859_v49  ;;  %v1959_v42 = vunpack.c.h.bf16 %v5836_v35  ;;  %v1966_v46 = vunpack.c.h.bf16 %v5839_v62  ;;  %v2078_v44 = vunpack.c.h.bf16 %v5844_v19  ;;  %v2066_v8 = vmul.f32 %v2064_v28, %v7637_v17  ;;  %v5866_v55 = vld [vmem:[%s4209_s25 + $0x468] sm:$0xff] }
 0x1a1   : > { %v1907_v0 = vadd.f32 %v1905_v15, %v1900_v25  ;;  %v2054_v56 = vadd.f32 %v2052_v30, %v2047_v63  ;;  %7674 = vst [vmem:[#allocation33_spill] sm:$0xff] %v5866_v55  ;;  %v1748_v10 = vunpack.c.l.bf16 %v5547_v37  ;;  %v1755_v47 = vunpack.c.l.bf16 %v5555_v60  ;;  %v5877_v28 = vld [vmem:[%s4209_s25 + $0x4a8] sm:$0xff] }
 0x1a2   : > { %v5871_v15 = vmul.f32 %v1952_v27, %v7675_v41  ;;  %v2085_v25 = vunpack.c.h.bf16 %v5859_v49  ;;  %v1762_v62 = vunpack.c.l.bf16 %v5558_v26  ;;  %v2073_v30 = vmul.f32 %v2071_v51, %v7639_v7  ;;  %v7676_v37 = vld [vmem:[#allocation119_spill] sm:$0xff]  ;;  %v7681_v7 = vld [vmem:[#allocation77_spill] sm:$0xff] }
 0x1a3   : > { %v1914_v5 = vadd.f32 %v1912_v32, %v1907_v0  ;;  %v2061_v19 = vadd.f32 %v2059_v40, %v2054_v56  ;;  %v1750_v63 = vmul.f32 %v1748_v10, %v7523_v61  ;;  %v1757_v17 = vmul.f32 %v1755_v47, %v7676_v37  ;;  %v7677_v32 = vld [vmem:[#allocation120_spill] sm:$0xff]  ;;  %v7678_v0 = vld [vmem:[#allocation79_spill] sm:$0xff] }
 0x1a4   : > { %v2092_v60 = vunpack.c.h.bf16 %v5866_v55  ;;  %v1764_v27 = vmul.f32 %v1762_v62, %v7677_v32  ;;  %v1769_v35 = vunpack.c.l.bf16 %v7678_v0  ;;  %v7679_v49 = vld [vmem:[#allocation83_spill] sm:$0xff]  ;;  %v2080_v56 = vmul.f32 %v2078_v44, %v7640_v11  ;;  %v7684_v44 = vld [vmem:[#allocation124_spill] sm:$0xff] }
 0x1a5   : > { %v1776_v29 = vunpack.c.l.bf16 %v7679_v49  ;;  %v2068_v26 = vadd.f32 %v2066_v8, %v2061_v19  ;;  %v5887_v40 = vld [vmem:[%s4209_s25 + $0x4e8] sm:$0xff]  ;;  %v1759_v10 = vadd.f32 %v1757_v17, %v1750_v63  ;;  %v1783_v47 = vunpack.c.l.bf16 %v7681_v7  ;;  %v7685_v7 = vld [vmem:[#allocation116_spill] sm:$0xff] }
 0x1a6   : > { %v5890_v51 = vld [vmem:[%s4209_s25 + $0x528] sm:$0xff]  ;;  %v1921_v34 = vadd.f32 %v1919_v39, %v1914_v5  ;;  %v2087_v55 = vmul.f32 %v2085_v25, %v7641_v14  ;;  %v2099_v62 = vunpack.c.h.bf16 %v5877_v28  ;;  %v1771_v0 = vmul.f32 %v1769_v35, %v7682_v53  ;;  %v7687_v14 = vld [vmem:[#allocation125_spill] sm:$0xff] }
 0x1a7   : > { %7680 = vst [vmem:[#allocation40_spill] sm:$0xff] %v5890_v51  ;;  %v2075_v6 = vadd.f32 %v2073_v30, %v2068_v26  ;;  %v5897_v49 = vld [vmem:[%s4209_s25 + $0x568] sm:$0xff]  ;;  %v1766_v19 = vadd.f32 %v1764_v27, %v1759_v10  ;;  %v1778_v11 = vmul.f32 %v1776_v29, %v7684_v44  ;;  %v1790_v17 = vunpack.c.l.bf16 %v5592_v21 }
 0x1a8   : > { %v5900_v8 = vld [vmem:[%s4209_s25 + $0x5a8] sm:$0xff]  ;;  %v5905_v63 = vmul.f32 %v1959_v42, %v7685_v7  ;;  %v2094_v39 = vmul.f32 %v2092_v60, %v7645_v48  ;;  %v2106_v5 = vunpack.c.h.bf16 %v5887_v40  ;;  %v2113_v35 = vunpack.c.h.bf16 %v5890_v51  ;;  %v7689_v51 = vld [vmem:[#allocation117_spill] sm:$0xff] }
 0x1a9   : > { %7683 = vst [vmem:[#allocation43_spill] sm:$0xff] %v5900_v8  ;;  %v2082_v25 = vadd.f32 %v2080_v56, %v2075_v6  ;;  %v5911_v30 = vld [vmem:[%s4209_s25 + $0x5e8] sm:$0xff]  ;;  %v1773_v26 = vadd.f32 %v1771_v0, %v1766_v19  ;;  %v1785_v27 = vmul.f32 %v1783_v47, %v7687_v14  ;;  %v1797_v29 = vunpack.c.l.bf16 %v5603_v57 }
 0x1aa   : > { %7686 = vst [vmem:[#allocation42_spill] sm:$0xff] %v5911_v30  ;;  %v1928_v21 = vadd.f32 %v5833_v52, %v1921_v34  ;;  %v2101_v42 = vmul.f32 %v2099_v62, %v7649_v9  ;;  %v2120_v60 = vunpack.c.h.bf16 %v5897_v49  ;;  %v2127_v10 = vunpack.c.h.bf16 %v5900_v8  ;;  %v5920_v6 = vld [vmem:[%s4209_s25 + $0x628] sm:$0xff] }
 0x1ab   : > { %v2089_v48 = vadd.f32 %v2087_v55, %v2082_v25  ;;  %v1780_v56 = vadd.f32 %v1778_v11, %v1773_v26  ;;  %v7688_v0 = vld [vmem:[#allocation127_spill] sm:$0xff]  ;;  %v1804_v47 = vunpack.c.l.bf16 %v5611_v43  ;;  %v5925_v57 = vmul.f32 %v1966_v46, %v7689_v51 }
 0x1ac   : > { %v1792_v19 = vmul.f32 %v1790_v17, %v7688_v0  ;;  %v2108_v34 = vmul.f32 %v2106_v5, %v7654_v16  ;;  %v2115_v52 = vmul.f32 %v2113_v35, %v7655_v36  ;;  %v2134_v62 = vunpack.c.h.bf16 %v5911_v30  ;;  %v5931_v55 = vld [vmem:[%s4209_s25 + $0x668] sm:$0xff] }
 0x1ad   : > { %v2096_v9 = vadd.f32 %v2094_v39, %v2089_v48  ;;  %v5934_v25 = vld [vmem:[%s4209_s25 + $0x6a8] sm:$0xff]  ;;  %v1787_v17 = vadd.f32 %v1785_v27, %v1780_v56  ;;  %v1811_v46 = vunpack.c.l.bf16 %v5622_v59  ;;  %v1935_v5 = vadd.f32 %v5847_v1, %v1928_v21 }
 0x1ae   : > { %7690 = vst [vmem:[#allocation131_spill] sm:$0xff] %v5934_v25  ;;  %v5937_v11 = vld [vmem:[%s4209_s25 + $0x6e8] sm:$0xff]  ;;  %v2122_v16 = vmul.f32 %v2120_v60, %v7656_v3  ;;  %v2129_v35 = vmul.f32 %v2127_v10, %v7664_v38  ;;  %v2141_v48 = vunpack.c.h.bf16 %v5920_v6  ;;  %v1818_v59 = vunpack.c.l.bf16 %v5631_v18  ;;  %v7696_v38 = vld [vmem:[#allocation37_spill] sm:$0xff] }
 0x1af   : > { %7691 = vst [vmem:[#allocation47_spill] sm:$0xff] %v5937_v11  ;;  %v7692_v43 = vld [vmem:[#allocation31_spill] sm:$0xff]  ;;  %v2103_v39 = vadd.f32 %v2101_v42, %v2096_v9  ;;  %v1794_v8 = vadd.f32 %v1792_v19, %v1787_v17  ;;  %v7694_v27 = vld [vmem:[#allocation34_spill] sm:$0xff]  ;;  %v2148_v1 = vunpack.c.h.bf16 %v5931_v55  ;;  %v2155_v21 = vunpack.c.h.bf16 %v5934_v25 }
 0x1b0   : > { %v1799_v26 = vmul.f32 %v1797_v29, %v7692_v43  ;;  %v5946_v36 = vld [vmem:[%s4209_s25 + $0x728] sm:$0xff]  ;;  %v1806_v56 = vmul.f32 %v1804_v47, %v7694_v27  ;;  %v2136_v29 = vmul.f32 %v2134_v62, %v7665_v12  ;;  %v2162_v60 = vunpack.c.h.bf16 %v5937_v11 }
 0x1b1   : > { %v5949_v30 = vld [vmem:[%s4209_s25 + $0x768] sm:$0xff]  ;;  %v2110_v10 = vadd.f32 %v2108_v34, %v2103_v39  ;;  %v1813_v3 = vmul.f32 %v1811_v46, %v7696_v38  ;;  %v1825_v19 = vunpack.c.l.bf16 %v5640_v2  ;;  %v1942_v47 = vadd.f32 %v5850_v24, %v1935_v5  ;;  %v7698_v34 = vld [vmem:[#allocation36_spill] sm:$0xff] }
 0x1b2   : > { %7693 = vst [vmem:[#allocation72_spill] sm:$0xff] %v5949_v30  ;;  %v5958_v9 = vld [vmem:[%s4209_s25 + $0x7a8] sm:$0xff]  ;;  %v1801_v42 = vadd.f32 %v1799_v26, %v1794_v8  ;;  %v2143_v18 = vmul.f32 %v2141_v48, %v7666_v23  ;;  %v2169_v62 = vunpack.c.h.bf16 %v5946_v36  ;;  %v2176_v17 = vunpack.c.h.bf16 %v5949_v30 }
 0x1b3   : > { %7695 = vst [vmem:[#allocation78_spill] sm:$0xff] %v5958_v9  ;;  %v2117_v12 = vadd.f32 %v2115_v52, %v2110_v10  ;;  %v5967_v25 = vld [vmem:[%s4209_s25 + $0x7e8] sm:$0xff]  ;;  %v1820_v39 = vmul.f32 %v1818_v59, %v7698_v34  ;;  %v1832_v8 = vunpack.c.l.bf16 %v5649_v58  ;;  %v2150_v26 = vmul.f32 %v2148_v1, %v7515_v31 }
 0x1b4   : > { %7697 = vst [vmem:[#allocation73_spill] sm:$0xff] %v5967_v25  ;;  %v1808_v11 = vadd.f32 %v1806_v56, %v1801_v42  ;;  %v2157_v2 = vmul.f32 %v2155_v21, %v7516_v4  ;;  %v2183_v24 = vunpack.c.h.bf16 %v5958_v9  ;;  %v7699_v46 = vld [vmem:[#allocation82_spill] sm:$0xff]  ;;  %v2164_v23 = vmul.f32 %v2162_v60, %v7671_v45  ;;  %v7700_v52 = vld [vmem:[#allocation39_spill] sm:$0xff] }
 0x1b5   : > { %v1839_v5 = vunpack.c.l.bf16 %v7699_v46  ;;  %v2124_v48 = vadd.f32 %v2122_v16, %v2117_v12  ;;  %v1827_v10 = vmul.f32 %v1825_v19, %v7700_v52  ;;  %v1949_v56 = vadd.f32 %v5854_v13, %v1942_v47  ;;  %v7701_v42 = vld [vmem:[#allocation87_spill] sm:$0xff]  ;;  %v7702_v9 = vld [vmem:[#allocation46_spill] sm:$0xff]  ;;  %v7703_v12 = vld [vmem:[#allocation45_spill] sm:$0xff] }
 0x1b6   : > { %v1815_v30 = vadd.f32 %v1813_v3, %v1808_v11  ;;  %v2171_v59 = vmul.f32 %v2169_v62, %v7672_v54  ;;  %v2190_v58 = vunpack.c.h.bf16 %v5967_v25  ;;  %v1846_v1 = vunpack.c.l.bf16 %v7701_v42  ;;  %v7704_v11 = vld [vmem:[#allocation85_spill] sm:$0xff]  ;;  %v7705_v19 = vld [vmem:[#allocation92_spill] sm:$0xff] }
 0x1b7   : > { %v2131_v31 = vadd.f32 %v2129_v35, %v2124_v48  ;;  %v2178_v21 = vmul.f32 %v2176_v17, %v7675_v41  ;;  %v1834_v46 = vmul.f32 %v1832_v8, %v7702_v9  ;;  %v2185_v16 = vmul.f32 %v2183_v24, %v7685_v7  ;;  %v7706_v54 = vld [vmem:[#allocation89_spill] sm:$0xff]  ;;  %v7707_v25 = vld [vmem:[#allocation84_spill] sm:$0xff]  ;;  %v7709_v8 = vld [vmem:[#allocation94_spill] sm:$0xff] }
 0x1b8   : > { %v1822_v4 = vadd.f32 %v1820_v39, %v1815_v30  ;;  %v1841_v3 = vmul.f32 %v1839_v5, %v7703_v12  ;;  %v1853_v60 = vunpack.c.l.bf16 %v7704_v11  ;;  %v1860_v13 = vunpack.c.l.bf16 %v7705_v19  ;;  %v7708_v17 = vld [vmem:[#allocation48_spill] sm:$0xff] }
 0x1b9   : > { %v2138_v47 = vadd.f32 %v2136_v29, %v2131_v31  ;;  %v1972_v45 = vunpack.c.l.bf16 %v7706_v54  ;;  %v1979_v42 = vunpack.c.l.bf16 %v7707_v25  ;;  %v1956_v35 = vadd.f32 %v5871_v15, %v1949_v56  ;;  %v7710_v31 = vld [vmem:[#allocation51_spill] sm:$0xff]  ;;  %v7711_v29 = vld [vmem:[#allocation88_spill] sm:$0xff] }
 0x1ba   : > { %v1829_v62 = vadd.f32 %v1827_v10, %v1822_v4  ;;  %v1848_v30 = vmul.f32 %v1846_v1, %v7708_v17  ;;  %v1867_v39 = vunpack.c.l.bf16 %v5694_v50  ;;  %v1986_v24 = vunpack.c.l.bf16 %v7709_v8  ;;  %v7712_v10 = vld [vmem:[#allocation95_spill] sm:$0xff]  ;;  %v7713_v50 = vld [vmem:[#allocation96_spill] sm:$0xff]  ;;  %v7714_v8 = vld [vmem:[#allocation49_spill] sm:$0xff] }
 0x1bb   : > { %v2145_v48 = vadd.f32 %v2143_v18, %v2138_v47  ;;  %v1974_v11 = vmul.f32 %v1972_v45, %v7523_v61  ;;  %v1981_v19 = vmul.f32 %v1979_v42, %v7676_v37  ;;  %v1855_v4 = vmul.f32 %v1853_v60, %v7710_v31 }
 0x1bc   : > { %v1836_v5 = vadd.f32 %v1834_v46, %v1829_v62  ;;  %v1988_v54 = vmul.f32 %v1986_v24, %v7677_v32  ;;  %v1993_v25 = vunpack.c.l.bf16 %v7711_v29  ;;  %v2000_v15 = vunpack.c.l.bf16 %v7712_v10  ;;  %v7717_v10 = vld [vmem:[#allocation52_spill] sm:$0xff] }
 0x1bd   : > { %v2152_v56 = vadd.f32 %v2150_v26, %v2145_v48  ;;  %v1983_v7 = vadd.f32 %v1981_v19, %v1974_v11  ;;  %v2007_v41 = vunpack.c.l.bf16 %v7713_v50  ;;  %v1862_v18 = vmul.f32 %v1860_v13, %v7714_v8  ;;  %v7715_v26 = vld [vmem:[#allocation54_spill] sm:$0xff] }
 0x1be   : > { %v1843_v1 = vadd.f32 %v1841_v3, %v1836_v5  ;;  %v1874_v46 = vunpack.c.l.bf16 %v5730_v33  ;;  %v1995_v45 = vmul.f32 %v1993_v25, %v7682_v53  ;;  %v2014_v47 = vunpack.c.l.bf16 %v5724_v20  ;;  %v7716_v5 = vld [vmem:[#allocation105_spill] sm:$0xff]  ;;  %v6100_v53 = vld [vmem:[%s4209_s25 + $0x1f0] sm:$0xff] }
 0x1bf   : > { %v2159_v60 = vadd.f32 %v2157_v2, %v2152_v56  ;;  %v1990_v42 = vadd.f32 %v1988_v54, %v1983_v7  ;;  %v2002_v24 = vmul.f32 %v2000_v15, %v7684_v44  ;;  %v1963_v29 = vadd.f32 %v5905_v63, %v1956_v35  ;;  %v7718_v2 = vld [vmem:[#allocation99_spill] sm:$0xff]  ;;  %v7719_v7 = vld [vmem:[#allocation97_spill] sm:$0xff]  ;;  %v7720_v56 = vld [vmem:[#allocation98_spill] sm:$0xff]  ;;  %7758 = vst [vmem:[#allocation77_spill] sm:$0xff] %v6100_v53 }
 0x1c0   : > { %v1850_v62 = vadd.f32 %v1848_v30, %v1843_v1  ;;  %v1869_v3 = vmul.f32 %v1867_v39, %v7715_v26  ;;  %v1881_v48 = vunpack.c.l.bf16 %v5740_v22  ;;  %v2021_v11 = vunpack.c.l.bf16 %v7716_v5  ;;  %v7723_v5 = vld [vmem:[#allocation55_spill] sm:$0xff] }
 0x1c1   : > { %v2166_v13 = vadd.f32 %v2164_v23, %v2159_v60  ;;  %v1997_v33 = vadd.f32 %v1995_v45, %v1990_v42  ;;  %v2009_v25 = vmul.f32 %v2007_v41, %v7687_v14  ;;  %v1876_v20 = vmul.f32 %v1874_v46, %v7717_v10 }
 0x1c2   : > { %v1857_v19 = vadd.f32 %v1855_v4, %v1850_v62  ;;  %v1888_v30 = vunpack.c.l.bf16 %v7718_v2  ;;  %v1895_v54 = vunpack.c.l.bf16 %v7719_v7  ;;  %v2016_v15 = vmul.f32 %v2014_v47, %v7688_v0  ;;  %v7721_v4 = vld [vmem:[#allocation56_spill] sm:$0xff]  ;;  %v7722_v62 = vld [vmem:[#allocation101_spill] sm:$0xff]  ;;  %v7754_v0 = vld [vmem:[#allocation26_spill] sm:$0xff] }
 0x1c3   : > { %v2173_v63 = vadd.f32 %v2171_v59, %v2166_v13  ;;  %v2004_v39 = vadd.f32 %v2002_v24, %v1997_v33  ;;  %v2028_v22 = vunpack.c.l.bf16 %v7720_v56  ;;  %v1970_v1 = vadd.f32 %v5925_v57, %v1963_v29  ;;  %v7724_v59 = vld [vmem:[#allocation59_spill] sm:$0xff]  ;;  %v7725_v24 = vld [vmem:[#allocation102_spill] sm:$0xff]  ;;  %v7727_v2 = vld [vmem:[#allocation104_spill] sm:$0xff] }
 0x1c4   : > { %v1864_v35 = vadd.f32 %v1862_v18, %v1857_v19  ;;  %v2192_v23 = vmul.f32 %v2190_v58, %v7689_v51  ;;  %v1883_v50 = vmul.f32 %v1881_v48, %v7721_v4  ;;  %v2023_v41 = vmul.f32 %v2021_v11, %v7692_v43  ;;  %v7726_v19 = vld [vmem:[#allocation100_spill] sm:$0xff] }
 0x1c5   : > { %v2180_v46 = vadd.f32 %v2178_v21, %v2173_v63  ;;  %v2011_v60 = vadd.f32 %v2009_v25, %v2004_v39  ;;  %v2035_v42 = vunpack.c.l.bf16 %v7722_v62  ;;  %v1890_v47 = vmul.f32 %v1888_v30, %v7723_v5  ;;  %v7728_v21 = vld [vmem:[#allocation111_spill] sm:$0xff]  ;;  %v7730_v63 = vld [vmem:[#allocation106_spill] sm:$0xff]  ;;  %v7731_v62 = vld [vmem:[#allocation108_spill] sm:$0xff] }
 0x1c6   : > { %v1871_v45 = vadd.f32 %v1869_v3, %v1864_v35  ;;  %v1897_v18 = vmul.f32 %v1895_v54, %v7724_v59  ;;  %v1902_v13 = vunpack.c.l.bf16 %v7725_v24  ;;  %v2042_v33 = vunpack.c.l.bf16 %v7726_v19  ;;  %v7729_v25 = vld [vmem:[#allocation107_spill] sm:$0xff] }
 0x1c7   : > { %v2187_v57 = vadd.f32 %v2185_v16, %v2180_v46  ;;  %v2018_v58 = vadd.f32 %v2016_v15, %v2011_v60  ;;  %v2030_v48 = vmul.f32 %v2028_v22, %v7694_v27  ;;  %v1909_v11 = vunpack.c.l.bf16 %v7727_v2  ;;  %v7732_v16 = vld [vmem:[#allocation118_spill] sm:$0xff]  ;;  %v7733_v15 = vld [vmem:[#allocation113_spill] sm:$0xff] }
 0x1c8   : > { %v1878_v29 = vadd.f32 %v1876_v20, %v1871_v45  ;;  %v1916_v3 = vunpack.c.l.bf16 %v7728_v21  ;;  %v1923_v7 = vunpack.c.l.bf16 %v7729_v25  ;;  %v2049_v35 = vunpack.c.l.bf16 %v7730_v63  ;;  %v7734_v2 = vld [vmem:[#allocation121_spill] sm:$0xff]  ;;  %v7737_v25 = vld [vmem:[#allocation112_spill] sm:$0xff] }
 0x1c9   : > { %v2194_v30 = vadd.f32 %v2192_v23, %v2187_v57  ;;  %v2025_v54 = vadd.f32 %v2023_v41, %v2018_v58  ;;  %v2037_v56 = vmul.f32 %v2035_v42, %v7696_v38  ;;  %v1930_v24 = vunpack.c.l.bf16 %v7731_v62  ;;  %v7735_v23 = vld [vmem:[#allocation58_spill] sm:$0xff]  ;;  %v7753_v27 = vld [vmem:[#allocation25_spill] sm:$0xff] }
 0x1ca   : > { %v1885_v39 = vadd.f32 %v1883_v50, %v1878_v29  ;;  %v1937_v20 = vunpack.c.l.bf16 %v7732_v16  ;;  %v1944_v46 = vunpack.c.l.bf16 %v7733_v15  ;;  %v2044_v22 = vmul.f32 %v2042_v33, %v7698_v34  ;;  %v7736_v41 = vld [vmem:[#allocation66_spill] sm:$0xff]  ;;  %v7738_v33 = vld [vmem:[#allocation65_spill] sm:$0xff] }
 0x1cb   : > { %v3529_v45 = vpack.c.bf16 %v2194_v30, %v1970_v1  ;;  %v2032_v19 = vadd.f32 %v2030_v48, %v2025_v54  ;;  %v2056_v21 = vunpack.c.l.bf16 %v7734_v2  ;;  %v1904_v50 = vmul.f32 %v1902_v13, %v7735_v23  ;;  %v7739_v1 = vld [vmem:[#allocation68_spill] sm:$0xff]  ;;  %v7742_v54 = vld [vmem:[#allocation70_spill] sm:$0xff] }
 0x1cc   : > { %v1892_v60 = vadd.f32 %v1890_v47, %v1885_v39  ;;  %v1911_v57 = vmul.f32 %v1909_v11, %v7736_v41  ;;  %v2051_v58 = vmul.f32 %v2049_v35, %v7700_v52  ;;  %v2063_v63 = vunpack.c.l.bf16 %v7737_v25  ;;  %v7740_v47 = vld [vmem:[#allocation67_spill] sm:$0xff]  ;;  %v7741_v39 = vld [vmem:[#allocation126_spill] sm:$0xff] }
 0x1cd   : > { %3530 = vmatprep.subr.bf16.mxu0 %v3529_v45  ;;  %v2039_v29 = vadd.f32 %v2037_v56, %v2032_v19  ;;  %v1918_v62 = vmul.f32 %v1916_v3, %v7738_v33  ;;  %v6041_v30 = vmul.f32 %v1923_v7, %v7739_v1  ;;  %v6044_v48 = vmul.f32 %v1930_v24, %v7740_v47  ;;  %v6048_v11 = vld [vmem:[%s4209_s25 + $0x30] sm:$0xff]  ;;  %v7743_v56 = vld [vmem:[#allocation69_spill] sm:$0xff]  ;;  %v7744_v45 = vld [vmem:[#allocation122_spill] sm:$0xff] }
 0x1ce   : > { %v1899_v42 = vadd.f32 %v1897_v18, %v1892_v60  ;;  %v2070_v13 = vunpack.c.l.bf16 %v7741_v39  ;;  %v6051_v18 = vld [vmem:[%s4209_s25 + $0x70] sm:$0xff]  ;;  %v6054_v35 = vmul.f32 %v1937_v20, %v7742_v54  ;;  %v6057_v16 = vmul.f32 %v1944_v46, %v7743_v56  ;;  %v7746_v25 = vld [vmem:[#allocation30_spill] sm:$0xff] }
 0x1cf   : > { %v2046_v3 = vadd.f32 %v2044_v22, %v2039_v29  ;;  %v2058_v7 = vmul.f32 %v2056_v21, %v7702_v9  ;;  %v6061_v24 = vld [vmem:[%s4209_s25 + $0xb0] sm:$0xff]  ;;  %v1951_v60 = vunpack.c.l.bf16 %v7744_v45  ;;  %v2077_v39 = vunpack.c.l.bf16 %v7746_v25  ;;  %v7748_v29 = vld [vmem:[#allocation129_spill] sm:$0xff]  ;;  %v7749_v45 = vld [vmem:[#allocation130_spill] sm:$0xff] }
 0x1d0   : > { %v1906_v15 = vadd.f32 %v1904_v50, %v1899_v42  ;;  %v7745_v19 = vld [vmem:[#allocation128_spill] sm:$0xff]  ;;  %v2065_v20 = vmul.f32 %v2063_v63, %v7703_v12  ;;  %v2197_v34 = vunpack.c.h.bf16 %v6048_v11  ;;  %v2204_v46 = vunpack.c.h.bf16 %v6051_v18 }
 0x1d1   : > { %v1958_v2 = vunpack.c.l.bf16 %v7745_v19  ;;  %v2053_v52 = vadd.f32 %v2051_v58, %v2046_v3  ;;  %v6070_v22 = vld [vmem:[%s4209_s25 + $0xf0] sm:$0xff]  ;;  %v1965_v50 = vunpack.c.l.bf16 %v7748_v29  ;;  %v2072_v42 = vmul.f32 %v2070_v13, %v7708_v17  ;;  %v7751_v3 = vld [vmem:[#allocation33_spill] sm:$0xff] }
 0x1d2   : > { %v6073_v21 = vld [vmem:[%s4209_s25 + $0x130] sm:$0xff]  ;;  %v2084_v19 = vunpack.c.l.bf16 %v7749_v45  ;;  %v2211_v25 = vunpack.c.h.bf16 %v6061_v24  ;;  %v2091_v12 = vunpack.c.l.bf16 %v7751_v3  ;;  %v2206_v43 = vmul.f32 %v2204_v46, %v7753_v27  ;;  %v7756_v3 = vld [vmem:[#allocation74_spill] sm:$0xff] }
 0x1d3   : > { %7747 = vst [vmem:[#allocation119_spill] sm:$0xff] %v6073_v21  ;;  %v6080_v58 = vld [vmem:[%s4209_s25 + $0x170] sm:$0xff]  ;;  %v2060_v63 = vadd.f32 %v2058_v7, %v2053_v52  ;;  %v1913_v51 = vadd.f32 %v1911_v57, %v1906_v15  ;;  %v2218_v29 = vunpack.c.h.bf16 %v6070_v22  ;;  %v2225_v13 = vunpack.c.h.bf16 %v6073_v21 }
 0x1d4   : > { %7750 = vst [vmem:[#allocation79_spill] sm:$0xff] %v6080_v58  ;;  %v7752_v9 = vld [vmem:[#allocation24_spill] sm:$0xff]  ;;  %v2213_v14 = vmul.f32 %v2211_v25, %v7754_v0  ;;  %v2079_v44 = vmul.f32 %v2077_v39, %v7710_v31  ;;  %v2232_v7 = vunpack.c.h.bf16 %v6080_v58  ;;  %v2086_v57 = vmul.f32 %v2084_v19, %v7714_v8  ;;  %v7757_v46 = vld [vmem:[#allocation27_spill] sm:$0xff]  ;;  %v7761_v58 = vld [vmem:[#allocation29_spill] sm:$0xff] }
 0x1d5   : > { %v2199_v38 = vmul.f32 %v2197_v34, %v7752_v9  ;;  %v6089_v45 = vld [vmem:[%s4209_s25 + $0x1b0] sm:$0xff]  ;;  %v2067_v17 = vadd.f32 %v2065_v20, %v2060_v63  ;;  %v6094_v34 = vmul.f32 %v1951_v60, %v7756_v3  ;;  %v2098_v15 = vunpack.c.l.bf16 %v5877_v28 }
 0x1d6   : > { %7755 = vst [vmem:[#allocation83_spill] sm:$0xff] %v6089_v45  ;;  %v2220_v25 = vmul.f32 %v2218_v29, %v7757_v46  ;;  %v7759_v20 = vld [vmem:[#allocation28_spill] sm:$0xff]  ;;  %v2093_v63 = vmul.f32 %v2091_v12, %v7715_v26  ;;  %v2105_v60 = vunpack.c.l.bf16 %v5887_v40  ;;  %v2119_v40 = vunpack.c.l.bf16 %v5897_v49  ;;  %v7765_v26 = vld [vmem:[#allocation43_spill] sm:$0xff] }
 0x1d7   : > { %v2208_v52 = vadd.f32 %v2206_v43, %v2199_v38  ;;  %v2074_v21 = vadd.f32 %v2072_v42, %v2067_v17  ;;  %v2227_v39 = vmul.f32 %v2225_v13, %v7759_v20  ;;  %v2239_v38 = vunpack.c.h.bf16 %v6089_v45  ;;  %v7760_v31 = vld [vmem:[#allocation40_spill] sm:$0xff]  ;;  %v7762_v42 = vld [vmem:[#allocation71_spill] sm:$0xff] }
 0x1d8   : > { %v1920_v43 = vadd.f32 %v1918_v62, %v1913_v51  ;;  %v2112_v19 = vunpack.c.l.bf16 %v7760_v31  ;;  %v6108_v8 = vld [vmem:[%s4209_s25 + $0x230] sm:$0xff]  ;;  %v2234_v17 = vmul.f32 %v2232_v7, %v7761_v58  ;;  %v6113_v13 = vmul.f32 %v1958_v2, %v7762_v42 }
 0x1d9   : > { %v2215_v32 = vadd.f32 %v2213_v14, %v2208_v52  ;;  %v2081_v28 = vadd.f32 %v2079_v44, %v2074_v21  ;;  %v2246_v14 = vunpack.c.h.bf16 %v6100_v53  ;;  %v7763_v52 = vld [vmem:[#allocation75_spill] sm:$0xff]  ;;  %v2100_v12 = vmul.f32 %v2098_v15, %v7717_v10 }
 0x1da   : > { %v6116_v51 = vmul.f32 %v1965_v50, %v7763_v52  ;;  %v6121_v31 = vld [vmem:[%s4209_s25 + $0x270] sm:$0xff]  ;;  %v2253_v7 = vunpack.c.h.bf16 %v6108_v8  ;;  %v2107_v2 = vmul.f32 %v2105_v60, %v7721_v4  ;;  %v2114_v50 = vmul.f32 %v2112_v19, %v7723_v5  ;;  %v7768_v5 = vld [vmem:[#allocation38_spill] sm:$0xff]  ;;  %v6193_v4 = vld [vmem:[%s4209_s25 + $0xb8] sm:$0xff] }
 0x1db   : > { %v2222_v29 = vadd.f32 %v2220_v25, %v2215_v32  ;;  %v2088_v62 = vadd.f32 %v2086_v57, %v2081_v28  ;;  %v7764_v32 = vld [vmem:[#allocation32_spill] sm:$0xff]  ;;  %v1927_v25 = vadd.f32 %v6041_v30, %v1920_v43  ;;  %v2126_v53 = vunpack.c.l.bf16 %v7765_v26  ;;  %v7766_v45 = vld [vmem:[#allocation35_spill] sm:$0xff]  ;;  %v7767_v28 = vld [vmem:[#allocation42_spill] sm:$0xff]  ;;  %7785 = vst [vmem:[#allocation88_spill] sm:$0xff] %v6193_v4 }
 0x1dc   : > { %v2241_v21 = vmul.f32 %v2239_v38, %v7764_v32  ;;  %v6130_v15 = vld [vmem:[%s4209_s25 + $0x2b0] sm:$0xff]  ;;  %v2248_v57 = vmul.f32 %v2246_v14, %v7766_v45  ;;  %v2121_v38 = vmul.f32 %v2119_v40, %v7724_v59  ;;  %v2140_v30 = vunpack.c.l.bf16 %v5920_v6 }
 0x1dd   : > { %v2229_v44 = vadd.f32 %v2227_v39, %v2222_v29  ;;  %v2095_v49 = vadd.f32 %v2093_v63, %v2088_v62  ;;  %v2260_v39 = vunpack.c.h.bf16 %v6121_v31  ;;  %v2133_v29 = vunpack.c.l.bf16 %v7767_v28  ;;  %v6139_v60 = vld [vmem:[%s4209_s25 + $0x2f0] sm:$0xff] }
 0x1de   : > { %v2147_v43 = vunpack.c.l.bf16 %v5931_v55  ;;  %v2255_v63 = vmul.f32 %v2253_v7, %v7768_v5  ;;  %v1934_v14 = vadd.f32 %v6044_v48, %v1927_v25  ;;  %v2128_v62 = vmul.f32 %v2126_v53, %v7735_v23  ;;  %v7769_v40 = vld [vmem:[#allocation131_spill] sm:$0xff] }
 0x1df   : > { %v2236_v10 = vadd.f32 %v2234_v17, %v2229_v44  ;;  %v2102_v26 = vadd.f32 %v2100_v12, %v2095_v49  ;;  %v2267_v17 = vunpack.c.h.bf16 %v6130_v15  ;;  %v2154_v44 = vunpack.c.l.bf16 %v7769_v40  ;;  %v7770_v28 = vld [vmem:[#allocation47_spill] sm:$0xff] }
 0x1e0   : > { %v2161_v6 = vunpack.c.l.bf16 %v7770_v28  ;;  %v6148_v55 = vld [vmem:[%s4209_s25 + $0x330] sm:$0xff]  ;;  %v2274_v7 = vunpack.c.h.bf16 %v6139_v60  ;;  %v2135_v49 = vmul.f32 %v2133_v29, %v7736_v41  ;;  %v2142_v48 = vmul.f32 %v2140_v30, %v7738_v33  ;;  %v6179_v41 = vld [vmem:[%s4209_s25 + $0x38] sm:$0xff] }
 0x1e1   : > { %v2243_v19 = vadd.f32 %v2241_v21, %v2236_v10  ;;  %7771 = vst [vmem:[#allocation82_spill] sm:$0xff] %v6148_v55  ;;  %v2109_v59 = vadd.f32 %v2107_v2, %v2102_v26  ;;  %v7772_v10 = vld [vmem:[#allocation41_spill] sm:$0xff]  ;;  %v2149_v53 = vmul.f32 %v2147_v43, %v7739_v1  ;;  %v2168_v25 = vunpack.c.l.bf16 %v5946_v36  ;;  %v6157_v40 = vld [vmem:[%s4209_s25 + $0x370] sm:$0xff]  ;;  %7780 = vst [vmem:[#allocation84_spill] sm:$0xff] %v6179_v41 }
 0x1e2   : > { %v2262_v21 = vmul.f32 %v2260_v39, %v7772_v10  ;;  %7773 = vst [vmem:[#allocation87_spill] sm:$0xff] %v6157_v40  ;;  %v7774_v2 = vld [vmem:[#allocation44_spill] sm:$0xff]  ;;  %v2281_v39 = vunpack.c.h.bf16 %v6148_v55  ;;  %v1941_v30 = vadd.f32 %v6054_v35, %v1934_v14  ;;  %v2156_v43 = vmul.f32 %v2154_v44, %v7740_v47  ;;  %v7781_v14 = vld [vmem:[#allocation78_spill] sm:$0xff] }
 0x1e3   : > { %v2250_v12 = vadd.f32 %v2248_v57, %v2243_v19  ;;  %v2116_v28 = vadd.f32 %v2114_v50, %v2109_v59  ;;  %v2269_v57 = vmul.f32 %v2267_v17, %v7774_v2  ;;  %v6162_v26 = vld [vmem:[%s4209_s25 + $0x3b0] sm:$0xff]  ;;  %v6170_v36 = vmul.f32 %v2161_v6, %v7742_v54  ;;  %v7784_v54 = vld [vmem:[#allocation57_spill] sm:$0xff] }
 0x1e4   : > { %7775 = vst [vmem:[#allocation85_spill] sm:$0xff] %v6162_v26  ;;  %v6165_v29 = vld [vmem:[%s4209_s25 + $0x3f0] sm:$0xff]  ;;  %v6182_v35 = vmul.f32 %v2168_v25, %v7743_v56  ;;  %v2182_v44 = vunpack.c.l.bf16 %v7781_v14  ;;  %v2295_v6 = vunpack.c.h.bf16 %v6162_v26  ;;  %v2283_v47 = vmul.f32 %v2281_v39, %v7784_v54  ;;  %v6202_v26 = vld [vmem:[%s4209_s25 + $0xf8] sm:$0xff] }
 0x1e5   : > { %v2257_v23 = vadd.f32 %v2255_v63, %v2250_v12  ;;  %7776 = vst [vmem:[#allocation92_spill] sm:$0xff] %v6165_v29  ;;  %v7777_v19 = vld [vmem:[#allocation72_spill] sm:$0xff]  ;;  %v2123_v59 = vadd.f32 %v2121_v38, %v2116_v28  ;;  %v7778_v63 = vld [vmem:[#allocation53_spill] sm:$0xff]  ;;  %v2288_v12 = vunpack.c.h.bf16 %v6157_v40  ;;  %v2302_v38 = vunpack.c.h.bf16 %v6165_v29  ;;  %7786 = vst [vmem:[#allocation95_spill] sm:$0xff] %v6202_v26 }
 0x1e6   : > { %v2175_v1 = vunpack.c.l.bf16 %v7777_v19  ;;  %v2276_v17 = vmul.f32 %v2274_v7, %v7778_v63  ;;  %v6176_v33 = vld [vmem:[%s4209_s25 + $0x430] sm:$0xff]  ;;  %v7783_v7 = vld [vmem:[#allocation73_spill] sm:$0xff]  ;;  %v1948_v25 = vadd.f32 %v6057_v16, %v1941_v30  ;;  %v2421_v29 = vunpack.c.h.bf16 %v6179_v41 }
 0x1e7   : > { %v2264_v50 = vadd.f32 %v2262_v21, %v2257_v23  ;;  %7779 = vst [vmem:[#allocation89_spill] sm:$0xff] %v6176_v33  ;;  %v6188_v23 = vld [vmem:[%s4209_s25 + $0x78] sm:$0xff]  ;;  %v2130_v21 = vadd.f32 %v2128_v62, %v2123_v59  ;;  %v2309_v56 = vunpack.c.h.bf16 %v6176_v33  ;;  %v6206_v39 = vld [vmem:[%s4209_s25 + $0x470] sm:$0xff]  ;;  %v7791_v33 = vld [vmem:[#allocation62_spill] sm:$0xff] }
 0x1e8   : > { %7782 = vst [vmem:[#allocation94_spill] sm:$0xff] %v6188_v23  ;;  %v6197_v14 = vmul.f32 %v2175_v1, %v7756_v3  ;;  %7788 = vst [vmem:[#allocation96_spill] sm:$0xff] %v6206_v39  ;;  %v2428_v28 = vunpack.c.h.bf16 %v6188_v23  ;;  %v6210_v16 = vld [vmem:[%s4209_s25 + $0x138] sm:$0xff]  ;;  %v2304_v41 = vmul.f32 %v2302_v38, %v7791_v33  ;;  %v2423_v40 = vmul.f32 %v2421_v29, %v7752_v9 }
 0x1e9   : > { %v2271_v19 = vadd.f32 %v2269_v57, %v2264_v50  ;;  %v2137_v62 = vadd.f32 %v2135_v49, %v2130_v21  ;;  %v7787_v57 = vld [vmem:[#allocation60_spill] sm:$0xff]  ;;  %v7790_v30 = vld [vmem:[#allocation61_spill] sm:$0xff]  ;;  %v2435_v49 = vunpack.c.h.bf16 %v6193_v4  ;;  %v2442_v23 = vunpack.c.h.bf16 %v6202_v26 }
 0x1ea   : > { %v2290_v50 = vmul.f32 %v2288_v12, %v7787_v57  ;;  %v6213_v1 = vld [vmem:[%s4209_s25 + $0x178] sm:$0xff]  ;;  %v2297_v3 = vmul.f32 %v2295_v6, %v7790_v30  ;;  %v6220_v21 = vld [vmem:[%s4209_s25 + $0x4b0] sm:$0xff]  ;;  %v2316_v6 = vunpack.c.h.bf16 %v6206_v39  ;;  %v2449_v9 = vunpack.c.h.bf16 %v6210_v16 }
 0x1eb   : > { %v2278_v59 = vadd.f32 %v2276_v17, %v2271_v19  ;;  %7789 = vst [vmem:[#allocation105_spill] sm:$0xff] %v6213_v1  ;;  %v2144_v17 = vadd.f32 %v2142_v48, %v2137_v62  ;;  %v2430_v19 = vmul.f32 %v2428_v28, %v7753_v27  ;;  %v6225_v55 = vld [vmem:[%s4209_s25 + $0x1b8] sm:$0xff]  ;;  %v2437_v38 = vmul.f32 %v2435_v49, %v7754_v0  ;;  %v7792_v39 = vld [vmem:[#allocation63_spill] sm:$0xff] }
 0x1ec   : > { %v2456_v29 = vunpack.c.h.bf16 %v6213_v1  ;;  %v2444_v27 = vmul.f32 %v2442_v23, %v7757_v46  ;;  %v6236_v28 = vld [vmem:[%s4209_s25 + $0x1f8] sm:$0xff]  ;;  %v2311_v26 = vmul.f32 %v2309_v56, %v7792_v39  ;;  %v2323_v0 = vunpack.c.h.bf16 %v6220_v21 }
 0x1ed   : > { %v2285_v12 = vadd.f32 %v2283_v47, %v2278_v59  ;;  %v2151_v4 = vadd.f32 %v2149_v53, %v2144_v17  ;;  %v6232_v47 = vld [vmem:[%s4209_s25 + $0x4f0] sm:$0xff]  ;;  %v2432_v62 = vadd.f32 %v2430_v19, %v2423_v40  ;;  %v1955_v59 = vadd.f32 %v6094_v34, %v1948_v25  ;;  %v6251_v25 = vld [vmem:[%s4209_s25 + $0x238] sm:$0xff] }
 0x1ee   : > { %v2463_v49 = vunpack.c.h.bf16 %v6225_v55  ;;  %v2451_v40 = vmul.f32 %v2449_v9, %v7759_v20  ;;  %v2184_v46 = vmul.f32 %v2182_v44, %v7762_v42  ;;  %v7794_v23 = vld [vmem:[#allocation64_spill] sm:$0xff]  ;;  %v2330_v34 = vunpack.c.h.bf16 %v6232_v47  ;;  %7795 = vst [vmem:[#allocation97_spill] sm:$0xff] %v6251_v25 }
 0x1ef   : > { %v2292_v48 = vadd.f32 %v2290_v50, %v2285_v12  ;;  %v2158_v1 = vadd.f32 %v2156_v43, %v2151_v4  ;;  %v6243_v50 = vld [vmem:[%s4209_s25 + $0x530] sm:$0xff]  ;;  %v2439_v17 = vadd.f32 %v2437_v38, %v2432_v62  ;;  %v2318_v12 = vmul.f32 %v2316_v6, %v7794_v23  ;;  %v6263_v62 = vld [vmem:[%s4209_s25 + $0x278] sm:$0xff] }
 0x1f0   : > { %7793 = vst [vmem:[#allocation99_spill] sm:$0xff] %v6243_v50  ;;  %v2470_v56 = vunpack.c.h.bf16 %v6236_v28  ;;  %v6255_v43 = vld [vmem:[%s4209_s25 + $0x570] sm:$0xff]  ;;  %v2458_v20 = vmul.f32 %v2456_v29, %v7761_v58  ;;  %v1962_v44 = vadd.f32 %v6113_v13, %v1955_v59  ;;  %v2337_v9 = vunpack.c.h.bf16 %v6243_v50  ;;  %7798 = vst [vmem:[#allocation101_spill] sm:$0xff] %v6263_v62  ;;  %v6271_v13 = vld [vmem:[%s4209_s25 + $0x2b8] sm:$0xff] }
 0x1f1   : > { %v2299_v53 = vadd.f32 %v2297_v3, %v2292_v48  ;;  %v2165_v4 = vadd.f32 %v6170_v36, %v2158_v1  ;;  %7796 = vst [vmem:[#allocation98_spill] sm:$0xff] %v6255_v43  ;;  %v2446_v19 = vadd.f32 %v2444_v27, %v2439_v17  ;;  %v7797_v38 = vld [vmem:[#allocation76_spill] sm:$0xff]  ;;  %v2465_v48 = vmul.f32 %v2463_v49, %v7764_v32  ;;  %v7839_v50 = vld [vmem:[#allocation77_spill] sm:$0xff] }
 0x1f2   : > { %v2325_v6 = vmul.f32 %v2323_v0, %v7797_v38  ;;  %v6267_v1 = vld [vmem:[%s4209_s25 + $0x5b0] sm:$0xff]  ;;  %v2477_v58 = vunpack.c.h.bf16 %v6251_v25  ;;  %7800 = vst [vmem:[#allocation100_spill] sm:$0xff] %v6271_v13  ;;  %v7801_v29 = vunpack.c.l.bf16 %v7783_v7  ;;  %v2344_v32 = vunpack.c.h.bf16 %v6255_v43 }
 0x1f3   : > { %v2306_v3 = vadd.f32 %v2304_v41, %v2299_v53  ;;  %v2172_v36 = vadd.f32 %v6182_v35, %v2165_v4  ;;  %7799 = vst [vmem:[#allocation102_spill] sm:$0xff] %v6267_v1  ;;  %v2453_v27 = vadd.f32 %v2451_v40, %v2446_v19  ;;  %v7802_v0 = vld [vmem:[#allocation80_spill] sm:$0xff]  ;;  %v2472_v35 = vmul.f32 %v2470_v56, %v7766_v45  ;;  %v7806_v19 = vld [vmem:[#allocation81_spill] sm:$0xff] }
 0x1f4   : > { %v2191_v59 = vmul.f32 %v7801_v29, %v7763_v52  ;;  %v2332_v53 = vmul.f32 %v2330_v34, %v7802_v0  ;;  %v6281_v17 = vld [vmem:[%s4209_s25 + $0x5f0] sm:$0xff]  ;;  %v2484_v7 = vunpack.c.h.bf16 %v6263_v62  ;;  %v1969_v34 = vadd.f32 %v6116_v51, %v1962_v44  ;;  %v7810_v51 = vld [vmem:[#allocation86_spill] sm:$0xff] }
 0x1f5   : > { %v2313_v41 = vadd.f32 %v2311_v26, %v2306_v3  ;;  %v2179_v26 = vadd.f32 %v6197_v14, %v2172_v36  ;;  %7803 = vst [vmem:[#allocation104_spill] sm:$0xff] %v6281_v17  ;;  %v6284_v40 = vld [vmem:[%s4209_s25 + $0x630] sm:$0xff]  ;;  %v2460_v4 = vadd.f32 %v2458_v20, %v2453_v27  ;;  %v6288_v3 = vld [vmem:[%s4209_s25 + $0x2f8] sm:$0xff]  ;;  %v2339_v29 = vmul.f32 %v2337_v9, %v7806_v19 }
 0x1f6   : > { %7804 = vst [vmem:[#allocation111_spill] sm:$0xff] %v6284_v40  ;;  %7805 = vst [vmem:[#allocation107_spill] sm:$0xff] %v6288_v3  ;;  %v2351_v45 = vunpack.c.h.bf16 %v6267_v1  ;;  %v2491_v14 = vunpack.c.h.bf16 %v6271_v13  ;;  %v6295_v36 = vld [vmem:[%s4209_s25 + $0x670] sm:$0xff]  ;;  %v2479_v52 = vmul.f32 %v2477_v58, %v7768_v5  ;;  %v2346_v44 = vmul.f32 %v2344_v32, %v7810_v51 }
 0x1f7   : > { %v2320_v49 = vadd.f32 %v2318_v12, %v2313_v41  ;;  %v2186_v12 = vadd.f32 %v2184_v46, %v2179_v26  ;;  %7807 = vst [vmem:[#allocation106_spill] sm:$0xff] %v6295_v36  ;;  %v6298_v41 = vld [vmem:[%s4209_s25 + $0x6b0] sm:$0xff]  ;;  %v2467_v27 = vadd.f32 %v2465_v48, %v2460_v4  ;;  %v2358_v9 = vunpack.c.h.bf16 %v6281_v17  ;;  %v6309_v46 = vld [vmem:[%s4209_s25 + $0x338] sm:$0xff] }
 0x1f8   : > { %7808 = vst [vmem:[#allocation108_spill] sm:$0xff] %v6298_v41  ;;  %v6301_v20 = vld [vmem:[%s4209_s25 + $0x6f0] sm:$0xff]  ;;  %v2365_v42 = vunpack.c.h.bf16 %v6284_v40  ;;  %v2498_v1 = vunpack.c.h.bf16 %v6288_v3  ;;  %7811 = vst [vmem:[#allocation113_spill] sm:$0xff] %v6309_v46  ;;  %v2486_v4 = vmul.f32 %v2484_v7, %v7772_v10  ;;  %v2372_v5 = vunpack.c.h.bf16 %v6295_v36  ;;  %v6320_v17 = vld [vmem:[%s4209_s25 + $0x378] sm:$0xff] }
 0x1f9   : > { %v2327_v56 = vadd.f32 %v2325_v6, %v2320_v49  ;;  %7809 = vst [vmem:[#allocation118_spill] sm:$0xff] %v6301_v20  ;;  %v2193_v6 = vadd.f32 %v2191_v59, %v2186_v12  ;;  %v6312_v49 = vld [vmem:[%s4209_s25 + $0x730] sm:$0xff]  ;;  %v2474_v48 = vadd.f32 %v2472_v35, %v2467_v27  ;;  %v2379_v58 = vunpack.c.h.bf16 %v6298_v41  ;;  %7813 = vst [vmem:[#allocation112_spill] sm:$0xff] %v6320_v17  ;;  %v6324_v35 = vld [vmem:[%s4209_s25 + $0x3b8] sm:$0xff] }
 0x1fa   : > { %7812 = vst [vmem:[#allocation121_spill] sm:$0xff] %v6312_v49  ;;  %v2386_v32 = vunpack.c.h.bf16 %v6301_v20  ;;  %v2493_v40 = vmul.f32 %v2491_v14, %v7774_v2  ;;  %v2505_v12 = vunpack.c.h.bf16 %v6309_v46  ;;  %7814 = vst [vmem:[#allocation126_spill] sm:$0xff] %v6324_v35  ;;  %v7815_v10 = vld [vmem:[#allocation90_spill] sm:$0xff]  ;;  %v2393_v41 = vunpack.c.h.bf16 %v6312_v49  ;;  %v6330_v36 = vld [vmem:[%s4209_s25 + $0x3f8] sm:$0xff] }
 0x1fb   : > { %v2334_v26 = vadd.f32 %v2332_v53, %v2327_v56  ;;  %v3531_v3 = vpack.c.bf16 %v2193_v6, %v1969_v34  ;;  %v2481_v53 = vadd.f32 %v2479_v52, %v2474_v48  ;;  %v2353_v7 = vmul.f32 %v2351_v45, %v7815_v10  ;;  %v7816_v56 = vld [vmem:[#allocation91_spill] sm:$0xff]  ;;  %7817 = vst [vmem:[#allocation122_spill] sm:$0xff] %v6330_v36  ;;  %v7819_v6 = vld [vmem:[#allocation93_spill] sm:$0xff] }
 0x1fc   : > { %v2360_v27 = vmul.f32 %v2358_v9, %v7816_v56  ;;  %v6333_v14 = vld [vmem:[%s4209_s25 + $0x770] sm:$0xff]  ;;  %v2500_v52 = vmul.f32 %v2498_v1, %v7778_v63  ;;  %v7821_v9 = vld [vmem:[#allocation109_spill] sm:$0xff]  ;;  %v2507_v63 = vmul.f32 %v2505_v12, %v7784_v54  ;;  %v2203_v12 = vunpack.c.l.bf16 %v6051_v18 }
 0x1fd   : > { %v2341_v59 = vadd.f32 %v2339_v29, %v2334_v26  ;;  %3532 = vmatpush1.bf16.msra.mxu0 %v3531_v3  ;;  %7818 = vst [vmem:[#allocation128_spill] sm:$0xff] %v6333_v14  ;;  %v2488_v34 = vadd.f32 %v2486_v4, %v2481_v53  ;;  %v2512_v29 = vunpack.c.h.bf16 %v6320_v17  ;;  %v2367_v26 = vmul.f32 %v2365_v42, %v7819_v6  ;;  %v7820_v48 = vld [vmem:[#allocation103_spill] sm:$0xff]  ;;  %v6354_v1 = vld [vmem:[%s4209_s25 + $0x438] sm:$0xff]  ;;  %v7825_v53 = vld [vmem:[#allocation114_spill] sm:$0xff] }
 0x1fe   : > { %v6339_v45 = vmul.f32 %v2372_v5, %v7820_v48  ;;  %v6342_v49 = vmul.f32 %v2379_v58, %v7821_v9  ;;  %v6345_v20 = vld [vmem:[%s4209_s25 + $0x7b0] sm:$0xff]  ;;  %v2519_v3 = vunpack.c.h.bf16 %v6324_v35  ;;  %v2526_v42 = vunpack.c.h.bf16 %v6330_v36  ;;  %7824 = vst [vmem:[#allocation129_spill] sm:$0xff] %v6354_v1  ;;  %v6364_v54 = vld [vmem:[%s4209_s25 + $0x478] sm:$0xff] }
 0x1ff   : > { %v2348_v2 = vadd.f32 %v2346_v44, %v2341_v59  ;;  %7822 = vst [vmem:[#allocation30_spill] sm:$0xff] %v6345_v20  ;;  %v7823_v44 = vld [vmem:[#allocation110_spill] sm:$0xff]  ;;  %v2495_v4 = vadd.f32 %v2493_v40, %v2488_v34  ;;  %v6357_v58 = vmul.f32 %v2393_v41, %v7825_v53  ;;  %v2400_v17 = vunpack.c.h.bf16 %v6333_v14  ;;  %7826 = vst [vmem:[#allocation130_spill] sm:$0xff] %v6364_v54  ;;  %v7830_v14 = vld [vmem:[#allocation119_spill] sm:$0xff] }
 0x200   : > { %v6349_v59 = vmul.f32 %v2386_v32, %v7823_v44  ;;  %v2196_v35 = vunpack.c.l.bf16 %v6048_v11  ;;  %v2407_v32 = vunpack.c.h.bf16 %v6345_v20  ;;  %v2514_v40 = vmul.f32 %v2512_v29, %v7787_v57  ;;  %v6372_v11 = vld [vmem:[%s4209_s25 + $0x7f0] sm:$0xff]  ;;  %v6376_v57 = vld [vmem:[%s4209_s25 + $0x4b8] sm:$0xff] }
 0x201   : > { %v2355_v5 = vadd.f32 %v2353_v7, %v2348_v2  ;;  %v2502_v46 = vadd.f32 %v2500_v52, %v2495_v4  ;;  %v2521_v7 = vmul.f32 %v2519_v3, %v7790_v30  ;;  %v2533_v41 = vunpack.c.h.bf16 %v6354_v1  ;;  %7827 = vst [vmem:[#allocation33_spill] sm:$0xff] %v6372_v11  ;;  %7828 = vst [vmem:[#allocation24_spill] sm:$0xff] %v6376_v57  ;;  %v7829_v4 = vld [vmem:[#allocation120_spill] sm:$0xff] }
 0x202   : > { %v2198_v2 = vmul.f32 %v2196_v35, %v7523_v61  ;;  %v2210_v34 = vunpack.c.l.bf16 %v6061_v24  ;;  %v2528_v52 = vmul.f32 %v2526_v42, %v7791_v33  ;;  %v2205_v29 = vmul.f32 %v2203_v12, %v7676_v37  ;;  %v6384_v36 = vld [vmem:[%s4209_s25 + $0x4f8] sm:$0xff]  ;;  %v7832_v12 = vld [vmem:[#allocation79_spill] sm:$0xff] }
 0x203   : > { %v2509_v20 = vadd.f32 %v2507_v63, %v2502_v46  ;;  %v2217_v18 = vunpack.c.l.bf16 %v6070_v22  ;;  %v2362_v30 = vadd.f32 %v2360_v27, %v2355_v5  ;;  %v2540_v3 = vunpack.c.h.bf16 %v6364_v54  ;;  %v6387_v46 = vld [vmem:[%s4209_s25 + $0x538] sm:$0xff]  ;;  %v7831_v63 = vld [vmem:[#allocation123_spill] sm:$0xff] }
 0x204   : > { %v2212_v35 = vmul.f32 %v2210_v34, %v7829_v4  ;;  %v2224_v24 = vunpack.c.l.bf16 %v7830_v14  ;;  %v2207_v33 = vadd.f32 %v2205_v29, %v2198_v2  ;;  %v2231_v13 = vunpack.c.l.bf16 %v7832_v12  ;;  %v7833_v22 = vld [vmem:[#allocation115_spill] sm:$0xff]  ;;  %v7836_v2 = vld [vmem:[#allocation124_spill] sm:$0xff] }
 0x205   : > { %v2516_v1 = vadd.f32 %v2514_v40, %v2509_v20  ;;  %v2219_v42 = vmul.f32 %v2217_v18, %v7831_v63  ;;  %v6392_v43 = vmul.f32 %v2400_v17, %v7833_v22  ;;  %v2414_v27 = vunpack.c.h.bf16 %v6372_v11  ;;  %v6398_v20 = vld [vmem:[%s4209_s25 + $0x578] sm:$0xff]  ;;  %v7837_v18 = vld [vmem:[#allocation83_spill] sm:$0xff] }
 0x206   : > { %v2535_v5 = vmul.f32 %v2533_v41, %v7792_v39  ;;  %v2547_v34 = vunpack.c.h.bf16 %v6376_v57  ;;  %7834 = vst [vmem:[#allocation25_spill] sm:$0xff] %v6398_v20  ;;  %v6401_v40 = vld [vmem:[%s4209_s25 + $0x5b8] sm:$0xff]  ;;  %v2214_v54 = vadd.f32 %v2212_v35, %v2207_v33  ;;  %v2226_v29 = vmul.f32 %v2224_v24, %v7836_v2 }
 0x207   : > { %v2523_v14 = vadd.f32 %v2521_v7, %v2516_v1  ;;  %7835 = vst [vmem:[#allocation26_spill] sm:$0xff] %v6401_v40  ;;  %v2238_v12 = vunpack.c.l.bf16 %v7837_v18  ;;  %v2369_v17 = vadd.f32 %v2367_v26, %v2362_v30  ;;  %v2542_v62 = vmul.f32 %v2540_v3, %v7794_v23  ;;  %v7838_v7 = vld [vmem:[#allocation125_spill] sm:$0xff]  ;;  %v7840_v35 = vld [vmem:[#allocation116_spill] sm:$0xff] }
 0x208   : > { %v2554_v11 = vunpack.c.h.bf16 %v6384_v36  ;;  %v2561_v39 = vunpack.c.h.bf16 %v6387_v46  ;;  %v2221_v1 = vadd.f32 %v2219_v42, %v2214_v54  ;;  %v2233_v57 = vmul.f32 %v2231_v13, %v7838_v7  ;;  %v6417_v3 = vld [vmem:[%s4209_s25 + $0x5f8] sm:$0xff] }
 0x209   : > { %v2530_v41 = vadd.f32 %v2528_v52, %v2523_v14  ;;  %v2245_v25 = vunpack.c.l.bf16 %v7839_v50  ;;  %v6411_v33 = vmul.f32 %v2407_v32, %v7840_v35  ;;  %v2549_v24 = vmul.f32 %v2547_v34, %v7797_v38  ;;  %v6420_v54 = vld [vmem:[%s4209_s25 + $0x638] sm:$0xff]  ;;  %v7841_v52 = vld [vmem:[#allocation127_spill] sm:$0xff] }
 0x20a   : > { %v2568_v23 = vunpack.c.h.bf16 %v6398_v20  ;;  %v2575_v26 = vunpack.c.h.bf16 %v6401_v40  ;;  %v2228_v13 = vadd.f32 %v2226_v29, %v2221_v1  ;;  %v2240_v50 = vmul.f32 %v2238_v12, %v7841_v52  ;;  %v7842_v14 = vld [vmem:[#allocation117_spill] sm:$0xff]  ;;  %v7849_v20 = vld [vmem:[#allocation34_spill] sm:$0xff] }
 0x20b   : > { %v2537_v30 = vadd.f32 %v2535_v5, %v2530_v41  ;;  %v2252_v42 = vunpack.c.l.bf16 %v6108_v8  ;;  %v2376_v32 = vadd.f32 %v6339_v45, %v2369_v17  ;;  %v6426_v38 = vmul.f32 %v2414_v27, %v7842_v14  ;;  %v6431_v41 = vld [vmem:[%s4209_s25 + $0x678] sm:$0xff]  ;;  %v7846_v8 = vld [vmem:[#allocation31_spill] sm:$0xff] }
 0x20c   : > { %v2556_v34 = vmul.f32 %v2554_v11, %v7802_v0  ;;  %v2563_v5 = vmul.f32 %v2561_v39, %v7806_v19  ;;  %7843 = vst [vmem:[#allocation27_spill] sm:$0xff] %v6431_v41  ;;  %v6434_v40 = vld [vmem:[%s4209_s25 + $0x6b8] sm:$0xff]  ;;  %v2235_v12 = vadd.f32 %v2233_v57, %v2228_v13  ;;  %v2247_v1 = vmul.f32 %v2245_v25, %v7846_v8 }
 0x20d   : > { %v2544_v18 = vadd.f32 %v2542_v62, %v2537_v30  ;;  %7844 = vst [vmem:[#allocation28_spill] sm:$0xff] %v6434_v40  ;;  %v6437_v29 = vld [vmem:[%s4209_s25 + $0x6f8] sm:$0xff]  ;;  %v2259_v45 = vunpack.c.l.bf16 %v6121_v31  ;;  %v2570_v27 = vmul.f32 %v2568_v23, %v7810_v51  ;;  %v2577_v17 = vmul.f32 %v2575_v26, %v7815_v10 }
 0x20e   : > { %7845 = vst [vmem:[#allocation40_spill] sm:$0xff] %v6437_v29  ;;  %v2582_v0 = vunpack.c.h.bf16 %v6417_v3  ;;  %v2589_v19 = vunpack.c.h.bf16 %v6420_v54  ;;  %v6446_v11 = vld [vmem:[%s4209_s25 + $0x738] sm:$0xff]  ;;  %v2242_v30 = vadd.f32 %v2240_v50, %v2235_v12  ;;  %v2254_v57 = vmul.f32 %v2252_v42, %v7849_v20 }
 0x20f   : > { %v2551_v62 = vadd.f32 %v2549_v24, %v2544_v18  ;;  %7847 = vst [vmem:[#allocation29_spill] sm:$0xff] %v6446_v11  ;;  %v6449_v39 = vld [vmem:[%s4209_s25 + $0x778] sm:$0xff]  ;;  %v2266_v31 = vunpack.c.l.bf16 %v6130_v15  ;;  %v2383_v25 = vadd.f32 %v6342_v49, %v2376_v32  ;;  %v2596_v51 = vunpack.c.h.bf16 %v6431_v41 }
 0x210   : > { %7848 = vst [vmem:[#allocation32_spill] sm:$0xff] %v6449_v39  ;;  %v2603_v10 = vunpack.c.h.bf16 %v6434_v40  ;;  %v2610_v23 = vunpack.c.h.bf16 %v6437_v29  ;;  %v2249_v26 = vadd.f32 %v2247_v1, %v2242_v30  ;;  %v7850_v13 = vld [vmem:[#allocation37_spill] sm:$0xff]  ;;  %v2273_v50 = vunpack.c.l.bf16 %v6139_v60 }
 0x211   : > { %v2558_v24 = vadd.f32 %v2556_v34, %v2551_v62  ;;  %v2261_v18 = vmul.f32 %v2259_v45, %v7850_v13  ;;  %v2584_v12 = vmul.f32 %v2582_v0, %v7816_v56  ;;  %v2591_v42 = vmul.f32 %v2589_v19, %v7819_v6  ;;  %v6464_v41 = vld [vmem:[%s4209_s25 + $0x7b8] sm:$0xff]  ;;  %v7854_v62 = vld [vmem:[#allocation82_spill] sm:$0xff] }
 0x212   : > { %v2617_v15 = vunpack.c.h.bf16 %v6446_v11  ;;  %v2624_v49 = vunpack.c.h.bf16 %v6449_v39  ;;  %7851 = vst [vmem:[#allocation43_spill] sm:$0xff] %v6464_v41  ;;  %v6467_v40 = vld [vmem:[%s4209_s25 + $0x7f8] sm:$0xff]  ;;  %v2256_v29 = vadd.f32 %v2254_v57, %v2249_v26  ;;  %v2280_v45 = vunpack.c.l.bf16 %v7854_v62  ;;  %v7856_v39 = vld [vmem:[#allocation87_spill] sm:$0xff]  ;;  %s400_s25 = scalar_lea.vmem [#allocation12], %s3217_s13 }
 0x213   : > { %v2565_v32 = vadd.f32 %v2563_v5, %v2558_v24  ;;  %7852 = vst [vmem:[#allocation35_spill] sm:$0xff] %v6467_v40  ;;  %v7853_v34 = vld [vmem:[#allocation36_spill] sm:$0xff]  ;;  %v2390_v60 = vadd.f32 %v6349_v59, %v2383_v25  ;;  %v2598_v56 = vmul.f32 %v2596_v51, %v7820_v48  ;;  %v2605_v6 = vmul.f32 %v2603_v10, %v7821_v9  ;;  %v7855_v5 = vld [vmem:[#allocation39_spill] sm:$0xff]  ;;  %v7857_v62 = vld [vmem:[#allocation85_spill] sm:$0xff]  ;;  %s3036_s8 = sshll.u32 %s400_s25, 4  ;;  %s6649_s8 = int_to_ptr.vmem [resolvable:$true] %s3036_s8 }
 0x214   : > { %v2268_v1 = vmul.f32 %v2266_v31, %v7853_v34  ;;  %v2612_v0 = vmul.f32 %v2610_v23, %v7823_v44  ;;  %v2263_v30 = vadd.f32 %v2261_v18, %v2256_v29  ;;  %v2275_v24 = vmul.f32 %v2273_v50, %v7855_v5  ;;  %v7858_v51 = vld [vmem:[#allocation46_spill] sm:$0xff]  ;;  %v7860_v23 = vld [vmem:[#allocation84_spill] sm:$0xff]  ;;  %s3783_s23 = scalar_lea.vmem %s6649_s8, 32  ;;  %p3790_p4 = scmp.lt.s32.totalorder %s6649_s8, %s3788_s22 }
 0x215   : > { %v2572_v19 = vadd.f32 %v2570_v27, %v2565_v32  ;;  %v2287_v11 = vunpack.c.l.bf16 %v7856_v39  ;;  %v2619_v57 = vmul.f32 %v2617_v15, %v7825_v53  ;;  %v2631_v31 = vunpack.c.h.bf16 %v6464_v41  ;;  %v7859_v27 = vld [vmem:[#allocation92_spill] sm:$0xff]  ;;  %v7861_v18 = vld [vmem:[#allocation94_spill] sm:$0xff]  ;;  %v7862_v32 = vld [vmem:[#allocation45_spill] sm:$0xff]  ;;  %p3784_p2 = scmp.ne.s32.totalorder %s6649_s8, %s3783_s23  ;;  %p3791_p9 = scmp.lt.s32.totalorder %s3789_s14, %s3783_s23 }
 0x216   : > { %v2638_v26 = vunpack.c.h.bf16 %v6467_v40  ;;  %v2294_v59 = vunpack.c.l.bf16 %v7857_v62  ;;  %v2626_v48 = vmul.f32 %v2624_v49, %v7833_v22  ;;  %v2270_v9 = vadd.f32 %v2268_v1, %v2263_v30  ;;  %v7863_v41 = vld [vmem:[#allocation89_spill] sm:$0xff]  ;;  %v7865_v1 = vld [vmem:[#allocation88_spill] sm:$0xff]  ;;  %v7866_v30 = vld [vmem:[#allocation95_spill] sm:$0xff] }
 0x217   : > { %v2579_v25 = vadd.f32 %v2577_v17, %v2572_v19  ;;  %v2282_v44 = vmul.f32 %v2280_v45, %v7858_v51  ;;  %v2397_v29 = vadd.f32 %v6357_v58, %v2390_v60  ;;  %v2301_v10 = vunpack.c.l.bf16 %v7859_v27  ;;  %v7864_v17 = vld [vmem:[#allocation48_spill] sm:$0xff]  ;;  %p3785_p10 = pnand %p3784_p2, %p7923_p6  ;;  %p3792_p5 = por %p3791_p9, %p3790_p4 }
 0x218   : > { %v2420_v39 = vunpack.c.l.bf16 %v7860_v23  ;;  %v2427_v53 = vunpack.c.l.bf16 %v7861_v18  ;;  %v2277_v15 = vadd.f32 %v2275_v24, %v2270_v9  ;;  %v2289_v40 = vmul.f32 %v2287_v11, %v7862_v32 }
 0x219   : > { %v2586_v50 = vadd.f32 %v2584_v12, %v2579_v25  ;;  %v2308_v62 = vunpack.c.l.bf16 %v7863_v41  ;;  %v2296_v19 = vmul.f32 %v2294_v59, %v7864_v17  ;;  %v2434_v58 = vunpack.c.l.bf16 %v7865_v1  ;;  %v7867_v12 = vld [vmem:[#allocation51_spill] sm:$0xff]  ;;  %v7868_v41 = vld [vmem:[#allocation105_spill] sm:$0xff]  ;;  %p3786_p3 = pneg %p3785_p10 }
 0x21a   : > { %v2422_v22 = vmul.f32 %v2420_v39, %v7523_v61  ;;  %v2429_v49 = vmul.f32 %v2427_v53, %v7676_v37  ;;  %v2284_v60 = vadd.f32 %v2282_v44, %v2277_v15  ;;  %v2441_v27 = vunpack.c.l.bf16 %v7866_v30  ;;  %v7869_v61 = vld [vmem:[#allocation96_spill] sm:$0xff]  ;;  %v7870_v15 = vld [vmem:[#allocation49_spill] sm:$0xff] }
 0x21b   : > { %v2593_v45 = vadd.f32 %v2591_v42, %v2586_v50  ;;  %v2448_v23 = vunpack.c.l.bf16 %v6210_v16  ;;  %v2303_v24 = vmul.f32 %v2301_v10, %v7867_v12  ;;  %v2436_v11 = vmul.f32 %v2434_v58, %v7829_v4  ;;  %p3793_p7 = pnand %p3792_p5, %p3786_p3 }
 0x21c   : > { %v2431_v25 = vadd.f32 %v2429_v49, %v2422_v22  ;;  %v2455_v9 = vunpack.c.l.bf16 %v7868_v41  ;;  %v2291_v18 = vadd.f32 %v2289_v40, %v2284_v60  ;;  %v2315_v39 = vunpack.c.l.bf16 %v7869_v61 }
 0x21d   : > { %v2600_v59 = vadd.f32 %v2598_v56, %v2593_v45  ;;  %v2443_v37 = vmul.f32 %v2441_v27, %v7831_v63  ;;  %v2404_v42 = vadd.f32 %v6392_v43, %v2397_v29  ;;  %v2450_v53 = vmul.f32 %v2448_v23, %v7836_v2  ;;  %v7871_v29 = vld [vmem:[#allocation54_spill] sm:$0xff]  ;;  %v7875_v27 = vld [vmem:[#allocation101_spill] sm:$0xff] }
 0x21e   : > { %v2438_v44 = vadd.f32 %v2436_v11, %v2431_v25  ;;  %v2462_v16 = vunpack.c.l.bf16 %v6225_v55  ;;  %v2298_v10 = vadd.f32 %v2296_v19, %v2291_v18  ;;  %v2310_v22 = vmul.f32 %v2308_v62, %v7870_v15  ;;  %v7872_v19 = vld [vmem:[#allocation97_spill] sm:$0xff]  ;;  %v7876_v25 = vld [vmem:[#allocation56_spill] sm:$0xff] }
 0x21f   : > { %v2607_v50 = vadd.f32 %v2605_v6, %v2600_v59  ;;  %v2322_v4 = vunpack.c.l.bf16 %v6220_v21  ;;  %v2633_v56 = vmul.f32 %v2631_v31, %v7840_v35  ;;  %v2457_v49 = vmul.f32 %v2455_v9, %v7838_v7  ;;  %v7873_v31 = vld [vmem:[#allocation52_spill] sm:$0xff]  ;;  %v7874_v7 = vld [vmem:[#allocation99_spill] sm:$0xff] }
 0x220   : > { %v2445_v40 = vadd.f32 %v2443_v37, %v2438_v44  ;;  %v2469_v63 = vunpack.c.l.bf16 %v6236_v28  ;;  %v2305_v43 = vadd.f32 %v2303_v24, %v2298_v10  ;;  %v2317_v58 = vmul.f32 %v2315_v39, %v7871_v29  ;;  %v7878_v59 = vld [vmem:[#allocation100_spill] sm:$0xff] }
 0x221   : > { %v2614_v1 = vadd.f32 %v2612_v0, %v2607_v50  ;;  %v2329_v2 = vunpack.c.l.bf16 %v6232_v47  ;;  %v2411_v55 = vadd.f32 %v6411_v33, %v2404_v42  ;;  %v2464_v62 = vmul.f32 %v2462_v16, %v7841_v52  ;;  %v7877_v52 = vld [vmem:[#allocation98_spill] sm:$0xff] }
 0x222   : > { %v2452_v6 = vadd.f32 %v2450_v53, %v2445_v40  ;;  %v2476_v21 = vunpack.c.l.bf16 %v7872_v19  ;;  %v2312_v35 = vadd.f32 %v2310_v22, %v2305_v43  ;;  %v2324_v60 = vmul.f32 %v2322_v4, %v7873_v31  ;;  %v7881_v50 = vld [vmem:[#allocation102_spill] sm:$0xff]  ;;  %v7882_v22 = vld [vmem:[#allocation59_spill] sm:$0xff] }
 0x223   : > { %v2621_v45 = vadd.f32 %v2619_v57, %v2614_v1  ;;  %v2336_v30 = vunpack.c.l.bf16 %v7874_v7  ;;  %v2471_v0 = vmul.f32 %v2469_v63, %v7846_v8  ;;  %v2483_v23 = vunpack.c.l.bf16 %v7875_v27  ;;  %v7879_v8 = vld [vmem:[#allocation55_spill] sm:$0xff] }
 0x224   : > { %v2459_v28 = vadd.f32 %v2457_v49, %v2452_v6  ;;  %v2640_v47 = vmul.f32 %v2638_v26, %v7842_v14  ;;  %v2319_v33 = vadd.f32 %v2317_v58, %v2312_v35  ;;  %v2331_v11 = vmul.f32 %v2329_v2, %v7876_v25  ;;  %v7880_v14 = vld [vmem:[#allocation107_spill] sm:$0xff]  ;;  %v7883_v49 = vld [vmem:[#allocation113_spill] sm:$0xff]  ;;  %v7884_v58 = vld [vmem:[#allocation112_spill] sm:$0xff] }
 0x225   : > { %v2628_v24 = vadd.f32 %v2626_v48, %v2621_v45  ;;  %v2343_v41 = vunpack.c.l.bf16 %v7877_v52  ;;  %v2478_v57 = vmul.f32 %v2476_v21, %v7849_v20  ;;  %v2490_v18 = vunpack.c.l.bf16 %v7878_v59  ;;  %v7885_v2 = vld [vmem:[#allocation58_spill] sm:$0xff]  ;;  %v7886_v6 = vld [vmem:[#allocation104_spill] sm:$0xff]  ;;  %v7890_v27 = vld [vmem:[#allocation111_spill] sm:$0xff] }
 0x226   : > { %v2466_v9 = vadd.f32 %v2464_v62, %v2459_v28  ;;  %v2418_v61 = vadd.f32 %v6426_v38, %v2411_v55  ;;  %v2326_v37 = vadd.f32 %v2324_v60, %v2319_v33  ;;  %v2338_v42 = vmul.f32 %v2336_v30, %v7879_v8  ;;  %v7887_v35 = vld [vmem:[#allocation126_spill] sm:$0xff] }
 0x227   : > { %v2635_v39 = vadd.f32 %v2633_v56, %v2628_v24  ;;  %v2485_v48 = vmul.f32 %v2483_v23, %v7850_v13  ;;  %v2497_v26 = vunpack.c.l.bf16 %v7880_v14  ;;  %v2350_v10 = vunpack.c.l.bf16 %v7881_v50  ;;  %v7888_v30 = vld [vmem:[#allocation122_spill] sm:$0xff]  ;;  %v7891_v24 = vld [vmem:[#allocation129_spill] sm:$0xff] }
 0x228   : > { %v2473_v44 = vadd.f32 %v2471_v0, %v2466_v9  ;;  %v2333_v16 = vadd.f32 %v2331_v11, %v2326_v37  ;;  %v2345_v4 = vmul.f32 %v2343_v41, %v7882_v22  ;;  %v2492_v40 = vmul.f32 %v2490_v18, %v7853_v34  ;;  %v7889_v0 = vld [vmem:[#allocation66_spill] sm:$0xff]  ;;  %v2653_v11 = vld [vmem:[%s6736_s3 + $0x10] sm:$0xff] }
 0x229   : > { %v2642_v53 = vadd.f32 %v2640_v47, %v2635_v39  ;;  %v2504_v38 = vunpack.c.l.bf16 %v7883_v49  ;;  %v2499_v43 = vmul.f32 %v2497_v26, %v7855_v5  ;;  %v2511_v13 = vunpack.c.l.bf16 %v7884_v58  ;;  %v7892_v18 = vld [vmem:[#allocation130_spill] sm:$0xff]  ;;  %v7893_v39 = vld [vmem:[#allocation65_spill] sm:$0xff]  ;;  %v7897_v49 = vld [vmem:[#allocation108_spill] sm:$0xff] }
 0x22a   : > { %v2480_v20 = vadd.f32 %v2478_v57, %v2473_v44  ;;  %v2340_v63 = vadd.f32 %v2338_v42, %v2333_v16  ;;  %v2352_v55 = vmul.f32 %v2350_v10, %v7885_v2  ;;  %v2357_v62 = vunpack.c.l.bf16 %v7886_v6  ;;  %v7894_v42 = vld [vmem:[#allocation106_spill] sm:$0xff]  ;;  %v7899_v6 = vld [vmem:[#allocation67_spill] sm:$0xff] }
 0x22b   : > { %v3533_v56 = vpack.c.bf16 %v2642_v53, %v2418_v61  ;;  %v2506_v45 = vmul.f32 %v2504_v38, %v7858_v51  ;;  %v2518_v34 = vunpack.c.l.bf16 %v7887_v35  ;;  %v2513_v7 = vmul.f32 %v2511_v13, %v7862_v32  ;;  %v2651_v51 = vld [vmem:[%s6736_s3] sm:$0xff]  ;;  %v7895_v53 = vld [vmem:[#allocation24_spill] sm:$0xff] }
 0x22c   : > { %v2487_v1 = vadd.f32 %v2485_v48, %v2480_v20  ;;  %v2347_v19 = vadd.f32 %v2345_v4, %v2340_v63  ;;  %v2525_v28 = vunpack.c.l.bf16 %v7888_v30  ;;  %v2359_v5 = vmul.f32 %v2357_v62, %v7889_v0  ;;  %v2652_v48 = vld [vmem:[%s6736_s3 + $0x8] sm:$0xff]  ;;  %v7896_v20 = vld [vmem:[#allocation68_spill] sm:$0xff]  ;;  %v7898_v13 = vld [vmem:[#allocation25_spill] sm:$0xff] }
 0x22d   : > { %3534 = vmatprep.subr.bf16.mxu0 %v3533_v56  ;;  %v2364_v23 = vunpack.c.l.bf16 %v7890_v27  ;;  %v2532_v47 = vunpack.c.l.bf16 %v7891_v24  ;;  %v3919_v33 = vmov 0.0   ;;  %v2520_v41 = vmul.f32 %v2518_v34, %v7864_v17  ;;  %v2654_v17 = vld [vmem:[%s6736_s3 + $0x18] sm:$0xff]  ;;  %v2655_v56 = vld [vmem:[%s6736_s3 + $0x20] sm:$0xff] }
 0x22e   : > { %v2494_v21 = vadd.f32 %v2492_v40, %v2487_v1  ;;  %2788 = vmatprep.mubr.f32.mxu0 %v3919_v33  ;;  %2931 = vmatprep.mubr.f32.mxu1 %v3919_v33  ;;  %v2354_v32 = vadd.f32 %v2352_v55, %v2347_v19  ;;  %v3920_v9 = vmov 0   ;;  %v2527_v59 = vmul.f32 %v2525_v28, %v7867_v12  ;;  %v7900_v19 = vld [vmem:[#allocation118_spill] sm:$0xff] }
 0x22f   : > { %3653 = vset.pattern.permute.xlu0 %v3920_v9  ;;  %3654 = vset.pattern.permute.xlu1 %v3920_v9  ;;  %v2539_v61 = vunpack.c.l.bf16 %v7892_v18  ;;  %v2366_v37 = vmul.f32 %v2364_v23, %v7893_v39  ;;  %v2371_v44 = vunpack.c.l.bf16 %v7894_v42  ;;  %v2534_v12 = vmul.f32 %v2532_v47, %v7870_v15  ;;  %v2656_v15 = vld [vmem:[%s6736_s3 + $0x28] sm:$0xff]  ;;  %v7903_v23 = vld [vmem:[#allocation121_spill] sm:$0xff] }
 0x230   : > { %v2501_v60 = vadd.f32 %v2499_v43, %v2494_v21  ;;  %2661 = vperm.xlu0 %3653, %v2651_v51   ;;  %2671 = vperm.xlu1 %3654, %v2653_v11   ;;  %v2361_v14 = vadd.f32 %v2359_v5, %v2354_v32  ;;  %v2546_v16 = vunpack.c.l.bf16 %v7895_v53  ;;  %v2553_v4 = vunpack.c.l.bf16 %v6384_v36  ;;  %v7901_v34 = vld [vmem:[#allocation26_spill] sm:$0xff]  ;;  %v2854_v47 = vld [vmem:[#allocation2] sm:$0x1]  ;;  %v7904_v9 = vld [vmem:[#allocation27_spill] sm:$0xff] }
 0x231   : > { %v2541_v10 = vmul.f32 %v2539_v61, %v7871_v29  ;;  %v2373_v40 = vmul.f32 %v2371_v44, %v7896_v20  ;;  %v2378_v38 = vunpack.c.l.bf16 %v7897_v49  ;;  %v2560_v36 = vunpack.c.l.bf16 %v6387_v46  ;;  %v7902_v5 = vld [vmem:[#allocation70_spill] sm:$0xff]  ;;  %v7907_v44 = vld [vmem:[#allocation28_spill] sm:$0xff] }
 0x232   : > { %v2508_v52 = vadd.f32 %v2506_v45, %v2501_v60  ;;  %v2368_v63 = vadd.f32 %v2366_v37, %v2361_v14  ;;  %v2548_v29 = vmul.f32 %v2546_v16, %v7873_v31  ;;  %v2555_v58 = vmul.f32 %v2553_v4, %v7876_v25  ;;  %v2657_v45 = vld [vmem:[%s6736_s3 + $0x30] sm:$0xff]  ;;  %v2658_v31 = vld [vmem:[%s6736_s3 + $0x38] sm:$0xff] }
 0x233   : > { %v2567_v55 = vunpack.c.l.bf16 %v7898_v13  ;;  %v2380_v62 = vmul.f32 %v2378_v38, %v7899_v6  ;;  %v2385_v21 = vunpack.c.l.bf16 %v7900_v19  ;;  %v2562_v25 = vmul.f32 %v2560_v36, %v7879_v8  ;;  %v7911_v4 = vld [vmem:[#allocation29_spill] sm:$0xff]  ;;  %v7912_v38 = vld [vmem:[#allocation32_spill] sm:$0xff] }
 0x234   : > { %v2515_v57 = vadd.f32 %v2513_v7, %v2508_v52  ;;  %2666 = vperm.xlu0 %3653, %v2652_v48   ;;  %2676 = vperm.xlu1 %3654, %v2654_v17   ;;  %v2375_v46 = vadd.f32 %v2373_v40, %v2368_v63  ;;  %v2574_v60 = vunpack.c.l.bf16 %v7901_v34  ;;  %v2581_v28 = vunpack.c.l.bf16 %v6417_v3  ;;  %v7905_v3 = vld [vmem:[#allocation69_spill] sm:$0xff] }
 0x235   : > { %v2569_v30 = vmul.f32 %v2567_v55, %v7882_v22  ;;  %v2387_v27 = vmul.f32 %v2385_v21, %v7902_v5  ;;  %v2392_v24 = vunpack.c.l.bf16 %v7903_v23  ;;  %v2588_v8 = vunpack.c.l.bf16 %v6420_v54  ;;  %v7908_v54 = vld [vmem:[#allocation40_spill] sm:$0xff] }
 0x236   : > { %v2522_v26 = vadd.f32 %v2520_v41, %v2515_v57  ;;  %v2382_v51 = vadd.f32 %v2380_v62, %v2375_v46  ;;  %v2576_v32 = vmul.f32 %v2574_v60, %v7885_v2  ;;  %v2583_v41 = vmul.f32 %v2581_v28, %v7889_v0  ;;  %v7916_v62 = vld [vmem:[#allocation35_spill] sm:$0xff] }
 0x237   : > { %v2595_v22 = vunpack.c.l.bf16 %v7904_v9  ;;  %v2394_v57 = vmul.f32 %v2392_v24, %v7905_v3  ;;  %v2590_v42 = vmul.f32 %v2588_v8, %v7893_v39  ;;  %v2602_v48 = vunpack.c.l.bf16 %v7907_v44  ;;  %v2645_v23 = vld [vmem:[#allocation8 + $0x10] sm:$0xff]  ;;  %v2646_v24 = vld [vmem:[#allocation8 + $0x18] sm:$0xff] }
 0x238   : > { %v2529_v50 = vadd.f32 %v2527_v59, %v2522_v26  ;;  %2681 = vperm.xlu0 %3653, %v2655_v56   ;;  %2686 = vperm.xlu1 %3654, %v2656_v15   ;;  %v7906_v59 = vld [vmem:[#allocation128_spill] sm:$0xff]  ;;  %v2389_v61 = vadd.f32 %v2387_v27, %v2382_v51  ;;  %v2609_v14 = vunpack.c.l.bf16 %v7908_v54  ;;  %v7909_v26 = vld [vmem:[#allocation74_spill] sm:$0xff]  ;;  %v2616_v40 = vunpack.c.l.bf16 %v7911_v4  ;;  %v7913_v15 = vld [vmem:[#allocation71_spill] sm:$0xff] }
 0x239   : > { %v2399_v18 = vunpack.c.l.bf16 %v7906_v59  ;;  %v2597_v2 = vmul.f32 %v2595_v22, %v7896_v20  ;;  %v2623_v56 = vunpack.c.l.bf16 %v7912_v38  ;;  %v7914_v20 = vld [vmem:[#allocation33_spill] sm:$0xff]  ;;  %v2637_v19 = vunpack.c.l.bf16 %v7916_v62  ;;  %v2644_v27 = vld [vmem:[#allocation8 + $0x8] sm:$0xff] }
 0x23a   : > { %v2536_v1 = vadd.f32 %v2534_v12, %v2529_v50  ;;  %v7910_v12 = vld [vmem:[#allocation30_spill] sm:$0xff]  ;;  %v2396_v16 = vadd.f32 %v2394_v57, %v2389_v61  ;;  %v2611_v39 = vmul.f32 %v2609_v14, %v7902_v5 }
 0x23b   : > { %v2401_v0 = vmul.f32 %v2399_v18, %v7909_v26  ;;  %v2406_v53 = vunpack.c.l.bf16 %v7910_v12  ;;  %v2643_v5 = vld [vmem:[#allocation8] sm:$0xff]  ;;  %v2648_v51 = vld [vmem:[#allocation8 + $0x28] sm:$0xff] }
 0x23c   : > { %v2543_v43 = vadd.f32 %v2541_v10, %v2536_v1  ;;  %2691 = vperm.xlu0 %3653, %v2657_v45   ;;  %2696 = vperm.xlu1 %3654, %v2658_v31   ;;  %v2604_v10 = vmul.f32 %v2602_v48, %v7899_v6  ;;  %v2413_v1 = vunpack.c.l.bf16 %v7914_v20  ;;  %v2625_v6 = vmul.f32 %v2623_v56, %v7909_v26  ;;  %v7917_v45 = vld [vmem:[#allocation75_spill] sm:$0xff] }
 0x23d   : > { %v2408_v63 = vmul.f32 %v2406_v53, %v7913_v15  ;;  %v2639_v34 = vmul.f32 %v2637_v19, %v7917_v45 }
 0x23e   : > { %v2550_v35 = vadd.f32 %v2548_v29, %v2543_v43  ;;  %v2403_v29 = vadd.f32 %v2401_v0, %v2396_v16  ;;  %v2618_v43 = vmul.f32 %v2616_v40, %v7905_v3  ;;  %v2415_v31 = vmul.f32 %v2413_v1, %v7917_v45 }
 0x240   : > { %v2557_v7 = vadd.f32 %v2555_v58, %v2550_v35  ;;  %2857 = vperm.xlu0 %3653, %v2854_v47   ;;  %v7915_v58 = vld [vmem:[#allocation43_spill] sm:$0xff]  ;;  %v2410_v21 = vadd.f32 %v2408_v63, %v2403_v29  ;;  %v2647_v47 = vld [vmem:[#allocation8 + $0x20] sm:$0xff] }
 0x241   : > { %v2630_v13 = vunpack.c.l.bf16 %v7915_v58 }
 0x242   : > { %v2564_v11 = vadd.f32 %v2562_v25, %v2557_v7  ;;  %v2417_v60 = vadd.f32 %v2415_v31, %v2410_v21 }
 0x243   : > { %v2632_v35 = vmul.f32 %v2630_v13, %v7913_v15 }
 0x244   : > { %v2571_v52 = vadd.f32 %v2569_v30, %v2564_v11  ;;  %v2649_v11 = vld [vmem:[#allocation8 + $0x30] sm:$0xff] }
 0x246   : > { %v2578_v37 = vadd.f32 %v2576_v32, %v2571_v52  ;;  %v2650_v32 = vld [vmem:[#allocation8 + $0x38] sm:$0xff] }
 0x248   : > { %v2585_v17 = vadd.f32 %v2583_v41, %v2578_v37 }
 0x24a   : > { %v2592_v50 = vadd.f32 %v2590_v42, %v2585_v17 }
 0x24c   : > { %v2599_v49 = vadd.f32 %v2597_v2, %v2592_v50 }
 0x24e   : > { %v2606_v36 = vadd.f32 %v2604_v10, %v2599_v49 }
 0x250   : > { %v2613_v55 = vadd.f32 %v2611_v39, %v2606_v36 }
 0x252   : > { %v2620_v46 = vadd.f32 %v2618_v43, %v2613_v55 }
 0x254   : > { %v2627_v25 = vadd.f32 %v2625_v6, %v2620_v46 }
 0x256   : > { %v2634_v7 = vadd.f32 %v2632_v35, %v2627_v25 }
 0x258   : > { %v2641_v30 = vadd.f32 %v2639_v34, %v2634_v7 }
 0x25a   : > { %v3535_v28 = vpack.c.bf16 %v2641_v30, %v2417_v60 }
 0x25c   : > { %3536 = vmatpush1.bf16.msra.mxu0 %v3535_v28 }
 0x25f   : > { %3498 = vmatmul.mubr.msk.f32.vlgmr.msra.gmra.mrb[0].mxu0 %vm2699_vm0, %v2643_v5 }
 0x260   : > { %2794 = vmatprep.mubr.f32.mxu0 %v3919_v33 }
 0x263   : > { %3499 = vmatmul.mubr.msk.f32.gmra.mrb[2].mxu0 %vm2699_vm0, %v2644_v27 }
 0x264   : > { %2800 = vmatprep.mubr.f32.mxu0 %v3919_v33 }
 0x267   : > { %3500 = vmatmul.mubr.msk.f32.gmra.mrb[4].mxu0 %vm2699_vm0, %v2645_v23 }
 0x268   : > { %2806 = vmatprep.mubr.f32.mxu0 %v3919_v33 }
 0x26b   : > { %3501 = vmatmul.mubr.msk.f32.gmra.mrb[6].mxu0 %vm2699_vm0, %v2646_v24 }
 0x26c   : > { %2812 = vmatprep.mubr.f32.mxu0 %v3919_v33 }
 0x26f   : > { %3502 = vmatmul.mubr.msk.f32.gmra.mrb[8].mxu0 %vm2699_vm0, %v2647_v47 }
 0x270   : > { %2818 = vmatprep.mubr.f32.mxu0 %v3919_v33 }
 0x273   : > { %3503 = vmatmul.mubr.msk.f32.gmra.mrb[10].mxu0 %vm2699_vm0, %v2648_v51 }
 0x274   : > { %2824 = vmatprep.mubr.f32.mxu0 %v3919_v33 }
 0x277   : > { %3504 = vmatmul.mubr.msk.f32.gmra.mrb[12].mxu0 %vm2699_vm0, %v2649_v11 }
 0x278   : > { %2830 = vmatprep.mubr.f32.mxu0 %v3919_v33 }
 0x27b   : > { %3505 = vmatmul.mubr.msk.f32.gmra.mrb[14].mxu0 %vm2699_vm0, %v2650_v32 }
 0x2af   : > { %v2662_v8 = vpop.permute.xlu0 %2661  ;;  %v2672_v61 = vpop.permute.xlu1 %2671 }
 0x2b3   : > { %v2667_v22 = vpop.permute.xlu0 %2666  ;;  %v2677_v0 = vpop.permute.xlu1 %2676 }
 0x2b7   : > { %v2682_v63 = vpop.permute.xlu0 %2681  ;;  %v2687_v29 = vpop.permute.xlu1 %2686 }
 0x2bb   : > { %v2692_v35 = vpop.permute.xlu0 %2691  ;;  %v2697_v60 = vpop.permute.xlu1 %2696 }
 0x332   : > { %v2790_v52 = vpop.f32.mrb[0].mxu0 }
 0x333   : > { %v2792_v41 = vpop.f32.mrb[1].mxu0  ;;  %v2791_v9 = vadd.f32 %v2790_v52, %v2662_v8  ;;  %v2858_v52 = vpop.permute.xlu0 %2857 }
 0x334   : > { %v2793_v3 = vadd.f32 %v2792_v41, %v2662_v8  ;;  %v2853_v8 = vld [vmem:[#allocation9] sm:$0x1]  ;;  %v7918_v41 = vld [vmem:[#allocation50_spill] sm:$0xff] }
 0x335   : > { %v2837_v42 = vmax.f32 %v2791_v9, 0.0  ;;  %v2863_v9 = vrot.slane %v2858_v52, %v7918_v41 }
 0x336   : > { %v2796_v57 = vpop.f32.mrb[2].mxu0  ;;  %v2838_v48 = vmax.f32 %v2793_v3, 0.0 }
 0x337   : > { %v2797_v59 = vadd.f32 %v2796_v57, %v2667_v22  ;;  %v2798_v18 = vpop.f32.mrb[3].mxu0 }
 0x338   : > { %v2799_v37 = vadd.f32 %v2798_v18, %v2667_v22 }
 0x339   : > { %v2839_v44 = vmax.f32 %v2797_v59, 0.0 }
 0x33a   : > { %v2840_v17 = vmax.f32 %v2799_v37, 0.0  ;;  %v2802_v2 = vpop.f32.mrb[4].mxu0 }
 0x33b   : > { %v2804_v33 = vpop.f32.mrb[5].mxu0  ;;  %v3539_v54 = vpack.c.bf16 %v2839_v44, %v2837_v42  ;;  %v2803_v26 = vadd.f32 %v2802_v2, %v2672_v61 }
 0x33c   : > { %v3537_v14 = vpack.c.bf16 %v2840_v17, %v2838_v48  ;;  %v2805_v12 = vadd.f32 %v2804_v33, %v2672_v61  ;;  %v3921_v17 = vmov 1966171168  }
 0x33d   : > { %v2841_v4 = vmax.f32 %v2803_v26, 0.0  ;;  %v2960_v2 = vunpack.c.l.s4 %v3921_v17 }
 0x33e   : > { %v2808_v53 = vpop.f32.mrb[6].mxu0  ;;  %3538 = vmatprep.subr.bf16.mxu1 %v3537_v14  ;;  %v2842_v49 = vmax.f32 %v2805_v12, 0.0 }
 0x33f   : > { %v2809_v16 = vadd.f32 %v2808_v53, %v2677_v0  ;;  %v2810_v50 = vpop.f32.mrb[7].mxu0  ;;  %3540 = vmatpush1.bf16.msra.mxu1 %v3539_v54  ;;  %v2961_v54 = vunpack.c.0.s8 %v2960_v2 }
 0x340   : > { %v2811_v10 = vadd.f32 %v2810_v50, %v2677_v0 }
 0x341   : > { %v2843_v40 = vmax.f32 %v2809_v16, 0.0  ;;  %v7919_v16 = vld [vmem:[#allocation23_spill] sm:$0xff] }
 0x342   : > { %v2844_v39 = vmax.f32 %v2811_v10, 0.0  ;;  %v2814_v38 = vpop.f32.mrb[8].mxu0  ;;  %v2964_v50 = vsub.s32 %v2961_v54, %v7919_v16 }
 0x343   : > { %v3543_v56 = vpack.c.bf16 %v2843_v40, %v2841_v4  ;;  %v2816_v15 = vpop.f32.mrb[9].mxu0  ;;  %v2815_v1 = vadd.f32 %v2814_v38, %v2682_v63  ;;  %v7920_v40 = vlaneseq }
 0x344   : > { %v3541_v20 = vpack.c.bf16 %v2844_v39, %v2842_v49  ;;  %v2817_v36 = vadd.f32 %v2816_v15, %v2682_v63 }
 0x345   : > { %v2845_v6 = vmax.f32 %v2815_v1, 0.0  ;;  %vm6638_vm1 = vcmp.lt.s32.totalorder %v7920_v40, 256 }
 0x346   : > { %v2820_v43 = vpop.f32.mrb[10].mxu0  ;;  %3542 = vmatprep.subr.bf16.mxu1 %v3541_v20  ;;  %v2846_v19 = vmax.f32 %v2817_v36, 0.0 }
 0x347   : > { %v2821_v58 = vadd.f32 %v2820_v43, %v2687_v29  ;;  %v2822_v13 = vpop.f32.mrb[11].mxu0  ;;  %3544 = vmatpush1.bf16.msra.mxu1 %v3543_v56 }
 0x348   : > { %v2823_v55 = vadd.f32 %v2822_v13, %v2687_v29 }
 0x349   : > { %v2847_v62 = vmax.f32 %v2821_v58, 0.0 }
 0x34a   : > { %v2848_v21 = vmax.f32 %v2823_v55, 0.0  ;;  %v2826_v45 = vpop.f32.mrb[12].mxu0 }
 0x34b   : > { %v3547_v31 = vpack.c.bf16 %v2847_v62, %v2845_v6  ;;  %v2828_v46 = vpop.f32.mrb[13].mxu0  ;;  %v2827_v34 = vadd.f32 %v2826_v45, %v2692_v35 }
 0x34c   : > { %v3545_v25 = vpack.c.bf16 %v2848_v21, %v2846_v19  ;;  %v2829_v7 = vadd.f32 %v2828_v46, %v2692_v35 }
 0x34d   : > { %v2849_v23 = vmax.f32 %v2827_v34, 0.0 }
 0x34e   : > { %v2832_v30 = vpop.f32.mrb[14].mxu0  ;;  %3546 = vmatprep.subr.bf16.mxu1 %v3545_v25  ;;  %v2850_v47 = vmax.f32 %v2829_v7, 0.0 }
 0x34f   : > { %v2833_v28 = vadd.f32 %v2832_v30, %v2697_v60  ;;  %v2834_v5 = vpop.f32.mrb[15].mxu0  ;;  %3548 = vmatpush1.bf16.msra.mxu1 %v3547_v31 }
 0x350   : > { %v2835_v27 = vadd.f32 %v2834_v5, %v2697_v60 }
 0x351   : > { %v2851_v24 = vmax.f32 %v2833_v28, 0.0 }
 0x352   : > { %v2852_v51 = vmax.f32 %v2835_v27, 0.0 }
 0x353   : > { %v3551_v11 = vpack.c.bf16 %v2851_v24, %v2849_v23 }
 0x354   : > { %v3549_v32 = vpack.c.bf16 %v2852_v51, %v2850_v47 }
 0x356   : > { %3550 = vmatprep.subr.bf16.mxu1 %v3549_v32 }
 0x357   : > { %3552 = vmatpush1.bf16.msra.mxu1 %v3551_v11 }
 0x35a   : > { %3506 = vmatmul.mubr.msk.f32.vlgmr.msra.gmra.mrb[0].mxu1 %vm2699_vm0, %v2853_v8 }
 0x42d   : > { %v2933_v22 = vpop.f32.mrb[0].mxu1 }
 0x42e   : > { %v2934_v3 = vadd.f32 %v2933_v22, %v2863_v9  ;;  %v2935_v57 = vpop.f32.mrb[1].mxu1 }
 0x42f   : > { %v2936_v59 = vadd.f32 %v2935_v57, %v2863_v9 }
 0x430   : > { %v3507_v18 = vmul.f32 -1.442695, %v2934_v3 }
 0x431   : > { %v3508_v61 = vmul.f32 -1.442695, %v2936_v59 }
 0x432   : > { %3655 = vpow2.f32 %v3507_v18 }
 0x433   : > { %3657 = vpow2.f32 %v3508_v61 }
 0x43c   : > { %v3656_v37 = vpop.eup %3655 }
 0x43d   : > { %v3658_v42 = vpop.eup %3657  ;;  %v2944_v44 = vadd.f32 1.0, %v3656_v37 }
 0x43e   : > { %v2945_v48 = vadd.f32 1.0, %v3658_v42 }
 0x43f   : > { %3659 = vrcp.f32 %v2944_v44 }
 0x440   : > { %3661 = vrcp.f32 %v2945_v48 }
 0x449   : > { %v3660_v33 = vpop.eup %3659 }
 0x44a   : > { %v3662_v14 = vpop.eup %3661  ;;  %v2950_v26 = vmul.f32 1.9, %v3660_v33 }
 0x44b   : > { %v2951_v0 = vmul.f32 1.9, %v3662_v14 }
 0x44c   : > { %v2952_v12 = vadd.f32 0.1, %v2950_v26 }
 0x44d   : > { %v2953_v53 = vadd.f32 0.1, %v2951_v0 }
 0x44e   : > { %3663 = vrcp.f32 %v2952_v12 }
 0x44f   : > { %3665 = vrcp.f32 %v2953_v53  ;;  %v2981_v10 = vcombine.low %v2952_v12, %v2953_v53 }
 0x451   : > { %v2988_v4 = vrot.slane %v2981_v10, %v2964_v50 }
 0x453   : > { %v2995_v39 = vrot.slane %v2988_v4, %v2964_v50 }
 0x455   : > { %2997 = vst.msk [vmem:[%s400_s25] sm:$0x3] %vm6638_vm1, %v2995_v39 }
 0x456   : > { %3796 = shalt.err (!%p3793_p7)
}
 0x457   : > { %s3797_s19 = scalar_lea.hbm %s6647_s2, 32  ;;  %s3801_s21 = scalar_lea.hbm %s6740_s7, 64 }
 0x458   : > { %p3798_p11 = scmp.ne.s32.totalorder %s6647_s2, %s3797_s19  ;;  %p3802_p12 = scmp.lt.u32.totalorder %s6647_s2, %s6740_s7 }
 0x459   : > { %p3803_p13 = scmp.lt.u32.totalorder %s3801_s21, %s3797_s19  ;;  %p3805_p2 = scmp.lt.u32.totalorder %s3797_s19, %s6647_s2 }
 0x45a   : > { %p3799_p1 = pnand %p3798_p11, %p7923_p6 }
 0x45b   : > { %p3804_p0 = por %p3803_p13, %p3802_p12 }
 0x45c   : > { %p3800_p8 = pneg %p3799_p1 }
 0x45d   : > { %p3806_p10 = por %p3805_p2, %p3804_p0 }
 0x45f   : > { %p3807_p3 = pnand %p3806_p10, %p3800_p8 }
 0x461   : > { %3810 = shalt.err (!%p3807_p3)
}
 0x462   : > { %3566 = dma.vmem_to_hbm [thread:$0]  (%p7923_p6), %s6649_s8, 32, %s6647_s2, %s3004_s4   ;;  %v3664_v38 = vpop.eup %3663 }
 0x463   : > { %v3666_v56 = vpop.eup %3665  ;;  %s393_s12 = scalar_lea.vmem [#allocation11], %s3217_s13  ;;  %s6682_s23 = scalar_lea.hbm %s6739_s6, %s3519_s20 }
 0x464   : > { %v2958_v15 = vcombine.low %v3664_v38, %v3666_v56  ;;  %s3020_s25 = sshll.u32 %s393_s12, 4  ;;  %s2999_s8 = scalar_lea.sflag [#allocation5], %s4197_s24  ;;  %s6684_s25 = int_to_ptr.vmem [resolvable:$true] %s3020_s25 }
 0x465   : > { %s3811_s2 = scalar_lea.vmem %s6684_s25, 32  ;;  %s3923_s29 = smov [#allocation11]  }
 0x466   : > { %v2965_v63 = vrot.slane %v2958_v15, %v2964_v50  ;;  %p3812_p4 = scmp.ne.s32.totalorder %s6684_s25, %s3811_s2  ;;  %s3815_s13 = sshll.u32 %s3923_s29, 4  ;;  %s3816_s13 = int_to_ptr.vmem [resolvable:$false] %s3815_s13 }
 0x467   : > { %s3817_s4 = scalar_lea.vmem %s3816_s13, 64  ;;  %p3818_p7 = scmp.lt.s32.totalorder %s6684_s25, %s3816_s13 }
 0x468   : > { %v2972_v20 = vrot.slane %v2965_v63, %v2964_v50  ;;  %p3813_p9 = pnand %p3812_p4, %p7923_p6  ;;  %p3819_p11 = scmp.lt.s32.totalorder %s3817_s4, %s3811_s2 }
 0x46a   : > { %2978 = vst.msk [vmem:[%s393_s12] sm:$0x3] %vm6638_vm1, %v2972_v20  ;;  %p3814_p5 = pneg %p3813_p9  ;;  %p3820_p1 = por %p3819_p11, %p3818_p7 }
 0x46c   : > { %p3821_p8 = pnand %p3820_p1, %p3814_p5 }
 0x46e   : > { %3824 = shalt.err (!%p3821_p8)
}
 0x46f   : > { %s3825_s24 = scalar_lea.hbm %s6682_s23, 32  ;;  %s3829_s22 = scalar_lea.hbm %s6739_s6, 64 }
 0x470   : > { %p3826_p12 = scmp.ne.s32.totalorder %s6682_s23, %s3825_s24  ;;  %p3830_p2 = scmp.lt.u32.totalorder %s6682_s23, %s6739_s6 }
 0x471   : > { %p3831_p10 = scmp.lt.u32.totalorder %s3829_s22, %s3825_s24  ;;  %p3833_p4 = scmp.lt.u32.totalorder %s3825_s24, %s6682_s23 }
 0x472   : > { %p3827_p13 = pnand %p3826_p12, %p7923_p6 }
 0x473   : > { %p3832_p3 = por %p3831_p10, %p3830_p2 }
 0x474   : > { %p3828_p0 = pneg %p3827_p13 }
 0x475   : > { %p3834_p9 = por %p3833_p4, %p3832_p3 }
 0x477   : > { %p3835_p5 = pnand %p3834_p9, %p3828_p0 }
 0x479   : > { %3838 = shalt.err (!%p3835_p5)
}
 0x47a   : > { %3565 = dma.vmem_to_hbm [thread:$0]  (%p7923_p6), %s6684_s25, 32, %s6682_s23, %s2999_s8  }
 0x47b PF: > { %s3048_s28 = sand.u32 1, %s3889_s26   ;;  %p7924_p7 = scmp.ne.s32.totalorder %s7217_s11, 0 }
 0x47c   : > { %p7925_p11 = scmp.ge.s32.totalorder %s3909_s5, 2  ;;  %s3049_s17 = scalar_lea.sflag [#allocation5], %s3048_s28 }
 0x47e   : > { %p3584_p1 = pnand %p7925_p11, %p7924_p7 }
 0x480   : > { %3880 = dma.done.wait (!%p3584_p1), %s3049_s17, 32  }
 0x481   : > { %3882 = vsyncadd (!%p3584_p1), %s3049_s17, 4294967264  ;;  %s3058_s21 = scalar_lea.sflag [#allocation13], %s3048_s28 }
 0x482   : > { %3884 = dma.done.wait (!%p3584_p1), %s3058_s21, 32  }
 0x483   : > { %3886 = vsyncadd (!%p3584_p1), %s3058_s21, 4294967264  ;;  %s33_s5 = sadd.s32 1, %s3909_s5   ;;  %s7926_s15 = sld [smem:[#allocation20_spill]] }
 0x484   : > { %p30_p8 = scmp.ge.s32.totalorder %s33_s5, 4   ;;  %s7927_s28 = sld [smem:[#allocation22_spill]] }
 0x485   : > { %s7928_s0 = sld [smem:[#allocation21_spill]]  ;;  %s7929_s26 = smov %s3893_s27 }
 0x486   : > { %s7931_s29 = smov %s3905_s30  ;;  %32 = sbr.rel (!%p30_p8) target bundleno = 15 (0xf), region = 189 }
 0x489   : > { %s7930_s27 = smov %s7926_s15 }
 0x48b   : > { %s7932_s30 = smov %s7928_s0 }
 0x48d   :  { %3063 = vsyncpa [#allocation4], 1 }
 0x48e   :  { %3065 = vsyncpa [#allocation4 + $0x1], 1 }
 0x48f   :  { %3066 = vsyncpa [#allocation7], 1 }
 0x490   :  { %3068 = vsyncpa [#allocation7 + $0x1], 1 }
 0x491   :  { %3069 = vsyncpa [#allocation10], 1 }
 0x492   :  { %3070 = vsyncpa [#allocation5], 1 }
 0x493   :  { %3072 = vsyncpa [#allocation5 + $0x1], 1 }
 0x494   :  { %3073 = vsyncpa [#allocation13], 1 }
 0x495   :  { %3075 = vsyncpa [#allocation13 + $0x1], 1 }

</bundles_post_ra>
